<compile_context>
chip_gen: v7x
topology: tpu7x:2x2x1
jax: 0.10.0
libtpu: 0.0.40
codegen_flags: <defaults>
</compile_context>

<pallas_src>
import functools
import math

import numpy as np
import jax
import jax.numpy as jnp
from jax import lax
from jax.experimental import pallas as pl
from jax.experimental.pallas import tpu as pltpu


MATMUL_DTYPE = jnp.bfloat16      # MXU operand dtype (accumulation stays f32)
ACT_DTYPE = jnp.bfloat16         # inter-layer activation storage dtype
GN_EPS = 1e-5

# Everything here is tiny, but give the pipeline explicit VMEM headroom (review).
_CPARAMS = pltpu.CompilerParams(vmem_limit_bytes=32 * 1024 * 1024)


# ----------------------------------------------------------------------------
# Folded activation layout (host-side constants)
# ----------------------------------------------------------------------------

def make_layout(batch, length, margin):
    """Per-resolution layout: (C, W) slabs with W = batch * seg, lane-dense."""
    off = int(margin)
    s_min = off + length + int(margin)
    g = 128 // math.gcd(batch, 128)          # segment granularity so W % 128 == 0
    seg = ((s_min + g - 1) // g) * g
    width = batch * seg
    mask = np.zeros((1, width), np.float32)
    selw = np.zeros((width, batch), np.float32)
    for b in range(batch):
        lo = b * seg + off
        mask[0, lo:lo + length] = 1.0
        selw[lo:lo + length, b] = 1.0
    return {
        "B": batch, "L": length, "S": seg, "OFF": off, "W": width,
        "mask": jnp.asarray(mask),            # (1, W) valid-column mask
        "selw": jnp.asarray(selw),            # (W, B) per-batch column selector
        "selt": jnp.asarray(selw.T.copy()),   # (B, W) broadcast-back selector
    }


def fold_to_layout(x, lay, dtype):
    """(B, C, L) -> (C, W) with exact zeros outside the valid columns."""
    B, C, L = x.shape
    xp = jnp.pad(x, ((0, 0), (0, 0), (lay["OFF"], lay["S"] - lay["OFF"] - L)))
    return jnp.transpose(xp, (1, 0, 2)).reshape(C, lay["W"]).astype(dtype)


def unfold_from_layout(a, lay, dtype=jnp.float32):
    """(C, W) -> (B, C, L)."""
    C = a.shape[0]
    a3 = jnp.transpose(a.reshape(C, lay["B"], lay["S"]), (1, 0, 2))
    return lax.slice_in_dim(a3, lay["OFF"], lay["OFF"] + lay["L"], axis=2).astype(dtype)


def make_down_select(lay_in, lay_out, factor):
    """0/1 (W_in, W_out) matrix keeping every `factor`-th valid column (strided conv)."""
    d = np.zeros((lay_in["W"], lay_out["W"]), np.float32)
    for b in range(lay_in["B"]):
        for t in range(lay_out["L"]):
            d[b * lay_in["S"] + lay_in["OFF"] + factor * t,
              b * lay_out["S"] + lay_out["OFF"] + t] = 1.0
    return jnp.asarray(d)


def make_up_stuff(lay_in, lay_out, factor):
    """0/1 (W_in, W_out) matrix zero-stuffing valid columns by `factor` (transposed conv)."""
    u = np.zeros((lay_in["W"], lay_out["W"]), np.float32)
    for b in range(lay_in["B"]):
        for m in range(lay_in["L"]):
            u[b * lay_in["S"] + lay_in["OFF"] + m,
              b * lay_out["S"] + lay_out["OFF"] + factor * m] = 1.0
    return jnp.asarray(u)


# ----------------------------------------------------------------------------
# In-kernel helpers (operate on values inside Pallas kernels)
# ----------------------------------------------------------------------------

def _shift_cols(a, delta):
    """out[:, j] = a[:, j + delta], zero-filled outside [0, W).  Static delta.
    (pltpu.roll(a, (-delta) % W, axis=1) is the XLU-native variant for large W.)"""
    W = a.shape[-1]
    if delta == 0:
        return a
    z = jnp.zeros((a.shape[0], abs(delta)), a.dtype)
    if delta > 0:
        return jnp.concatenate([a[:, delta:], z], axis=1)
    return jnp.concatenate([z, a[:, :W + delta]], axis=1)


def _snake(x, alpha, inv_alpha):
    s = jnp.sin(alpha * x)
    return x + s * s * inv_alpha


def _gn_snake(x, gnp, avg, bct, selw, selt):
    """Per-batch-segment GroupNorm + Snake on a folded (C, W) slab.

    x must have exact zeros outside valid columns; the result also has exact
    zeros there (scale/shift are broadcast only onto valid columns via `selt`
    and snake(0)==0), so no extra masking is needed before the conv.
    """
    s1 = jnp.dot(x, selw, preferred_element_type=jnp.float32)        # (C, B)
    s2 = jnp.dot(x * x, selw, preferred_element_type=jnp.float32)    # (C, B)
    gm = jnp.dot(avg, s1, preferred_element_type=jnp.float32)        # (G, B) E[x]
    gq = jnp.dot(avg, s2, preferred_element_type=jnp.float32)        # (G, B) E[x^2]
    gv = jnp.maximum(gq - gm * gm, 0.0)
    mean = jnp.dot(bct, gm, preferred_element_type=jnp.float32)      # (C, B)
    var = jnp.dot(bct, gv, preferred_element_type=jnp.float32)       # (C, B)
    gamma, beta = gnp[:, 0:1], gnp[:, 1:2]
    alpha, inv_alpha = gnp[:, 2:3], gnp[:, 3:4]
    scale = gamma * lax.rsqrt(var + GN_EPS)                          # (C, B)
    shift = beta - mean * scale                                      # (C, B)
    scale_w = jnp.dot(scale, selt, preferred_element_type=jnp.float32)  # (C, W)
    shift_w = jnp.dot(shift, selt, preferred_element_type=jnp.float32)
    return _snake(x * scale_w + shift_w, alpha, inv_alpha)


def _conv_taps(a, w_ref, ntaps, dil, padl):
    """Stride-1 dilated conv on a folded slab: K accumulating MXU matmuls."""
    acc = None
    for k in range(ntaps):
        ak = _shift_cols(a, k * dil - padl)
        part = jnp.dot(w_ref[k], ak.astype(MATMUL_DTYPE),
                       preferred_element_type=jnp.float32)
        acc = part if acc is None else acc + part
    return acc


# ----------------------------------------------------------------------------
# Pallas kernels
# ----------------------------------------------------------------------------

def _resnet_kernel(*refs, k1, dil1, pad1, res_mode):
    """Fused ResnetBlock1d: [GN+Snake+conv(k1,dil1)] -> [GN+Snake+conv1] (+ residual)."""
    (x_ref, mask_ref, selw_ref, selt_ref,
     gn1_ref, avg1_ref, bct1_ref, w1_ref, b1_ref,
     gn2_ref, avg2_ref, bct2_ref, w2_ref, b2_ref) = refs[:14]
    if res_mode == "conv":
        wres_ref, bres_ref = refs[14], refs[15]
        out_ref = refs[16]
    else:
        out_ref = refs[14]

    x = x_ref[...].astype(jnp.float32)
    mask = mask_ref[...]
    selw = selw_ref[...]
    selt = selt_ref[...]

    # block1
    a1 = _gn_snake(x, gn1_ref[...], avg1_ref[...], bct1_ref[...], selw, selt)
    h = _conv_taps(a1, w1_ref, k1, dil1, pad1) + b1_ref[...]
    h = h * mask                      # restore exact-zero margins for block2's GN

    # block2 (kernel_size 1)
    a2 = _gn_snake(h, gn2_ref[...], avg2_ref[...], bct2_ref[...], selw, selt)
    g = _conv_taps(a2, w2_ref, 1, 1, 0) + b2_ref[...]

    if res_mode == "conv":
        g = g + jnp.dot(wres_ref[...], x.astype(MATMUL_DTYPE),
                        preferred_element_type=jnp.float32) + bres_ref[...]
    elif res_mode == "identity":
        g = g + x
    out_ref[...] = (g * mask).astype(out_ref.dtype)


def _act_conv_kernel(*refs, mode, resample, ntaps, dil, padl):
    """[Snake | identity] -> stride-1 conv, optionally fused with the strided-conv
    down-selection or the transposed-conv zero-stuffing (constant 0/1 matmuls)."""
    idx = 0
    x_ref = refs[idx]; idx += 1
    mask_ref = refs[idx]; idx += 1
    if mode == "snake":
        al_ref = refs[idx]; idx += 1
    w_ref = refs[idx]; b_ref = refs[idx + 1]; idx += 2
    sel_ref = None
    if resample is not None:
        sel_ref = refs[idx]; idx += 1
    out_ref = refs[idx]

    x = x_ref[...].astype(jnp.float32)
    if mode == "snake":
        al = al_ref[...]
        a = _snake(x, al[:, 0:1], al[:, 1:2])     # snake(0)==0 keeps margins zero
    else:
        a = x
    if resample == "up":
        a = jnp.dot(a, sel_ref[...], preferred_element_type=jnp.float32)
    acc = _conv_taps(a, w_ref, ntaps, dil, padl) + b_ref[...]
    if resample == "down":
        acc = jnp.dot(acc, sel_ref[...], preferred_element_type=jnp.float32)
    out_ref[...] = (acc * mask_ref[...]).astype(out_ref.dtype)


def _vae_kernel(z_ref, n_ref, mask_ref, zo_ref, kl_ref, *, zc):
    z = z_ref[...].astype(jnp.float32)
    mean, scale = z[:zc, :], z[zc:, :]
    # softplus with PyTorch threshold-20 semantics
    sp = jnp.where(scale > 20.0, scale,
                   jnp.log1p(jnp.exp(jnp.minimum(scale, 20.0))))
    std = sp + 0.01
    var = std * std
    logvar = 2.0 * jnp.log(std)
    mask = mask_ref[...]
    zo_ref[...] = ((n_ref[...] * std + mean) * mask).astype(zo_ref.dtype)
    kl = mean * mean + var - logvar - 1.0
    kl_ref[...] = jnp.sum(kl, axis=0, keepdims=True) * mask


# ----------------------------------------------------------------------------
# pallas_call wrappers (no grid: whole lane-dense slabs resident in VMEM)
# ----------------------------------------------------------------------------

def resnet_forward(p, x_lay, lay, out_dtype=ACT_DTYPE):
    args = [x_lay, lay["mask"], lay["selw"], lay["selt"],
            p["gn1"], p["avg1"], p["bct1"], p["w1"], p["b1"],
            p["gn2"], p["avg2"], p["bct2"], p["w2"], p["b2"]]
    if p["res_mode"] == "conv":
        args += [p["wres"], p["bres"]]
    kernel = functools.partial(_resnet_kernel, k1=p["k1"], dil1=p["dil1"],
                               pad1=p["pad1"], res_mode=p["res_mode"])
    cout = p["w1"].shape[1]
    return pl.pallas_call(
        kernel,
        out_shape=jax.ShapeDtypeStruct((cout, lay["W"]), out_dtype),
        compiler_params=_CPARAMS,
    )(*args)


def act_conv_forward(x_lay, w_taps, bias, mask_out, *, mode="none",
                     alpha_pack=None, resample=None, sel=None, dil=1, padl=0,
                     out_dtype=ACT_DTYPE):
    args = [x_lay, mask_out]
    if mode == "snake":
        args.append(alpha_pack)
    args += [w_taps, bias]
    if resample is not None:
        args.append(sel)
    kernel = functools.partial(_act_conv_kernel, mode=mode, resample=resample,
                               ntaps=w_taps.shape[0], dil=dil, padl=padl)
    return pl.pallas_call(
        kernel,
        out_shape=jax.ShapeDtypeStruct((w_taps.shape[1], mask_out.shape[-1]),
                                       out_dtype),
        compiler_params=_CPARAMS,
    )(*args)


def vae_forward(z_enc_lay, noise_lay, lay, zc):
    z_out, kl_cols = pl.pallas_call(
        functools.partial(_vae_kernel, zc=zc),
        out_shape=(jax.ShapeDtypeStruct((zc, lay["W"]), jnp.float32),
                   jax.ShapeDtypeStruct((1, lay["W"]), jnp.float32)),
        compiler_params=_CPARAMS,
    )(z_enc_lay, noise_lay, lay["mask"])
    regloss = jnp.sum(kl_cols) / (lay["B"] * lay["L"])
    return z_out, regloss


# ----------------------------------------------------------------------------
# Deterministic parameter initialization (mirrors the module structure)
# ----------------------------------------------------------------------------

_KEY = [jax.random.PRNGKey(0)]


def _next_key():
    _KEY[0], sub = jax.random.split(_KEY[0])
    return sub


def conv_weight(cin, cout, k):
    w = jax.random.normal(_next_key(), (cout, cin, k), jnp.float32) / np.sqrt(cin * k)
    b = jax.random.normal(_next_key(), (cout,), jnp.float32) * 0.05
    return w, b


def pack_taps(w):
    # (Cout, Cin, K) -> (K, Cout, Cin) in the MXU dtype
    return jnp.transpose(w, (2, 0, 1)).astype(MATMUL_DTYPE)


def bias_col(b):
    return b.reshape(-1, 1).astype(jnp.float32)


def gn_pack(c):
    # per-channel [gamma, beta, snake alpha, 1/(alpha+eps)]
    g = np.ones((c, 1), np.float32)
    z = np.zeros((c, 1), np.float32)
    a = np.ones((c, 1), np.float32)
    return jnp.asarray(np.concatenate([g, z, a, 1.0 / (a + 1e-9)], axis=1))


def snake_pack(c):
    a = np.ones((c, 1), np.float32)
    return jnp.asarray(np.concatenate([a, 1.0 / (a + 1e-9)], axis=1))


def gn_mats(c, groups, valid_len):
    cg = c // groups
    onehot = ((np.arange(c) // cg)[None, :] == np.arange(groups)[:, None]
              ).astype(np.float32)
    return jnp.asarray(onehot / float(cg * valid_len)), jnp.asarray(onehot.T.copy())


def init_resnet(cin, cout, k, dilation, num_groups, lay, use_res=True):
    w1, b1 = conv_weight(cin, cout, k)
    w2, b2 = conv_weight(cout, cout, 1)
    avg1, bct1 = gn_mats(cin, min(cin, num_groups), lay["L"])
    avg2, bct2 = gn_mats(cout, min(cout, 8), lay["L"])   # block2 uses default groups=8
    p = {"gn1": gn_pack(cin), "avg1": avg1, "bct1": bct1,
         "w1": pack_taps(w1), "b1": bias_col(b1),
         "gn2": gn_pack(cout), "avg2": avg2, "bct2": bct2,
         "w2": pack_taps(w2), "b2": bias_col(b2),
         "k1": k, "dil1": dilation, "pad1": ((k - 1) * dilation) // 2}
    if not use_res:
        p["res_mode"] = "none"
    elif cin == cout:
        p["res_mode"] = "identity"
    else:
        wr, br = conv_weight(cin, cout, 1)
        p["wres"] = wr[:, :, 0].astype(MATMUL_DTYPE)
        p["bres"] = bias_col(br)
        p["res_mode"] = "conv"
    return p


def init_encoder(in_ch, channels, multipliers, factors, num_blocks, dilations, k,
                 resnet_groups, out_ch, layouts):
    p = {"to_in": init_resnet(in_ch, channels * multipliers[0], k, 1, 8, layouts[0]),
         "down": []}
    for i, f in enumerate(factors):
        cin, cout = channels * multipliers[i], channels * multipliers[i + 1]
        wd, bd = conv_weight(cin, cout, 2 * f)
        p["down"].append({
            "res": [init_resnet(cin, cin, k, dilations[j], resnet_groups, layouts[i])
                    for j in range(num_blocks[i])],
            "alpha": snake_pack(cin),
            "wd": pack_taps(wd), "bd": bias_col(bd),
            "padl": f // 2,                              # get_padding(2f, f) left pad
            "dsel": make_down_select(layouts[i], layouts[i + 1], f),
        })
    cl = channels * multipliers[-1]
    w, b = conv_weight(cl, out_ch, 3)
    p["alpha_out"] = snake_pack(cl)
    p["w_out"] = pack_taps(w)
    p["b_out"] = bias_col(b)
    return p


def encoder_forward(p, h, layouts):
    h = resnet_forward(p["to_in"], h, layouts[0])
    for i, dp in enumerate(p["down"]):
        for rp in dp["res"]:
            h = resnet_forward(rp, h, layouts[i])
        h = act_conv_forward(h, dp["wd"], dp["bd"], layouts[i + 1]["mask"],
                             mode="snake", alpha_pack=dp["alpha"],
                             resample="down", sel=dp["dsel"], dil=1, padl=dp["padl"])
    return act_conv_forward(h, p["w_out"], p["b_out"], layouts[-1]["mask"],
                            mode="snake", alpha_pack=p["alpha_out"], dil=1, padl=1)


def init_decoder(out_ch, channels, multipliers, factors, num_blocks, dilations, k,
                 resnet_groups, in_ch, layouts_dec):
    w, b = conv_weight(in_ch, channels * multipliers[0], k)
    p = {"w_in": pack_taps(w), "b_in": bias_col(b), "pad_in": (k - 1) // 2, "up": []}
    for i, f in enumerate(factors):
        cin, cout = channels * multipliers[i], channels * multipliers[i + 1]
        up = {"alpha": snake_pack(cin), "factor": f}
        if f == 1:
            wu, bu = conv_weight(cin, cout, 3)
            up.update(w=pack_taps(wu), b=bias_col(bu), padl=1, resample=None, sel=None)
        else:
            # TODO(synk): odd upsample factors change the ConvTranspose output length
            # ((L-1)*f + 2f - 2*(f//2)); only even factors are laid out here.
            assert f % 2 == 0
            wt = (jax.random.normal(_next_key(), (cin, cout, 2 * f), jnp.float32)
                  / np.sqrt(cin * 2 * f))
            bu = jax.random.normal(_next_key(), (cout,), jnp.float32) * 0.05
            # ConvTranspose1d == zero-stuff + stride-1 conv with flipped/transposed taps.
            # TODO(synk): a true polyphase split would avoid the structurally-zero
            # columns of the zero-stuffed slab (~2x MXU flops saved).
            wf = jnp.flip(jnp.transpose(wt, (1, 0, 2)), axis=-1)
            up.update(w=pack_taps(wf), b=bias_col(bu), padl=2 * f - 1 - f // 2,
                      resample="up",
                      sel=make_up_stuff(layouts_dec[i], layouts_dec[i + 1], f))
        up["res"] = [init_resnet(cout, cout, k, dilations[j], resnet_groups,
                                 layouts_dec[i + 1])
                     for j in range(num_blocks[i])]
        p["up"].append(up)
    # ResnetBlock1dNoRes (use_loudness=False, use_noise=False)
    p["to_out"] = init_resnet(channels * multipliers[-1], out_ch, k, 1, 8,
                              layouts_dec[-1], use_res=False)
    return p


def decoder_forward(p, h, layouts_dec):
    h = act_conv_forward(h, p["w_in"], p["b_in"], layouts_dec[0]["mask"],
                         mode="none", dil=1, padl=p["pad_in"])
    for i, up in enumerate(p["up"]):
        lay_out = layouts_dec[i + 1]
        h = act_conv_forward(h, up["w"], up["b"], lay_out["mask"], mode="snake",
                             alpha_pack=up["alpha"], resample=up["resample"],
                             sel=up["sel"], dil=1, padl=up["padl"])
        for rp in up["res"]:
            h = resnet_forward(rp, h, lay_out)
    return resnet_forward(p["to_out"], h, layouts_dec[-1], out_dtype=jnp.float32)


def init_autoencoder(in_channels, channels, z_channels, multipliers, factors,
                     dilations, kernel_size, resnet_groups=8, decoder_ratio=1,
                     batch=2, length=64):
    num_blocks = [3] * len(factors)
    n_levels = len(factors) + 1
    margin_res = max((kernel_size - 1) * max(dilations), 2 * max(factors), 4)
    margin_bot = max(kernel_size - 1, 2 * max(factors), 4)
    layouts, lc = [], length
    for lvl in range(n_levels):
        layouts.append(make_layout(batch, lc,
                                   margin_bot if lvl == n_levels - 1 else margin_res))
        if lvl < len(factors):
            assert lc % factors[lvl] == 0
            lc //= factors[lvl]
    p = {"layouts": layouts, "z_channels": z_channels}
    p["encoder"] = init_encoder(in_channels, channels, multipliers, factors,
                                num_blocks, dilations, kernel_size, resnet_groups,
                                z_channels * 2, layouts)        # VAE -> mean & scale
    dec_mult = [int(m * decoder_ratio) for m in multipliers[::-1]]
    p["decoder"] = init_decoder(in_channels, channels, dec_mult, factors[::-1],
                                num_blocks[::-1], dilations, kernel_size,
                                resnet_groups, z_channels, layouts[::-1])
    return p


def autoencoder_forward(p, x, noise_key):
    layouts = p["layouts"]
    lay0, layb = layouts[0], layouts[-1]
    x_multiband = x                                  # pqmf_bands=0 -> identity
    h = fold_to_layout(x, lay0, jnp.float32)
    z_enc = encoder_forward(p["encoder"], h, layouts)
    zc = p["z_channels"]
    noise = jax.random.normal(noise_key, (zc, layb["W"]), jnp.float32)
    z_lay, regloss = vae_forward(z_enc, noise, layb, zc)
    y_lay = decoder_forward(p["decoder"], z_lay.astype(ACT_DTYPE), layouts[::-1])
    y = unfold_from_layout(y_lay, lay0, jnp.float32)
    z = unfold_from_layout(z_lay, layb, jnp.float32)
    # TODO(synk): with pqmf_bands<=1 the reference forward references an undefined `y`
    # (pqmf.inverse never runs); here y := y_multiband := decoder output.
    return y, y, z, regloss, x_multiband


# ----------------------------------------------------------------------------
# Main
# ----------------------------------------------------------------------------

if __name__ == "__main__":
    B, IN_CH, L = 2, 2, 64
    CHANNELS, Z_CH = 8, 4
    MULTIPLIERS, FACTORS = [1, 2], [2]
    DILATIONS, KSIZE, GROUPS = [1, 3, 9], 3, 4

    params = init_autoencoder(IN_CH, CHANNELS, Z_CH, MULTIPLIERS, FACTORS,
                              DILATIONS, KSIZE, resnet_groups=GROUPS,
                              batch=B, length=L)

    key = jax.random.PRNGKey(0)
    k_x, k_noise = jax.random.split(key)
    x = jax.random.normal(k_x, (B, IN_CH, L), jnp.float32)

    fwd = jax.jit(functools.partial(autoencoder_forward, params))
    y, y_mb, z, regloss, x_mb = fwd(x, k_noise)
    jax.block_until_ready((y, y_mb, z, regloss, x_mb))

    assert y.shape == (B, IN_CH, L)
    assert z.shape == (B, Z_CH, L // int(np.prod(FACTORS)))
    assert regloss.shape == ()
    assert bool(jnp.all(jnp.isfinite(y))) and bool(jnp.isfinite(regloss))
    print("KERNEL_OK")
</pallas_src>

<mosaic_0001>
module attributes {stable_mosaic.version = 11 : i64} {
  func.func @_resnet_kernel(%arg0: memref<8x256xbf16, #tpu.memory_space<vmem>>, %arg1: memref<1x256xf32, #tpu.memory_space<vmem>>, %arg2: memref<256x2xf32, #tpu.memory_space<vmem>>, %arg3: memref<2x256xf32, #tpu.memory_space<vmem>>, %arg4: memref<8x4xf32, #tpu.memory_space<vmem>>, %arg5: memref<4x8xf32, #tpu.memory_space<vmem>>, %arg6: memref<8x4xf32, #tpu.memory_space<vmem>>, %arg7: memref<3x8x8xbf16, #tpu.memory_space<vmem>>, %arg8: memref<8x1xf32, #tpu.memory_space<vmem>>, %arg9: memref<8x4xf32, #tpu.memory_space<vmem>>, %arg10: memref<8x8xf32, #tpu.memory_space<vmem>>, %arg11: memref<8x8xf32, #tpu.memory_space<vmem>>, %arg12: memref<1x8x8xbf16, #tpu.memory_space<vmem>>, %arg13: memref<8x1xf32, #tpu.memory_space<vmem>>, %arg14: memref<8x256xbf16, #tpu.memory_space<vmem>>) attributes {dimension_semantics = [], scalar_prefetch = 0 : i64, scratch_operands = 0 : i64, tpu.core_type = #tpu.core_type<tc>} {
    %c0 = arith.constant 0 : index
    %c0_0 = arith.constant 0 : index
    %0 = vector.load %arg0[%c0, %c0_0] : memref<8x256xbf16, #tpu.memory_space<vmem>>, vector<8x256xbf16>
    %1 = arith.extf %0 : vector<8x256xbf16> to vector<8x256xf32>
    %c0_1 = arith.constant 0 : index
    %c0_2 = arith.constant 0 : index
    %2 = vector.load %arg1[%c0_1, %c0_2] : memref<1x256xf32, #tpu.memory_space<vmem>>, vector<1x256xf32>
    %c0_3 = arith.constant 0 : index
    %c0_4 = arith.constant 0 : index
    %3 = vector.load %arg2[%c0_3, %c0_4] : memref<256x2xf32, #tpu.memory_space<vmem>>, vector<256x2xf32>
    %c0_5 = arith.constant 0 : index
    %c0_6 = arith.constant 0 : index
    %4 = vector.load %arg3[%c0_5, %c0_6] : memref<2x256xf32, #tpu.memory_space<vmem>>, vector<2x256xf32>
    %c0_7 = arith.constant 0 : index
    %c0_8 = arith.constant 0 : index
    %5 = vector.load %arg4[%c0_7, %c0_8] : memref<8x4xf32, #tpu.memory_space<vmem>>, vector<8x4xf32>
    %c0_9 = arith.constant 0 : index
    %c0_10 = arith.constant 0 : index
    %6 = vector.load %arg5[%c0_9, %c0_10] : memref<4x8xf32, #tpu.memory_space<vmem>>, vector<4x8xf32>
    %c0_11 = arith.constant 0 : index
    %c0_12 = arith.constant 0 : index
    %7 = vector.load %arg6[%c0_11, %c0_12] : memref<8x4xf32, #tpu.memory_space<vmem>>, vector<8x4xf32>
    %cst = arith.constant dense<0.000000e+00> : vector<8x2xf32>
    %8 = tpu.matmul %1, %3, %cst {dimension_numbers = #tpu.dot_dimension_numbers<[1], [0], [0], [1], [0, 0, 1, 1], [], []>} : vector<8x256xf32>, vector<256x2xf32>, vector<8x2xf32> -> vector<8x2xf32>
    %9 = arith.mulf %1, %1 : vector<8x256xf32>
    %cst_13 = arith.constant dense<0.000000e+00> : vector<8x2xf32>
    %10 = tpu.matmul %9, %3, %cst_13 {dimension_numbers = #tpu.dot_dimension_numbers<[1], [0], [0], [1], [0, 0, 1, 1], [], []>} : vector<8x256xf32>, vector<256x2xf32>, vector<8x2xf32> -> vector<8x2xf32>
    %cst_14 = arith.constant dense<0.000000e+00> : vector<4x2xf32>
    %11 = tpu.matmul %6, %8, %cst_14 {dimension_numbers = #tpu.dot_dimension_numbers<[1], [0], [0], [1], [0, 0, 1, 1], [], []>} : vector<4x8xf32>, vector<8x2xf32>, vector<4x2xf32> -> vector<4x2xf32>
    %cst_15 = arith.constant dense<0.000000e+00> : vector<4x2xf32>
    %12 = tpu.matmul %6, %10, %cst_15 {dimension_numbers = #tpu.dot_dimension_numbers<[1], [0], [0], [1], [0, 0, 1, 1], [], []>} : vector<4x8xf32>, vector<8x2xf32>, vector<4x2xf32> -> vector<4x2xf32>
    %13 = arith.mulf %11, %11 : vector<4x2xf32>
    %14 = arith.subf %12, %13 : vector<4x2xf32>
    %cst_16 = arith.constant 0.000000e+00 : f32
    %15 = vector.broadcast %cst_16 : f32 to vector<4x2xf32>
    %16 = arith.maximumf %14, %15 : vector<4x2xf32>
    %cst_17 = arith.constant dense<0.000000e+00> : vector<8x2xf32>
    %17 = tpu.matmul %7, %11, %cst_17 {dimension_numbers = #tpu.dot_dimension_numbers<[1], [0], [0], [1], [0, 0, 1, 1], [], []>} : vector<8x4xf32>, vector<4x2xf32>, vector<8x2xf32> -> vector<8x2xf32>
    %cst_18 = arith.constant dense<0.000000e+00> : vector<8x2xf32>
    %18 = tpu.matmul %7, %16, %cst_18 {dimension_numbers = #tpu.dot_dimension_numbers<[1], [0], [0], [1], [0, 0, 1, 1], [], []>} : vector<8x4xf32>, vector<4x2xf32>, vector<8x2xf32> -> vector<8x2xf32>
    %19 = vector.extract_strided_slice %5 {offsets = [0, 0], sizes = [8, 1], strides = [1, 1]} : vector<8x4xf32> to vector<8x1xf32>
    %20 = vector.extract_strided_slice %5 {offsets = [0, 1], sizes = [8, 1], strides = [1, 1]} : vector<8x4xf32> to vector<8x1xf32>
    %21 = vector.extract_strided_slice %5 {offsets = [0, 2], sizes = [8, 1], strides = [1, 1]} : vector<8x4xf32> to vector<8x1xf32>
    %22 = vector.extract_strided_slice %5 {offsets = [0, 3], sizes = [8, 1], strides = [1, 1]} : vector<8x4xf32> to vector<8x1xf32>
    %cst_19 = arith.constant 9.99999974E-6 : f32
    %23 = vector.broadcast %cst_19 : f32 to vector<8x2xf32>
    %24 = arith.addf %18, %23 : vector<8x2xf32>
    %25 = math.rsqrt %24 : vector<8x2xf32>
    %26 = vector.broadcast %19 : vector<8x1xf32> to vector<8x2xf32>
    %27 = arith.mulf %26, %25 : vector<8x2xf32>
    %28 = arith.mulf %17, %27 : vector<8x2xf32>
    %29 = vector.broadcast %20 : vector<8x1xf32> to vector<8x2xf32>
    %30 = arith.subf %29, %28 : vector<8x2xf32>
    %cst_20 = arith.constant dense<0.000000e+00> : vector<8x256xf32>
    %31 = tpu.matmul %27, %4, %cst_20 {dimension_numbers = #tpu.dot_dimension_numbers<[1], [0], [0], [1], [0, 0, 1, 1], [], []>} : vector<8x2xf32>, vector<2x256xf32>, vector<8x256xf32> -> vector<8x256xf32>
    %cst_21 = arith.constant dense<0.000000e+00> : vector<8x256xf32>
    %32 = tpu.matmul %30, %4, %cst_21 {dimension_numbers = #tpu.dot_dimension_numbers<[1], [0], [0], [1], [0, 0, 1, 1], [], []>} : vector<8x2xf32>, vector<2x256xf32>, vector<8x256xf32> -> vector<8x256xf32>
    %33 = arith.mulf %1, %31 : vector<8x256xf32>
    %34 = arith.addf %33, %32 : vector<8x256xf32>
    %35 = vector.broadcast %21 : vector<8x1xf32> to vector<8x256xf32>
    %36 = arith.mulf %35, %34 : vector<8x256xf32>
    %37 = math.sin %36 : vector<8x256xf32>
    %38 = arith.mulf %37, %37 : vector<8x256xf32>
    %39 = vector.broadcast %22 : vector<8x1xf32> to vector<8x256xf32>
    %40 = arith.mulf %38, %39 : vector<8x256xf32>
    %41 = arith.addf %34, %40 : vector<8x256xf32>
    %cst_22 = arith.constant 0.000000e+00 : f32
    %42 = vector.broadcast %cst_22 : f32 to vector<8x1xf32>
    %43 = vector.extract_strided_slice %41 {offsets = [0, 0], sizes = [8, 255], strides = [1, 1]} : vector<8x256xf32> to vector<8x255xf32>
    %44 = tpu.concatenate %42, %43 in 1 : vector<8x1xf32>, vector<8x255xf32> -> vector<8x256xf32>
    %c0_23 = arith.constant 0 : index
    %c0_24 = arith.constant 0 : index
    %c0_25 = arith.constant 0 : index
    %45 = vector.load %arg7[%c0_23, %c0_24, %c0_25] : memref<3x8x8xbf16, #tpu.memory_space<vmem>>, vector<1x8x8xbf16>
    %46 = vector.shape_cast %45 : vector<1x8x8xbf16> to vector<8x8xbf16>
    %47 = arith.truncf %44 : vector<8x256xf32> to vector<8x256xbf16>
    %cst_26 = arith.constant dense<0.000000e+00> : vector<8x256xf32>
    %48 = tpu.matmul %46, %47, %cst_26 {dimension_numbers = #tpu.dot_dimension_numbers<[1], [0], [0], [1], [0, 0, 1, 1], [], []>} : vector<8x8xbf16>, vector<8x256xbf16>, vector<8x256xf32> -> vector<8x256xf32>
    %c1 = arith.constant 1 : index
    %c0_27 = arith.constant 0 : index
    %c0_28 = arith.constant 0 : index
    %49 = vector.load %arg7[%c1, %c0_27, %c0_28] : memref<3x8x8xbf16, #tpu.memory_space<vmem>>, vector<1x8x8xbf16>
    %50 = vector.shape_cast %49 : vector<1x8x8xbf16> to vector<8x8xbf16>
    %51 = arith.truncf %41 : vector<8x256xf32> to vector<8x256xbf16>
    %cst_29 = arith.constant dense<0.000000e+00> : vector<8x256xf32>
    %52 = tpu.matmul %50, %51, %cst_29 {dimension_numbers = #tpu.dot_dimension_numbers<[1], [0], [0], [1], [0, 0, 1, 1], [], []>} : vector<8x8xbf16>, vector<8x256xbf16>, vector<8x256xf32> -> vector<8x256xf32>
    %53 = arith.addf %48, %52 : vector<8x256xf32>
    %cst_30 = arith.constant 0.000000e+00 : f32
    %54 = vector.broadcast %cst_30 : f32 to vector<8x1xf32>
    %55 = vector.extract_strided_slice %41 {offsets = [0, 1], sizes = [8, 255], strides = [1, 1]} : vector<8x256xf32> to vector<8x255xf32>
    %56 = tpu.concatenate %55, %54 in 1 : vector<8x255xf32>, vector<8x1xf32> -> vector<8x256xf32>
    %c2 = arith.constant 2 : index
    %c0_31 = arith.constant 0 : index
    %c0_32 = arith.constant 0 : index
    %57 = vector.load %arg7[%c2, %c0_31, %c0_32] : memref<3x8x8xbf16, #tpu.memory_space<vmem>>, vector<1x8x8xbf16>
    %58 = vector.shape_cast %57 : vector<1x8x8xbf16> to vector<8x8xbf16>
    %59 = arith.truncf %56 : vector<8x256xf32> to vector<8x256xbf16>
    %cst_33 = arith.constant dense<0.000000e+00> : vector<8x256xf32>
    %60 = tpu.matmul %58, %59, %cst_33 {dimension_numbers = #tpu.dot_dimension_numbers<[1], [0], [0], [1], [0, 0, 1, 1], [], []>} : vector<8x8xbf16>, vector<8x256xbf16>, vector<8x256xf32> -> vector<8x256xf32>
    %61 = arith.addf %53, %60 : vector<8x256xf32>
    %c0_34 = arith.constant 0 : index
    %c0_35 = arith.constant 0 : index
    %62 = vector.load %arg8[%c0_34, %c0_35] : memref<8x1xf32, #tpu.memory_space<vmem>>, vector<8x1xf32>
    %63 = vector.broadcast %62 : vector<8x1xf32> to vector<8x256xf32>
    %64 = arith.addf %61, %63 : vector<8x256xf32>
    %65 = vector.broadcast %2 : vector<1x256xf32> to vector<8x256xf32>
    %66 = arith.mulf %64, %65 : vector<8x256xf32>
    %c0_36 = arith.constant 0 : index
    %c0_37 = arith.constant 0 : index
    %67 = vector.load %arg9[%c0_36, %c0_37] : memref<8x4xf32, #tpu.memory_space<vmem>>, vector<8x4xf32>
    %c0_38 = arith.constant 0 : index
    %c0_39 = arith.constant 0 : index
    %68 = vector.load %arg10[%c0_38, %c0_39] : memref<8x8xf32, #tpu.memory_space<vmem>>, vector<8x8xf32>
    %c0_40 = arith.constant 0 : index
    %c0_41 = arith.constant 0 : index
    %69 = vector.load %arg11[%c0_40, %c0_41] : memref<8x8xf32, #tpu.memory_space<vmem>>, vector<8x8xf32>
    %cst_42 = arith.constant dense<0.000000e+00> : vector<8x2xf32>
    %70 = tpu.matmul %66, %3, %cst_42 {dimension_numbers = #tpu.dot_dimension_numbers<[1], [0], [0], [1], [0, 0, 1, 1], [], []>} : vector<8x256xf32>, vector<256x2xf32>, vector<8x2xf32> -> vector<8x2xf32>
    %71 = arith.mulf %66, %66 : vector<8x256xf32>
    %cst_43 = arith.constant dense<0.000000e+00> : vector<8x2xf32>
    %72 = tpu.matmul %71, %3, %cst_43 {dimension_numbers = #tpu.dot_dimension_numbers<[1], [0], [0], [1], [0, 0, 1, 1], [], []>} : vector<8x256xf32>, vector<256x2xf32>, vector<8x2xf32> -> vector<8x2xf32>
    %cst_44 = arith.constant dense<0.000000e+00> : vector<8x2xf32>
    %73 = tpu.matmul %68, %70, %cst_44 {dimension_numbers = #tpu.dot_dimension_numbers<[1], [0], [0], [1], [0, 0, 1, 1], [], []>} : vector<8x8xf32>, vector<8x2xf32>, vector<8x2xf32> -> vector<8x2xf32>
    %cst_45 = arith.constant dense<0.000000e+00> : vector<8x2xf32>
    %74 = tpu.matmul %68, %72, %cst_45 {dimension_numbers = #tpu.dot_dimension_numbers<[1], [0], [0], [1], [0, 0, 1, 1], [], []>} : vector<8x8xf32>, vector<8x2xf32>, vector<8x2xf32> -> vector<8x2xf32>
    %75 = arith.mulf %73, %73 : vector<8x2xf32>
    %76 = arith.subf %74, %75 : vector<8x2xf32>
    %cst_46 = arith.constant 0.000000e+00 : f32
    %77 = vector.broadcast %cst_46 : f32 to vector<8x2xf32>
    %78 = arith.maximumf %76, %77 : vector<8x2xf32>
    %cst_47 = arith.constant dense<0.000000e+00> : vector<8x2xf32>
    %79 = tpu.matmul %69, %73, %cst_47 {dimension_numbers = #tpu.dot_dimension_numbers<[1], [0], [0], [1], [0, 0, 1, 1], [], []>} : vector<8x8xf32>, vector<8x2xf32>, vector<8x2xf32> -> vector<8x2xf32>
    %cst_48 = arith.constant dense<0.000000e+00> : vector<8x2xf32>
    %80 = tpu.matmul %69, %78, %cst_48 {dimension_numbers = #tpu.dot_dimension_numbers<[1], [0], [0], [1], [0, 0, 1, 1], [], []>} : vector<8x8xf32>, vector<8x2xf32>, vector<8x2xf32> -> vector<8x2xf32>
    %81 = vector.extract_strided_slice %67 {offsets = [0, 0], sizes = [8, 1], strides = [1, 1]} : vector<8x4xf32> to vector<8x1xf32>
    %82 = vector.extract_strided_slice %67 {offsets = [0, 1], sizes = [8, 1], strides = [1, 1]} : vector<8x4xf32> to vector<8x1xf32>
    %83 = vector.extract_strided_slice %67 {offsets = [0, 2], sizes = [8, 1], strides = [1, 1]} : vector<8x4xf32> to vector<8x1xf32>
    %84 = vector.extract_strided_slice %67 {offsets = [0, 3], sizes = [8, 1], strides = [1, 1]} : vector<8x4xf32> to vector<8x1xf32>
    %cst_49 = arith.constant 9.99999974E-6 : f32
    %85 = vector.broadcast %cst_49 : f32 to vector<8x2xf32>
    %86 = arith.addf %80, %85 : vector<8x2xf32>
    %87 = math.rsqrt %86 : vector<8x2xf32>
    %88 = vector.broadcast %81 : vector<8x1xf32> to vector<8x2xf32>
    %89 = arith.mulf %88, %87 : vector<8x2xf32>
    %90 = arith.mulf %79, %89 : vector<8x2xf32>
    %91 = vector.broadcast %82 : vector<8x1xf32> to vector<8x2xf32>
    %92 = arith.subf %91, %90 : vector<8x2xf32>
    %cst_50 = arith.constant dense<0.000000e+00> : vector<8x256xf32>
    %93 = tpu.matmul %89, %4, %cst_50 {dimension_numbers = #tpu.dot_dimension_numbers<[1], [0], [0], [1], [0, 0, 1, 1], [], []>} : vector<8x2xf32>, vector<2x256xf32>, vector<8x256xf32> -> vector<8x256xf32>
    %cst_51 = arith.constant dense<0.000000e+00> : vector<8x256xf32>
    %94 = tpu.matmul %92, %4, %cst_51 {dimension_numbers = #tpu.dot_dimension_numbers<[1], [0], [0], [1], [0, 0, 1, 1], [], []>} : vector<8x2xf32>, vector<2x256xf32>, vector<8x256xf32> -> vector<8x256xf32>
    %95 = arith.mulf %66, %93 : vector<8x256xf32>
    %96 = arith.addf %95, %94 : vector<8x256xf32>
    %97 = vector.broadcast %83 : vector<8x1xf32> to vector<8x256xf32>
    %98 = arith.mulf %97, %96 : vector<8x256xf32>
    %99 = math.sin %98 : vector<8x256xf32>
    %100 = arith.mulf %99, %99 : vector<8x256xf32>
    %101 = vector.broadcast %84 : vector<8x1xf32> to vector<8x256xf32>
    %102 = arith.mulf %100, %101 : vector<8x256xf32>
    %103 = arith.addf %96, %102 : vector<8x256xf32>
    %c0_52 = arith.constant 0 : index
    %c0_53 = arith.constant 0 : index
    %c0_54 = arith.constant 0 : index
    %104 = vector.load %arg12[%c0_52, %c0_53, %c0_54] : memref<1x8x8xbf16, #tpu.memory_space<vmem>>, vector<1x8x8xbf16>
    %105 = vector.shape_cast %104 : vector<1x8x8xbf16> to vector<8x8xbf16>
    %106 = arith.truncf %103 : vector<8x256xf32> to vector<8x256xbf16>
    %cst_55 = arith.constant dense<0.000000e+00> : vector<8x256xf32>
    %107 = tpu.matmul %105, %106, %cst_55 {dimension_numbers = #tpu.dot_dimension_numbers<[1], [0], [0], [1], [0, 0, 1, 1], [], []>} : vector<8x8xbf16>, vector<8x256xbf16>, vector<8x256xf32> -> vector<8x256xf32>
    %c0_56 = arith.constant 0 : index
    %c0_57 = arith.constant 0 : index
    %108 = vector.load %arg13[%c0_56, %c0_57] : memref<8x1xf32, #tpu.memory_space<vmem>>, vector<8x1xf32>
    %109 = vector.broadcast %108 : vector<8x1xf32> to vector<8x256xf32>
    %110 = arith.addf %107, %109 : vector<8x256xf32>
    %111 = arith.addf %110, %1 : vector<8x256xf32>
    %112 = vector.broadcast %2 : vector<1x256xf32> to vector<8x256xf32>
    %113 = arith.mulf %111, %112 : vector<8x256xf32>
    %114 = arith.truncf %113 : vector<8x256xf32> to vector<8x256xbf16>
    %c0_58 = arith.constant 0 : index
    %c0_59 = arith.constant 0 : index
    %115 = vector.load %arg14[%c0_58, %c0_59] : memref<8x256xbf16, #tpu.memory_space<vmem>>, vector<8x256xbf16>
    tpu.vector_store %arg14[%c0_58, %c0_59], %114 {strides = array<i32>} : memref<8x256xbf16, #tpu.memory_space<vmem>>, vector<8x256xbf16>,
    return
  }
}

module attributes {stable_mosaic.version = 11 : i64} {
  func.func @_resnet_kernel(%arg0: memref<8x256xbf16, #tpu.memory_space<vmem>>, %arg1: memref<1x256xf32, #tpu.memory_space<vmem>>, %arg2: memref<256x2xf32, #tpu.memory_space<vmem>>, %arg3: memref<2x256xf32, #tpu.memory_space<vmem>>, %arg4: memref<8x4xf32, #tpu.memory_space<vmem>>, %arg5: memref<4x8xf32, #tpu.memory_space<vmem>>, %arg6: memref<8x4xf32, #tpu.memory_space<vmem>>, %arg7: memref<3x8x8xbf16, #tpu.memory_space<vmem>>, %arg8: memref<8x1xf32, #tpu.memory_space<vmem>>, %arg9: memref<8x4xf32, #tpu.memory_space<vmem>>, %arg10: memref<8x8xf32, #tpu.memory_space<vmem>>, %arg11: memref<8x8xf32, #tpu.memory_space<vmem>>, %arg12: memref<1x8x8xbf16, #tpu.memory_space<vmem>>, %arg13: memref<8x1xf32, #tpu.memory_space<vmem>>, %arg14: memref<8x256xbf16, #tpu.memory_space<vmem>>) attributes {dimension_semantics = [], scalar_prefetch = 0 : i64, scratch_operands = 0 : i64, tpu.core_type = #tpu.core_type<tc>} {
    %c0 = arith.constant 0 : index
    %c0_0 = arith.constant 0 : index
    %0 = vector.load %arg0[%c0, %c0_0] : memref<8x256xbf16, #tpu.memory_space<vmem>>, vector<8x256xbf16>
    %1 = arith.extf %0 : vector<8x256xbf16> to vector<8x256xf32>
    %c0_1 = arith.constant 0 : index
    %c0_2 = arith.constant 0 : index
    %2 = vector.load %arg1[%c0_1, %c0_2] : memref<1x256xf32, #tpu.memory_space<vmem>>, vector<1x256xf32>
    %c0_3 = arith.constant 0 : index
    %c0_4 = arith.constant 0 : index
    %3 = vector.load %arg2[%c0_3, %c0_4] : memref<256x2xf32, #tpu.memory_space<vmem>>, vector<256x2xf32>
    %c0_5 = arith.constant 0 : index
    %c0_6 = arith.constant 0 : index
    %4 = vector.load %arg3[%c0_5, %c0_6] : memref<2x256xf32, #tpu.memory_space<vmem>>, vector<2x256xf32>
    %c0_7 = arith.constant 0 : index
    %c0_8 = arith.constant 0 : index
    %5 = vector.load %arg4[%c0_7, %c0_8] : memref<8x4xf32, #tpu.memory_space<vmem>>, vector<8x4xf32>
    %c0_9 = arith.constant 0 : index
    %c0_10 = arith.constant 0 : index
    %6 = vector.load %arg5[%c0_9, %c0_10] : memref<4x8xf32, #tpu.memory_space<vmem>>, vector<4x8xf32>
    %c0_11 = arith.constant 0 : index
    %c0_12 = arith.constant 0 : index
    %7 = vector.load %arg6[%c0_11, %c0_12] : memref<8x4xf32, #tpu.memory_space<vmem>>, vector<8x4xf32>
    %cst = arith.constant dense<0.000000e+00> : vector<8x2xf32>
    %8 = tpu.matmul %1, %3, %cst {dimension_numbers = #tpu.dot_dimension_numbers<[1], [0], [0], [1], [0, 0, 1, 1], [], []>} : vector<8x256xf32>, vector<256x2xf32>, vector<8x2xf32> -> vector<8x2xf32>
    %9 = arith.mulf %1, %1 : vector<8x256xf32>
    %cst_13 = arith.constant dense<0.000000e+00> : vector<8x2xf32>
    %10 = tpu.matmul %9, %3, %cst_13 {dimension_numbers = #tpu.dot_dimension_numbers<[1], [0], [0], [1], [0, 0, 1, 1], [], []>} : vector<8x256xf32>, vector<256x2xf32>, vector<8x2xf32> -> vector<8x2xf32>
    %cst_14 = arith.constant dense<0.000000e+00> : vector<4x2xf32>
    %11 = tpu.matmul %6, %8, %cst_14 {dimension_numbers = #tpu.dot_dimension_numbers<[1], [0], [0], [1], [0, 0, 1, 1], [], []>} : vector<4x8xf32>, vector<8x2xf32>, vector<4x2xf32> -> vector<4x2xf32>
    %cst_15 = arith.constant dense<0.000000e+00> : vector<4x2xf32>
    %12 = tpu.matmul %6, %10, %cst_15 {dimension_numbers = #tpu.dot_dimension_numbers<[1], [0], [0], [1], [0, 0, 1, 1], [], []>} : vector<4x8xf32>, vector<8x2xf32>, vector<4x2xf32> -> vector<4x2xf32>
    %13 = arith.mulf %11, %11 : vector<4x2xf32>
    %14 = arith.subf %12, %13 : vector<4x2xf32>
    %cst_16 = arith.constant 0.000000e+00 : f32
    %15 = vector.broadcast %cst_16 : f32 to vector<4x2xf32>
    %16 = arith.maximumf %14, %15 : vector<4x2xf32>
    %cst_17 = arith.constant dense<0.000000e+00> : vector<8x2xf32>
    %17 = tpu.matmul %7, %11, %cst_17 {dimension_numbers = #tpu.dot_dimension_numbers<[1], [0], [0], [1], [0, 0, 1, 1], [], []>} : vector<8x4xf32>, vector<4x2xf32>, vector<8x2xf32> -> vector<8x2xf32>
    %cst_18 = arith.constant dense<0.000000e+00> : vector<8x2xf32>
    %18 = tpu.matmul %7, %16, %cst_18 {dimension_numbers = #tpu.dot_dimension_numbers<[1], [0], [0], [1], [0, 0, 1, 1], [], []>} : vector<8x4xf32>, vector<4x2xf32>, vector<8x2xf32> -> vector<8x2xf32>
    %19 = vector.extract_strided_slice %5 {offsets = [0, 0], sizes = [8, 1], strides = [1, 1]} : vector<8x4xf32> to vector<8x1xf32>
    %20 = vector.extract_strided_slice %5 {offsets = [0, 1], sizes = [8, 1], strides = [1, 1]} : vector<8x4xf32> to vector<8x1xf32>
    %21 = vector.extract_strided_slice %5 {offsets = [0, 2], sizes = [8, 1], strides = [1, 1]} : vector<8x4xf32> to vector<8x1xf32>
    %22 = vector.extract_strided_slice %5 {offsets = [0, 3], sizes = [8, 1], strides = [1, 1]} : vector<8x4xf32> to vector<8x1xf32>
    %cst_19 = arith.constant 9.99999974E-6 : f32
    %23 = vector.broadcast %cst_19 : f32 to vector<8x2xf32>
    %24 = arith.addf %18, %23 : vector<8x2xf32>
    %25 = math.rsqrt %24 : vector<8x2xf32>
    %26 = vector.broadcast %19 : vector<8x1xf32> to vector<8x2xf32>
    %27 = arith.mulf %26, %25 : vector<8x2xf32>
    %28 = arith.mulf %17, %27 : vector<8x2xf32>
    %29 = vector.broadcast %20 : vector<8x1xf32> to vector<8x2xf32>
    %30 = arith.subf %29, %28 : vector<8x2xf32>
    %cst_20 = arith.constant dense<0.000000e+00> : vector<8x256xf32>
    %31 = tpu.matmul %27, %4, %cst_20 {dimension_numbers = #tpu.dot_dimension_numbers<[1], [0], [0], [1], [0, 0, 1, 1], [], []>} : vector<8x2xf32>, vector<2x256xf32>, vector<8x256xf32> -> vector<8x256xf32>
    %cst_21 = arith.constant dense<0.000000e+00> : vector<8x256xf32>
    %32 = tpu.matmul %30, %4, %cst_21 {dimension_numbers = #tpu.dot_dimension_numbers<[1], [0], [0], [1], [0, 0, 1, 1], [], []>} : vector<8x2xf32>, vector<2x256xf32>, vector<8x256xf32> -> vector<8x256xf32>
    %33 = arith.mulf %1, %31 : vector<8x256xf32>
    %34 = arith.addf %33, %32 : vector<8x256xf32>
    %35 = vector.broadcast %21 : vector<8x1xf32> to vector<8x256xf32>
    %36 = arith.mulf %35, %34 : vector<8x256xf32>
    %37 = math.sin %36 : vector<8x256xf32>
    %38 = arith.mulf %37, %37 : vector<8x256xf32>
    %39 = vector.broadcast %22 : vector<8x1xf32> to vector<8x256xf32>
    %40 = arith.mulf %38, %39 : vector<8x256xf32>
    %41 = arith.addf %34, %40 : vector<8x256xf32>
    %cst_22 = arith.constant 0.000000e+00 : f32
    %42 = vector.broadcast %cst_22 : f32 to vector<8x3xf32>
    %43 = vector.extract_strided_slice %41 {offsets = [0, 0], sizes = [8, 253], strides = [1, 1]} : vector<8x256xf32> to vector<8x253xf32>
    %44 = tpu.concatenate %42, %43 in 1 : vector<8x3xf32>, vector<8x253xf32> -> vector<8x256xf32>
    %c0_23 = arith.constant 0 : index
    %c0_24 = arith.constant 0 : index
    %c0_25 = arith.constant 0 : index
    %45 = vector.load %arg7[%c0_23, %c0_24, %c0_25] : memref<3x8x8xbf16, #tpu.memory_space<vmem>>, vector<1x8x8xbf16>
    %46 = vector.shape_cast %45 : vector<1x8x8xbf16> to vector<8x8xbf16>
    %47 = arith.truncf %44 : vector<8x256xf32> to vector<8x256xbf16>
    %cst_26 = arith.constant dense<0.000000e+00> : vector<8x256xf32>
    %48 = tpu.matmul %46, %47, %cst_26 {dimension_numbers = #tpu.dot_dimension_numbers<[1], [0], [0], [1], [0, 0, 1, 1], [], []>} : vector<8x8xbf16>, vector<8x256xbf16>, vector<8x256xf32> -> vector<8x256xf32>
    %c1 = arith.constant 1 : index
    %c0_27 = arith.constant 0 : index
    %c0_28 = arith.constant 0 : index
    %49 = vector.load %arg7[%c1, %c0_27, %c0_28] : memref<3x8x8xbf16, #tpu.memory_space<vmem>>, vector<1x8x8xbf16>
    %50 = vector.shape_cast %49 : vector<1x8x8xbf16> to vector<8x8xbf16>
    %51 = arith.truncf %41 : vector<8x256xf32> to vector<8x256xbf16>
    %cst_29 = arith.constant dense<0.000000e+00> : vector<8x256xf32>
    %52 = tpu.matmul %50, %51, %cst_29 {dimension_numbers = #tpu.dot_dimension_numbers<[1], [0], [0], [1], [0, 0, 1, 1], [], []>} : vector<8x8xbf16>, vector<8x256xbf16>, vector<8x256xf32> -> vector<8x256xf32>
    %53 = arith.addf %48, %52 : vector<8x256xf32>
    %cst_30 = arith.constant 0.000000e+00 : f32
    %54 = vector.broadcast %cst_30 : f32 to vector<8x3xf32>
    %55 = vector.extract_strided_slice %41 {offsets = [0, 3], sizes = [8, 253], strides = [1, 1]} : vector<8x256xf32> to vector<8x253xf32>
    %56 = tpu.concatenate %55, %54 in 1 : vector<8x253xf32>, vector<8x3xf32> -> vector<8x256xf32>
    %c2 = arith.constant 2 : index
    %c0_31 = arith.constant 0 : index
    %c0_32 = arith.constant 0 : index
    %57 = vector.load %arg7[%c2, %c0_31, %c0_32] : memref<3x8x8xbf16, #tpu.memory_space<vmem>>, vector<1x8x8xbf16>
    %58 = vector.shape_cast %57 : vector<1x8x8xbf16> to vector<8x8xbf16>
    %59 = arith.truncf %56 : vector<8x256xf32> to vector<8x256xbf16>
    %cst_33 = arith.constant dense<0.000000e+00> : vector<8x256xf32>
    %60 = tpu.matmul %58, %59, %cst_33 {dimension_numbers = #tpu.dot_dimension_numbers<[1], [0], [0], [1], [0, 0, 1, 1], [], []>} : vector<8x8xbf16>, vector<8x256xbf16>, vector<8x256xf32> -> vector<8x256xf32>
    %61 = arith.addf %53, %60 : vector<8x256xf32>
    %c0_34 = arith.constant 0 : index
    %c0_35 = arith.constant 0 : index
    %62 = vector.load %arg8[%c0_34, %c0_35] : memref<8x1xf32, #tpu.memory_space<vmem>>, vector<8x1xf32>
    %63 = vector.broadcast %62 : vector<8x1xf32> to vector<8x256xf32>
    %64 = arith.addf %61, %63 : vector<8x256xf32>
    %65 = vector.broadcast %2 : vector<1x256xf32> to vector<8x256xf32>
    %66 = arith.mulf %64, %65 : vector<8x256xf32>
    %c0_36 = arith.constant 0 : index
    %c0_37 = arith.constant 0 : index
    %67 = vector.load %arg9[%c0_36, %c0_37] : memref<8x4xf32, #tpu.memory_space<vmem>>, vector<8x4xf32>
    %c0_38 = arith.constant 0 : index
    %c0_39 = arith.constant 0 : index
    %68 = vector.load %arg10[%c0_38, %c0_39] : memref<8x8xf32, #tpu.memory_space<vmem>>, vector<8x8xf32>
    %c0_40 = arith.constant 0 : index
    %c0_41 = arith.constant 0 : index
    %69 = vector.load %arg11[%c0_40, %c0_41] : memref<8x8xf32, #tpu.memory_space<vmem>>, vector<8x8xf32>
    %cst_42 = arith.constant dense<0.000000e+00> : vector<8x2xf32>
    %70 = tpu.matmul %66, %3, %cst_42 {dimension_numbers = #tpu.dot_dimension_numbers<[1], [0], [0], [1], [0, 0, 1, 1], [], []>} : vector<8x256xf32>, vector<256x2xf32>, vector<8x2xf32> -> vector<8x2xf32>
    %71 = arith.mulf %66, %66 : vector<8x256xf32>
    %cst_43 = arith.constant dense<0.000000e+00> : vector<8x2xf32>
    %72 = tpu.matmul %71, %3, %cst_43 {dimension_numbers = #tpu.dot_dimension_numbers<[1], [0], [0], [1], [0, 0, 1, 1], [], []>} : vector<8x256xf32>, vector<256x2xf32>, vector<8x2xf32> -> vector<8x2xf32>
    %cst_44 = arith.constant dense<0.000000e+00> : vector<8x2xf32>
    %73 = tpu.matmul %68, %70, %cst_44 {dimension_numbers = #tpu.dot_dimension_numbers<[1], [0], [0], [1], [0, 0, 1, 1], [], []>} : vector<8x8xf32>, vector<8x2xf32>, vector<8x2xf32> -> vector<8x2xf32>
    %cst_45 = arith.constant dense<0.000000e+00> : vector<8x2xf32>
    %74 = tpu.matmul %68, %72, %cst_45 {dimension_numbers = #tpu.dot_dimension_numbers<[1], [0], [0], [1], [0, 0, 1, 1], [], []>} : vector<8x8xf32>, vector<8x2xf32>, vector<8x2xf32> -> vector<8x2xf32>
    %75 = arith.mulf %73, %73 : vector<8x2xf32>
    %76 = arith.subf %74, %75 : vector<8x2xf32>
    %cst_46 = arith.constant 0.000000e+00 : f32
    %77 = vector.broadcast %cst_46 : f32 to vector<8x2xf32>
    %78 = arith.maximumf %76, %77 : vector<8x2xf32>
    %cst_47 = arith.constant dense<0.000000e+00> : vector<8x2xf32>
    %79 = tpu.matmul %69, %73, %cst_47 {dimension_numbers = #tpu.dot_dimension_numbers<[1], [0], [0], [1], [0, 0, 1, 1], [], []>} : vector<8x8xf32>, vector<8x2xf32>, vector<8x2xf32> -> vector<8x2xf32>
    %cst_48 = arith.constant dense<0.000000e+00> : vector<8x2xf32>
    %80 = tpu.matmul %69, %78, %cst_48 {dimension_numbers = #tpu.dot_dimension_numbers<[1], [0], [0], [1], [0, 0, 1, 1], [], []>} : vector<8x8xf32>, vector<8x2xf32>, vector<8x2xf32> -> vector<8x2xf32>
    %81 = vector.extract_strided_slice %67 {offsets = [0, 0], sizes = [8, 1], strides = [1, 1]} : vector<8x4xf32> to vector<8x1xf32>
    %82 = vector.extract_strided_slice %67 {offsets = [0, 1], sizes = [8, 1], strides = [1, 1]} : vector<8x4xf32> to vector<8x1xf32>
    %83 = vector.extract_strided_slice %67 {offsets = [0, 2], sizes = [8, 1], strides = [1, 1]} : vector<8x4xf32> to vector<8x1xf32>
    %84 = vector.extract_strided_slice %67 {offsets = [0, 3], sizes = [8, 1], strides = [1, 1]} : vector<8x4xf32> to vector<8x1xf32>
    %cst_49 = arith.constant 9.99999974E-6 : f32
    %85 = vector.broadcast %cst_49 : f32 to vector<8x2xf32>
    %86 = arith.addf %80, %85 : vector<8x2xf32>
    %87 = math.rsqrt %86 : vector<8x2xf32>
    %88 = vector.broadcast %81 : vector<8x1xf32> to vector<8x2xf32>
    %89 = arith.mulf %88, %87 : vector<8x2xf32>
    %90 = arith.mulf %79, %89 : vector<8x2xf32>
    %91 = vector.broadcast %82 : vector<8x1xf32> to vector<8x2xf32>
    %92 = arith.subf %91, %90 : vector<8x2xf32>
    %cst_50 = arith.constant dense<0.000000e+00> : vector<8x256xf32>
    %93 = tpu.matmul %89, %4, %cst_50 {dimension_numbers = #tpu.dot_dimension_numbers<[1], [0], [0], [1], [0, 0, 1, 1], [], []>} : vector<8x2xf32>, vector<2x256xf32>, vector<8x256xf32> -> vector<8x256xf32>
    %cst_51 = arith.constant dense<0.000000e+00> : vector<8x256xf32>
    %94 = tpu.matmul %92, %4, %cst_51 {dimension_numbers = #tpu.dot_dimension_numbers<[1], [0], [0], [1], [0, 0, 1, 1], [], []>} : vector<8x2xf32>, vector<2x256xf32>, vector<8x256xf32> -> vector<8x256xf32>
    %95 = arith.mulf %66, %93 : vector<8x256xf32>
    %96 = arith.addf %95, %94 : vector<8x256xf32>
    %97 = vector.broadcast %83 : vector<8x1xf32> to vector<8x256xf32>
    %98 = arith.mulf %97, %96 : vector<8x256xf32>
    %99 = math.sin %98 : vector<8x256xf32>
    %100 = arith.mulf %99, %99 : vector<8x256xf32>
    %101 = vector.broadcast %84 : vector<8x1xf32> to vector<8x256xf32>
    %102 = arith.mulf %100, %101 : vector<8x256xf32>
    %103 = arith.addf %96, %102 : vector<8x256xf32>
    %c0_52 = arith.constant 0 : index
    %c0_53 = arith.constant 0 : index
    %c0_54 = arith.constant 0 : index
    %104 = vector.load %arg12[%c0_52, %c0_53, %c0_54] : memref<1x8x8xbf16, #tpu.memory_space<vmem>>, vector<1x8x8xbf16>
    %105 = vector.shape_cast %104 : vector<1x8x8xbf16> to vector<8x8xbf16>
    %106 = arith.truncf %103 : vector<8x256xf32> to vector<8x256xbf16>
    %cst_55 = arith.constant dense<0.000000e+00> : vector<8x256xf32>
    %107 = tpu.matmul %105, %106, %cst_55 {dimension_numbers = #tpu.dot_dimension_numbers<[1], [0], [0], [1], [0, 0, 1, 1], [], []>} : vector<8x8xbf16>, vector<8x256xbf16>, vector<8x256xf32> -> vector<8x256xf32>
    %c0_56 = arith.constant 0 : index
    %c0_57 = arith.constant 0 : index
    %108 = vector.load %arg13[%c0_56, %c0_57] : memref<8x1xf32, #tpu.memory_space<vmem>>, vector<8x1xf32>
    %109 = vector.broadcast %108 : vector<8x1xf32> to vector<8x256xf32>
    %110 = arith.addf %107, %109 : vector<8x256xf32>
    %111 = arith.addf %110, %1 : vector<8x256xf32>
    %112 = vector.broadcast %2 : vector<1x256xf32> to vector<8x256xf32>
    %113 = arith.mulf %111, %112 : vector<8x256xf32>
    %114 = arith.truncf %113 : vector<8x256xf32> to vector<8x256xbf16>
    %c0_58 = arith.constant 0 : index
    %c0_59 = arith.constant 0 : index
    %115 = vector.load %arg14[%c0_58, %c0_59] : memref<8x256xbf16, #tpu.memory_space<vmem>>, vector<8x256xbf16>
    tpu.vector_store %arg14[%c0_58, %c0_59], %114 {strides = array<i32>} : memref<8x256xbf16, #tpu.memory_space<vmem>>, vector<8x256xbf16>,
    return
  }
}

module attributes {stable_mosaic.version = 11 : i64} {
  func.func @_resnet_kernel(%arg0: memref<2x256xf32, #tpu.memory_space<vmem>>, %arg1: memref<1x256xf32, #tpu.memory_space<vmem>>, %arg2: memref<256x2xf32, #tpu.memory_space<vmem>>, %arg3: memref<2x256xf32, #tpu.memory_space<vmem>>, %arg4: memref<2x4xf32, #tpu.memory_space<vmem>>, %arg5: memref<2x2xf32, #tpu.memory_space<vmem>>, %arg6: memref<2x2xf32, #tpu.memory_space<vmem>>, %arg7: memref<3x8x2xbf16, #tpu.memory_space<vmem>>, %arg8: memref<8x1xf32, #tpu.memory_space<vmem>>, %arg9: memref<8x4xf32, #tpu.memory_space<vmem>>, %arg10: memref<8x8xf32, #tpu.memory_space<vmem>>, %arg11: memref<8x8xf32, #tpu.memory_space<vmem>>, %arg12: memref<1x8x8xbf16, #tpu.memory_space<vmem>>, %arg13: memref<8x1xf32, #tpu.memory_space<vmem>>, %arg14: memref<8x2xbf16, #tpu.memory_space<vmem>>, %arg15: memref<8x1xf32, #tpu.memory_space<vmem>>, %arg16: memref<8x256xbf16, #tpu.memory_space<vmem>>) attributes {dimension_semantics = [], scalar_prefetch = 0 : i64, scratch_operands = 0 : i64, tpu.core_type = #tpu.core_type<tc>} {
    %c0 = arith.constant 0 : index
    %c0_0 = arith.constant 0 : index
    %0 = vector.load %arg0[%c0, %c0_0] : memref<2x256xf32, #tpu.memory_space<vmem>>, vector<2x256xf32>
    %c0_1 = arith.constant 0 : index
    %c0_2 = arith.constant 0 : index
    %1 = vector.load %arg1[%c0_1, %c0_2] : memref<1x256xf32, #tpu.memory_space<vmem>>, vector<1x256xf32>
    %c0_3 = arith.constant 0 : index
    %c0_4 = arith.constant 0 : index
    %2 = vector.load %arg2[%c0_3, %c0_4] : memref<256x2xf32, #tpu.memory_space<vmem>>, vector<256x2xf32>
    %c0_5 = arith.constant 0 : index
    %c0_6 = arith.constant 0 : index
    %3 = vector.load %arg3[%c0_5, %c0_6] : memref<2x256xf32, #tpu.memory_space<vmem>>, vector<2x256xf32>
    %c0_7 = arith.constant 0 : index
    %c0_8 = arith.constant 0 : index
    %4 = vector.load %arg4[%c0_7, %c0_8] : memref<2x4xf32, #tpu.memory_space<vmem>>, vector<2x4xf32>
    %c0_9 = arith.constant 0 : index
    %c0_10 = arith.constant 0 : index
    %5 = vector.load %arg5[%c0_9, %c0_10] : memref<2x2xf32, #tpu.memory_space<vmem>>, vector<2x2xf32>
    %c0_11 = arith.constant 0 : index
    %c0_12 = arith.constant 0 : index
    %6 = vector.load %arg6[%c0_11, %c0_12] : memref<2x2xf32, #tpu.memory_space<vmem>>, vector<2x2xf32>
    %cst = arith.constant dense<0.000000e+00> : vector<2x2xf32>
    %7 = tpu.matmul %0, %2, %cst {dimension_numbers = #tpu.dot_dimension_numbers<[1], [0], [0], [1], [0, 0, 1, 1], [], []>} : vector<2x256xf32>, vector<256x2xf32>, vector<2x2xf32> -> vector<2x2xf32>
    %8 = arith.mulf %0, %0 : vector<2x256xf32>
    %cst_13 = arith.constant dense<0.000000e+00> : vector<2x2xf32>
    %9 = tpu.matmul %8, %2, %cst_13 {dimension_numbers = #tpu.dot_dimension_numbers<[1], [0], [0], [1], [0, 0, 1, 1], [], []>} : vector<2x256xf32>, vector<256x2xf32>, vector<2x2xf32> -> vector<2x2xf32>
    %cst_14 = arith.constant dense<0.000000e+00> : vector<2x2xf32>
    %10 = tpu.matmul %5, %7, %cst_14 {dimension_numbers = #tpu.dot_dimension_numbers<[1], [0], [0], [1], [0, 0, 1, 1], [], []>} : vector<2x2xf32>, vector<2x2xf32>, vector<2x2xf32> -> vector<2x2xf32>
    %cst_15 = arith.constant dense<0.000000e+00> : vector<2x2xf32>
    %11 = tpu.matmul %5, %9, %cst_15 {dimension_numbers = #tpu.dot_dimension_numbers<[1], [0], [0], [1], [0, 0, 1, 1], [], []>} : vector<2x2xf32>, vector<2x2xf32>, vector<2x2xf32> -> vector<2x2xf32>
    %12 = arith.mulf %10, %10 : vector<2x2xf32>
    %13 = arith.subf %11, %12 : vector<2x2xf32>
    %cst_16 = arith.constant 0.000000e+00 : f32
    %14 = vector.broadcast %cst_16 : f32 to vector<2x2xf32>
    %15 = arith.maximumf %13, %14 : vector<2x2xf32>
    %cst_17 = arith.constant dense<0.000000e+00> : vector<2x2xf32>
    %16 = tpu.matmul %6, %10, %cst_17 {dimension_numbers = #tpu.dot_dimension_numbers<[1], [0], [0], [1], [0, 0, 1, 1], [], []>} : vector<2x2xf32>, vector<2x2xf32>, vector<2x2xf32> -> vector<2x2xf32>
    %cst_18 = arith.constant dense<0.000000e+00> : vector<2x2xf32>
    %17 = tpu.matmul %6, %15, %cst_18 {dimension_numbers = #tpu.dot_dimension_numbers<[1], [0], [0], [1], [0, 0, 1, 1], [], []>} : vector<2x2xf32>, vector<2x2xf32>, vector<2x2xf32> -> vector<2x2xf32>
    %18 = vector.extract_strided_slice %4 {offsets = [0, 0], sizes = [2, 1], strides = [1, 1]} : vector<2x4xf32> to vector<2x1xf32>
    %19 = vector.extract_strided_slice %4 {offsets = [0, 1], sizes = [2, 1], strides = [1, 1]} : vector<2x4xf32> to vector<2x1xf32>
    %20 = vector.extract_strided_slice %4 {offsets = [0, 2], sizes = [2, 1], strides = [1, 1]} : vector<2x4xf32> to vector<2x1xf32>
    %21 = vector.extract_strided_slice %4 {offsets = [0, 3], sizes = [2, 1], strides = [1, 1]} : vector<2x4xf32> to vector<2x1xf32>
    %cst_19 = arith.constant 9.99999974E-6 : f32
    %22 = vector.broadcast %cst_19 : f32 to vector<2x2xf32>
    %23 = arith.addf %17, %22 : vector<2x2xf32>
    %24 = math.rsqrt %23 : vector<2x2xf32>
    %25 = vector.broadcast %18 : vector<2x1xf32> to vector<2x2xf32>
    %26 = arith.mulf %25, %24 : vector<2x2xf32>
    %27 = arith.mulf %16, %26 : vector<2x2xf32>
    %28 = vector.broadcast %19 : vector<2x1xf32> to vector<2x2xf32>
    %29 = arith.subf %28, %27 : vector<2x2xf32>
    %cst_20 = arith.constant dense<0.000000e+00> : vector<2x256xf32>
    %30 = tpu.matmul %26, %3, %cst_20 {dimension_numbers = #tpu.dot_dimension_numbers<[1], [0], [0], [1], [0, 0, 1, 1], [], []>} : vector<2x2xf32>, vector<2x256xf32>, vector<2x256xf32> -> vector<2x256xf32>
    %cst_21 = arith.constant dense<0.000000e+00> : vector<2x256xf32>
    %31 = tpu.matmul %29, %3, %cst_21 {dimension_numbers = #tpu.dot_dimension_numbers<[1], [0], [0], [1], [0, 0, 1, 1], [], []>} : vector<2x2xf32>, vector<2x256xf32>, vector<2x256xf32> -> vector<2x256xf32>
    %32 = arith.mulf %0, %30 : vector<2x256xf32>
    %33 = arith.addf %32, %31 : vector<2x256xf32>
    %34 = vector.broadcast %20 : vector<2x1xf32> to vector<2x256xf32>
    %35 = arith.mulf %34, %33 : vector<2x256xf32>
    %36 = math.sin %35 : vector<2x256xf32>
    %37 = arith.mulf %36, %36 : vector<2x256xf32>
    %38 = vector.broadcast %21 : vector<2x1xf32> to vector<2x256xf32>
    %39 = arith.mulf %37, %38 : vector<2x256xf32>
    %40 = arith.addf %33, %39 : vector<2x256xf32>
    %cst_22 = arith.constant 0.000000e+00 : f32
    %41 = vector.broadcast %cst_22 : f32 to vector<2x1xf32>
    %42 = vector.extract_strided_slice %40 {offsets = [0, 0], sizes = [2, 255], strides = [1, 1]} : vector<2x256xf32> to vector<2x255xf32>
    %43 = tpu.concatenate %41, %42 in 1 : vector<2x1xf32>, vector<2x255xf32> -> vector<2x256xf32>
    %c0_23 = arith.constant 0 : index
    %c0_24 = arith.constant 0 : index
    %c0_25 = arith.constant 0 : index
    %44 = vector.load %arg7[%c0_23, %c0_24, %c0_25] : memref<3x8x2xbf16, #tpu.memory_space<vmem>>, vector<1x8x2xbf16>
    %45 = vector.shape_cast %44 : vector<1x8x2xbf16> to vector<8x2xbf16>
    %46 = arith.truncf %43 : vector<2x256xf32> to vector<2x256xbf16>
    %cst_26 = arith.constant dense<0.000000e+00> : vector<8x256xf32>
    %47 = tpu.matmul %45, %46, %cst_26 {dimension_numbers = #tpu.dot_dimension_numbers<[1], [0], [0], [1], [0, 0, 1, 1], [], []>} : vector<8x2xbf16>, vector<2x256xbf16>, vector<8x256xf32> -> vector<8x256xf32>
    %c1 = arith.constant 1 : index
    %c0_27 = arith.constant 0 : index
    %c0_28 = arith.constant 0 : index
    %48 = vector.load %arg7[%c1, %c0_27, %c0_28] : memref<3x8x2xbf16, #tpu.memory_space<vmem>>, vector<1x8x2xbf16>
    %49 = vector.shape_cast %48 : vector<1x8x2xbf16> to vector<8x2xbf16>
    %50 = arith.truncf %40 : vector<2x256xf32> to vector<2x256xbf16>
    %cst_29 = arith.constant dense<0.000000e+00> : vector<8x256xf32>
    %51 = tpu.matmul %49, %50, %cst_29 {dimension_numbers = #tpu.dot_dimension_numbers<[1], [0], [0], [1], [0, 0, 1, 1], [], []>} : vector<8x2xbf16>, vector<2x256xbf16>, vector<8x256xf32> -> vector<8x256xf32>
    %52 = arith.addf %47, %51 : vector<8x256xf32>
    %cst_30 = arith.constant 0.000000e+00 : f32
    %53 = vector.broadcast %cst_30 : f32 to vector<2x1xf32>
    %54 = vector.extract_strided_slice %40 {offsets = [0, 1], sizes = [2, 255], strides = [1, 1]} : vector<2x256xf32> to vector<2x255xf32>
    %55 = tpu.concatenate %54, %53 in 1 : vector<2x255xf32>, vector<2x1xf32> -> vector<2x256xf32>
    %c2 = arith.constant 2 : index
    %c0_31 = arith.constant 0 : index
    %c0_32 = arith.constant 0 : index
    %56 = vector.load %arg7[%c2, %c0_31, %c0_32] : memref<3x8x2xbf16, #tpu.memory_space<vmem>>, vector<1x8x2xbf16>
    %57 = vector.shape_cast %56 : vector<1x8x2xbf16> to vector<8x2xbf16>
    %58 = arith.truncf %55 : vector<2x256xf32> to vector<2x256xbf16>
    %cst_33 = arith.constant dense<0.000000e+00> : vector<8x256xf32>
    %59 = tpu.matmul %57, %58, %cst_33 {dimension_numbers = #tpu.dot_dimension_numbers<[1], [0], [0], [1], [0, 0, 1, 1], [], []>} : vector<8x2xbf16>, vector<2x256xbf16>, vector<8x256xf32> -> vector<8x256xf32>
    %60 = arith.addf %52, %59 : vector<8x256xf32>
    %c0_34 = arith.constant 0 : index
    %c0_35 = arith.constant 0 : index
    %61 = vector.load %arg8[%c0_34, %c0_35] : memref<8x1xf32, #tpu.memory_space<vmem>>, vector<8x1xf32>
    %62 = vector.broadcast %61 : vector<8x1xf32> to vector<8x256xf32>
    %63 = arith.addf %60, %62 : vector<8x256xf32>
    %64 = vector.broadcast %1 : vector<1x256xf32> to vector<8x256xf32>
    %65 = arith.mulf %63, %64 : vector<8x256xf32>
    %c0_36 = arith.constant 0 : index
    %c0_37 = arith.constant 0 : index
    %66 = vector.load %arg9[%c0_36, %c0_37] : memref<8x4xf32, #tpu.memory_space<vmem>>, vector<8x4xf32>
    %c0_38 = arith.constant 0 : index
    %c0_39 = arith.constant 0 : index
    %67 = vector.load %arg10[%c0_38, %c0_39] : memref<8x8xf32, #tpu.memory_space<vmem>>, vector<8x8xf32>
    %c0_40 = arith.constant 0 : index
    %c0_41 = arith.constant 0 : index
    %68 = vector.load %arg11[%c0_40, %c0_41] : memref<8x8xf32, #tpu.memory_space<vmem>>, vector<8x8xf32>
    %cst_42 = arith.constant dense<0.000000e+00> : vector<8x2xf32>
    %69 = tpu.matmul %65, %2, %cst_42 {dimension_numbers = #tpu.dot_dimension_numbers<[1], [0], [0], [1], [0, 0, 1, 1], [], []>} : vector<8x256xf32>, vector<256x2xf32>, vector<8x2xf32> -> vector<8x2xf32>
    %70 = arith.mulf %65, %65 : vector<8x256xf32>
    %cst_43 = arith.constant dense<0.000000e+00> : vector<8x2xf32>
    %71 = tpu.matmul %70, %2, %cst_43 {dimension_numbers = #tpu.dot_dimension_numbers<[1], [0], [0], [1], [0, 0, 1, 1], [], []>} : vector<8x256xf32>, vector<256x2xf32>, vector<8x2xf32> -> vector<8x2xf32>
    %cst_44 = arith.constant dense<0.000000e+00> : vector<8x2xf32>
    %72 = tpu.matmul %67, %69, %cst_44 {dimension_numbers = #tpu.dot_dimension_numbers<[1], [0], [0], [1], [0, 0, 1, 1], [], []>} : vector<8x8xf32>, vector<8x2xf32>, vector<8x2xf32> -> vector<8x2xf32>
    %cst_45 = arith.constant dense<0.000000e+00> : vector<8x2xf32>
    %73 = tpu.matmul %67, %71, %cst_45 {dimension_numbers = #tpu.dot_dimension_numbers<[1], [0], [0], [1], [0, 0, 1, 1], [], []>} : vector<8x8xf32>, vector<8x2xf32>, vector<8x2xf32> -> vector<8x2xf32>
    %74 = arith.mulf %72, %72 : vector<8x2xf32>
    %75 = arith.subf %73, %74 : vector<8x2xf32>
    %cst_46 = arith.constant 0.000000e+00 : f32
    %76 = vector.broadcast %cst_46 : f32 to vector<8x2xf32>
    %77 = arith.maximumf %75, %76 : vector<8x2xf32>
    %cst_47 = arith.constant dense<0.000000e+00> : vector<8x2xf32>
    %78 = tpu.matmul %68, %72, %cst_47 {dimension_numbers = #tpu.dot_dimension_numbers<[1], [0], [0], [1], [0, 0, 1, 1], [], []>} : vector<8x8xf32>, vector<8x2xf32>, vector<8x2xf32> -> vector<8x2xf32>
    %cst_48 = arith.constant dense<0.000000e+00> : vector<8x2xf32>
    %79 = tpu.matmul %68, %77, %cst_48 {dimension_numbers = #tpu.dot_dimension_numbers<[1], [0], [0], [1], [0, 0, 1, 1], [], []>} : vector<8x8xf32>, vector<8x2xf32>, vector<8x2xf32> -> vector<8x2xf32>
    %80 = vector.extract_strided_slice %66 {offsets = [0, 0], sizes = [8, 1], strides = [1, 1]} : vector<8x4xf32> to vector<8x1xf32>
    %81 = vector.extract_strided_slice %66 {offsets = [0, 1], sizes = [8, 1], strides = [1, 1]} : vector<8x4xf32> to vector<8x1xf32>
    %82 = vector.extract_strided_slice %66 {offsets = [0, 2], sizes = [8, 1], strides = [1, 1]} : vector<8x4xf32> to vector<8x1xf32>
    %83 = vector.extract_strided_slice %66 {offsets = [0, 3], sizes = [8, 1], strides = [1, 1]} : vector<8x4xf32> to vector<8x1xf32>
    %cst_49 = arith.constant 9.99999974E-6 : f32
    %84 = vector.broadcast %cst_49 : f32 to vector<8x2xf32>
    %85 = arith.addf %79, %84 : vector<8x2xf32>
    %86 = math.rsqrt %85 : vector<8x2xf32>
    %87 = vector.broadcast %80 : vector<8x1xf32> to vector<8x2xf32>
    %88 = arith.mulf %87, %86 : vector<8x2xf32>
    %89 = arith.mulf %78, %88 : vector<8x2xf32>
    %90 = vector.broadcast %81 : vector<8x1xf32> to vector<8x2xf32>
    %91 = arith.subf %90, %89 : vector<8x2xf32>
    %cst_50 = arith.constant dense<0.000000e+00> : vector<8x256xf32>
    %92 = tpu.matmul %88, %3, %cst_50 {dimension_numbers = #tpu.dot_dimension_numbers<[1], [0], [0], [1], [0, 0, 1, 1], [], []>} : vector<8x2xf32>, vector<2x256xf32>, vector<8x256xf32> -> vector<8x256xf32>
    %cst_51 = arith.constant dense<0.000000e+00> : vector<8x256xf32>
    %93 = tpu.matmul %91, %3, %cst_51 {dimension_numbers = #tpu.dot_dimension_numbers<[1], [0], [0], [1], [0, 0, 1, 1], [], []>} : vector<8x2xf32>, vector<2x256xf32>, vector<8x256xf32> -> vector<8x256xf32>
    %94 = arith.mulf %65, %92 : vector<8x256xf32>
    %95 = arith.addf %94, %93 : vector<8x256xf32>
    %96 = vector.broadcast %82 : vector<8x1xf32> to vector<8x256xf32>
    %97 = arith.mulf %96, %95 : vector<8x256xf32>
    %98 = math.sin %97 : vector<8x256xf32>
    %99 = arith.mulf %98, %98 : vector<8x256xf32>
    %100 = vector.broadcast %83 : vector<8x1xf32> to vector<8x256xf32>
    %101 = arith.mulf %99, %100 : vector<8x256xf32>
    %102 = arith.addf %95, %101 : vector<8x256xf32>
    %c0_52 = arith.constant 0 : index
    %c0_53 = arith.constant 0 : index
    %c0_54 = arith.constant 0 : index
    %103 = vector.load %arg12[%c0_52, %c0_53, %c0_54] : memref<1x8x8xbf16, #tpu.memory_space<vmem>>, vector<1x8x8xbf16>
    %104 = vector.shape_cast %103 : vector<1x8x8xbf16> to vector<8x8xbf16>
    %105 = arith.truncf %102 : vector<8x256xf32> to vector<8x256xbf16>
    %cst_55 = arith.constant dense<0.000000e+00> : vector<8x256xf32>
    %106 = tpu.matmul %104, %105, %cst_55 {dimension_numbers = #tpu.dot_dimension_numbers<[1], [0], [0], [1], [0, 0, 1, 1], [], []>} : vector<8x8xbf16>, vector<8x256xbf16>, vector<8x256xf32> -> vector<8x256xf32>
    %c0_56 = arith.constant 0 : index
    %c0_57 = arith.constant 0 : index
    %107 = vector.load %arg13[%c0_56, %c0_57] : memref<8x1xf32, #tpu.memory_space<vmem>>, vector<8x1xf32>
    %108 = vector.broadcast %107 : vector<8x1xf32> to vector<8x256xf32>
    %109 = arith.addf %106, %108 : vector<8x256xf32>
    %c0_58 = arith.constant 0 : index
    %c0_59 = arith.constant 0 : index
    %110 = vector.load %arg14[%c0_58, %c0_59] : memref<8x2xbf16, #tpu.memory_space<vmem>>, vector<8x2xbf16>
    %111 = arith.truncf %0 : vector<2x256xf32> to vector<2x256xbf16>
    %cst_60 = arith.constant dense<0.000000e+00> : vector<8x256xf32>
    %112 = tpu.matmul %110, %111, %cst_60 {dimension_numbers = #tpu.dot_dimension_numbers<[1], [0], [0], [1], [0, 0, 1, 1], [], []>} : vector<8x2xbf16>, vector<2x256xbf16>, vector<8x256xf32> -> vector<8x256xf32>
    %113 = arith.addf %109, %112 : vector<8x256xf32>
    %c0_61 = arith.constant 0 : index
    %c0_62 = arith.constant 0 : index
    %114 = vector.load %arg15[%c0_61, %c0_62] : memref<8x1xf32, #tpu.memory_space<vmem>>, vector<8x1xf32>
    %115 = vector.broadcast %114 : vector<8x1xf32> to vector<8x256xf32>
    %116 = arith.addf %113, %115 : vector<8x256xf32>
    %117 = vector.broadcast %1 : vector<1x256xf32> to vector<8x256xf32>
    %118 = arith.mulf %116, %117 : vector<8x256xf32>
    %119 = arith.truncf %118 : vector<8x256xf32> to vector<8x256xbf16>
    %c0_63 = arith.constant 0 : index
    %c0_64 = arith.constant 0 : index
    %120 = vector.load %arg16[%c0_63, %c0_64] : memref<8x256xbf16, #tpu.memory_space<vmem>>, vector<8x256xbf16>
    tpu.vector_store %arg16[%c0_63, %c0_64], %119 {strides = array<i32>} : memref<8x256xbf16, #tpu.memory_space<vmem>>, vector<8x256xbf16>,
    return
  }
}

module attributes {stable_mosaic.version = 11 : i64} {
  func.func @_resnet_kernel(%arg0: memref<8x256xbf16, #tpu.memory_space<vmem>>, %arg1: memref<1x256xf32, #tpu.memory_space<vmem>>, %arg2: memref<256x2xf32, #tpu.memory_space<vmem>>, %arg3: memref<2x256xf32, #tpu.memory_space<vmem>>, %arg4: memref<8x4xf32, #tpu.memory_space<vmem>>, %arg5: memref<4x8xf32, #tpu.memory_space<vmem>>, %arg6: memref<8x4xf32, #tpu.memory_space<vmem>>, %arg7: memref<3x8x8xbf16, #tpu.memory_space<vmem>>, %arg8: memref<8x1xf32, #tpu.memory_space<vmem>>, %arg9: memref<8x4xf32, #tpu.memory_space<vmem>>, %arg10: memref<8x8xf32, #tpu.memory_space<vmem>>, %arg11: memref<8x8xf32, #tpu.memory_space<vmem>>, %arg12: memref<1x8x8xbf16, #tpu.memory_space<vmem>>, %arg13: memref<8x1xf32, #tpu.memory_space<vmem>>, %arg14: memref<8x256xbf16, #tpu.memory_space<vmem>>) attributes {dimension_semantics = [], scalar_prefetch = 0 : i64, scratch_operands = 0 : i64, tpu.core_type = #tpu.core_type<tc>} {
    %c0 = arith.constant 0 : index
    %c0_0 = arith.constant 0 : index
    %0 = vector.load %arg0[%c0, %c0_0] : memref<8x256xbf16, #tpu.memory_space<vmem>>, vector<8x256xbf16>
    %1 = arith.extf %0 : vector<8x256xbf16> to vector<8x256xf32>
    %c0_1 = arith.constant 0 : index
    %c0_2 = arith.constant 0 : index
    %2 = vector.load %arg1[%c0_1, %c0_2] : memref<1x256xf32, #tpu.memory_space<vmem>>, vector<1x256xf32>
    %c0_3 = arith.constant 0 : index
    %c0_4 = arith.constant 0 : index
    %3 = vector.load %arg2[%c0_3, %c0_4] : memref<256x2xf32, #tpu.memory_space<vmem>>, vector<256x2xf32>
    %c0_5 = arith.constant 0 : index
    %c0_6 = arith.constant 0 : index
    %4 = vector.load %arg3[%c0_5, %c0_6] : memref<2x256xf32, #tpu.memory_space<vmem>>, vector<2x256xf32>
    %c0_7 = arith.constant 0 : index
    %c0_8 = arith.constant 0 : index
    %5 = vector.load %arg4[%c0_7, %c0_8] : memref<8x4xf32, #tpu.memory_space<vmem>>, vector<8x4xf32>
    %c0_9 = arith.constant 0 : index
    %c0_10 = arith.constant 0 : index
    %6 = vector.load %arg5[%c0_9, %c0_10] : memref<4x8xf32, #tpu.memory_space<vmem>>, vector<4x8xf32>
    %c0_11 = arith.constant 0 : index
    %c0_12 = arith.constant 0 : index
    %7 = vector.load %arg6[%c0_11, %c0_12] : memref<8x4xf32, #tpu.memory_space<vmem>>, vector<8x4xf32>
    %cst = arith.constant dense<0.000000e+00> : vector<8x2xf32>
    %8 = tpu.matmul %1, %3, %cst {dimension_numbers = #tpu.dot_dimension_numbers<[1], [0], [0], [1], [0, 0, 1, 1], [], []>} : vector<8x256xf32>, vector<256x2xf32>, vector<8x2xf32> -> vector<8x2xf32>
    %9 = arith.mulf %1, %1 : vector<8x256xf32>
    %cst_13 = arith.constant dense<0.000000e+00> : vector<8x2xf32>
    %10 = tpu.matmul %9, %3, %cst_13 {dimension_numbers = #tpu.dot_dimension_numbers<[1], [0], [0], [1], [0, 0, 1, 1], [], []>} : vector<8x256xf32>, vector<256x2xf32>, vector<8x2xf32> -> vector<8x2xf32>
    %cst_14 = arith.constant dense<0.000000e+00> : vector<4x2xf32>
    %11 = tpu.matmul %6, %8, %cst_14 {dimension_numbers = #tpu.dot_dimension_numbers<[1], [0], [0], [1], [0, 0, 1, 1], [], []>} : vector<4x8xf32>, vector<8x2xf32>, vector<4x2xf32> -> vector<4x2xf32>
    %cst_15 = arith.constant dense<0.000000e+00> : vector<4x2xf32>
    %12 = tpu.matmul %6, %10, %cst_15 {dimension_numbers = #tpu.dot_dimension_numbers<[1], [0], [0], [1], [0, 0, 1, 1], [], []>} : vector<4x8xf32>, vector<8x2xf32>, vector<4x2xf32> -> vector<4x2xf32>
    %13 = arith.mulf %11, %11 : vector<4x2xf32>
    %14 = arith.subf %12, %13 : vector<4x2xf32>
    %cst_16 = arith.constant 0.000000e+00 : f32
    %15 = vector.broadcast %cst_16 : f32 to vector<4x2xf32>
    %16 = arith.maximumf %14, %15 : vector<4x2xf32>
    %cst_17 = arith.constant dense<0.000000e+00> : vector<8x2xf32>
    %17 = tpu.matmul %7, %11, %cst_17 {dimension_numbers = #tpu.dot_dimension_numbers<[1], [0], [0], [1], [0, 0, 1, 1], [], []>} : vector<8x4xf32>, vector<4x2xf32>, vector<8x2xf32> -> vector<8x2xf32>
    %cst_18 = arith.constant dense<0.000000e+00> : vector<8x2xf32>
    %18 = tpu.matmul %7, %16, %cst_18 {dimension_numbers = #tpu.dot_dimension_numbers<[1], [0], [0], [1], [0, 0, 1, 1], [], []>} : vector<8x4xf32>, vector<4x2xf32>, vector<8x2xf32> -> vector<8x2xf32>
    %19 = vector.extract_strided_slice %5 {offsets = [0, 0], sizes = [8, 1], strides = [1, 1]} : vector<8x4xf32> to vector<8x1xf32>
    %20 = vector.extract_strided_slice %5 {offsets = [0, 1], sizes = [8, 1], strides = [1, 1]} : vector<8x4xf32> to vector<8x1xf32>
    %21 = vector.extract_strided_slice %5 {offsets = [0, 2], sizes = [8, 1], strides = [1, 1]} : vector<8x4xf32> to vector<8x1xf32>
    %22 = vector.extract_strided_slice %5 {offsets = [0, 3], sizes = [8, 1], strides = [1, 1]} : vector<8x4xf32> to vector<8x1xf32>
    %cst_19 = arith.constant 9.99999974E-6 : f32
    %23 = vector.broadcast %cst_19 : f32 to vector<8x2xf32>
    %24 = arith.addf %18, %23 : vector<8x2xf32>
    %25 = math.rsqrt %24 : vector<8x2xf32>
    %26 = vector.broadcast %19 : vector<8x1xf32> to vector<8x2xf32>
    %27 = arith.mulf %26, %25 : vector<8x2xf32>
    %28 = arith.mulf %17, %27 : vector<8x2xf32>
    %29 = vector.broadcast %20 : vector<8x1xf32> to vector<8x2xf32>
    %30 = arith.subf %29, %28 : vector<8x2xf32>
    %cst_20 = arith.constant dense<0.000000e+00> : vector<8x256xf32>
    %31 = tpu.matmul %27, %4, %cst_20 {dimension_numbers = #tpu.dot_dimension_numbers<[1], [0], [0], [1], [0, 0, 1, 1], [], []>} : vector<8x2xf32>, vector<2x256xf32>, vector<8x256xf32> -> vector<8x256xf32>
    %cst_21 = arith.constant dense<0.000000e+00> : vector<8x256xf32>
    %32 = tpu.matmul %30, %4, %cst_21 {dimension_numbers = #tpu.dot_dimension_numbers<[1], [0], [0], [1], [0, 0, 1, 1], [], []>} : vector<8x2xf32>, vector<2x256xf32>, vector<8x256xf32> -> vector<8x256xf32>
    %33 = arith.mulf %1, %31 : vector<8x256xf32>
    %34 = arith.addf %33, %32 : vector<8x256xf32>
    %35 = vector.broadcast %21 : vector<8x1xf32> to vector<8x256xf32>
    %36 = arith.mulf %35, %34 : vector<8x256xf32>
    %37 = math.sin %36 : vector<8x256xf32>
    %38 = arith.mulf %37, %37 : vector<8x256xf32>
    %39 = vector.broadcast %22 : vector<8x1xf32> to vector<8x256xf32>
    %40 = arith.mulf %38, %39 : vector<8x256xf32>
    %41 = arith.addf %34, %40 : vector<8x256xf32>
    %cst_22 = arith.constant 0.000000e+00 : f32
    %42 = vector.broadcast %cst_22 : f32 to vector<8x9xf32>
    %43 = vector.extract_strided_slice %41 {offsets = [0, 0], sizes = [8, 247], strides = [1, 1]} : vector<8x256xf32> to vector<8x247xf32>
    %44 = tpu.concatenate %42, %43 in 1 : vector<8x9xf32>, vector<8x247xf32> -> vector<8x256xf32>
    %c0_23 = arith.constant 0 : index
    %c0_24 = arith.constant 0 : index
    %c0_25 = arith.constant 0 : index
    %45 = vector.load %arg7[%c0_23, %c0_24, %c0_25] : memref<3x8x8xbf16, #tpu.memory_space<vmem>>, vector<1x8x8xbf16>
    %46 = vector.shape_cast %45 : vector<1x8x8xbf16> to vector<8x8xbf16>
    %47 = arith.truncf %44 : vector<8x256xf32> to vector<8x256xbf16>
    %cst_26 = arith.constant dense<0.000000e+00> : vector<8x256xf32>
    %48 = tpu.matmul %46, %47, %cst_26 {dimension_numbers = #tpu.dot_dimension_numbers<[1], [0], [0], [1], [0, 0, 1, 1], [], []>} : vector<8x8xbf16>, vector<8x256xbf16>, vector<8x256xf32> -> vector<8x256xf32>
    %c1 = arith.constant 1 : index
    %c0_27 = arith.constant 0 : index
    %c0_28 = arith.constant 0 : index
    %49 = vector.load %arg7[%c1, %c0_27, %c0_28] : memref<3x8x8xbf16, #tpu.memory_space<vmem>>, vector<1x8x8xbf16>
    %50 = vector.shape_cast %49 : vector<1x8x8xbf16> to vector<8x8xbf16>
    %51 = arith.truncf %41 : vector<8x256xf32> to vector<8x256xbf16>
    %cst_29 = arith.constant dense<0.000000e+00> : vector<8x256xf32>
    %52 = tpu.matmul %50, %51, %cst_29 {dimension_numbers = #tpu.dot_dimension_numbers<[1], [0], [0], [1], [0, 0, 1, 1], [], []>} : vector<8x8xbf16>, vector<8x256xbf16>, vector<8x256xf32> -> vector<8x256xf32>
    %53 = arith.addf %48, %52 : vector<8x256xf32>
    %cst_30 = arith.constant 0.000000e+00 : f32
    %54 = vector.broadcast %cst_30 : f32 to vector<8x9xf32>
    %55 = vector.extract_strided_slice %41 {offsets = [0, 9], sizes = [8, 247], strides = [1, 1]} : vector<8x256xf32> to vector<8x247xf32>
    %56 = tpu.concatenate %55, %54 in 1 : vector<8x247xf32>, vector<8x9xf32> -> vector<8x256xf32>
    %c2 = arith.constant 2 : index
    %c0_31 = arith.constant 0 : index
    %c0_32 = arith.constant 0 : index
    %57 = vector.load %arg7[%c2, %c0_31, %c0_32] : memref<3x8x8xbf16, #tpu.memory_space<vmem>>, vector<1x8x8xbf16>
    %58 = vector.shape_cast %57 : vector<1x8x8xbf16> to vector<8x8xbf16>
    %59 = arith.truncf %56 : vector<8x256xf32> to vector<8x256xbf16>
    %cst_33 = arith.constant dense<0.000000e+00> : vector<8x256xf32>
    %60 = tpu.matmul %58, %59, %cst_33 {dimension_numbers = #tpu.dot_dimension_numbers<[1], [0], [0], [1], [0, 0, 1, 1], [], []>} : vector<8x8xbf16>, vector<8x256xbf16>, vector<8x256xf32> -> vector<8x256xf32>
    %61 = arith.addf %53, %60 : vector<8x256xf32>
    %c0_34 = arith.constant 0 : index
    %c0_35 = arith.constant 0 : index
    %62 = vector.load %arg8[%c0_34, %c0_35] : memref<8x1xf32, #tpu.memory_space<vmem>>, vector<8x1xf32>
    %63 = vector.broadcast %62 : vector<8x1xf32> to vector<8x256xf32>
    %64 = arith.addf %61, %63 : vector<8x256xf32>
    %65 = vector.broadcast %2 : vector<1x256xf32> to vector<8x256xf32>
    %66 = arith.mulf %64, %65 : vector<8x256xf32>
    %c0_36 = arith.constant 0 : index
    %c0_37 = arith.constant 0 : index
    %67 = vector.load %arg9[%c0_36, %c0_37] : memref<8x4xf32, #tpu.memory_space<vmem>>, vector<8x4xf32>
    %c0_38 = arith.constant 0 : index
    %c0_39 = arith.constant 0 : index
    %68 = vector.load %arg10[%c0_38, %c0_39] : memref<8x8xf32, #tpu.memory_space<vmem>>, vector<8x8xf32>
    %c0_40 = arith.constant 0 : index
    %c0_41 = arith.constant 0 : index
    %69 = vector.load %arg11[%c0_40, %c0_41] : memref<8x8xf32, #tpu.memory_space<vmem>>, vector<8x8xf32>
    %cst_42 = arith.constant dense<0.000000e+00> : vector<8x2xf32>
    %70 = tpu.matmul %66, %3, %cst_42 {dimension_numbers = #tpu.dot_dimension_numbers<[1], [0], [0], [1], [0, 0, 1, 1], [], []>} : vector<8x256xf32>, vector<256x2xf32>, vector<8x2xf32> -> vector<8x2xf32>
    %71 = arith.mulf %66, %66 : vector<8x256xf32>
    %cst_43 = arith.constant dense<0.000000e+00> : vector<8x2xf32>
    %72 = tpu.matmul %71, %3, %cst_43 {dimension_numbers = #tpu.dot_dimension_numbers<[1], [0], [0], [1], [0, 0, 1, 1], [], []>} : vector<8x256xf32>, vector<256x2xf32>, vector<8x2xf32> -> vector<8x2xf32>
    %cst_44 = arith.constant dense<0.000000e+00> : vector<8x2xf32>
    %73 = tpu.matmul %68, %70, %cst_44 {dimension_numbers = #tpu.dot_dimension_numbers<[1], [0], [0], [1], [0, 0, 1, 1], [], []>} : vector<8x8xf32>, vector<8x2xf32>, vector<8x2xf32> -> vector<8x2xf32>
    %cst_45 = arith.constant dense<0.000000e+00> : vector<8x2xf32>
    %74 = tpu.matmul %68, %72, %cst_45 {dimension_numbers = #tpu.dot_dimension_numbers<[1], [0], [0], [1], [0, 0, 1, 1], [], []>} : vector<8x8xf32>, vector<8x2xf32>, vector<8x2xf32> -> vector<8x2xf32>
    %75 = arith.mulf %73, %73 : vector<8x2xf32>
    %76 = arith.subf %74, %75 : vector<8x2xf32>
    %cst_46 = arith.constant 0.000000e+00 : f32
    %77 = vector.broadcast %cst_46 : f32 to vector<8x2xf32>
    %78 = arith.maximumf %76, %77 : vector<8x2xf32>
    %cst_47 = arith.constant dense<0.000000e+00> : vector<8x2xf32>
    %79 = tpu.matmul %69, %73, %cst_47 {dimension_numbers = #tpu.dot_dimension_numbers<[1], [0], [0], [1], [0, 0, 1, 1], [], []>} : vector<8x8xf32>, vector<8x2xf32>, vector<8x2xf32> -> vector<8x2xf32>
    %cst_48 = arith.constant dense<0.000000e+00> : vector<8x2xf32>
    %80 = tpu.matmul %69, %78, %cst_48 {dimension_numbers = #tpu.dot_dimension_numbers<[1], [0], [0], [1], [0, 0, 1, 1], [], []>} : vector<8x8xf32>, vector<8x2xf32>, vector<8x2xf32> -> vector<8x2xf32>
    %81 = vector.extract_strided_slice %67 {offsets = [0, 0], sizes = [8, 1], strides = [1, 1]} : vector<8x4xf32> to vector<8x1xf32>
    %82 = vector.extract_strided_slice %67 {offsets = [0, 1], sizes = [8, 1], strides = [1, 1]} : vector<8x4xf32> to vector<8x1xf32>
    %83 = vector.extract_strided_slice %67 {offsets = [0, 2], sizes = [8, 1], strides = [1, 1]} : vector<8x4xf32> to vector<8x1xf32>
    %84 = vector.extract_strided_slice %67 {offsets = [0, 3], sizes = [8, 1], strides = [1, 1]} : vector<8x4xf32> to vector<8x1xf32>
    %cst_49 = arith.constant 9.99999974E-6 : f32
    %85 = vector.broadcast %cst_49 : f32 to vector<8x2xf32>
    %86 = arith.addf %80, %85 : vector<8x2xf32>
    %87 = math.rsqrt %86 : vector<8x2xf32>
    %88 = vector.broadcast %81 : vector<8x1xf32> to vector<8x2xf32>
    %89 = arith.mulf %88, %87 : vector<8x2xf32>
    %90 = arith.mulf %79, %89 : vector<8x2xf32>
    %91 = vector.broadcast %82 : vector<8x1xf32> to vector<8x2xf32>
    %92 = arith.subf %91, %90 : vector<8x2xf32>
    %cst_50 = arith.constant dense<0.000000e+00> : vector<8x256xf32>
    %93 = tpu.matmul %89, %4, %cst_50 {dimension_numbers = #tpu.dot_dimension_numbers<[1], [0], [0], [1], [0, 0, 1, 1], [], []>} : vector<8x2xf32>, vector<2x256xf32>, vector<8x256xf32> -> vector<8x256xf32>
    %cst_51 = arith.constant dense<0.000000e+00> : vector<8x256xf32>
    %94 = tpu.matmul %92, %4, %cst_51 {dimension_numbers = #tpu.dot_dimension_numbers<[1], [0], [0], [1], [0, 0, 1, 1], [], []>} : vector<8x2xf32>, vector<2x256xf32>, vector<8x256xf32> -> vector<8x256xf32>
    %95 = arith.mulf %66, %93 : vector<8x256xf32>
    %96 = arith.addf %95, %94 : vector<8x256xf32>
    %97 = vector.broadcast %83 : vector<8x1xf32> to vector<8x256xf32>
    %98 = arith.mulf %97, %96 : vector<8x256xf32>
    %99 = math.sin %98 : vector<8x256xf32>
    %100 = arith.mulf %99, %99 : vector<8x256xf32>
    %101 = vector.broadcast %84 : vector<8x1xf32> to vector<8x256xf32>
    %102 = arith.mulf %100, %101 : vector<8x256xf32>
    %103 = arith.addf %96, %102 : vector<8x256xf32>
    %c0_52 = arith.constant 0 : index
    %c0_53 = arith.constant 0 : index
    %c0_54 = arith.constant 0 : index
    %104 = vector.load %arg12[%c0_52, %c0_53, %c0_54] : memref<1x8x8xbf16, #tpu.memory_space<vmem>>, vector<1x8x8xbf16>
    %105 = vector.shape_cast %104 : vector<1x8x8xbf16> to vector<8x8xbf16>
    %106 = arith.truncf %103 : vector<8x256xf32> to vector<8x256xbf16>
    %cst_55 = arith.constant dense<0.000000e+00> : vector<8x256xf32>
    %107 = tpu.matmul %105, %106, %cst_55 {dimension_numbers = #tpu.dot_dimension_numbers<[1], [0], [0], [1], [0, 0, 1, 1], [], []>} : vector<8x8xbf16>, vector<8x256xbf16>, vector<8x256xf32> -> vector<8x256xf32>
    %c0_56 = arith.constant 0 : index
    %c0_57 = arith.constant 0 : index
    %108 = vector.load %arg13[%c0_56, %c0_57] : memref<8x1xf32, #tpu.memory_space<vmem>>, vector<8x1xf32>
    %109 = vector.broadcast %108 : vector<8x1xf32> to vector<8x256xf32>
    %110 = arith.addf %107, %109 : vector<8x256xf32>
    %111 = arith.addf %110, %1 : vector<8x256xf32>
    %112 = vector.broadcast %2 : vector<1x256xf32> to vector<8x256xf32>
    %113 = arith.mulf %111, %112 : vector<8x256xf32>
    %114 = arith.truncf %113 : vector<8x256xf32> to vector<8x256xbf16>
    %c0_58 = arith.constant 0 : index
    %c0_59 = arith.constant 0 : index
    %115 = vector.load %arg14[%c0_58, %c0_59] : memref<8x256xbf16, #tpu.memory_space<vmem>>, vector<8x256xbf16>
    tpu.vector_store %arg14[%c0_58, %c0_59], %114 {strides = array<i32>} : memref<8x256xbf16, #tpu.memory_space<vmem>>, vector<8x256xbf16>,
    return
  }
}

module attributes {stable_mosaic.version = 11 : i64} {
  func.func @_act_conv_kernel(%arg0: memref<16x128xbf16, #tpu.memory_space<vmem>>, %arg1: memref<1x128xf32, #tpu.memory_space<vmem>>, %arg2: memref<16x2xf32, #tpu.memory_space<vmem>>, %arg3: memref<3x8x16xbf16, #tpu.memory_space<vmem>>, %arg4: memref<8x1xf32, #tpu.memory_space<vmem>>, %arg5: memref<8x128xbf16, #tpu.memory_space<vmem>>) attributes {dimension_semantics = [], scalar_prefetch = 0 : i64, scratch_operands = 0 : i64, tpu.core_type = #tpu.core_type<tc>} {
    %c0 = arith.constant 0 : index
    %c0_0 = arith.constant 0 : index
    %0 = vector.load %arg0[%c0, %c0_0] : memref<16x128xbf16, #tpu.memory_space<vmem>>, vector<16x128xbf16>
    %1 = arith.extf %0 : vector<16x128xbf16> to vector<16x128xf32>
    %c0_1 = arith.constant 0 : index
    %c0_2 = arith.constant 0 : index
    %2 = vector.load %arg2[%c0_1, %c0_2] : memref<16x2xf32, #tpu.memory_space<vmem>>, vector<16x2xf32>
    %3 = vector.extract_strided_slice %2 {offsets = [0, 0], sizes = [16, 1], strides = [1, 1]} : vector<16x2xf32> to vector<16x1xf32>
    %4 = vector.extract_strided_slice %2 {offsets = [0, 1], sizes = [16, 1], strides = [1, 1]} : vector<16x2xf32> to vector<16x1xf32>
    %5 = vector.broadcast %3 : vector<16x1xf32> to vector<16x128xf32>
    %6 = arith.mulf %5, %1 : vector<16x128xf32>
    %7 = math.sin %6 : vector<16x128xf32>
    %8 = arith.mulf %7, %7 : vector<16x128xf32>
    %9 = vector.broadcast %4 : vector<16x1xf32> to vector<16x128xf32>
    %10 = arith.mulf %8, %9 : vector<16x128xf32>
    %11 = arith.addf %1, %10 : vector<16x128xf32>
    %cst = arith.constant 0.000000e+00 : f32
    %12 = vector.broadcast %cst : f32 to vector<16x1xf32>
    %13 = vector.extract_strided_slice %11 {offsets = [0, 0], sizes = [16, 127], strides = [1, 1]} : vector<16x128xf32> to vector<16x127xf32>
    %14 = tpu.concatenate %12, %13 in 1 : vector<16x1xf32>, vector<16x127xf32> -> vector<16x128xf32>
    %c0_3 = arith.constant 0 : index
    %c0_4 = arith.constant 0 : index
    %c0_5 = arith.constant 0 : index
    %15 = vector.load %arg3[%c0_3, %c0_4, %c0_5] : memref<3x8x16xbf16, #tpu.memory_space<vmem>>, vector<1x8x16xbf16>
    %16 = vector.shape_cast %15 : vector<1x8x16xbf16> to vector<8x16xbf16>
    %17 = arith.truncf %14 : vector<16x128xf32> to vector<16x128xbf16>
    %cst_6 = arith.constant dense<0.000000e+00> : vector<8x128xf32>
    %18 = tpu.matmul %16, %17, %cst_6 {dimension_numbers = #tpu.dot_dimension_numbers<[1], [0], [0], [1], [0, 0, 1, 1], [], []>} : vector<8x16xbf16>, vector<16x128xbf16>, vector<8x128xf32> -> vector<8x128xf32>
    %c1 = arith.constant 1 : index
    %c0_7 = arith.constant 0 : index
    %c0_8 = arith.constant 0 : index
    %19 = vector.load %arg3[%c1, %c0_7, %c0_8] : memref<3x8x16xbf16, #tpu.memory_space<vmem>>, vector<1x8x16xbf16>
    %20 = vector.shape_cast %19 : vector<1x8x16xbf16> to vector<8x16xbf16>
    %21 = arith.truncf %11 : vector<16x128xf32> to vector<16x128xbf16>
    %cst_9 = arith.constant dense<0.000000e+00> : vector<8x128xf32>
    %22 = tpu.matmul %20, %21, %cst_9 {dimension_numbers = #tpu.dot_dimension_numbers<[1], [0], [0], [1], [0, 0, 1, 1], [], []>} : vector<8x16xbf16>, vector<16x128xbf16>, vector<8x128xf32> -> vector<8x128xf32>
    %23 = arith.addf %18, %22 : vector<8x128xf32>
    %cst_10 = arith.constant 0.000000e+00 : f32
    %24 = vector.broadcast %cst_10 : f32 to vector<16x1xf32>
    %25 = vector.extract_strided_slice %11 {offsets = [0, 1], sizes = [16, 127], strides = [1, 1]} : vector<16x128xf32> to vector<16x127xf32>
    %26 = tpu.concatenate %25, %24 in 1 : vector<16x127xf32>, vector<16x1xf32> -> vector<16x128xf32>
    %c2 = arith.constant 2 : index
    %c0_11 = arith.constant 0 : index
    %c0_12 = arith.constant 0 : index
    %27 = vector.load %arg3[%c2, %c0_11, %c0_12] : memref<3x8x16xbf16, #tpu.memory_space<vmem>>, vector<1x8x16xbf16>
    %28 = vector.shape_cast %27 : vector<1x8x16xbf16> to vector<8x16xbf16>
    %29 = arith.truncf %26 : vector<16x128xf32> to vector<16x128xbf16>
    %cst_13 = arith.constant dense<0.000000e+00> : vector<8x128xf32>
    %30 = tpu.matmul %28, %29, %cst_13 {dimension_numbers = #tpu.dot_dimension_numbers<[1], [0], [0], [1], [0, 0, 1, 1], [], []>} : vector<8x16xbf16>, vector<16x128xbf16>, vector<8x128xf32> -> vector<8x128xf32>
    %31 = arith.addf %23, %30 : vector<8x128xf32>
    %c0_14 = arith.constant 0 : index
    %c0_15 = arith.constant 0 : index
    %32 = vector.load %arg4[%c0_14, %c0_15] : memref<8x1xf32, #tpu.memory_space<vmem>>, vector<8x1xf32>
    %33 = vector.broadcast %32 : vector<8x1xf32> to vector<8x128xf32>
    %34 = arith.addf %31, %33 : vector<8x128xf32>
    %c0_16 = arith.constant 0 : index
    %c0_17 = arith.constant 0 : index
    %35 = vector.load %arg1[%c0_16, %c0_17] : memref<1x128xf32, #tpu.memory_space<vmem>>, vector<1x128xf32>
    %36 = vector.broadcast %35 : vector<1x128xf32> to vector<8x128xf32>
    %37 = arith.mulf %34, %36 : vector<8x128xf32>
    %38 = arith.truncf %37 : vector<8x128xf32> to vector<8x128xbf16>
    %c0_18 = arith.constant 0 : index
    %c0_19 = arith.constant 0 : index
    %39 = vector.load %arg5[%c0_18, %c0_19] : memref<8x128xbf16, #tpu.memory_space<vmem>>, vector<8x128xbf16>
    tpu.vector_store %arg5[%c0_18, %c0_19], %38 {strides = array<i32>} : memref<8x128xbf16, #tpu.memory_space<vmem>>, vector<8x128xbf16>,
    return
  }
}

module attributes {stable_mosaic.version = 11 : i64} {
  func.func @_act_conv_kernel(%arg0: memref<8x256xbf16, #tpu.memory_space<vmem>>, %arg1: memref<1x128xf32, #tpu.memory_space<vmem>>, %arg2: memref<8x2xf32, #tpu.memory_space<vmem>>, %arg3: memref<4x16x8xbf16, #tpu.memory_space<vmem>>, %arg4: memref<16x1xf32, #tpu.memory_space<vmem>>, %arg5: memref<256x128xf32, #tpu.memory_space<vmem>>, %arg6: memref<16x128xbf16, #tpu.memory_space<vmem>>) attributes {dimension_semantics = [], scalar_prefetch = 0 : i64, scratch_operands = 0 : i64, tpu.core_type = #tpu.core_type<tc>} {
    %c0 = arith.constant 0 : index
    %c0_0 = arith.constant 0 : index
    %0 = vector.load %arg0[%c0, %c0_0] : memref<8x256xbf16, #tpu.memory_space<vmem>>, vector<8x256xbf16>
    %1 = arith.extf %0 : vector<8x256xbf16> to vector<8x256xf32>
    %c0_1 = arith.constant 0 : index
    %c0_2 = arith.constant 0 : index
    %2 = vector.load %arg2[%c0_1, %c0_2] : memref<8x2xf32, #tpu.memory_space<vmem>>, vector<8x2xf32>
    %3 = vector.extract_strided_slice %2 {offsets = [0, 0], sizes = [8, 1], strides = [1, 1]} : vector<8x2xf32> to vector<8x1xf32>
    %4 = vector.extract_strided_slice %2 {offsets = [0, 1], sizes = [8, 1], strides = [1, 1]} : vector<8x2xf32> to vector<8x1xf32>
    %5 = vector.broadcast %3 : vector<8x1xf32> to vector<8x256xf32>
    %6 = arith.mulf %5, %1 : vector<8x256xf32>
    %7 = math.sin %6 : vector<8x256xf32>
    %8 = arith.mulf %7, %7 : vector<8x256xf32>
    %9 = vector.broadcast %4 : vector<8x1xf32> to vector<8x256xf32>
    %10 = arith.mulf %8, %9 : vector<8x256xf32>
    %11 = arith.addf %1, %10 : vector<8x256xf32>
    %cst = arith.constant 0.000000e+00 : f32
    %12 = vector.broadcast %cst : f32 to vector<8x1xf32>
    %13 = vector.extract_strided_slice %11 {offsets = [0, 0], sizes = [8, 255], strides = [1, 1]} : vector<8x256xf32> to vector<8x255xf32>
    %14 = tpu.concatenate %12, %13 in 1 : vector<8x1xf32>, vector<8x255xf32> -> vector<8x256xf32>
    %c0_3 = arith.constant 0 : index
    %c0_4 = arith.constant 0 : index
    %c0_5 = arith.constant 0 : index
    %15 = vector.load %arg3[%c0_3, %c0_4, %c0_5] : memref<4x16x8xbf16, #tpu.memory_space<vmem>>, vector<1x16x8xbf16>
    %16 = vector.shape_cast %15 : vector<1x16x8xbf16> to vector<16x8xbf16>
    %17 = arith.truncf %14 : vector<8x256xf32> to vector<8x256xbf16>
    %cst_6 = arith.constant dense<0.000000e+00> : vector<16x256xf32>
    %18 = tpu.matmul %16, %17, %cst_6 {dimension_numbers = #tpu.dot_dimension_numbers<[1], [0], [0], [1], [0, 0, 1, 1], [], []>} : vector<16x8xbf16>, vector<8x256xbf16>, vector<16x256xf32> -> vector<16x256xf32>
    %c1 = arith.constant 1 : index
    %c0_7 = arith.constant 0 : index
    %c0_8 = arith.constant 0 : index
    %19 = vector.load %arg3[%c1, %c0_7, %c0_8] : memref<4x16x8xbf16, #tpu.memory_space<vmem>>, vector<1x16x8xbf16>
    %20 = vector.shape_cast %19 : vector<1x16x8xbf16> to vector<16x8xbf16>
    %21 = arith.truncf %11 : vector<8x256xf32> to vector<8x256xbf16>
    %cst_9 = arith.constant dense<0.000000e+00> : vector<16x256xf32>
    %22 = tpu.matmul %20, %21, %cst_9 {dimension_numbers = #tpu.dot_dimension_numbers<[1], [0], [0], [1], [0, 0, 1, 1], [], []>} : vector<16x8xbf16>, vector<8x256xbf16>, vector<16x256xf32> -> vector<16x256xf32>
    %23 = arith.addf %18, %22 : vector<16x256xf32>
    %cst_10 = arith.constant 0.000000e+00 : f32
    %24 = vector.broadcast %cst_10 : f32 to vector<8x1xf32>
    %25 = vector.extract_strided_slice %11 {offsets = [0, 1], sizes = [8, 255], strides = [1, 1]} : vector<8x256xf32> to vector<8x255xf32>
    %26 = tpu.concatenate %25, %24 in 1 : vector<8x255xf32>, vector<8x1xf32> -> vector<8x256xf32>
    %c2 = arith.constant 2 : index
    %c0_11 = arith.constant 0 : index
    %c0_12 = arith.constant 0 : index
    %27 = vector.load %arg3[%c2, %c0_11, %c0_12] : memref<4x16x8xbf16, #tpu.memory_space<vmem>>, vector<1x16x8xbf16>
    %28 = vector.shape_cast %27 : vector<1x16x8xbf16> to vector<16x8xbf16>
    %29 = arith.truncf %26 : vector<8x256xf32> to vector<8x256xbf16>
    %cst_13 = arith.constant dense<0.000000e+00> : vector<16x256xf32>
    %30 = tpu.matmul %28, %29, %cst_13 {dimension_numbers = #tpu.dot_dimension_numbers<[1], [0], [0], [1], [0, 0, 1, 1], [], []>} : vector<16x8xbf16>, vector<8x256xbf16>, vector<16x256xf32> -> vector<16x256xf32>
    %31 = arith.addf %23, %30 : vector<16x256xf32>
    %cst_14 = arith.constant 0.000000e+00 : f32
    %32 = vector.broadcast %cst_14 : f32 to vector<8x2xf32>
    %33 = vector.extract_strided_slice %11 {offsets = [0, 2], sizes = [8, 254], strides = [1, 1]} : vector<8x256xf32> to vector<8x254xf32>
    %34 = tpu.concatenate %33, %32 in 1 : vector<8x254xf32>, vector<8x2xf32> -> vector<8x256xf32>
    %c3 = arith.constant 3 : index
    %c0_15 = arith.constant 0 : index
    %c0_16 = arith.constant 0 : index
    %35 = vector.load %arg3[%c3, %c0_15, %c0_16] : memref<4x16x8xbf16, #tpu.memory_space<vmem>>, vector<1x16x8xbf16>
    %36 = vector.shape_cast %35 : vector<1x16x8xbf16> to vector<16x8xbf16>
    %37 = arith.truncf %34 : vector<8x256xf32> to vector<8x256xbf16>
    %cst_17 = arith.constant dense<0.000000e+00> : vector<16x256xf32>
    %38 = tpu.matmul %36, %37, %cst_17 {dimension_numbers = #tpu.dot_dimension_numbers<[1], [0], [0], [1], [0, 0, 1, 1], [], []>} : vector<16x8xbf16>, vector<8x256xbf16>, vector<16x256xf32> -> vector<16x256xf32>
    %39 = arith.addf %31, %38 : vector<16x256xf32>
    %c0_18 = arith.constant 0 : index
    %c0_19 = arith.constant 0 : index
    %40 = vector.load %arg4[%c0_18, %c0_19] : memref<16x1xf32, #tpu.memory_space<vmem>>, vector<16x1xf32>
    %41 = vector.broadcast %40 : vector<16x1xf32> to vector<16x256xf32>
    %42 = arith.addf %39, %41 : vector<16x256xf32>
    %c0_20 = arith.constant 0 : index
    %c0_21 = arith.constant 0 : index
    %43 = vector.load %arg5[%c0_20, %c0_21] : memref<256x128xf32, #tpu.memory_space<vmem>>, vector<256x128xf32>
    %cst_22 = arith.constant dense<0.000000e+00> : vector<16x128xf32>
    %44 = tpu.matmul %42, %43, %cst_22 {dimension_numbers = #tpu.dot_dimension_numbers<[1], [0], [0], [1], [0, 0, 1, 1], [], []>} : vector<16x256xf32>, vector<256x128xf32>, vector<16x128xf32> -> vector<16x128xf32>
    %c0_23 = arith.constant 0 : index
    %c0_24 = arith.constant 0 : index
    %45 = vector.load %arg1[%c0_23, %c0_24] : memref<1x128xf32, #tpu.memory_space<vmem>>, vector<1x128xf32>
    %46 = vector.broadcast %45 : vector<1x128xf32> to vector<16x128xf32>
    %47 = arith.mulf %44, %46 : vector<16x128xf32>
    %48 = arith.truncf %47 : vector<16x128xf32> to vector<16x128xbf16>
    %c0_25 = arith.constant 0 : index
    %c0_26 = arith.constant 0 : index
    %49 = vector.load %arg6[%c0_25, %c0_26] : memref<16x128xbf16, #tpu.memory_space<vmem>>, vector<16x128xbf16>
    tpu.vector_store %arg6[%c0_25, %c0_26], %48 {strides = array<i32>} : memref<16x128xbf16, #tpu.memory_space<vmem>>, vector<16x128xbf16>,
    return
  }
}

module attributes {stable_mosaic.version = 11 : i64} {
  func.func @_act_conv_kernel(%arg0: memref<4x128xbf16, #tpu.memory_space<vmem>>, %arg1: memref<1x128xf32, #tpu.memory_space<vmem>>, %arg2: memref<3x16x4xbf16, #tpu.memory_space<vmem>>, %arg3: memref<16x1xf32, #tpu.memory_space<vmem>>, %arg4: memref<16x128xbf16, #tpu.memory_space<vmem>>) attributes {dimension_semantics = [], scalar_prefetch = 0 : i64, scratch_operands = 0 : i64, tpu.core_type = #tpu.core_type<tc>} {
    %c0 = arith.constant 0 : index
    %c0_0 = arith.constant 0 : index
    %0 = vector.load %arg0[%c0, %c0_0] : memref<4x128xbf16, #tpu.memory_space<vmem>>, vector<4x128xbf16>
    %1 = arith.extf %0 : vector<4x128xbf16> to vector<4x128xf32>
    %cst = arith.constant 0.000000e+00 : f32
    %2 = vector.broadcast %cst : f32 to vector<4x1xf32>
    %3 = vector.extract_strided_slice %1 {offsets = [0, 0], sizes = [4, 127], strides = [1, 1]} : vector<4x128xf32> to vector<4x127xf32>
    %4 = tpu.concatenate %2, %3 in 1 : vector<4x1xf32>, vector<4x127xf32> -> vector<4x128xf32>
    %c0_1 = arith.constant 0 : index
    %c0_2 = arith.constant 0 : index
    %c0_3 = arith.constant 0 : index
    %5 = vector.load %arg2[%c0_1, %c0_2, %c0_3] : memref<3x16x4xbf16, #tpu.memory_space<vmem>>, vector<1x16x4xbf16>
    %6 = vector.shape_cast %5 : vector<1x16x4xbf16> to vector<16x4xbf16>
    %7 = arith.truncf %4 : vector<4x128xf32> to vector<4x128xbf16>
    %cst_4 = arith.constant dense<0.000000e+00> : vector<16x128xf32>
    %8 = tpu.matmul %6, %7, %cst_4 {dimension_numbers = #tpu.dot_dimension_numbers<[1], [0], [0], [1], [0, 0, 1, 1], [], []>} : vector<16x4xbf16>, vector<4x128xbf16>, vector<16x128xf32> -> vector<16x128xf32>
    %c1 = arith.constant 1 : index
    %c0_5 = arith.constant 0 : index
    %c0_6 = arith.constant 0 : index
    %9 = vector.load %arg2[%c1, %c0_5, %c0_6] : memref<3x16x4xbf16, #tpu.memory_space<vmem>>, vector<1x16x4xbf16>
    %10 = vector.shape_cast %9 : vector<1x16x4xbf16> to vector<16x4xbf16>
    %11 = arith.truncf %1 : vector<4x128xf32> to vector<4x128xbf16>
    %cst_7 = arith.constant dense<0.000000e+00> : vector<16x128xf32>
    %12 = tpu.matmul %10, %11, %cst_7 {dimension_numbers = #tpu.dot_dimension_numbers<[1], [0], [0], [1], [0, 0, 1, 1], [], []>} : vector<16x4xbf16>, vector<4x128xbf16>, vector<16x128xf32> -> vector<16x128xf32>
    %13 = arith.addf %8, %12 : vector<16x128xf32>
    %cst_8 = arith.constant 0.000000e+00 : f32
    %14 = vector.broadcast %cst_8 : f32 to vector<4x1xf32>
    %15 = vector.extract_strided_slice %1 {offsets = [0, 1], sizes = [4, 127], strides = [1, 1]} : vector<4x128xf32> to vector<4x127xf32>
    %16 = tpu.concatenate %15, %14 in 1 : vector<4x127xf32>, vector<4x1xf32> -> vector<4x128xf32>
    %c2 = arith.constant 2 : index
    %c0_9 = arith.constant 0 : index
    %c0_10 = arith.constant 0 : index
    %17 = vector.load %arg2[%c2, %c0_9, %c0_10] : memref<3x16x4xbf16, #tpu.memory_space<vmem>>, vector<1x16x4xbf16>
    %18 = vector.shape_cast %17 : vector<1x16x4xbf16> to vector<16x4xbf16>
    %19 = arith.truncf %16 : vector<4x128xf32> to vector<4x128xbf16>
    %cst_11 = arith.constant dense<0.000000e+00> : vector<16x128xf32>
    %20 = tpu.matmul %18, %19, %cst_11 {dimension_numbers = #tpu.dot_dimension_numbers<[1], [0], [0], [1], [0, 0, 1, 1], [], []>} : vector<16x4xbf16>, vector<4x128xbf16>, vector<16x128xf32> -> vector<16x128xf32>
    %21 = arith.addf %13, %20 : vector<16x128xf32>
    %c0_12 = arith.constant 0 : index
    %c0_13 = arith.constant 0 : index
    %22 = vector.load %arg3[%c0_12, %c0_13] : memref<16x1xf32, #tpu.memory_space<vmem>>, vector<16x1xf32>
    %23 = vector.broadcast %22 : vector<16x1xf32> to vector<16x128xf32>
    %24 = arith.addf %21, %23 : vector<16x128xf32>
    %c0_14 = arith.constant 0 : index
    %c0_15 = arith.constant 0 : index
    %25 = vector.load %arg1[%c0_14, %c0_15] : memref<1x128xf32, #tpu.memory_space<vmem>>, vector<1x128xf32>
    %26 = vector.broadcast %25 : vector<1x128xf32> to vector<16x128xf32>
    %27 = arith.mulf %24, %26 : vector<16x128xf32>
    %28 = arith.truncf %27 : vector<16x128xf32> to vector<16x128xbf16>
    %c0_16 = arith.constant 0 : index
    %c0_17 = arith.constant 0 : index
    %29 = vector.load %arg4[%c0_16, %c0_17] : memref<16x128xbf16, #tpu.memory_space<vmem>>, vector<16x128xbf16>
    tpu.vector_store %arg4[%c0_16, %c0_17], %28 {strides = array<i32>} : memref<16x128xbf16, #tpu.memory_space<vmem>>, vector<16x128xbf16>,
    return
  }
}

module attributes {stable_mosaic.version = 11 : i64} {
  func.func @_act_conv_kernel(%arg0: memref<16x128xbf16, #tpu.memory_space<vmem>>, %arg1: memref<1x256xf32, #tpu.memory_space<vmem>>, %arg2: memref<16x2xf32, #tpu.memory_space<vmem>>, %arg3: memref<4x8x16xbf16, #tpu.memory_space<vmem>>, %arg4: memref<8x1xf32, #tpu.memory_space<vmem>>, %arg5: memref<128x256xf32, #tpu.memory_space<vmem>>, %arg6: memref<8x256xbf16, #tpu.memory_space<vmem>>) attributes {dimension_semantics = [], scalar_prefetch = 0 : i64, scratch_operands = 0 : i64, tpu.core_type = #tpu.core_type<tc>} {
    %c0 = arith.constant 0 : index
    %c0_0 = arith.constant 0 : index
    %0 = vector.load %arg0[%c0, %c0_0] : memref<16x128xbf16, #tpu.memory_space<vmem>>, vector<16x128xbf16>
    %1 = arith.extf %0 : vector<16x128xbf16> to vector<16x128xf32>
    %c0_1 = arith.constant 0 : index
    %c0_2 = arith.constant 0 : index
    %2 = vector.load %arg2[%c0_1, %c0_2] : memref<16x2xf32, #tpu.memory_space<vmem>>, vector<16x2xf32>
    %3 = vector.extract_strided_slice %2 {offsets = [0, 0], sizes = [16, 1], strides = [1, 1]} : vector<16x2xf32> to vector<16x1xf32>
    %4 = vector.extract_strided_slice %2 {offsets = [0, 1], sizes = [16, 1], strides = [1, 1]} : vector<16x2xf32> to vector<16x1xf32>
    %5 = vector.broadcast %3 : vector<16x1xf32> to vector<16x128xf32>
    %6 = arith.mulf %5, %1 : vector<16x128xf32>
    %7 = math.sin %6 : vector<16x128xf32>
    %8 = arith.mulf %7, %7 : vector<16x128xf32>
    %9 = vector.broadcast %4 : vector<16x1xf32> to vector<16x128xf32>
    %10 = arith.mulf %8, %9 : vector<16x128xf32>
    %11 = arith.addf %1, %10 : vector<16x128xf32>
    %c0_3 = arith.constant 0 : index
    %c0_4 = arith.constant 0 : index
    %12 = vector.load %arg5[%c0_3, %c0_4] : memref<128x256xf32, #tpu.memory_space<vmem>>, vector<128x256xf32>
    %cst = arith.constant dense<0.000000e+00> : vector<16x256xf32>
    %13 = tpu.matmul %11, %12, %cst {dimension_numbers = #tpu.dot_dimension_numbers<[1], [0], [0], [1], [0, 0, 1, 1], [], []>} : vector<16x128xf32>, vector<128x256xf32>, vector<16x256xf32> -> vector<16x256xf32>
    %cst_5 = arith.constant 0.000000e+00 : f32
    %14 = vector.broadcast %cst_5 : f32 to vector<16x2xf32>
    %15 = vector.extract_strided_slice %13 {offsets = [0, 0], sizes = [16, 254], strides = [1, 1]} : vector<16x256xf32> to vector<16x254xf32>
    %16 = tpu.concatenate %14, %15 in 1 : vector<16x2xf32>, vector<16x254xf32> -> vector<16x256xf32>
    %c0_6 = arith.constant 0 : index
    %c0_7 = arith.constant 0 : index
    %c0_8 = arith.constant 0 : index
    %17 = vector.load %arg3[%c0_6, %c0_7, %c0_8] : memref<4x8x16xbf16, #tpu.memory_space<vmem>>, vector<1x8x16xbf16>
    %18 = vector.shape_cast %17 : vector<1x8x16xbf16> to vector<8x16xbf16>
    %19 = arith.truncf %16 : vector<16x256xf32> to vector<16x256xbf16>
    %cst_9 = arith.constant dense<0.000000e+00> : vector<8x256xf32>
    %20 = tpu.matmul %18, %19, %cst_9 {dimension_numbers = #tpu.dot_dimension_numbers<[1], [0], [0], [1], [0, 0, 1, 1], [], []>} : vector<8x16xbf16>, vector<16x256xbf16>, vector<8x256xf32> -> vector<8x256xf32>
    %cst_10 = arith.constant 0.000000e+00 : f32
    %21 = vector.broadcast %cst_10 : f32 to vector<16x1xf32>
    %22 = vector.extract_strided_slice %13 {offsets = [0, 0], sizes = [16, 255], strides = [1, 1]} : vector<16x256xf32> to vector<16x255xf32>
    %23 = tpu.concatenate %21, %22 in 1 : vector<16x1xf32>, vector<16x255xf32> -> vector<16x256xf32>
    %c1 = arith.constant 1 : index
    %c0_11 = arith.constant 0 : index
    %c0_12 = arith.constant 0 : index
    %24 = vector.load %arg3[%c1, %c0_11, %c0_12] : memref<4x8x16xbf16, #tpu.memory_space<vmem>>, vector<1x8x16xbf16>
    %25 = vector.shape_cast %24 : vector<1x8x16xbf16> to vector<8x16xbf16>
    %26 = arith.truncf %23 : vector<16x256xf32> to vector<16x256xbf16>
    %cst_13 = arith.constant dense<0.000000e+00> : vector<8x256xf32>
    %27 = tpu.matmul %25, %26, %cst_13 {dimension_numbers = #tpu.dot_dimension_numbers<[1], [0], [0], [1], [0, 0, 1, 1], [], []>} : vector<8x16xbf16>, vector<16x256xbf16>, vector<8x256xf32> -> vector<8x256xf32>
    %28 = arith.addf %20, %27 : vector<8x256xf32>
    %c2 = arith.constant 2 : index
    %c0_14 = arith.constant 0 : index
    %c0_15 = arith.constant 0 : index
    %29 = vector.load %arg3[%c2, %c0_14, %c0_15] : memref<4x8x16xbf16, #tpu.memory_space<vmem>>, vector<1x8x16xbf16>
    %30 = vector.shape_cast %29 : vector<1x8x16xbf16> to vector<8x16xbf16>
    %31 = arith.truncf %13 : vector<16x256xf32> to vector<16x256xbf16>
    %cst_16 = arith.constant dense<0.000000e+00> : vector<8x256xf32>
    %32 = tpu.matmul %30, %31, %cst_16 {dimension_numbers = #tpu.dot_dimension_numbers<[1], [0], [0], [1], [0, 0, 1, 1], [], []>} : vector<8x16xbf16>, vector<16x256xbf16>, vector<8x256xf32> -> vector<8x256xf32>
    %33 = arith.addf %28, %32 : vector<8x256xf32>
    %cst_17 = arith.constant 0.000000e+00 : f32
    %34 = vector.broadcast %cst_17 : f32 to vector<16x1xf32>
    %35 = vector.extract_strided_slice %13 {offsets = [0, 1], sizes = [16, 255], strides = [1, 1]} : vector<16x256xf32> to vector<16x255xf32>
    %36 = tpu.concatenate %35, %34 in 1 : vector<16x255xf32>, vector<16x1xf32> -> vector<16x256xf32>
    %c3 = arith.constant 3 : index
    %c0_18 = arith.constant 0 : index
    %c0_19 = arith.constant 0 : index
    %37 = vector.load %arg3[%c3, %c0_18, %c0_19] : memref<4x8x16xbf16, #tpu.memory_space<vmem>>, vector<1x8x16xbf16>
    %38 = vector.shape_cast %37 : vector<1x8x16xbf16> to vector<8x16xbf16>
    %39 = arith.truncf %36 : vector<16x256xf32> to vector<16x256xbf16>
    %cst_20 = arith.constant dense<0.000000e+00> : vector<8x256xf32>
    %40 = tpu.matmul %38, %39, %cst_20 {dimension_numbers = #tpu.dot_dimension_numbers<[1], [0], [0], [1], [0, 0, 1, 1], [], []>} : vector<8x16xbf16>, vector<16x256xbf16>, vector<8x256xf32> -> vector<8x256xf32>
    %41 = arith.addf %33, %40 : vector<8x256xf32>
    %c0_21 = arith.constant 0 : index
    %c0_22 = arith.constant 0 : index
    %42 = vector.load %arg4[%c0_21, %c0_22] : memref<8x1xf32, #tpu.memory_space<vmem>>, vector<8x1xf32>
    %43 = vector.broadcast %42 : vector<8x1xf32> to vector<8x256xf32>
    %44 = arith.addf %41, %43 : vector<8x256xf32>
    %c0_23 = arith.constant 0 : index
    %c0_24 = arith.constant 0 : index
    %45 = vector.load %arg1[%c0_23, %c0_24] : memref<1x256xf32, #tpu.memory_space<vmem>>, vector<1x256xf32>
    %46 = vector.broadcast %45 : vector<1x256xf32> to vector<8x256xf32>
    %47 = arith.mulf %44, %46 : vector<8x256xf32>
    %48 = arith.truncf %47 : vector<8x256xf32> to vector<8x256xbf16>
    %c0_25 = arith.constant 0 : index
    %c0_26 = arith.constant 0 : index
    %49 = vector.load %arg6[%c0_25, %c0_26] : memref<8x256xbf16, #tpu.memory_space<vmem>>, vector<8x256xbf16>
    tpu.vector_store %arg6[%c0_25, %c0_26], %48 {strides = array<i32>} : memref<8x256xbf16, #tpu.memory_space<vmem>>, vector<8x256xbf16>,
    return
  }
}

module attributes {stable_mosaic.version = 11 : i64} {
  func.func @_vae_kernel(%arg0: memref<8x128xbf16, #tpu.memory_space<vmem>>, %arg1: memref<4x128xf32, #tpu.memory_space<vmem>>, %arg2: memref<1x128xf32, #tpu.memory_space<vmem>>, %arg3: memref<4x128xf32, #tpu.memory_space<vmem>>, %arg4: memref<1x128xf32, #tpu.memory_space<vmem>>) attributes {dimension_semantics = [], scalar_prefetch = 0 : i64, scratch_operands = 0 : i64, tpu.core_type = #tpu.core_type<tc>} {
    %c0 = arith.constant 0 : index
    %c0_0 = arith.constant 0 : index
    %0 = vector.load %arg0[%c0, %c0_0] : memref<8x128xbf16, #tpu.memory_space<vmem>>, vector<8x128xbf16>
    %1 = arith.extf %0 : vector<8x128xbf16> to vector<8x128xf32>
    %2 = vector.extract_strided_slice %1 {offsets = [0, 0], sizes = [4, 128], strides = [1, 1]} : vector<8x128xf32> to vector<4x128xf32>
    %3 = vector.extract_strided_slice %1 {offsets = [4, 0], sizes = [4, 128], strides = [1, 1]} : vector<8x128xf32> to vector<4x128xf32>
    %cst = arith.constant 2.000000e+01 : f32
    %4 = vector.broadcast %cst : f32 to vector<4x128xf32>
    %5 = arith.cmpf ogt, %3, %4 : vector<4x128xf32>
    %cst_1 = arith.constant 2.000000e+01 : f32
    %6 = vector.broadcast %cst_1 : f32 to vector<4x128xf32>
    %7 = arith.minimumf %3, %6 : vector<4x128xf32>
    %8 = math.exp %7 : vector<4x128xf32>
    %9 = math.log1p %8 : vector<4x128xf32>
    %10 = arith.select %5, %3, %9 : vector<4x128xi1>, vector<4x128xf32>
    %cst_2 = arith.constant 0.00999999977 : f32
    %11 = vector.broadcast %cst_2 : f32 to vector<4x128xf32>
    %12 = arith.addf %10, %11 : vector<4x128xf32>
    %13 = arith.mulf %12, %12 : vector<4x128xf32>
    %14 = math.log %12 : vector<4x128xf32>
    %cst_3 = arith.constant 2.000000e+00 : f32
    %15 = vector.broadcast %cst_3 : f32 to vector<4x128xf32>
    %16 = arith.mulf %15, %14 : vector<4x128xf32>
    %c0_4 = arith.constant 0 : index
    %c0_5 = arith.constant 0 : index
    %17 = vector.load %arg2[%c0_4, %c0_5] : memref<1x128xf32, #tpu.memory_space<vmem>>, vector<1x128xf32>
    %c0_6 = arith.constant 0 : index
    %c0_7 = arith.constant 0 : index
    %18 = vector.load %arg1[%c0_6, %c0_7] : memref<4x128xf32, #tpu.memory_space<vmem>>, vector<4x128xf32>
    %19 = arith.mulf %18, %12 : vector<4x128xf32>
    %20 = arith.addf %19, %2 : vector<4x128xf32>
    %21 = vector.broadcast %17 : vector<1x128xf32> to vector<4x128xf32>
    %22 = arith.mulf %20, %21 : vector<4x128xf32>
    %c0_8 = arith.constant 0 : index
    %c0_9 = arith.constant 0 : index
    %23 = vector.load %arg3[%c0_8, %c0_9] : memref<4x128xf32, #tpu.memory_space<vmem>>, vector<4x128xf32>
    tpu.vector_store %arg3[%c0_8, %c0_9], %22 {strides = array<i32>} : memref<4x128xf32, #tpu.memory_space<vmem>>, vector<4x128xf32>,
    %24 = arith.mulf %2, %2 : vector<4x128xf32>
    %25 = arith.addf %24, %13 : vector<4x128xf32>
    %26 = arith.subf %25, %16 : vector<4x128xf32>
    %cst_10 = arith.constant 1.000000e+00 : f32
    %27 = vector.broadcast %cst_10 : f32 to vector<4x128xf32>
    %28 = arith.subf %26, %27 : vector<4x128xf32>
    %cst_11 = arith.constant dense<0.000000e+00> : vector<128xf32>
    %29 = vector.multi_reduction <add>, %28, %cst_11 [0] : vector<4x128xf32> to vector<128xf32>
    %30 = vector.shape_cast %29 : vector<128xf32> to vector<1x128xf32>
    %31 = arith.mulf %30, %17 : vector<1x128xf32>
    %c0_12 = arith.constant 0 : index
    %c0_13 = arith.constant 0 : index
    %32 = vector.load %arg4[%c0_12, %c0_13] : memref<1x128xf32, #tpu.memory_space<vmem>>, vector<1x128xf32>
    tpu.vector_store %arg4[%c0_12, %c0_13], %31 {strides = array<i32>} : memref<1x128xf32, #tpu.memory_space<vmem>>, vector<1x128xf32>,
    return
  }
}

module attributes {stable_mosaic.version = 11 : i64} {
  func.func @_resnet_kernel(%arg0: memref<8x256xbf16, #tpu.memory_space<vmem>>, %arg1: memref<1x256xf32, #tpu.memory_space<vmem>>, %arg2: memref<256x2xf32, #tpu.memory_space<vmem>>, %arg3: memref<2x256xf32, #tpu.memory_space<vmem>>, %arg4: memref<8x4xf32, #tpu.memory_space<vmem>>, %arg5: memref<8x8xf32, #tpu.memory_space<vmem>>, %arg6: memref<8x8xf32, #tpu.memory_space<vmem>>, %arg7: memref<3x2x8xbf16, #tpu.memory_space<vmem>>, %arg8: memref<2x1xf32, #tpu.memory_space<vmem>>, %arg9: memref<2x4xf32, #tpu.memory_space<vmem>>, %arg10: memref<2x2xf32, #tpu.memory_space<vmem>>, %arg11: memref<2x2xf32, #tpu.memory_space<vmem>>, %arg12: memref<1x2x2xbf16, #tpu.memory_space<vmem>>, %arg13: memref<2x1xf32, #tpu.memory_space<vmem>>, %arg14: memref<2x256xf32, #tpu.memory_space<vmem>>) attributes {dimension_semantics = [], scalar_prefetch = 0 : i64, scratch_operands = 0 : i64, tpu.core_type = #tpu.core_type<tc>} {
    %c0 = arith.constant 0 : index
    %c0_0 = arith.constant 0 : index
    %0 = vector.load %arg0[%c0, %c0_0] : memref<8x256xbf16, #tpu.memory_space<vmem>>, vector<8x256xbf16>
    %1 = arith.extf %0 : vector<8x256xbf16> to vector<8x256xf32>
    %c0_1 = arith.constant 0 : index
    %c0_2 = arith.constant 0 : index
    %2 = vector.load %arg1[%c0_1, %c0_2] : memref<1x256xf32, #tpu.memory_space<vmem>>, vector<1x256xf32>
    %c0_3 = arith.constant 0 : index
    %c0_4 = arith.constant 0 : index
    %3 = vector.load %arg2[%c0_3, %c0_4] : memref<256x2xf32, #tpu.memory_space<vmem>>, vector<256x2xf32>
    %c0_5 = arith.constant 0 : index
    %c0_6 = arith.constant 0 : index
    %4 = vector.load %arg3[%c0_5, %c0_6] : memref<2x256xf32, #tpu.memory_space<vmem>>, vector<2x256xf32>
    %c0_7 = arith.constant 0 : index
    %c0_8 = arith.constant 0 : index
    %5 = vector.load %arg4[%c0_7, %c0_8] : memref<8x4xf32, #tpu.memory_space<vmem>>, vector<8x4xf32>
    %c0_9 = arith.constant 0 : index
    %c0_10 = arith.constant 0 : index
    %6 = vector.load %arg5[%c0_9, %c0_10] : memref<8x8xf32, #tpu.memory_space<vmem>>, vector<8x8xf32>
    %c0_11 = arith.constant 0 : index
    %c0_12 = arith.constant 0 : index
    %7 = vector.load %arg6[%c0_11, %c0_12] : memref<8x8xf32, #tpu.memory_space<vmem>>, vector<8x8xf32>
    %cst = arith.constant dense<0.000000e+00> : vector<8x2xf32>
    %8 = tpu.matmul %1, %3, %cst {dimension_numbers = #tpu.dot_dimension_numbers<[1], [0], [0], [1], [0, 0, 1, 1], [], []>} : vector<8x256xf32>, vector<256x2xf32>, vector<8x2xf32> -> vector<8x2xf32>
    %9 = arith.mulf %1, %1 : vector<8x256xf32>
    %cst_13 = arith.constant dense<0.000000e+00> : vector<8x2xf32>
    %10 = tpu.matmul %9, %3, %cst_13 {dimension_numbers = #tpu.dot_dimension_numbers<[1], [0], [0], [1], [0, 0, 1, 1], [], []>} : vector<8x256xf32>, vector<256x2xf32>, vector<8x2xf32> -> vector<8x2xf32>
    %cst_14 = arith.constant dense<0.000000e+00> : vector<8x2xf32>
    %11 = tpu.matmul %6, %8, %cst_14 {dimension_numbers = #tpu.dot_dimension_numbers<[1], [0], [0], [1], [0, 0, 1, 1], [], []>} : vector<8x8xf32>, vector<8x2xf32>, vector<8x2xf32> -> vector<8x2xf32>
    %cst_15 = arith.constant dense<0.000000e+00> : vector<8x2xf32>
    %12 = tpu.matmul %6, %10, %cst_15 {dimension_numbers = #tpu.dot_dimension_numbers<[1], [0], [0], [1], [0, 0, 1, 1], [], []>} : vector<8x8xf32>, vector<8x2xf32>, vector<8x2xf32> -> vector<8x2xf32>
    %13 = arith.mulf %11, %11 : vector<8x2xf32>
    %14 = arith.subf %12, %13 : vector<8x2xf32>
    %cst_16 = arith.constant 0.000000e+00 : f32
    %15 = vector.broadcast %cst_16 : f32 to vector<8x2xf32>
    %16 = arith.maximumf %14, %15 : vector<8x2xf32>
    %cst_17 = arith.constant dense<0.000000e+00> : vector<8x2xf32>
    %17 = tpu.matmul %7, %11, %cst_17 {dimension_numbers = #tpu.dot_dimension_numbers<[1], [0], [0], [1], [0, 0, 1, 1], [], []>} : vector<8x8xf32>, vector<8x2xf32>, vector<8x2xf32> -> vector<8x2xf32>
    %cst_18 = arith.constant dense<0.000000e+00> : vector<8x2xf32>
    %18 = tpu.matmul %7, %16, %cst_18 {dimension_numbers = #tpu.dot_dimension_numbers<[1], [0], [0], [1], [0, 0, 1, 1], [], []>} : vector<8x8xf32>, vector<8x2xf32>, vector<8x2xf32> -> vector<8x2xf32>
    %19 = vector.extract_strided_slice %5 {offsets = [0, 0], sizes = [8, 1], strides = [1, 1]} : vector<8x4xf32> to vector<8x1xf32>
    %20 = vector.extract_strided_slice %5 {offsets = [0, 1], sizes = [8, 1], strides = [1, 1]} : vector<8x4xf32> to vector<8x1xf32>
    %21 = vector.extract_strided_slice %5 {offsets = [0, 2], sizes = [8, 1], strides = [1, 1]} : vector<8x4xf32> to vector<8x1xf32>
    %22 = vector.extract_strided_slice %5 {offsets = [0, 3], sizes = [8, 1], strides = [1, 1]} : vector<8x4xf32> to vector<8x1xf32>
    %cst_19 = arith.constant 9.99999974E-6 : f32
    %23 = vector.broadcast %cst_19 : f32 to vector<8x2xf32>
    %24 = arith.addf %18, %23 : vector<8x2xf32>
    %25 = math.rsqrt %24 : vector<8x2xf32>
    %26 = vector.broadcast %19 : vector<8x1xf32> to vector<8x2xf32>
    %27 = arith.mulf %26, %25 : vector<8x2xf32>
    %28 = arith.mulf %17, %27 : vector<8x2xf32>
    %29 = vector.broadcast %20 : vector<8x1xf32> to vector<8x2xf32>
    %30 = arith.subf %29, %28 : vector<8x2xf32>
    %cst_20 = arith.constant dense<0.000000e+00> : vector<8x256xf32>
    %31 = tpu.matmul %27, %4, %cst_20 {dimension_numbers = #tpu.dot_dimension_numbers<[1], [0], [0], [1], [0, 0, 1, 1], [], []>} : vector<8x2xf32>, vector<2x256xf32>, vector<8x256xf32> -> vector<8x256xf32>
    %cst_21 = arith.constant dense<0.000000e+00> : vector<8x256xf32>
    %32 = tpu.matmul %30, %4, %cst_21 {dimension_numbers = #tpu.dot_dimension_numbers<[1], [0], [0], [1], [0, 0, 1, 1], [], []>} : vector<8x2xf32>, vector<2x256xf32>, vector<8x256xf32> -> vector<8x256xf32>
    %33 = arith.mulf %1, %31 : vector<8x256xf32>
    %34 = arith.addf %33, %32 : vector<8x256xf32>
    %35 = vector.broadcast %21 : vector<8x1xf32> to vector<8x256xf32>
    %36 = arith.mulf %35, %34 : vector<8x256xf32>
    %37 = math.sin %36 : vector<8x256xf32>
    %38 = arith.mulf %37, %37 : vector<8x256xf32>
    %39 = vector.broadcast %22 : vector<8x1xf32> to vector<8x256xf32>
    %40 = arith.mulf %38, %39 : vector<8x256xf32>
    %41 = arith.addf %34, %40 : vector<8x256xf32>
    %cst_22 = arith.constant 0.000000e+00 : f32
    %42 = vector.broadcast %cst_22 : f32 to vector<8x1xf32>
    %43 = vector.extract_strided_slice %41 {offsets = [0, 0], sizes = [8, 255], strides = [1, 1]} : vector<8x256xf32> to vector<8x255xf32>
    %44 = tpu.concatenate %42, %43 in 1 : vector<8x1xf32>, vector<8x255xf32> -> vector<8x256xf32>
    %c0_23 = arith.constant 0 : index
    %c0_24 = arith.constant 0 : index
    %c0_25 = arith.constant 0 : index
    %45 = vector.load %arg7[%c0_23, %c0_24, %c0_25] : memref<3x2x8xbf16, #tpu.memory_space<vmem>>, vector<1x2x8xbf16>
    %46 = vector.shape_cast %45 : vector<1x2x8xbf16> to vector<2x8xbf16>
    %47 = arith.truncf %44 : vector<8x256xf32> to vector<8x256xbf16>
    %cst_26 = arith.constant dense<0.000000e+00> : vector<2x256xf32>
    %48 = tpu.matmul %46, %47, %cst_26 {dimension_numbers = #tpu.dot_dimension_numbers<[1], [0], [0], [1], [0, 0, 1, 1], [], []>} : vector<2x8xbf16>, vector<8x256xbf16>, vector<2x256xf32> -> vector<2x256xf32>
    %c1 = arith.constant 1 : index
    %c0_27 = arith.constant 0 : index
    %c0_28 = arith.constant 0 : index
    %49 = vector.load %arg7[%c1, %c0_27, %c0_28] : memref<3x2x8xbf16, #tpu.memory_space<vmem>>, vector<1x2x8xbf16>
    %50 = vector.shape_cast %49 : vector<1x2x8xbf16> to vector<2x8xbf16>
    %51 = arith.truncf %41 : vector<8x256xf32> to vector<8x256xbf16>
    %cst_29 = arith.constant dense<0.000000e+00> : vector<2x256xf32>
    %52 = tpu.matmul %50, %51, %cst_29 {dimension_numbers = #tpu.dot_dimension_numbers<[1], [0], [0], [1], [0, 0, 1, 1], [], []>} : vector<2x8xbf16>, vector<8x256xbf16>, vector<2x256xf32> -> vector<2x256xf32>
    %53 = arith.addf %48, %52 : vector<2x256xf32>
    %cst_30 = arith.constant 0.000000e+00 : f32
    %54 = vector.broadcast %cst_30 : f32 to vector<8x1xf32>
    %55 = vector.extract_strided_slice %41 {offsets = [0, 1], sizes = [8, 255], strides = [1, 1]} : vector<8x256xf32> to vector<8x255xf32>
    %56 = tpu.concatenate %55, %54 in 1 : vector<8x255xf32>, vector<8x1xf32> -> vector<8x256xf32>
    %c2 = arith.constant 2 : index
    %c0_31 = arith.constant 0 : index
    %c0_32 = arith.constant 0 : index
    %57 = vector.load %arg7[%c2, %c0_31, %c0_32] : memref<3x2x8xbf16, #tpu.memory_space<vmem>>, vector<1x2x8xbf16>
    %58 = vector.shape_cast %57 : vector<1x2x8xbf16> to vector<2x8xbf16>
    %59 = arith.truncf %56 : vector<8x256xf32> to vector<8x256xbf16>
    %cst_33 = arith.constant dense<0.000000e+00> : vector<2x256xf32>
    %60 = tpu.matmul %58, %59, %cst_33 {dimension_numbers = #tpu.dot_dimension_numbers<[1], [0], [0], [1], [0, 0, 1, 1], [], []>} : vector<2x8xbf16>, vector<8x256xbf16>, vector<2x256xf32> -> vector<2x256xf32>
    %61 = arith.addf %53, %60 : vector<2x256xf32>
    %c0_34 = arith.constant 0 : index
    %c0_35 = arith.constant 0 : index
    %62 = vector.load %arg8[%c0_34, %c0_35] : memref<2x1xf32, #tpu.memory_space<vmem>>, vector<2x1xf32>
    %63 = vector.broadcast %62 : vector<2x1xf32> to vector<2x256xf32>
    %64 = arith.addf %61, %63 : vector<2x256xf32>
    %65 = vector.broadcast %2 : vector<1x256xf32> to vector<2x256xf32>
    %66 = arith.mulf %64, %65 : vector<2x256xf32>
    %c0_36 = arith.constant 0 : index
    %c0_37 = arith.constant 0 : index
    %67 = vector.load %arg9[%c0_36, %c0_37] : memref<2x4xf32, #tpu.memory_space<vmem>>, vector<2x4xf32>
    %c0_38 = arith.constant 0 : index
    %c0_39 = arith.constant 0 : index
    %68 = vector.load %arg10[%c0_38, %c0_39] : memref<2x2xf32, #tpu.memory_space<vmem>>, vector<2x2xf32>
    %c0_40 = arith.constant 0 : index
    %c0_41 = arith.constant 0 : index
    %69 = vector.load %arg11[%c0_40, %c0_41] : memref<2x2xf32, #tpu.memory_space<vmem>>, vector<2x2xf32>
    %cst_42 = arith.constant dense<0.000000e+00> : vector<2x2xf32>
    %70 = tpu.matmul %66, %3, %cst_42 {dimension_numbers = #tpu.dot_dimension_numbers<[1], [0], [0], [1], [0, 0, 1, 1], [], []>} : vector<2x256xf32>, vector<256x2xf32>, vector<2x2xf32> -> vector<2x2xf32>
    %71 = arith.mulf %66, %66 : vector<2x256xf32>
    %cst_43 = arith.constant dense<0.000000e+00> : vector<2x2xf32>
    %72 = tpu.matmul %71, %3, %cst_43 {dimension_numbers = #tpu.dot_dimension_numbers<[1], [0], [0], [1], [0, 0, 1, 1], [], []>} : vector<2x256xf32>, vector<256x2xf32>, vector<2x2xf32> -> vector<2x2xf32>
    %cst_44 = arith.constant dense<0.000000e+00> : vector<2x2xf32>
    %73 = tpu.matmul %68, %70, %cst_44 {dimension_numbers = #tpu.dot_dimension_numbers<[1], [0], [0], [1], [0, 0, 1, 1], [], []>} : vector<2x2xf32>, vector<2x2xf32>, vector<2x2xf32> -> vector<2x2xf32>
    %cst_45 = arith.constant dense<0.000000e+00> : vector<2x2xf32>
    %74 = tpu.matmul %68, %72, %cst_45 {dimension_numbers = #tpu.dot_dimension_numbers<[1], [0], [0], [1], [0, 0, 1, 1], [], []>} : vector<2x2xf32>, vector<2x2xf32>, vector<2x2xf32> -> vector<2x2xf32>
    %75 = arith.mulf %73, %73 : vector<2x2xf32>
    %76 = arith.subf %74, %75 : vector<2x2xf32>
    %cst_46 = arith.constant 0.000000e+00 : f32
    %77 = vector.broadcast %cst_46 : f32 to vector<2x2xf32>
    %78 = arith.maximumf %76, %77 : vector<2x2xf32>
    %cst_47 = arith.constant dense<0.000000e+00> : vector<2x2xf32>
    %79 = tpu.matmul %69, %73, %cst_47 {dimension_numbers = #tpu.dot_dimension_numbers<[1], [0], [0], [1], [0, 0, 1, 1], [], []>} : vector<2x2xf32>, vector<2x2xf32>, vector<2x2xf32> -> vector<2x2xf32>
    %cst_48 = arith.constant dense<0.000000e+00> : vector<2x2xf32>
    %80 = tpu.matmul %69, %78, %cst_48 {dimension_numbers = #tpu.dot_dimension_numbers<[1], [0], [0], [1], [0, 0, 1, 1], [], []>} : vector<2x2xf32>, vector<2x2xf32>, vector<2x2xf32> -> vector<2x2xf32>
    %81 = vector.extract_strided_slice %67 {offsets = [0, 0], sizes = [2, 1], strides = [1, 1]} : vector<2x4xf32> to vector<2x1xf32>
    %82 = vector.extract_strided_slice %67 {offsets = [0, 1], sizes = [2, 1], strides = [1, 1]} : vector<2x4xf32> to vector<2x1xf32>
    %83 = vector.extract_strided_slice %67 {offsets = [0, 2], sizes = [2, 1], strides = [1, 1]} : vector<2x4xf32> to vector<2x1xf32>
    %84 = vector.extract_strided_slice %67 {offsets = [0, 3], sizes = [2, 1], strides = [1, 1]} : vector<2x4xf32> to vector<2x1xf32>
    %cst_49 = arith.constant 9.99999974E-6 : f32
    %85 = vector.broadcast %cst_49 : f32 to vector<2x2xf32>
    %86 = arith.addf %80, %85 : vector<2x2xf32>
    %87 = math.rsqrt %86 : vector<2x2xf32>
    %88 = vector.broadcast %81 : vector<2x1xf32> to vector<2x2xf32>
    %89 = arith.mulf %88, %87 : vector<2x2xf32>
    %90 = arith.mulf %79, %89 : vector<2x2xf32>
    %91 = vector.broadcast %82 : vector<2x1xf32> to vector<2x2xf32>
    %92 = arith.subf %91, %90 : vector<2x2xf32>
    %cst_50 = arith.constant dense<0.000000e+00> : vector<2x256xf32>
    %93 = tpu.matmul %89, %4, %cst_50 {dimension_numbers = #tpu.dot_dimension_numbers<[1], [0], [0], [1], [0, 0, 1, 1], [], []>} : vector<2x2xf32>, vector<2x256xf32>, vector<2x256xf32> -> vector<2x256xf32>
    %cst_51 = arith.constant dense<0.000000e+00> : vector<2x256xf32>
    %94 = tpu.matmul %92, %4, %cst_51 {dimension_numbers = #tpu.dot_dimension_numbers<[1], [0], [0], [1], [0, 0, 1, 1], [], []>} : vector<2x2xf32>, vector<2x256xf32>, vector<2x256xf32> -> vector<2x256xf32>
    %95 = arith.mulf %66, %93 : vector<2x256xf32>
    %96 = arith.addf %95, %94 : vector<2x256xf32>
    %97 = vector.broadcast %83 : vector<2x1xf32> to vector<2x256xf32>
    %98 = arith.mulf %97, %96 : vector<2x256xf32>
    %99 = math.sin %98 : vector<2x256xf32>
    %100 = arith.mulf %99, %99 : vector<2x256xf32>
    %101 = vector.broadcast %84 : vector<2x1xf32> to vector<2x256xf32>
    %102 = arith.mulf %100, %101 : vector<2x256xf32>
    %103 = arith.addf %96, %102 : vector<2x256xf32>
    %c0_52 = arith.constant 0 : index
    %c0_53 = arith.constant 0 : index
    %c0_54 = arith.constant 0 : index
    %104 = vector.load %arg12[%c0_52, %c0_53, %c0_54] : memref<1x2x2xbf16, #tpu.memory_space<vmem>>, vector<1x2x2xbf16>
    %105 = vector.shape_cast %104 : vector<1x2x2xbf16> to vector<2x2xbf16>
    %106 = arith.truncf %103 : vector<2x256xf32> to vector<2x256xbf16>
    %cst_55 = arith.constant dense<0.000000e+00> : vector<2x256xf32>
    %107 = tpu.matmul %105, %106, %cst_55 {dimension_numbers = #tpu.dot_dimension_numbers<[1], [0], [0], [1], [0, 0, 1, 1], [], []>} : vector<2x2xbf16>, vector<2x256xbf16>, vector<2x256xf32> -> vector<2x256xf32>
    %c0_56 = arith.constant 0 : index
    %c0_57 = arith.constant 0 : index
    %108 = vector.load %arg13[%c0_56, %c0_57] : memref<2x1xf32, #tpu.memory_space<vmem>>, vector<2x1xf32>
    %109 = vector.broadcast %108 : vector<2x1xf32> to vector<2x256xf32>
    %110 = arith.addf %107, %109 : vector<2x256xf32>
    %111 = vector.broadcast %2 : vector<1x256xf32> to vector<2x256xf32>
    %112 = arith.mulf %110, %111 : vector<2x256xf32>
    %c0_58 = arith.constant 0 : index
    %c0_59 = arith.constant 0 : index
    %113 = vector.load %arg14[%c0_58, %c0_59] : memref<2x256xf32, #tpu.memory_space<vmem>>, vector<2x256xf32>
    tpu.vector_store %arg14[%c0_58, %c0_59], %112 {strides = array<i32>} : memref<2x256xf32, #tpu.memory_space<vmem>>, vector<2x256xf32>,
    return
  }
}

</mosaic_0001>

<bundles_post_ra>
// kernel: autoencoder_forward.14
= control target key start
LH: loop header
LB: loop body
LE: loop exit
PB: predicated region body
PF: predicated region fallthrough
CT: control target
= control target key end

     0   :  { %v3143_v53 = vmov 0.0   ;;  %vm2482_vm0 = vmmov 0   ;;  %vm230_vm1 = vcmask 64512   ;;  %v2483_v61 = vmov 0   ;;  %s3126_s2 = inlined_call_operand.vmem [shape: f32[256,2], index: 2, kind: input, shape index: {}]   ;;  %s3127_s0 = inlined_call_operand.vmem [shape: bf16[8,256], index: 0, kind: input, shape index: {}]   ;;  %s3128_s5 = inlined_call_operand.vmem [shape: f32[4,8], index: 5, kind: input, shape index: {}]   ;;  %s3129_s4 = inlined_call_operand.vmem [shape: f32[8,4], index: 4, kind: input, shape index: {}, may-alias: {4,9}]   ;;  %s3130_s6 = inlined_call_operand.vmem [shape: f32[8,4], index: 6, kind: input, shape index: {}]   ;;  %s3131_s3 = inlined_call_operand.vmem [shape: f32[2,256], index: 3, kind: input, shape index: {}]   ;;  %s3132_s8 = inlined_call_operand.vmem [shape: f32[8,1], index: 8, kind: input, shape index: {}]   ;;  %s3133_s7 = inlined_call_operand.vmem [shape: bf16[3,8,8], index: 7, kind: input, shape index: {}]   ;;  %s3134_s1 = inlined_call_operand.vmem [shape: f32[1,256], index: 1, kind: input, shape index: {}]   ;;  %s3135_s10 = inlined_call_operand.vmem [shape: f32[8,8], index: 10, kind: input, shape index: {}]   ;;  %s3136_s9 = inlined_call_operand.vmem [shape: f32[8,4], index: 9, kind: input, shape index: {}, may-alias: {4,9}]   ;;  %s3137_s11 = inlined_call_operand.vmem [shape: f32[8,8], index: 11, kind: input, shape index: {}]   ;;  %s3138_s13 = inlined_call_operand.vmem [shape: f32[8,1], index: 13, kind: input, shape index: {}]   ;;  %s3139_s12 = inlined_call_operand.vmem [shape: bf16[1,8,8], index: 12, kind: input, shape index: {}]   ;;  %s3140_s14 = inlined_call_operand.vmem [shape: bf16[8,256], index: 14, kind: output, shape index: {}]  }
   0x1   :  { %v68_v0 = vld [vmem:[%s3126_s2 + $0x80] sm:$0xff]  ;;  %v69_v1 = vld [vmem:[%s3126_s2 + $0x88] sm:$0xff]  ;;  %v70_v5 = vld [vmem:[%s3126_s2 + $0x90] sm:$0xff]  ;;  %2440 = vset.pattern.permute.xlu0 %v2483_v61  ;;  %v2484_v63 = vmov 1   ;;  %vm381_vm2 = vcmask 1043456   ;;  %vm377_vm3 = vcmask 31744  }
   0x2   :  { %v52_v2 = vld [vmem:[%s3126_s2] sm:$0xff]  ;;  %v2579_v3 = vpack.c.bf16 %v69_v1, %v68_v0  ;;  %v53_v4 = vld [vmem:[%s3126_s2 + $0x8] sm:$0xff]  ;;  %v71_v6 = vld [vmem:[%s3126_s2 + $0x98] sm:$0xff]  ;;  %vm554_vm4 = vcmask 1041408   ;;  %vm550_vm5 = vcmask 15360  }
   0x3   :  { %v2590_v7 = vpack.c.bf16 %v53_v4, %v52_v2  ;;  %v2592_v8 = vpack.c.bf16 %v71_v6, %v70_v5  ;;  %v54_v9 = vld [vmem:[%s3126_s2 + $0x10] sm:$0xff]  ;;  %v55_v10 = vld [vmem:[%s3126_s2 + $0x18] sm:$0xff]  ;;  %v72_v11 = vld [vmem:[%s3126_s2 + $0xa0] sm:$0xff] }
   0x4   :  { %2283 = vmatprep.subr.bf16.mxu0 %v2579_v3  ;;  %2315 = vmatprep.subr.bf16.mxu1 %v2579_v3  ;;  %v73_v12 = vld [vmem:[%s3126_s2 + $0xa8] sm:$0xff]  ;;  %v2610_v13 = vpack.c.bf16 %v55_v10, %v54_v9  ;;  %v56_v15 = vld [vmem:[%s3126_s2 + $0x20] sm:$0xff]  ;;  %v74_v17 = vld [vmem:[%s3126_s2 + $0xb0] sm:$0xff] }
   0x5   :  { %2285 = vmatpush3.bf16.msra.mxu0 %v2590_v7  ;;  %2317 = vmatpush3.bf16.msra.mxu1 %v2590_v7  ;;  %v2614_v14 = vpack.c.bf16 %v73_v12, %v72_v11  ;;  %v57_v16 = vld [vmem:[%s3126_s2 + $0x28] sm:$0xff]  ;;  %v75_v18 = vld [vmem:[%s3126_s2 + $0xb8] sm:$0xff]  ;;  %v58_v21 = vld [vmem:[%s3126_s2 + $0x30] sm:$0xff] }
   0x6   :  { %2287 = vmatprep.subr.bf16.mxu0 %v2592_v8  ;;  %2319 = vmatprep.subr.bf16.mxu1 %v2592_v8  ;;  %v2630_v19 = vpack.c.bf16 %v57_v16, %v56_v15  ;;  %v2634_v20 = vpack.c.bf16 %v75_v18, %v74_v17  ;;  %v59_v22 = vld [vmem:[%s3126_s2 + $0x38] sm:$0xff]  ;;  %v76_v23 = vld [vmem:[%s3126_s2 + $0xc0] sm:$0xff]  ;;  %v77_v24 = vld [vmem:[%s3126_s2 + $0xc8] sm:$0xff]  ;;  %v3142_v15 = vmov 2   ;;  %v3141_v16 = vmov 3  }
   0x7   :  { %v48_v25 = vld [vmem:[%s3127_s0] sm:$0xff]  ;;  %v2655_v27 = vpack.c.bf16 %v59_v22, %v58_v21  ;;  %v2659_v28 = vpack.c.bf16 %v77_v24, %v76_v23  ;;  %v61_v30 = vld [vmem:[%s3126_s2 + $0x48] sm:$0xff]  ;;  %v78_v32 = vld [vmem:[%s3126_s2 + $0xd0] sm:$0xff]  ;;  %2442 = vset.pattern.permute.xlu1 %v3142_v15 }
   0x8   :  { %v2651_v26 = vunpack.c.h.bf16 %v48_v25  ;;  %v60_v29 = vld [vmem:[%s3126_s2 + $0x40] sm:$0xff]  ;;  %v79_v33 = vld [vmem:[%s3126_s2 + $0xd8] sm:$0xff]  ;;  %v62_v36 = vld [vmem:[%s3126_s2 + $0x50] sm:$0xff]  ;;  %v2730_v50 = vunpack.c.l.bf16 %v48_v25 }
   0x9   :  { %2289 = vmatpush3.bf16.msra.mxu0 %v2610_v13  ;;  %2321 = vmatpush3.bf16.msra.mxu1 %v2610_v13  ;;  %v2678_v34 = vpack.c.bf16 %v61_v30, %v60_v29  ;;  %v2682_v35 = vpack.c.bf16 %v79_v33, %v78_v32  ;;  %v63_v37 = vld [vmem:[%s3126_s2 + $0x58] sm:$0xff]  ;;  %v80_v38 = vld [vmem:[%s3126_s2 + $0xe0] sm:$0xff]  ;;  %v81_v39 = vld [vmem:[%s3126_s2 + $0xe8] sm:$0xff] }
   0xa   :  { %2291 = vmatprep.subr.bf16.mxu0 %v2614_v14  ;;  %2323 = vmatprep.subr.bf16.mxu1 %v2614_v14  ;;  %v159_v31 = vmul.f32 %v2651_v26, %v2651_v26  ;;  %v2698_v40 = vpack.c.bf16 %v63_v37, %v62_v36  ;;  %v2702_v41 = vpack.c.bf16 %v81_v39, %v80_v38  ;;  %v64_v42 = vld [vmem:[%s3126_s2 + $0x60] sm:$0xff]  ;;  %v65_v43 = vld [vmem:[%s3126_s2 + $0x68] sm:$0xff]  ;;  %v82_v44 = vld [vmem:[%s3126_s2 + $0xf0] sm:$0xff] }
   0xb   :  { %152 = vmatprep.mubr.f32.mxu0 %v2651_v26  ;;  %v83_v45 = vld [vmem:[%s3126_s2 + $0xf8] sm:$0xff]  ;;  %v2718_v46 = vpack.c.bf16 %v65_v43, %v64_v42  ;;  %v66_v48 = vld [vmem:[%s3126_s2 + $0x70] sm:$0xff]  ;;  %v158_v52 = vmul.f32 %v2730_v50, %v2730_v50  ;;  %v86_v60 = vld [vmem:[%s3128_s5] sm:$0xf] }
   0xc   :  { %224 = vmatprep.mubr.f32.mxu1 %v159_v31  ;;  %v2722_v47 = vpack.c.bf16 %v83_v45, %v82_v44  ;;  %v67_v49 = vld [vmem:[%s3126_s2 + $0x78] sm:$0xff]  ;;  %v85_v62 = vld [vmem:[%s3129_s4] sm:$0xff] }
   0xd   :  { %2293 = vmatpush3.bf16.msra.mxu0 %v2630_v19  ;;  %2325 = vmatpush3.bf16.msra.mxu1 %v2630_v19  ;;  %v2734_v51 = vpack.c.bf16 %v67_v49, %v66_v48  ;;  %v87_v2 = vld [vmem:[%s3130_s6] sm:$0xff]  ;;  %s2494_s6 = smov 1  }
   0xe   :  { %2295 = vmatprep.subr.bf16.mxu0 %v2634_v20  ;;  %2327 = vmatprep.subr.bf16.mxu1 %v2634_v20  ;;  %v2776_v11 = vld.sshfl [vmem:[%s3131_s3] sm:$0x33 pattern:$0x76325410]  ;;  %s2493_s3 = smov 127  }
   0xf   :  { %531 = vperm.xlu0 %2440, %v85_v62   ;;  %v2780_v12 = vcombine.high %v2776_v11, %v2776_v11  ;;  %709 = vperm.xlu1 %2442, %v85_v62  }
  0x11   :  { %2297 = vmatpush3.bf16.msra.mxu0 %v2655_v27  ;;  %2329 = vmatpush3.bf16.msra.mxu1 %v2655_v27 }
  0x12   :  { %2299 = vmatprep.subr.bf16.mxu0 %v2659_v28  ;;  %2331 = vmatprep.subr.bf16.mxu1 %v2659_v28 }
  0x13   :  { %2441 = vset.pattern.permute.xlu0 %v2484_v63  ;;  %2443 = vset.pattern.permute.xlu1 %v3141_v16 }
  0x14   :  { %537 = vperm.xlu0 %2441, %v85_v62   ;;  %925 = vperm.xlu1 %2443, %v85_v62  }
  0x15   :  { %2301 = vmatpush3.bf16.msra.mxu0 %v2678_v34  ;;  %2333 = vmatpush3.bf16.msra.mxu1 %v2678_v34 }
  0x16   :  { %2303 = vmatprep.subr.bf16.mxu0 %v2682_v35  ;;  %2335 = vmatprep.subr.bf16.mxu1 %v2682_v35 }
  0x18   :  { %2455 = vset.pattern.permute.xlu0 %v2483_v61  ;;  %2454 = vset.pattern.permute.xlu1 %v2483_v61 }
  0x19   :  { %2305 = vmatpush3.bf16.msra.mxu0 %v2698_v40  ;;  %2337 = vmatpush3.bf16.msra.mxu1 %v2698_v40 }
  0x1a   :  { %2307 = vmatprep.subr.bf16.mxu0 %v2702_v41  ;;  %2339 = vmatprep.subr.bf16.mxu1 %v2702_v41 }
  0x1d   :  { %2309 = vmatpush3.bf16.msra.mxu0 %v2718_v46  ;;  %2341 = vmatpush3.bf16.msra.mxu1 %v2718_v46 }
  0x1e   :  { %2311 = vmatprep.subr.bf16.mxu0 %v2722_v47  ;;  %2343 = vmatprep.subr.bf16.mxu1 %v2722_v47 }
  0x21   :  { %2313 = vmatpush3.bf16.msra.mxu0 %v2734_v51  ;;  %2345 = vmatpush3.bf16.msra.mxu1 %v2734_v51 }
  0x22   :  { %2242 = vmatprep.subr.mxu1 %v3143_v53  ;;  %2252 = vmatprep.subr.mxu0 %v3143_v53 }
  0x24   :  { %153 = vmatmul.mubr.f32.vlgmr.msra.gmra.mrb[0].mxu0 %v2730_v50  ;;  %225 = vmatmul.mubr.f32.vlgmr.msra.gmra.mrb[0].mxu1 %v158_v52 }
  0x25   :  { %2244 = vmatprep.mubr.msk.f32.mxu1 %vm2482_vm0, %v3143_v53  ;;  %2254 = vmatprep.mubr.msk.f32.mxu0 %vm2482_vm0, %v3143_v53 }
  0x8e   :  { %v532_v24 = vpop.permute.xlu0 %531  ;;  %v710_v42 = vpop.permute.xlu1 %709 }
  0x93   :  { %v538_v30 = vpop.permute.xlu0 %537 }
  0xf7   :  { %v2118_v54 = vpop.f32.mrb[0].mxu0  ;;  %v2153_v55 = vpop.f32.mrb[0].mxu1 }
  0xf8   :  { %v2119_v56 = vpop.f32.mrb[1].mxu0  ;;  %v2154_v57 = vpop.f32.mrb[1].mxu1 }
  0xf9   :  { %v2120_v58 = vadd.f32 %v2119_v56, %v2118_v54  ;;  %v2155_v59 = vadd.f32 %v2154_v57, %v2153_v55 }
  0xfb   :  { %2243 = vmatpush3.msra.mxu1 %v2120_v58 }
  0xfc   :  { %2245 = vmatmul.mubr.msk.f32.vlgmr.msra.gmra.mrb[2].mxu1 %vm230_vm1, %v86_v60  ;;  %2247 = vmatprep.subr.mxu1 %v3143_v53 }
  0xfd   :  { %2248 = vmatpush3.msra.mxu1 %v2155_v59  ;;  %2249 = vmatprep.mubr.msk.f32.mxu1 %vm2482_vm0, %v3143_v53 }
  0xfe   :  { %2257 = vmatprep.subr.mxu1 %v3143_v53 }
 0x100   :  { %2250 = vmatmul.mubr.msk.f32.vlgmr.msra.gmra.mrb[4].mxu1 %vm230_vm1, %v86_v60 }
 0x101   :  { %2259 = vmatprep.mubr.msk.f32.mxu1 %vm2482_vm0, %v3143_v53 }
 0x1cf   :  { %v300_v0 = vpop.f32.mrb[2].mxu1 }
 0x1d0   :  { %v2246_v1 = vpop.f32.mrb[3].mxu1  ;;  %2253 = vmatpush3.msk.msra.mxu0 %vm381_vm2, %v300_v0  ;;  %v374_v4 = vmul.f32 %v300_v0, %v300_v0 }
 0x1d1   :  { %2255 = vmatmul.mubr.msk.f32.vlgmr.msra.gmra.mrb[2].mxu0 %vm377_vm3, %v87_v2  ;;  %2042 = vmatprep.subr.msk.mxu0 %vm554_vm4, %v2780_v12 }
 0x1d2   :  { %623 = vmatprep.mubr.f32.mxu0 %v3143_v53  ;;  %2043 = vmatpush1.msk.msra.mxu0 %vm554_vm4, %v2776_v11 }
 0x1d3   :  { %v370_v5 = vpop.f32.mrb[4].mxu1 }
 0x1d4   :  { %v375_v6 = vsub.f32 %v370_v5, %v374_v4  ;;  %v2251_v9 = vpop.f32.mrb[5].mxu1 }
 0x1d6   :  { %v376_v10 = vmax.f32 %v375_v6, 0.0 }
 0x1d8   :  { %2258 = vmatpush3.msk.msra.mxu1 %vm381_vm2, %v376_v10 }
 0x1d9   :  { %2260 = vmatmul.mubr.msk.f32.vlgmr.msra.gmra.mrb[6].mxu1 %vm377_vm3, %v87_v2  ;;  %2045 = vmatprep.subr.msk.mxu1 %vm554_vm4, %v2780_v12 }
 0x1da   :  { %697 = vmatprep.mubr.f32.mxu1 %v3143_v53  ;;  %2046 = vmatpush1.msk.msra.mxu1 %vm554_vm4, %v2776_v11 }
 0x2a4   :  { %v451_v17 = vpop.f32.mrb[2].mxu0 }
 0x2a5   :  { %v2256_v18 = vpop.f32.mrb[3].mxu0 }
 0x2ac   :  { %v524_v21 = vpop.f32.mrb[6].mxu1 }
 0x2ad   :  { %v525_v22 = vadd.f32 1e-05, %v524_v21  ;;  %v2261_v23 = vpop.f32.mrb[7].mxu1 }
 0x2af   :  { %2461 = vrsqrt.f32 %v525_v22  ;;  %v2487_v22 = vmov 683565275  }
 0x2b9   :  { %v2462_v25 = vpop.eup %2461 }
 0x2ba   :  { %v534_v29 = vmul.f32 %v2462_v25, %v532_v24 }
 0x2bc   :  { %v535_v31 = vmul.f32 %v534_v29, %v451_v17  ;;  %2044 = vmatmul.mubr.msk.f32.vlgmr.msra.gmra.mrb[4].mxu0 %vm550_vm5, %v534_v29  ;;  %v3147_v29 = vmov 2475754826  }
 0x2bd   :  { %991 = vmatprep.mubr.bf16.mxu0 %v2483_v61 }
 0x2be   :  { %v540_v32 = vsub.f32 %v538_v30, %v535_v31  ;;  %v3145_v31 = vmov 2131351028  }
 0x2c0   :  { %2047 = vmatmul.mubr.msk.f32.vlgmr.msra.gmra.mrb[8].mxu1 %vm550_vm5, %v540_v32 }
 0x2c1   :  { %1041 = vmatprep.mubr.bf16.mxu1 %v2483_v61 }
 0x38f   :  { %v625_v33 = vpop.f32.mrb[4].mxu0 }
 0x390   :  { %v627_v36 = vpop.f32.mrb[5].mxu0  ;;  %v704_v37 = vmul.f32 %v625_v33, %v2730_v50  ;;  %v2490_v33 = vmov 2102212464  }
 0x391   :  { %v705_v38 = vmul.f32 %v627_v36, %v2651_v26 }
 0x393   :  { %v699_v39 = vpop.f32.mrb[8].mxu1 }
 0x394   :  { %v2799_v43 = vadd.f32 %v704_v37, %v699_v39  ;;  %v701_v44 = vpop.f32.mrb[9].mxu1  ;;  %v2491_v37 = vmov 920167782  }
 0x395   :  { %v2801_v45 = vadd.f32 %v705_v38, %v701_v44 }
 0x396   :  { %v2804_v48 = vmul.f32 %v710_v42, %v2799_v43 }
 0x397   :  { %v2807_v49 = vmul.f32 %v710_v42, %v2801_v45 }
 0x398   :  { %v714_v52 = vand.u32 2147483647, %v2804_v48  ;;  %v717_v54 = vand.u32 2139095040, %v2804_v48 }
 0x399   :  { %v821_v55 = vand.u32 2139095040, %v2807_v49  ;;  %v818_v58 = vand.u32 2147483647, %v2807_v49 }
 0x39a   :  { %v718_v56 = vshrl.u32 %v717_v54, 23  ;;  %v721_v57 = vand.u32 8388607, %v714_v52 }
 0x39b   :  { %v822_v59 = vshrl.u32 %v821_v55, 23  ;;  %v2817_v2 = vand.u32 8388607, %v818_v58 }
 0x39c   :  { %v2048_v60 = vadd.s32 4294967169, %v718_v56  ;;  %v722_v1 = vor.u32 8388608, %v721_v57  ;;  %v2492_v56 = vmov 1326507024  }
 0x39d   :  { %v2052_v62 = vadd.s32 4294967169, %v822_v59  ;;  %v826_v18 = vor.u32 8388608, %v2817_v2 }
 0x39e   :  { %v724_v0 = vadd.s32 1, %v2048_v60  ;;  %v2819_v17 = vshll.u32 %v722_v1, 8 }
 0x39f   :  { %v828_v4 = vadd.s32 1, %v2052_v62 }
 0x3a0   :  { %vm725_vm6 = vcmp.gt.s32.totalorder %v724_v0, 0 }
 0x3a1   :  { %v726_v5 = vsel %vm725_vm6, %v724_v0, 0  ;;  %vm829_vm7 = vcmp.gt.s32.totalorder %v828_v4, 0 }
 0x3a2   :  { %v727_v6 = vshrl.u32 %v726_v5, 5  ;;  %v728_v9 = vand.u32 31, %v726_v5  ;;  %v830_v10 = vsel %vm829_vm7, %v828_v4, 0 }
 0x3a3   :  { %v2823_v24 = vshrl.u32 %v830_v10, 5  ;;  %v832_v25 = vand.u32 31, %v830_v10 }
 0x3a4   :  { %v729_v21 = vsub.s32 32, %v728_v9  ;;  %v731_v23 = vshll.u32 %v2487_v22, %v728_v9  ;;  %v734_v30 = vshll.u32 %v3147_v29, %v728_v9  ;;  %v737_v32 = vshll.u32 %v3145_v31, %v728_v9 }
 0x3a5   :  { %v740_v36 = vshll.u32 %v2490_v33, %v728_v9  ;;  %v743_v38 = vshll.u32 %v2491_v37, %v728_v9  ;;  %vm746_vm8 = vcmp.lt.s32.totalorder %v727_v6, 1  ;;  %vm747_vm9 = vcmp.lt.s32.totalorder %v727_v6, 2 }
 0x3a6   :  { %v732_v39 = vshrl.u32 %v3147_v29, %v729_v21  ;;  %v735_v42 = vshrl.u32 %v3145_v31, %v729_v21  ;;  %v738_v44 = vshrl.u32 %v2490_v33, %v729_v21  ;;  %v730_v54 = vshrl.u32 %v2487_v22, %v729_v21 }
 0x3a7   :  { %v741_v55 = vshrl.u32 %v2491_v37, %v729_v21  ;;  %v744_v57 = vshrl.u32 %v2492_v56, %v729_v21  ;;  %v833_v0 = vsub.s32 32, %v832_v25  ;;  %vm748_vm10 = vcmp.lt.s32.totalorder %v727_v6, 3 }
 0x3a8   :  { %v733_v59 = vor.u32 %v732_v39, %v731_v23  ;;  %v736_v60 = vor.u32 %v735_v42, %v734_v30  ;;  %v739_v62 = vor.u32 %v738_v44, %v737_v32  ;;  %vm749_vm11 = vcmp.lt.s32.totalorder %v727_v6, 4 }
 0x3a9   :  { %v742_v1 = vor.u32 %v741_v55, %v740_v36  ;;  %v745_v2 = vor.u32 %v744_v57, %v743_v38  ;;  %v835_v21 = vshll.u32 %v2487_v22, %v832_v25  ;;  %v836_v32 = vshrl.u32 %v3147_v29, %v833_v0 }
 0x3aa   :  { %v750_v4 = vsel %vm746_vm8, %v730_v54, %v733_v59  ;;  %v751_v5 = vsel %vm749_vm11, %v739_v62, 2102212464  ;;  %v754_v9 = vsel %vm746_vm8, %v733_v59, %v736_v60  ;;  %v758_v10 = vsel %vm746_vm8, %v736_v60, %v739_v62 }
 0x3ab   :  { %v752_v16 = vsel %vm748_vm10, %v736_v60, %v751_v5  ;;  %v755_v15 = vsel %vm749_vm11, %v742_v1, 920167782  ;;  %v759_v53 = vsel %vm749_vm11, %v745_v2, 1326507024  ;;  %v838_v36 = vshll.u32 %v3147_v29, %v832_v25 }
 0x3ac   :  { %v756_v23 = vsel %vm748_vm10, %v739_v62, %v755_v15  ;;  %v760_v30 = vsel %vm748_vm10, %v742_v1, %v759_v53  ;;  %v753_v38 = vsel %vm747_vm9, %v750_v4, %v752_v16  ;;  %v839_v44 = vshrl.u32 %v3145_v31, %v833_v0 }
 0x3ad   :  { %v757_v39 = vsel %vm747_vm9, %v754_v9, %v756_v23  ;;  %v761_v42 = vsel %vm747_vm9, %v758_v10, %v760_v30  ;;  %v837_v53 = vor.u32 %v836_v32, %v835_v21  ;;  %v841_v60 = vshll.u32 %v3145_v31, %v832_v25 }
 0x3ae   :  { %v2846_v54 = vmul.u32.u64.low %v2819_v17, %v761_v42  ;;  %v2847_v55 = vmul.u32.u64.high %v2819_v17, %v761_v42, %v2846_v54  ;;  %v2850_v57 = vmul.u32.u64.low %v2819_v17, %v757_v39  ;;  %v2851_v15 = vmul.u32.u64.high %v2819_v17, %v757_v39, %v2850_v57 }
 0x3af   :  { %v840_v59 = vor.u32 %v839_v44, %v838_v36  ;;  %v842_v16 = vshrl.u32 %v2490_v33, %v833_v0  ;;  %v844_v62 = vshll.u32 %v2490_v33, %v832_v25  ;;  %v845_v6 = vshrl.u32 %v2491_v37, %v833_v0 }
 0x3b0   :  { %v848_v1 = vshrl.u32 %v2492_v56, %v833_v0  ;;  %v866_v2 = vshll.u32 %v826_v18, 8  ;;  %v769_v4 = vmul.u32 %v2819_v17, %v753_v38  ;;  %v834_v5 = vshrl.u32 %v2487_v22, %v833_v0 }
 0x3b1   :  { %v843_v9 = vor.u32 %v842_v16, %v841_v60  ;;  %v847_v10 = vshll.u32 %v2491_v37, %v832_v25  ;;  %vm771_vm12 = vc.u32 %v2847_v55, %v2850_v57  ;;  %v772_v21 = vadd.s32 1, %v2851_v15 }
 0x3b2   :  { %v846_v23 = vor.u32 %v845_v6, %v844_v62  ;;  %vm850_vm13 = vcmp.lt.s32.totalorder %v2823_v24, 1  ;;  %vm852_vm14 = vcmp.lt.s32.totalorder %v2823_v24, 3  ;;  %vm853_vm15 = vcmp.lt.s32.totalorder %v2823_v24, 4 }
 0x3b3   :  { %v849_v30 = vor.u32 %v848_v1, %v847_v10  ;;  %v858_v18 = vsel %vm850_vm13, %v837_v53, %v840_v59  ;;  %v773_v17 = vsel %vm771_vm12, %v772_v21, %v2851_v15  ;;  %v855_v32 = vsel %vm853_vm15, %v843_v9, 2102212464 }
 0x3b4   :  { %v859_v0 = vsel %vm853_vm15, %v846_v23, 920167782  ;;  %v862_v36 = vsel %vm850_vm13, %v840_v59, %v843_v9  ;;  %v774_v38 = vadd.s32 %v773_v17, %v769_v4  ;;  %vm851_vm3 = vcmp.lt.s32.totalorder %v2823_v24, 2 }
 0x3b5   :  { %v860_v25 = vsel %vm852_vm14, %v843_v9, %v859_v0  ;;  %v863_v39 = vsel %vm853_vm15, %v849_v30, 1326507024  ;;  %v854_v42 = vsel %vm850_vm13, %v834_v5, %v837_v53  ;;  %v856_v44 = vsel %vm852_vm14, %v840_v59, %v855_v32 }
 0x3b6   :  { %v861_v54 = vsel %vm851_vm3, %v858_v18, %v860_v25  ;;  %v864_v60 = vsel %vm852_vm14, %v846_v23, %v863_v39  ;;  %v775_v16 = vadd.s32 536870912, %v774_v38  ;;  %v857_v21 = vsel %vm851_vm3, %v854_v42, %v856_v44 }
 0x3b7   :  { %v865_v62 = vsel %vm851_vm3, %v862_v36, %v864_v60  ;;  %v2868_v6 = vmul.u32.u64.low %v866_v2, %v861_v54  ;;  %v2869_v1 = vmul.u32.u64.high %v866_v2, %v861_v54, %v2868_v6  ;;  %v873_v24 = vmul.u32 %v866_v2, %v857_v21 }
 0x3b8   :  { %v2871_v10 = vmul.u32.u64.low %v866_v2, %v865_v62  ;;  %v2872_v31 = vmul.u32.u64.high %v866_v2, %v865_v62, %v2871_v10  ;;  %v776_v15 = vshrl.u32 %v775_v16, 30  ;;  %v770_v42 = vadd.s32 %v2850_v57, %v2847_v55 }
 0x3b9   :  { %v876_v4 = vadd.s32 1, %v2869_v1  ;;  %vm716_vm9 = vcmp.lt.s32.totalorder %v2804_v48, 0  ;;  %vm715_vm10 = vcmp.le.f32.partialorder %v714_v52, 0.7853982  ;;  %vm820_vm11 = vcmp.lt.s32.totalorder %v2807_v49, 0 }
 0x3ba   :  { %v777_v29 = vshll.u32 %v776_v15, 30  ;;  %vm875_vm6 = vc.u32 %v2872_v31, %v2868_v6  ;;  %v800_v57 = vsub.s32 4, %v776_v15  ;;  %vm819_vm12 = vcmp.le.f32.partialorder %v818_v58, 0.7853982 }
 0x3bb   :  { %v877_v59 = vsel %vm875_vm6, %v876_v4, %v2869_v1  ;;  %vm806_vm3 = vweird.f32 %v2804_v48 }
 0x3bc   :  { %v778_v53 = vsub.s32 %v774_v38, %v777_v29  ;;  %v878_v5 = vadd.s32 %v877_v59, %v873_v24 }
 0x3be   :  { %v780_v9 = vsub.s32 0, %v778_v53  ;;  %v879_v23 = vadd.s32 536870912, %v878_v5 }
 0x3c0   :  { %v2049_v30 = vmin.u32 %v780_v9, %v778_v53  ;;  %v880_v18 = vshrl.u32 %v879_v23, 30 }
 0x3c2   :  { %v782_v17 = vclz %v2049_v30  ;;  %v881_v32 = vshll.u32 %v880_v18, 30 }
 0x3c4   :  { %v2050_v0 = vadd.s32 4294967294, %v782_v17  ;;  %v882_v36 = vsub.s32 %v878_v5, %v881_v32  ;;  %v874_v5 = vadd.s32 %v2868_v6, %v2872_v31 }
 0x3c6   :  { %vm2051_vm7 = vcmp.lt.s32.totalorder %v2050_v0, 0  ;;  %v884_v39 = vsub.s32 0, %v882_v36 }
 0x3c7   :  { %v785_v25 = vsel %vm2051_vm7, 0, %v2050_v0 }
 0x3c8   :  { %v786_v2 = vsub.s32 32, %v785_v25  ;;  %v790_v44 = vsub.s32 4294967266, %v785_v25  ;;  %v2053_v54 = vmin.u32 %v884_v39, %v882_v36  ;;  %v787_v29 = vshll.u32 %v778_v53, %v785_v25 }
 0x3ca   :  { %v788_v38 = vshrl.u32 %v770_v42, %v786_v2  ;;  %v791_v60 = vadd.s32 127, %v790_v44  ;;  %v886_v16 = vclz %v2053_v54  ;;  %v801_v42 = vsel %vm716_vm9, %v800_v57, %v776_v15  ;;  %v926_v57 = vpop.permute.xlu1 %925 }
 0x3cb   :  { %v803_v54 = vsel %vm715_vm10, 0, %v801_v42 }
 0x3cc   :  { %v789_v62 = vor.u32 %v788_v38, %v787_v29  ;;  %v792_v1 = vshll.u32 %v791_v60, 23  ;;  %v2054_v10 = vadd.s32 4294967294, %v886_v16  ;;  %v904_v29 = vsub.s32 4, %v880_v18 }
 0x3cd   :  { %v807_v38 = vadd.s32 3, %v803_v54 }
 0x3ce   :  { %v793_v21 = vor.u32 4788187, %v792_v1  ;;  %vm2055_vm8 = vcmp.lt.s32.totalorder %v2054_v10, 0  ;;  %v796_v24 = vcvt.s32.f32 %v789_v62  ;;  %v905_v52 = vsel %vm820_vm11, %v904_v29, %v880_v18 }
 0x3cf   :  { %v889_v59 = vsel %vm2055_vm8, 0, %v2054_v10  ;;  %v808_v15 = vand.u32 3, %v807_v38  ;;  %v907_v10 = vsel %vm819_vm12, 0, %v905_v52 }
 0x3d0   :  { %v794_v4 = vand.u32 2147483647, %v793_v21  ;;  %v890_v9 = vsub.s32 32, %v889_v59  ;;  %v894_v23 = vsub.s32 4294967266, %v889_v59  ;;  %v891_v30 = vshll.u32 %v882_v36, %v889_v59 }
 0x3d1   :  { %vm813_vm13 = vcmp.eq.s32.totalorder %v808_v15, 2  ;;  %vm810_vm14 = vcmp.eq.s32.totalorder %v808_v15, 0  ;;  %vm809_vm15 = vcmp.lt.s32.totalorder %v808_v15, 2 }
 0x3d2   :  { %v797_v55 = vmul.f32 %v796_v24, %v794_v4  ;;  %v892_v17 = vshrl.u32 %v874_v5, %v890_v9  ;;  %v895_v53 = vadd.s32 127, %v894_v23  ;;  %v911_v5 = vadd.s32 3, %v907_v10 }
 0x3d4   :  { %v798_v32 = vxor.u32 2147483648, %v797_v55  ;;  %v893_v0 = vor.u32 %v892_v17, %v891_v30  ;;  %v896_v25 = vshll.u32 %v895_v53, 23  ;;  %v912_v23 = vand.u32 3, %v911_v5 }
 0x3d6   :  { %v799_v39 = vsel %vm716_vm9, %v798_v32, %v797_v55  ;;  %v897_v2 = vor.u32 4788187, %v896_v25  ;;  %v900_v44 = vcvt.s32.f32 %v893_v0  ;;  %vm917_vm6 = vcmp.eq.s32.totalorder %v912_v23, 2 }
 0x3d7   :  { %v802_v31 = vsel %vm715_vm10, %v2804_v48, %v799_v39  ;;  %vm914_vm7 = vcmp.eq.s32.totalorder %v912_v23, 0  ;;  %vm913_vm8 = vcmp.lt.s32.totalorder %v912_v23, 2  ;;  %vm910_vm9 = vweird.f32 %v2807_v49  ;;  %v2061_v23 = vld [vmem:[%s3133_s7 + $0x8] sm:$0xf] }
 0x3d8   :  { %2463 = vcosq.f32 %v802_v31  ;;  %v898_v6 = vand.u32 2147483647, %v897_v2  ;;  %vm1054_vm10 = vcmask 1039360  }
 0x3d9   :  { %2465 = vsinq.f32 %v802_v31 }
 0x3da   :  { %v901_v36 = vmul.f32 %v900_v44, %v898_v6 }
 0x3dc   :  { %v902_v60 = vxor.u32 2147483648, %v901_v36 }
 0x3de   :  { %v903_v16 = vsel %vm820_vm11, %v902_v60, %v901_v36  ;;  %vm938_vm11 = vcmask 7168  }
 0x3df   :  { %v906_v62 = vsel %vm819_vm12, %v2807_v49, %v903_v16  ;;  %v1115_v49 = vld [vmem:[%s3132_s8] sm:$0xff] }
 0x3e0   :  { %2467 = vcosq.f32 %v906_v62 }
 0x3e1   :  { %2469 = vsinq.f32 %v906_v62 }
 0x3e2   :  { %v2464_v1 = vpop.eup %2463 }
 0x3e3   :  { %v2466_v21 = vpop.eup %2465  ;;  %v814_v4 = vxor.u32 2147483648, %v2464_v1 }
 0x3e4   :  { %v811_v24 = vxor.u32 2147483648, %v2466_v21 }
 0x3e5   :  { %v815_v59 = vsel %vm813_vm13, %v814_v4, %v2466_v21 }
 0x3e6   :  { %v812_v9 = vsel %vm810_vm14, %v2464_v1, %v811_v24 }
 0x3e7   :  { %v816_v58 = vsel %vm809_vm15, %v812_v9, %v815_v59 }
 0x3e8   :  { %v817_v18 = vsel %vm806_vm3, nan, %v816_v58 }
 0x3e9   :  { %v922_v55 = vmul.f32 %v817_v18, %v817_v18  ;;  %v943_v18 = vld [vmem:[%s3133_s7] sm:$0xf] }
 0x3ea   :  { %v2468_v30 = vpop.eup %2467 }
 0x3eb   :  { %v2470_v17 = vpop.eup %2469  ;;  %v918_v53 = vxor.u32 2147483648, %v2468_v30  ;;  %v928_v0 = vmul.f32 %v926_v57, %v922_v55 }
 0x3ec   :  { %v915_v32 = vxor.u32 2147483648, %v2470_v17 }
 0x3ed   :  { %v919_v25 = vsel %vm917_vm6, %v918_v53, %v2470_v17  ;;  %v930_v48 = vadd.f32 %v928_v0, %v2799_v43  ;;  %v2056_v43 = vld [vmem:[%s3133_s7 + $0x4] sm:$0xf] }
 0x3ee   :  { %v916_v39 = vsel %vm914_vm7, %v2468_v30, %v915_v32 }
 0x3ef   :  { %v920_v42 = vsel %vm913_vm8, %v916_v39, %v919_v25  ;;  %v948_v44 = vpack.c.bf16 %v930_v48, %v930_v48 }
 0x3f0   :  { %v921_v2 = vsel %vm910_vm9, nan, %v920_v42 }
 0x3f1   :  { %v923_v31 = vmul.f32 %v921_v2, %v921_v2  ;;  %v954_v38 = vsel %vm381_vm2, %v948_v44, 0 }
 0x3f3   :  { %v929_v6 = vmul.f32 %v926_v57, %v923_v31 }
 0x3f5   :  { %v931_v54 = vadd.f32 %v929_v6, %v2801_v45 }
 0x3f7   :  { %v2449_v36 = vpack.i.bf16 %v931_v54, %v930_v48  ;;  %v949_v29 = vpack.c.bf16 %v931_v54, %v931_v54 }
 0x3f9   :  { %2450 = vrot.lane.b32.xlu0 %v2449_v36, %s2493_s3  ;;  %2445 = vrot.lane.b32.xlu1 %v2449_v36, %s2494_s6 }
 0x3fa   :  { %2057 = vmatprep.subr.msk.bf16.mxu0 %vm381_vm2, %v949_v29 }
 0x3fb   :  { %960 = vmatpush1.bf16.msra.mxu0 %v954_v38 }
 0x3fd   :  { %1118 = vperm.xlu1 %2454, %v1115_v49   ;;  %v1137_v49 = vld [vmem:[%s3135_s10] sm:$0xff] }
 0x3fe   :  { %2058 = vmatmul.mubr.msk.bf16.vlgmr.msra.gmra.mrb[8].mxu0 %vm230_vm1, %v2056_v43 }
 0x3ff   :  { %1104 = vmatprep.mubr.bf16.mxu0 %v2483_v61 }
 0x401   :  { %2456 = vset.pattern.permute.xlu1 %v2484_v63 }
 0x46b   :  { %v2451_v45 = vpop.permute.xlu0 %2450  ;;  %v2446_v60 = vpop.permute.xlu1 %2445 }
 0x46c   :  { %v2453_v16 = vunpack.i.h.bf16 %v2451_v45  ;;  %v2452_v52 = vunpack.i.l.bf16 %v2451_v45  ;;  %v2448_v15 = vunpack.i.h.bf16 %v2446_v60  ;;  %v2447_v62 = vunpack.i.l.bf16 %v2446_v60  ;;  %v1136_v60 = vld [vmem:[%s3136_s9] sm:$0xff] }
 0x46d   :  { %1573 = vperm.xlu0 %2455, %v1136_v60   ;;  %1579 = vperm.xlu1 %2456, %v1136_v60  }
 0x46e   :  { %v1058_v1 = vsel %vm1054_vm10, %v2453_v16, 0.0  ;;  %v939_v10 = vsel %vm938_vm11, %v2447_v62, %v2448_v15  ;;  %v942_v21 = vsel %vm938_vm11, 0.0, %v2447_v62  ;;  %v1055_v4 = vsel %vm1054_vm10, %v2452_v52, %v2453_v16 }
 0x46f   :  { %v1062_v24 = vpack.c.bf16 %v1058_v1, %v1058_v1  ;;  %v944_v59 = vpack.c.bf16 %v942_v21, %v942_v21  ;;  %v945_v5 = vpack.c.bf16 %v939_v10, %v939_v10  ;;  %v1061_v9 = vpack.c.bf16 %v1055_v4, %v1055_v4  ;;  %v1138_v1 = vld [vmem:[%s3137_s11] sm:$0xff] }
 0x470   :  { %v3150_v16 = vmov 2   ;;  %v3151_v52 = vmov 3  }
 0x471   :  { %2059 = vmatprep.subr.msk.bf16.mxu1 %vm381_vm2, %v945_v5  ;;  %2062 = vmatprep.subr.msk.bf16.mxu0 %vm381_vm2, %v1062_v24  ;;  %v1004_v63 = vsel %vm381_vm2, %v944_v59, 0  ;;  %v1067_v58 = vsel %vm381_vm2, %v1061_v9, 0 }
 0x472   :  { %1010 = vmatpush1.bf16.msra.mxu1 %v1004_v63  ;;  %1073 = vmatpush1.bf16.msra.mxu0 %v1067_v58 }
 0x473   :  { %2347 = vmatprep.subr.bf16.mxu1 %v2579_v3  ;;  %2379 = vmatprep.subr.bf16.mxu0 %v2579_v3  ;;  %v3149_v3 = vmov 0.0  }
 0x474   :  { %2457 = vset.pattern.permute.xlu1 %v3150_v16  ;;  %2458 = vset.pattern.permute.xlu0 %v3151_v52 }
 0x475   :  { %2060 = vmatmul.mubr.msk.bf16.vlgmr.msra.gmra.mrb[12].mxu1 %vm230_vm1, %v943_v18  ;;  %2063 = vmatmul.mubr.msk.bf16.vlgmr.msra.gmra.mrb[12].mxu0 %vm230_vm1, %v2061_v23 }
 0x476   :  { %2349 = vmatpush3.bf16.msra.mxu1 %v2590_v7  ;;  %2381 = vmatpush3.bf16.msra.mxu0 %v2590_v7 }
 0x477   :  { %2351 = vmatprep.subr.bf16.mxu1 %v2592_v8  ;;  %2383 = vmatprep.subr.bf16.mxu0 %v2592_v8 }
 0x478   :  { %1736 = vperm.xlu1 %2457, %v1136_v60   ;;  %1952 = vperm.xlu0 %2458, %v1136_v60  }
 0x47a   :  { %2353 = vmatpush3.bf16.msra.mxu1 %v2610_v13  ;;  %2385 = vmatpush3.bf16.msra.mxu0 %v2610_v13 }
 0x47b   :  { %2355 = vmatprep.subr.bf16.mxu1 %v2614_v14  ;;  %2387 = vmatprep.subr.bf16.mxu0 %v2614_v14 }
 0x47c   :  { %2459 = vset.pattern.permute.xlu1 %v2483_v61  ;;  %2460 = vset.pattern.permute.xlu0 %v2483_v61 }
 0x47e   :  { %2357 = vmatpush3.bf16.msra.mxu1 %v2630_v19  ;;  %2389 = vmatpush3.bf16.msra.mxu0 %v2630_v19  ;;  %v1124_v19 = vlaneseq }
 0x47f   :  { %2359 = vmatprep.subr.bf16.mxu1 %v2634_v20  ;;  %2391 = vmatprep.subr.bf16.mxu0 %v2634_v20 }
 0x480   :  { %v1125_v20 = vshrl.u32 %v1124_v19, 7 }
 0x482   :  { %2361 = vmatpush3.bf16.msra.mxu1 %v2655_v27  ;;  %2393 = vmatpush3.bf16.msra.mxu0 %v2655_v27  ;;  %v1126_v27 = vsub.s32 0, %v1125_v20 }
 0x483   :  { %2363 = vmatprep.subr.bf16.mxu1 %v2659_v28  ;;  %2395 = vmatprep.subr.bf16.mxu0 %v2659_v28  ;;  %v1119_v28 = vpop.permute.xlu1 %1118 }
 0x486   :  { %2365 = vmatpush3.bf16.msra.mxu1 %v2678_v34  ;;  %2397 = vmatpush3.bf16.msra.mxu0 %v2678_v34 }
 0x487   :  { %2367 = vmatprep.subr.bf16.mxu1 %v2682_v35  ;;  %2399 = vmatprep.subr.bf16.mxu0 %v2682_v35 }
 0x48a   :  { %2369 = vmatpush3.bf16.msra.mxu1 %v2698_v40  ;;  %2401 = vmatpush3.bf16.msra.mxu0 %v2698_v40  ;;  %v51_v40 = vld [vmem:[%s3134_s1] sm:$0x3] }
 0x48b   :  { %2371 = vmatprep.subr.bf16.mxu1 %v2702_v41  ;;  %2403 = vmatprep.subr.bf16.mxu0 %v2702_v41  ;;  %v1130_v41 = vsub.s32 1, %v1125_v20  ;;  %v2951_v0 = vrot.slane %v51_v40, %v1126_v27 }
 0x48d   :  { %v2953_v39 = vrot.slane %v51_v40, %v1130_v41 }
 0x48e   :  { %2373 = vmatpush3.bf16.msra.mxu1 %v2718_v46  ;;  %2405 = vmatpush3.bf16.msra.mxu0 %v2718_v46 }
 0x48f   :  { %2375 = vmatprep.subr.bf16.mxu1 %v2722_v47  ;;  %2407 = vmatprep.subr.bf16.mxu0 %v2722_v47 }
 0x492   :  { %2377 = vmatpush3.bf16.msra.mxu1 %v2734_v51  ;;  %2409 = vmatpush3.bf16.msra.mxu0 %v2734_v51 }
 0x493   :  { %2262 = vmatprep.subr.mxu1 %v3149_v3  ;;  %2272 = vmatprep.subr.mxu0 %v3149_v3 }
 0x4d1   :  { %v993_v7 = vpop.f32.mrb[8].mxu0 }
 0x4d2   :  { %v995_v8 = vpop.f32.mrb[9].mxu0 }
 0x4d3   :  { %v997_v13 = vpop.f32.mrb[10].mxu0 }
 0x4d4   :  { %v998_v14 = vpop.f32.mrb[11].mxu0 }
 0x4ec   :  { %v1574_v23 = vpop.permute.xlu0 %1573  ;;  %v1580_v13 = vpop.permute.xlu1 %1579 }
 0x548   :  { %v1043_v34 = vpop.f32.mrb[12].mxu1  ;;  %v1106_v35 = vpop.f32.mrb[12].mxu0 }
 0x549   :  { %v1044_v46 = vadd.f32 %v1043_v34, %v993_v7  ;;  %v1045_v47 = vpop.f32.mrb[13].mxu1  ;;  %v1108_v51 = vpop.f32.mrb[13].mxu0 }
 0x54a   :  { %v1046_v55 = vadd.f32 %v1045_v47, %v995_v8  ;;  %v1047_v57 = vpop.f32.mrb[14].mxu1  ;;  %v1110_v30 = vpop.f32.mrb[14].mxu0 }
 0x54b   :  { %v1113_v17 = vadd.f32 %v1106_v35, %v1044_v46  ;;  %v1048_v53 = vpop.f32.mrb[15].mxu1  ;;  %v1111_v32 = vpop.f32.mrb[15].mxu0 }
 0x54c   :  { %v1114_v25 = vadd.f32 %v1108_v51, %v1046_v55  ;;  %v1737_v34 = vpop.permute.xlu1 %1736 }
 0x54d   :  { %v1121_v42 = vadd.f32 %v1119_v28, %v1113_v17 }
 0x54e   :  { %v1122_v2 = vadd.f32 %v1119_v28, %v1114_v25 }
 0x54f   :  { %v2956_v48 = vmul.f32 %v2951_v0, %v1121_v42 }
 0x550   :  { %v2959_v31 = vmul.f32 %v2953_v39, %v1122_v2 }
 0x551   :  { %v1209_v44 = vmul.f32 %v2956_v48, %v2956_v48 }
 0x552   :  { %1203 = vmatprep.mubr.f32.mxu1 %v2959_v31  ;;  %v1210_v6 = vmul.f32 %v2959_v31, %v2959_v31 }
 0x553   :  { %1204 = vmatmul.mubr.f32.vlgmr.msra.gmra.mrb[10].mxu1 %v2956_v48 }
 0x554   :  { %1275 = vmatprep.mubr.f32.mxu0 %v1210_v6  ;;  %2264 = vmatprep.mubr.msk.f32.mxu1 %vm2482_vm0, %v3149_v3 }
 0x555   :  { %1276 = vmatmul.mubr.f32.vlgmr.msra.gmra.mrb[6].mxu0 %v1209_v44 }
 0x556   :  { %2274 = vmatprep.mubr.msk.f32.mxu0 %vm2482_vm0, %v3149_v3 }
 0x626   :  { %v2196_v54 = vpop.f32.mrb[10].mxu1 }
 0x627   :  { %v2197_v36 = vpop.f32.mrb[11].mxu1 }
 0x628   :  { %v2198_v29 = vadd.f32 %v2197_v36, %v2196_v54  ;;  %v2231_v38 = vpop.f32.mrb[6].mxu0 }
 0x629   :  { %v2232_v43 = vpop.f32.mrb[7].mxu0 }
 0x62a   :  { %v2233_v45 = vadd.f32 %v2232_v43, %v2231_v38  ;;  %2263 = vmatpush3.msra.mxu1 %v2198_v29 }
 0x62b   :  { %2265 = vmatmul.mubr.msk.f32.vlgmr.msra.gmra.mrb[16].mxu1 %vm230_vm1, %v1137_v49  ;;  %2267 = vmatprep.subr.mxu1 %v3149_v3 }
 0x62c   :  { %2268 = vmatpush3.msra.mxu1 %v2233_v45  ;;  %2269 = vmatprep.mubr.msk.f32.mxu1 %vm2482_vm0, %v3149_v3 }
 0x62d   :  { %2277 = vmatprep.subr.mxu1 %v3149_v3 }
 0x62f   :  { %2270 = vmatmul.mubr.msk.f32.vlgmr.msra.gmra.mrb[18].mxu1 %vm230_vm1, %v1137_v49 }
 0x630   :  { %2279 = vmatprep.mubr.msk.f32.mxu1 %vm2482_vm0, %v3149_v3 }
 0x6fe   :  { %v1350_v15 = vpop.f32.mrb[16].mxu1 }
 0x6ff   :  { %v2266_v62 = vpop.f32.mrb[17].mxu1  ;;  %2273 = vmatpush3.msra.mxu0 %v1350_v15  ;;  %v1424_v10 = vmul.f32 %v1350_v15, %v1350_v15 }
 0x700   :  { %2275 = vmatmul.mubr.msk.f32.vlgmr.msra.gmra.mrb[16].mxu0 %vm230_vm1, %v1138_v1  ;;  %2068 = vmatprep.subr.msk.mxu0 %vm554_vm4, %v2780_v12 }
 0x701   :  { %2069 = vmatpush1.msk.msra.mxu0 %vm554_vm4, %v2776_v11  ;;  %1650 = vmatprep.mubr.f32.mxu0 %v3149_v3 }
 0x702   :  { %v1420_v21 = vpop.f32.mrb[18].mxu1 }
 0x703   :  { %v1425_v4 = vsub.f32 %v1420_v21, %v1424_v10  ;;  %v2271_v24 = vpop.f32.mrb[19].mxu1 }
 0x705   :  { %v1426_v59 = vmax.f32 %v1425_v4, 0.0 }
 0x707   :  { %2278 = vmatpush3.msra.mxu1 %v1426_v59  ;;  %v3152_v59 = vmov 2475754826  }
 0x708   :  { %2280 = vmatmul.mubr.msk.f32.vlgmr.msra.gmra.mrb[20].mxu1 %vm230_vm1, %v1138_v1  ;;  %2071 = vmatprep.subr.msk.mxu1 %vm554_vm4, %v2780_v12 }
 0x709   :  { %2072 = vmatpush1.msk.msra.mxu1 %vm554_vm4, %v2776_v11  ;;  %1724 = vmatprep.mubr.f32.mxu1 %v3149_v3  ;;  %v1962_v11 = vld [vmem:[%s3138_s13] sm:$0xff] }
 0x70a   :  { %1965 = vperm.xlu1 %2459, %v1962_v11  }
 0x7d3   :  { %v1496_v5 = vpop.f32.mrb[16].mxu0 }
 0x7d4   :  { %v2276_v9 = vpop.f32.mrb[17].mxu0 }
 0x7db   :  { %v1566_v63 = vpop.f32.mrb[20].mxu1 }
 0x7dc   :  { %v1567_v58 = vadd.f32 1e-05, %v1566_v63  ;;  %v2281_v18 = vpop.f32.mrb[21].mxu1 }
 0x7dd   :  { %v3153_v18 = vmov 2131351028  }
 0x7de   :  { %2471 = vrsqrt.f32 %v1567_v58 }
 0x7e8   :  { %v2472_v7 = vpop.eup %2471 }
 0x7e9   :  { %v1576_v8 = vmul.f32 %v2472_v7, %v1574_v23 }
 0x7eb   :  { %v1577_v14 = vmul.f32 %v1576_v8, %v1496_v5  ;;  %2070 = vmatmul.mubr.msk.f32.vlgmr.msra.gmra.mrb[18].mxu0 %vm550_vm5, %v1576_v8 }
 0x7ec   :  { %2009 = vmatprep.mubr.bf16.mxu0 %v2483_v61 }
 0x7ed   :  { %v1582_v12 = vsub.f32 %v1580_v13, %v1577_v14 }
 0x7ef   :  { %2073 = vmatmul.mubr.msk.f32.vlgmr.msra.gmra.mrb[22].mxu1 %vm550_vm5, %v1582_v12 }
 0x8be   :  { %v1652_v3 = vpop.f32.mrb[18].mxu0 }
 0x8bf   :  { %v1654_v19 = vpop.f32.mrb[19].mxu0  ;;  %v1731_v20 = vmul.f32 %v1652_v3, %v2956_v48 }
 0x8c0   :  { %v1732_v27 = vmul.f32 %v1654_v19, %v2959_v31 }
 0x8c2   :  { %v1726_v28 = vpop.f32.mrb[22].mxu1 }
 0x8c3   :  { %v3012_v35 = vadd.f32 %v1731_v20, %v1726_v28  ;;  %v1728_v40 = vpop.f32.mrb[23].mxu1 }
 0x8c4   :  { %v3014_v61 = vadd.f32 %v1732_v27, %v1728_v40 }
 0x8c5   :  { %v3017_v41 = vmul.f32 %v1737_v34, %v3012_v35 }
 0x8c6   :  { %v3020_v46 = vmul.f32 %v1737_v34, %v3014_v61 }
 0x8c7   :  { %v1744_v47 = vand.u32 2139095040, %v3017_v41  ;;  %v1741_v51 = vand.u32 2147483647, %v3017_v41 }
 0x8c8   :  { %v1848_v55 = vand.u32 2139095040, %v3020_v46  ;;  %v1845_v32 = vand.u32 2147483647, %v3020_v46 }
 0x8c9   :  { %v1745_v57 = vshrl.u32 %v1744_v47, 23  ;;  %v1748_v53 = vand.u32 8388607, %v1741_v51 }
 0x8ca   :  { %v1849_v30 = vshrl.u32 %v1848_v55, 23  ;;  %v3030_v31 = vand.u32 8388607, %v1845_v32 }
 0x8cb   :  { %v2074_v17 = vadd.s32 4294967169, %v1745_v57  ;;  %v1749_v48 = vor.u32 8388608, %v1748_v53 }
 0x8cc   :  { %v2078_v25 = vadd.s32 4294967169, %v1849_v30  ;;  %v1853_v45 = vor.u32 8388608, %v3030_v31 }
 0x8cd   :  { %v1751_v42 = vadd.s32 1, %v2074_v17  ;;  %v3034_v43 = vshll.u32 %v1749_v48, 8 }
 0x8ce   :  { %v1855_v2 = vadd.s32 1, %v2078_v25 }
 0x8cf   :  { %vm1752_vm0 = vcmp.gt.s32.totalorder %v1751_v42, 0 }
 0x8d0   :  { %v1753_v6 = vsel %vm1752_vm0, %v1751_v42, 0  ;;  %vm1856_vm4 = vcmp.gt.s32.totalorder %v1855_v2, 0  ;;  %vm1743_vm0 = vcmp.lt.s32.totalorder %v3017_v41, 0 }
 0x8d1   :  { %v1754_v44 = vshrl.u32 %v1753_v6, 5  ;;  %v1755_v54 = vand.u32 31, %v1753_v6  ;;  %v1857_v36 = vsel %vm1856_vm4, %v1855_v2, 0  ;;  %vm1742_vm4 = vcmp.le.f32.partialorder %v1741_v51, 0.7853982 }
 0x8d2   :  { %v1859_v29 = vand.u32 31, %v1857_v36  ;;  %v3032_v49 = vshrl.u32 %v1857_v36, 5 }
 0x8d3   :  { %v1756_v38 = vsub.s32 32, %v1755_v54  ;;  %v1767_v60 = vshll.u32 %v2490_v33, %v1755_v54  ;;  %v1770_v16 = vshll.u32 %v2491_v37, %v1755_v54  ;;  %vm1776_vm5 = vcmp.lt.s32.totalorder %v1754_v44, 4 }
 0x8d4   :  { %v1860_v52 = vsub.s32 32, %v1859_v29  ;;  %v1871_v1 = vshll.u32 %v2490_v33, %v1859_v29  ;;  %v1874_v10 = vshll.u32 %v2491_v37, %v1859_v29  ;;  %v1758_v24 = vshll.u32 %v2487_v22, %v1755_v54 }
 0x8d5   :  { %v1768_v15 = vshrl.u32 %v2491_v37, %v1756_v38  ;;  %v1771_v62 = vshrl.u32 %v2492_v56, %v1756_v38  ;;  %v1759_v5 = vshrl.u32 %v3152_v59, %v1756_v38  ;;  %v1761_v58 = vshll.u32 %v3152_v59, %v1755_v54 }
 0x8d6   :  { %v1872_v21 = vshrl.u32 %v2491_v37, %v1860_v52  ;;  %v1875_v4 = vshrl.u32 %v2492_v56, %v1860_v52  ;;  %v1762_v23 = vshrl.u32 %v3153_v18, %v1756_v38  ;;  %vm1880_vm12 = vcmp.lt.s32.totalorder %v3032_v49, 4 }
 0x8d7   :  { %v1769_v9 = vor.u32 %v1768_v15, %v1767_v60  ;;  %v1772_v63 = vor.u32 %v1771_v62, %v1770_v16  ;;  %v1760_v7 = vor.u32 %v1759_v5, %v1758_v24  ;;  %v1764_v8 = vshll.u32 %v3153_v18, %v1755_v54 }
 0x8d8   :  { %v1765_v13 = vshrl.u32 %v2490_v33, %v1756_v38  ;;  %v1757_v14 = vshrl.u32 %v2487_v22, %v1756_v38  ;;  %v1763_v12 = vor.u32 %v1762_v23, %v1761_v58  ;;  %v1873_v11 = vor.u32 %v1872_v21, %v1871_v1 }
 0x8d9   :  { %v1782_v37 = vsel %vm1776_vm5, %v1769_v9, 920167782  ;;  %v1786_v56 = vsel %vm1776_vm5, %v1772_v63, 1326507024  ;;  %v1876_v3 = vor.u32 %v1875_v4, %v1874_v10  ;;  %vm1773_vm13 = vcmp.lt.s32.totalorder %v1754_v44, 1 }
 0x8da   :  { %v1766_v19 = vor.u32 %v1765_v13, %v1764_v8  ;;  %vm1774_vm14 = vcmp.lt.s32.totalorder %v1754_v44, 2  ;;  %vm1775_vm15 = vcmp.lt.s32.totalorder %v1754_v44, 3  ;;  %v1777_v20 = vsel %vm1773_vm13, %v1757_v14, %v1760_v7 }
 0x8db   :  { %v1781_v27 = vsel %vm1773_vm13, %v1760_v7, %v1763_v12  ;;  %v1787_v47 = vsel %vm1775_vm15, %v1769_v9, %v1786_v56  ;;  %v1862_v17 = vshll.u32 %v2487_v22, %v1859_v29  ;;  %v1863_v2 = vshrl.u32 %v3152_v59, %v1860_v52 }
 0x8dc   :  { %v1778_v28 = vsel %vm1776_vm5, %v1766_v19, 2102212464  ;;  %v1783_v34 = vsel %vm1775_vm15, %v1766_v19, %v1782_v37  ;;  %v1785_v40 = vsel %vm1773_vm13, %v1763_v12, %v1766_v19  ;;  %v1890_v48 = vsel %vm1880_vm12, %v1876_v3, 1326507024 }
 0x8dd   :  { %v1779_v55 = vsel %vm1775_vm15, %v1763_v12, %v1778_v28  ;;  %v1784_v57 = vsel %vm1774_vm14, %v1781_v27, %v1783_v34  ;;  %v1788_v30 = vsel %vm1774_vm14, %v1785_v40, %v1787_v47  ;;  %v1865_v44 = vshll.u32 %v3152_v59, %v1859_v29 }
 0x8de   :  { %v1780_v53 = vsel %vm1774_vm14, %v1777_v20, %v1779_v55  ;;  %v3058_v25 = vmul.u32.u64.low %v3034_v43, %v1788_v30  ;;  %v3059_v42 = vmul.u32.u64.high %v3034_v43, %v1788_v30, %v3058_v25  ;;  %v1864_v54 = vor.u32 %v1863_v2, %v1862_v17 }
 0x8df   :  { %v3065_v31 = vmul.u32.u64.low %v3034_v43, %v1784_v57  ;;  %v3066_v6 = vmul.u32.u64.high %v3034_v43, %v1784_v57, %v3065_v31  ;;  %v1866_v36 = vshrl.u32 %v3153_v18, %v1860_v52  ;;  %v1868_v38 = vshll.u32 %v3153_v18, %v1859_v29 }
 0x8e0   :  { %v1869_v60 = vshrl.u32 %v2490_v33, %v1860_v52  ;;  %v1886_v16 = vsel %vm1880_vm12, %v1873_v11, 920167782  ;;  %v1796_v15 = vmul.u32 %v3034_v43, %v1780_v53  ;;  %v1861_v62 = vshrl.u32 %v2487_v22, %v1860_v52 }
 0x8e1   :  { %v1893_v1 = vshll.u32 %v1853_v45, 8  ;;  %vm1798_vm3 = vc.u32 %v3059_v42, %v3065_v31  ;;  %v1867_v10 = vor.u32 %v1866_v36, %v1865_v44  ;;  %vm1879_vm6 = vcmp.lt.s32.totalorder %v3032_v49, 3 }
 0x8e2   :  { %v1870_v21 = vor.u32 %v1869_v60, %v1868_v38  ;;  %v1799_v4 = vadd.s32 1, %v3066_v6  ;;  %vm1877_vm7 = vcmp.lt.s32.totalorder %v3032_v49, 1  ;;  %vm1878_vm8 = vcmp.lt.s32.totalorder %v3032_v49, 2 }
 0x8e3   :  { %v1891_v33 = vsel %vm1879_vm6, %v1873_v11, %v1890_v48  ;;  %v1885_v43 = vsel %vm1877_vm7, %v1864_v54, %v1867_v10  ;;  %v1881_v52 = vsel %vm1877_vm7, %v1861_v62, %v1864_v54  ;;  %v1797_v17 = vadd.s32 %v3065_v31, %v3059_v42 }
 0x8e4   :  { %v1882_v29 = vsel %vm1880_vm12, %v1870_v21, 2102212464  ;;  %v1887_v24 = vsel %vm1879_vm6, %v1870_v21, %v1886_v16  ;;  %v1889_v22 = vsel %vm1877_vm7, %v1867_v10, %v1870_v21  ;;  %v1800_v45 = vsel %vm1798_vm3, %v1799_v4, %v3066_v6 }
 0x8e5   :  { %v1888_v59 = vsel %vm1878_vm8, %v1885_v43, %v1887_v24  ;;  %v1892_v5 = vsel %vm1878_vm8, %v1889_v22, %v1891_v33  ;;  %v1801_v9 = vadd.s32 %v1800_v45, %v1796_v15  ;;  %v1883_v63 = vsel %vm1879_vm6, %v1867_v10, %v1882_v29 }
 0x8e6   :  { %v3088_v58 = vmul.u32.u64.low %v1893_v1, %v1892_v5  ;;  %v3089_v18 = vmul.u32.u64.high %v1893_v1, %v1892_v5, %v3088_v58  ;;  %v3091_v23 = vmul.u32.u64.low %v1893_v1, %v1888_v59  ;;  %v3092_v7 = vmul.u32.u64.high %v1893_v1, %v1888_v59, %v3091_v23 }
 0x8e7   :  { %v1802_v8 = vadd.s32 536870912, %v1801_v9  ;;  %v1884_v13 = vsel %vm1878_vm8, %v1881_v52, %v1883_v63  ;;  %vm1847_vm5 = vcmp.lt.s32.totalorder %v3020_v46, 0  ;;  %vm1846_vm12 = vcmp.le.f32.partialorder %v1845_v32, 0.7853982 }
 0x8e8   :  { %vm1902_vm9 = vc.u32 %v3089_v18, %v3091_v23  ;;  %v1903_v56 = vadd.s32 1, %v3092_v7  ;;  %v1900_v12 = vmul.u32 %v1893_v1, %v1884_v13  ;;  %v1901_v10 = vadd.s32 %v3091_v23, %v3089_v18 }
 0x8e9   :  { %v1803_v37 = vshrl.u32 %v1802_v8, 30  ;;  %vm1833_vm3 = vweird.f32 %v3017_v41 }
 0x8ea   :  { %v1904_v11 = vsel %vm1902_vm9, %v1903_v56, %v3092_v7  ;;  %vm1937_vm9 = vweird.f32 %v3020_v46 }
 0x8eb   :  { %v1804_v14 = vshll.u32 %v1803_v37, 30  ;;  %v1905_v19 = vadd.s32 %v1904_v11, %v1900_v12  ;;  %v1827_v31 = vsub.s32 4, %v1803_v37 }
 0x8ed   :  { %v1805_v3 = vsub.s32 %v1801_v9, %v1804_v14  ;;  %v1906_v27 = vadd.s32 536870912, %v1905_v19  ;;  %v1828_v59 = vsel %vm1743_vm0, %v1827_v31, %v1803_v37 }
 0x8ee   :  { %v1830_v63 = vsel %vm1742_vm4, 0, %v1828_v59 }
 0x8ef   :  { %v1807_v20 = vsub.s32 0, %v1805_v3  ;;  %v1907_v34 = vshrl.u32 %v1906_v27, 30  ;;  %v1834_v8 = vadd.s32 3, %v1830_v63 }
 0x8f1   :  { %v2075_v28 = vmin.u32 %v1807_v20, %v1805_v3  ;;  %v1908_v47 = vshll.u32 %v1907_v34, 30  ;;  %v1931_v7 = vsub.s32 4, %v1907_v34  ;;  %v1835_v37 = vand.u32 3, %v1834_v8 }
 0x8f3   :  { %v1809_v40 = vclz %v2075_v28  ;;  %v1909_v49 = vsub.s32 %v1905_v19, %v1908_v47  ;;  %v1932_v56 = vsel %vm1847_vm5, %v1931_v7, %v1907_v34  ;;  %vm1840_vm13 = vcmp.eq.s32.totalorder %v1835_v37, 2  ;;  %v1953_v47 = vpop.permute.xlu0 %1952 }
 0x8f4   :  { %v1934_v11 = vsel %vm1846_vm12, 0, %v1932_v56  ;;  %vm1837_vm14 = vcmp.eq.s32.totalorder %v1835_v37, 0  ;;  %vm1836_vm15 = vcmp.lt.s32.totalorder %v1835_v37, 2 }
 0x8f5   :  { %v2076_v55 = vadd.s32 4294967294, %v1809_v40  ;;  %v1911_v30 = vsub.s32 0, %v1909_v49  ;;  %v1938_v28 = vadd.s32 3, %v1934_v11 }
 0x8f7   :  { %vm2077_vm10 = vcmp.lt.s32.totalorder %v2076_v55, 0  ;;  %v2079_v2 = vmin.u32 %v1911_v30, %v1909_v49 }
 0x8f8   :  { %v1812_v57 = vsel %vm2077_vm10, 0, %v2076_v55  ;;  %v1939_v55 = vand.u32 3, %v1938_v28 }
 0x8f9   :  { %v1813_v53 = vsub.s32 32, %v1812_v57  ;;  %v1817_v25 = vsub.s32 4294967266, %v1812_v57  ;;  %v1814_v48 = vshll.u32 %v1805_v3, %v1812_v57  ;;  %v1913_v54 = vclz %v2079_v2 }
 0x8fa   :  { %vm1944_vm6 = vcmp.eq.s32.totalorder %v1939_v55, 2  ;;  %vm1941_vm7 = vcmp.eq.s32.totalorder %v1939_v55, 0  ;;  %vm1940_vm8 = vcmp.lt.s32.totalorder %v1939_v55, 2 }
 0x8fb   :  { %v1815_v6 = vshrl.u32 %v1797_v17, %v1813_v53  ;;  %v1818_v44 = vadd.s32 127, %v1817_v25  ;;  %v2080_v60 = vadd.s32 4294967294, %v1913_v54 }
 0x8fd   :  { %v1816_v36 = vor.u32 %v1815_v6, %v1814_v48  ;;  %v1819_v38 = vshll.u32 %v1818_v44, 23  ;;  %vm2081_vm11 = vcmp.lt.s32.totalorder %v2080_v60, 0 }
 0x8fe   :  { %v1916_v1 = vsel %vm2081_vm11, 0, %v2080_v60 }
 0x8ff   :  { %v1820_v16 = vor.u32 4788187, %v1819_v38  ;;  %v1823_v62 = vcvt.s32.f32 %v1816_v36  ;;  %v1917_v21 = vsub.s32 32, %v1916_v1  ;;  %v1921_v4 = vsub.s32 4294967266, %v1916_v1 }
 0x900   :  { %v1918_v33 = vshll.u32 %v1909_v49, %v1916_v1 }
 0x901   :  { %v1821_v15 = vand.u32 2147483647, %v1820_v16  ;;  %v1919_v29 = vshrl.u32 %v1901_v10, %v1917_v21  ;;  %v1922_v43 = vadd.s32 127, %v1921_v4 }
 0x903   :  { %v1824_v42 = vmul.f32 %v1823_v62, %v1821_v15  ;;  %v1920_v22 = vor.u32 %v1919_v29, %v1918_v33  ;;  %v1923_v45 = vshll.u32 %v1922_v43, 23  ;;  %v1959_v62 = vld [vmem:[%s3139_s12] sm:$0xf] }
 0x905   :  { %v1825_v24 = vxor.u32 2147483648, %v1824_v42  ;;  %v1924_v9 = vor.u32 4788187, %v1923_v45  ;;  %v1927_v18 = vcvt.s32.f32 %v1920_v22 }
 0x907   :  { %v1826_v52 = vsel %vm1743_vm0, %v1825_v24, %v1824_v42  ;;  %v1925_v58 = vand.u32 2147483647, %v1924_v9 }
 0x908   :  { %v1829_v5 = vsel %vm1742_vm4, %v3017_v41, %v1826_v52 }
 0x909   :  { %2473 = vcosq.f32 %v1829_v5  ;;  %v1928_v23 = vmul.f32 %v1927_v18, %v1925_v58 }
 0x90a   :  { %2475 = vsinq.f32 %v1829_v5 }
 0x90b   :  { %v1929_v13 = vxor.u32 2147483648, %v1928_v23 }
 0x90d   :  { %v1930_v51 = vsel %vm1847_vm5, %v1929_v13, %v1928_v23 }
 0x90e   :  { %v1933_v14 = vsel %vm1846_vm12, %v3020_v46, %v1930_v51  ;;  %v1966_v46 = vpop.permute.xlu1 %1965 }
 0x90f   :  { %2477 = vcosq.f32 %v1933_v14 }
 0x910   :  { %2479 = vsinq.f32 %v1933_v14 }
 0x913   :  { %v2474_v12 = vpop.eup %2473 }
 0x914   :  { %v2476_v3 = vpop.eup %2475  ;;  %v1841_v19 = vxor.u32 2147483648, %v2474_v12 }
 0x915   :  { %v1838_v20 = vxor.u32 2147483648, %v2476_v3 }
 0x916   :  { %v1842_v27 = vsel %vm1840_vm13, %v1841_v19, %v2476_v3 }
 0x917   :  { %v1839_v40 = vsel %vm1837_vm14, %v2474_v12, %v1838_v20 }
 0x918   :  { %v1843_v32 = vsel %vm1836_vm15, %v1839_v40, %v1842_v27 }
 0x919   :  { %v1844_v34 = vsel %vm1833_vm3, nan, %v1843_v32  ;;  %v2478_v57 = vpop.eup %2477 }
 0x91a   :  { %v1949_v49 = vmul.f32 %v1844_v34, %v1844_v34  ;;  %v2480_v30 = vpop.eup %2479  ;;  %v1945_v17 = vxor.u32 2147483648, %v2478_v57 }
 0x91b   :  { %v1942_v25 = vxor.u32 2147483648, %v2480_v30 }
 0x91c   :  { %v1955_v53 = vmul.f32 %v1953_v47, %v1949_v49  ;;  %v1946_v2 = vsel %vm1944_vm6, %v1945_v17, %v2480_v30 }
 0x91d   :  { %v1943_v48 = vsel %vm1941_vm7, %v2478_v57, %v1942_v25 }
 0x91e   :  { %v1947_v6 = vsel %vm1940_vm8, %v1943_v48, %v1946_v2  ;;  %v1957_v41 = vadd.f32 %v1955_v53, %v3012_v35 }
 0x91f   :  { %v1948_v44 = vsel %vm1937_vm9, nan, %v1947_v6 }
 0x920   :  { %v1950_v54 = vmul.f32 %v1948_v44, %v1948_v44  ;;  %v1960_v38 = vpack.c.bf16 %v1957_v41, %v1957_v41 }
 0x922   :  { %v1956_v36 = vmul.f32 %v1953_v47, %v1950_v54  ;;  %v1972_v15 = vsel %vm381_vm2, %v1960_v38, 0 }
 0x924   :  { %v1958_v60 = vadd.f32 %v1956_v36, %v3014_v61 }
 0x926   :  { %v1961_v16 = vpack.c.bf16 %v1958_v60, %v1958_v60 }
 0x928   :  { %2082 = vmatprep.subr.msk.bf16.mxu0 %vm381_vm2, %v1961_v16 }
 0x929   :  { %1978 = vmatpush1.bf16.msra.mxu0 %v1972_v15 }
 0x92c   :  { %2083 = vmatmul.mubr.msk.bf16.vlgmr.msra.gmra.mrb[20].mxu0 %vm230_vm1, %v1959_v62 }
 0x9ff   :  { %v2011_v35 = vpop.f32.mrb[20].mxu0 }
 0xa00   :  { %v2013_v1 = vpop.f32.mrb[21].mxu0  ;;  %v2012_v10 = vadd.f32 %v2011_v35, %v1966_v46 }
 0xa01   :  { %v2015_v21 = vpop.f32.mrb[22].mxu0  ;;  %v2014_v4 = vadd.f32 %v2013_v1, %v1966_v46 }
 0xa02   :  { %v2018_v61 = vadd.f32 %v2012_v10, %v2730_v50  ;;  %v2016_v42 = vpop.f32.mrb[23].mxu0 }
 0xa03   :  { %v2019_v31 = vadd.f32 %v2014_v4, %v2651_v26 }
 0xa04   :  { %v2020_v33 = vmul.f32 %v2018_v61, %v2951_v0 }
 0xa05   :  { %v2021_v29 = vmul.f32 %v2019_v31, %v2953_v39 }
 0xa07   :  { %v2085_v43 = vpack.c.bf16 %v2021_v29, %v2020_v33 }
 0xa09   :  { %2030 = vst [vmem:[%s3140_s14] sm:$0xff] %v2085_v43 }

// kernel: autoencoder_forward.15
= control target key start
LH: loop header
LB: loop body
LE: loop exit
PB: predicated region body
PF: predicated region fallthrough
CT: control target
= control target key end

     0   :  { %v3143_v53 = vmov 0.0   ;;  %vm2482_vm0 = vmmov 0   ;;  %vm230_vm1 = vcmask 64512   ;;  %v2483_v61 = vmov 0   ;;  %s3126_s2 = inlined_call_operand.vmem [shape: f32[256,2], index: 2, kind: input, shape index: {}]   ;;  %s3127_s0 = inlined_call_operand.vmem [shape: bf16[8,256], index: 0, kind: input, shape index: {}]   ;;  %s3128_s5 = inlined_call_operand.vmem [shape: f32[4,8], index: 5, kind: input, shape index: {}]   ;;  %s3129_s4 = inlined_call_operand.vmem [shape: f32[8,4], index: 4, kind: input, shape index: {}, may-alias: {4,9}]   ;;  %s3130_s6 = inlined_call_operand.vmem [shape: f32[8,4], index: 6, kind: input, shape index: {}]   ;;  %s3131_s3 = inlined_call_operand.vmem [shape: f32[2,256], index: 3, kind: input, shape index: {}]   ;;  %s3132_s8 = inlined_call_operand.vmem [shape: f32[8,1], index: 8, kind: input, shape index: {}]   ;;  %s3133_s7 = inlined_call_operand.vmem [shape: bf16[3,8,8], index: 7, kind: input, shape index: {}]   ;;  %s3134_s1 = inlined_call_operand.vmem [shape: f32[1,256], index: 1, kind: input, shape index: {}]   ;;  %s3135_s10 = inlined_call_operand.vmem [shape: f32[8,8], index: 10, kind: input, shape index: {}]   ;;  %s3136_s9 = inlined_call_operand.vmem [shape: f32[8,4], index: 9, kind: input, shape index: {}, may-alias: {4,9}]   ;;  %s3137_s11 = inlined_call_operand.vmem [shape: f32[8,8], index: 11, kind: input, shape index: {}]   ;;  %s3138_s13 = inlined_call_operand.vmem [shape: f32[8,1], index: 13, kind: input, shape index: {}]   ;;  %s3139_s12 = inlined_call_operand.vmem [shape: bf16[1,8,8], index: 12, kind: input, shape index: {}]   ;;  %s3140_s14 = inlined_call_operand.vmem [shape: bf16[8,256], index: 14, kind: output, shape index: {}]  }
   0x1   :  { %v68_v0 = vld [vmem:[%s3126_s2 + $0x80] sm:$0xff]  ;;  %v69_v1 = vld [vmem:[%s3126_s2 + $0x88] sm:$0xff]  ;;  %v70_v5 = vld [vmem:[%s3126_s2 + $0x90] sm:$0xff]  ;;  %2440 = vset.pattern.permute.xlu0 %v2483_v61  ;;  %v2484_v63 = vmov 1   ;;  %vm381_vm2 = vcmask 1043456   ;;  %vm377_vm3 = vcmask 31744  }
   0x2   :  { %v52_v2 = vld [vmem:[%s3126_s2] sm:$0xff]  ;;  %v2579_v3 = vpack.c.bf16 %v69_v1, %v68_v0  ;;  %v53_v4 = vld [vmem:[%s3126_s2 + $0x8] sm:$0xff]  ;;  %v71_v6 = vld [vmem:[%s3126_s2 + $0x98] sm:$0xff]  ;;  %vm554_vm4 = vcmask 1041408   ;;  %vm550_vm5 = vcmask 15360  }
   0x3   :  { %v2590_v7 = vpack.c.bf16 %v53_v4, %v52_v2  ;;  %v2592_v8 = vpack.c.bf16 %v71_v6, %v70_v5  ;;  %v54_v9 = vld [vmem:[%s3126_s2 + $0x10] sm:$0xff]  ;;  %v55_v10 = vld [vmem:[%s3126_s2 + $0x18] sm:$0xff]  ;;  %v72_v11 = vld [vmem:[%s3126_s2 + $0xa0] sm:$0xff] }
   0x4   :  { %2283 = vmatprep.subr.bf16.mxu0 %v2579_v3  ;;  %2315 = vmatprep.subr.bf16.mxu1 %v2579_v3  ;;  %v73_v12 = vld [vmem:[%s3126_s2 + $0xa8] sm:$0xff]  ;;  %v2610_v13 = vpack.c.bf16 %v55_v10, %v54_v9  ;;  %v56_v15 = vld [vmem:[%s3126_s2 + $0x20] sm:$0xff]  ;;  %v74_v17 = vld [vmem:[%s3126_s2 + $0xb0] sm:$0xff] }
   0x5   :  { %2285 = vmatpush3.bf16.msra.mxu0 %v2590_v7  ;;  %2317 = vmatpush3.bf16.msra.mxu1 %v2590_v7  ;;  %v2614_v14 = vpack.c.bf16 %v73_v12, %v72_v11  ;;  %v57_v16 = vld [vmem:[%s3126_s2 + $0x28] sm:$0xff]  ;;  %v75_v18 = vld [vmem:[%s3126_s2 + $0xb8] sm:$0xff]  ;;  %v58_v21 = vld [vmem:[%s3126_s2 + $0x30] sm:$0xff] }
   0x6   :  { %2287 = vmatprep.subr.bf16.mxu0 %v2592_v8  ;;  %2319 = vmatprep.subr.bf16.mxu1 %v2592_v8  ;;  %v2630_v19 = vpack.c.bf16 %v57_v16, %v56_v15  ;;  %v2634_v20 = vpack.c.bf16 %v75_v18, %v74_v17  ;;  %v59_v22 = vld [vmem:[%s3126_s2 + $0x38] sm:$0xff]  ;;  %v76_v23 = vld [vmem:[%s3126_s2 + $0xc0] sm:$0xff]  ;;  %v77_v24 = vld [vmem:[%s3126_s2 + $0xc8] sm:$0xff]  ;;  %v3142_v15 = vmov 2   ;;  %v3141_v16 = vmov 3  }
   0x7   :  { %v48_v25 = vld [vmem:[%s3127_s0] sm:$0xff]  ;;  %v2655_v27 = vpack.c.bf16 %v59_v22, %v58_v21  ;;  %v2659_v28 = vpack.c.bf16 %v77_v24, %v76_v23  ;;  %v61_v30 = vld [vmem:[%s3126_s2 + $0x48] sm:$0xff]  ;;  %v78_v32 = vld [vmem:[%s3126_s2 + $0xd0] sm:$0xff]  ;;  %2442 = vset.pattern.permute.xlu1 %v3142_v15 }
   0x8   :  { %v2651_v26 = vunpack.c.h.bf16 %v48_v25  ;;  %v60_v29 = vld [vmem:[%s3126_s2 + $0x40] sm:$0xff]  ;;  %v79_v33 = vld [vmem:[%s3126_s2 + $0xd8] sm:$0xff]  ;;  %v62_v36 = vld [vmem:[%s3126_s2 + $0x50] sm:$0xff]  ;;  %v2730_v50 = vunpack.c.l.bf16 %v48_v25 }
   0x9   :  { %2289 = vmatpush3.bf16.msra.mxu0 %v2610_v13  ;;  %2321 = vmatpush3.bf16.msra.mxu1 %v2610_v13  ;;  %v2678_v34 = vpack.c.bf16 %v61_v30, %v60_v29  ;;  %v2682_v35 = vpack.c.bf16 %v79_v33, %v78_v32  ;;  %v63_v37 = vld [vmem:[%s3126_s2 + $0x58] sm:$0xff]  ;;  %v80_v38 = vld [vmem:[%s3126_s2 + $0xe0] sm:$0xff]  ;;  %v81_v39 = vld [vmem:[%s3126_s2 + $0xe8] sm:$0xff] }
   0xa   :  { %2291 = vmatprep.subr.bf16.mxu0 %v2614_v14  ;;  %2323 = vmatprep.subr.bf16.mxu1 %v2614_v14  ;;  %v159_v31 = vmul.f32 %v2651_v26, %v2651_v26  ;;  %v2698_v40 = vpack.c.bf16 %v63_v37, %v62_v36  ;;  %v2702_v41 = vpack.c.bf16 %v81_v39, %v80_v38  ;;  %v64_v42 = vld [vmem:[%s3126_s2 + $0x60] sm:$0xff]  ;;  %v65_v43 = vld [vmem:[%s3126_s2 + $0x68] sm:$0xff]  ;;  %v82_v44 = vld [vmem:[%s3126_s2 + $0xf0] sm:$0xff] }
   0xb   :  { %152 = vmatprep.mubr.f32.mxu0 %v2651_v26  ;;  %v83_v45 = vld [vmem:[%s3126_s2 + $0xf8] sm:$0xff]  ;;  %v2718_v46 = vpack.c.bf16 %v65_v43, %v64_v42  ;;  %v66_v48 = vld [vmem:[%s3126_s2 + $0x70] sm:$0xff]  ;;  %v158_v52 = vmul.f32 %v2730_v50, %v2730_v50  ;;  %v86_v60 = vld [vmem:[%s3128_s5] sm:$0xf] }
   0xc   :  { %224 = vmatprep.mubr.f32.mxu1 %v159_v31  ;;  %v2722_v47 = vpack.c.bf16 %v83_v45, %v82_v44  ;;  %v67_v49 = vld [vmem:[%s3126_s2 + $0x78] sm:$0xff]  ;;  %v85_v62 = vld [vmem:[%s3129_s4] sm:$0xff] }
   0xd   :  { %2293 = vmatpush3.bf16.msra.mxu0 %v2630_v19  ;;  %2325 = vmatpush3.bf16.msra.mxu1 %v2630_v19  ;;  %v2734_v51 = vpack.c.bf16 %v67_v49, %v66_v48  ;;  %v87_v2 = vld [vmem:[%s3130_s6] sm:$0xff]  ;;  %s2494_s6 = smov 3  }
   0xe   :  { %2295 = vmatprep.subr.bf16.mxu0 %v2634_v20  ;;  %2327 = vmatprep.subr.bf16.mxu1 %v2634_v20  ;;  %v2776_v11 = vld.sshfl [vmem:[%s3131_s3] sm:$0x33 pattern:$0x76325410]  ;;  %s2493_s3 = smov 125  }
   0xf   :  { %531 = vperm.xlu0 %2440, %v85_v62   ;;  %v2780_v12 = vcombine.high %v2776_v11, %v2776_v11  ;;  %709 = vperm.xlu1 %2442, %v85_v62  }
  0x11   :  { %2297 = vmatpush3.bf16.msra.mxu0 %v2655_v27  ;;  %2329 = vmatpush3.bf16.msra.mxu1 %v2655_v27 }
  0x12   :  { %2299 = vmatprep.subr.bf16.mxu0 %v2659_v28  ;;  %2331 = vmatprep.subr.bf16.mxu1 %v2659_v28 }
  0x13   :  { %2441 = vset.pattern.permute.xlu0 %v2484_v63  ;;  %2443 = vset.pattern.permute.xlu1 %v3141_v16 }
  0x14   :  { %537 = vperm.xlu0 %2441, %v85_v62   ;;  %925 = vperm.xlu1 %2443, %v85_v62  }
  0x15   :  { %2301 = vmatpush3.bf16.msra.mxu0 %v2678_v34  ;;  %2333 = vmatpush3.bf16.msra.mxu1 %v2678_v34 }
  0x16   :  { %2303 = vmatprep.subr.bf16.mxu0 %v2682_v35  ;;  %2335 = vmatprep.subr.bf16.mxu1 %v2682_v35 }
  0x18   :  { %2455 = vset.pattern.permute.xlu0 %v2483_v61  ;;  %2454 = vset.pattern.permute.xlu1 %v2483_v61 }
  0x19   :  { %2305 = vmatpush3.bf16.msra.mxu0 %v2698_v40  ;;  %2337 = vmatpush3.bf16.msra.mxu1 %v2698_v40 }
  0x1a   :  { %2307 = vmatprep.subr.bf16.mxu0 %v2702_v41  ;;  %2339 = vmatprep.subr.bf16.mxu1 %v2702_v41 }
  0x1d   :  { %2309 = vmatpush3.bf16.msra.mxu0 %v2718_v46  ;;  %2341 = vmatpush3.bf16.msra.mxu1 %v2718_v46 }
  0x1e   :  { %2311 = vmatprep.subr.bf16.mxu0 %v2722_v47  ;;  %2343 = vmatprep.subr.bf16.mxu1 %v2722_v47 }
  0x21   :  { %2313 = vmatpush3.bf16.msra.mxu0 %v2734_v51  ;;  %2345 = vmatpush3.bf16.msra.mxu1 %v2734_v51 }
  0x22   :  { %2242 = vmatprep.subr.mxu1 %v3143_v53  ;;  %2252 = vmatprep.subr.mxu0 %v3143_v53 }
  0x24   :  { %153 = vmatmul.mubr.f32.vlgmr.msra.gmra.mrb[0].mxu0 %v2730_v50  ;;  %225 = vmatmul.mubr.f32.vlgmr.msra.gmra.mrb[0].mxu1 %v158_v52 }
  0x25   :  { %2244 = vmatprep.mubr.msk.f32.mxu1 %vm2482_vm0, %v3143_v53  ;;  %2254 = vmatprep.mubr.msk.f32.mxu0 %vm2482_vm0, %v3143_v53 }
  0x8e   :  { %v532_v24 = vpop.permute.xlu0 %531  ;;  %v710_v42 = vpop.permute.xlu1 %709 }
  0x93   :  { %v538_v30 = vpop.permute.xlu0 %537 }
  0xf7   :  { %v2118_v54 = vpop.f32.mrb[0].mxu0  ;;  %v2153_v55 = vpop.f32.mrb[0].mxu1 }
  0xf8   :  { %v2119_v56 = vpop.f32.mrb[1].mxu0  ;;  %v2154_v57 = vpop.f32.mrb[1].mxu1 }
  0xf9   :  { %v2120_v58 = vadd.f32 %v2119_v56, %v2118_v54  ;;  %v2155_v59 = vadd.f32 %v2154_v57, %v2153_v55 }
  0xfb   :  { %2243 = vmatpush3.msra.mxu1 %v2120_v58 }
  0xfc   :  { %2245 = vmatmul.mubr.msk.f32.vlgmr.msra.gmra.mrb[2].mxu1 %vm230_vm1, %v86_v60  ;;  %2247 = vmatprep.subr.mxu1 %v3143_v53 }
  0xfd   :  { %2248 = vmatpush3.msra.mxu1 %v2155_v59  ;;  %2249 = vmatprep.mubr.msk.f32.mxu1 %vm2482_vm0, %v3143_v53 }
  0xfe   :  { %2257 = vmatprep.subr.mxu1 %v3143_v53 }
 0x100   :  { %2250 = vmatmul.mubr.msk.f32.vlgmr.msra.gmra.mrb[4].mxu1 %vm230_vm1, %v86_v60 }
 0x101   :  { %2259 = vmatprep.mubr.msk.f32.mxu1 %vm2482_vm0, %v3143_v53 }
 0x1cf   :  { %v300_v0 = vpop.f32.mrb[2].mxu1 }
 0x1d0   :  { %v2246_v1 = vpop.f32.mrb[3].mxu1  ;;  %2253 = vmatpush3.msk.msra.mxu0 %vm381_vm2, %v300_v0  ;;  %v374_v4 = vmul.f32 %v300_v0, %v300_v0 }
 0x1d1   :  { %2255 = vmatmul.mubr.msk.f32.vlgmr.msra.gmra.mrb[2].mxu0 %vm377_vm3, %v87_v2  ;;  %2042 = vmatprep.subr.msk.mxu0 %vm554_vm4, %v2780_v12 }
 0x1d2   :  { %623 = vmatprep.mubr.f32.mxu0 %v3143_v53  ;;  %2043 = vmatpush1.msk.msra.mxu0 %vm554_vm4, %v2776_v11 }
 0x1d3   :  { %v370_v5 = vpop.f32.mrb[4].mxu1 }
 0x1d4   :  { %v375_v6 = vsub.f32 %v370_v5, %v374_v4  ;;  %v2251_v9 = vpop.f32.mrb[5].mxu1 }
 0x1d6   :  { %v376_v10 = vmax.f32 %v375_v6, 0.0 }
 0x1d8   :  { %2258 = vmatpush3.msk.msra.mxu1 %vm381_vm2, %v376_v10 }
 0x1d9   :  { %2260 = vmatmul.mubr.msk.f32.vlgmr.msra.gmra.mrb[6].mxu1 %vm377_vm3, %v87_v2  ;;  %2045 = vmatprep.subr.msk.mxu1 %vm554_vm4, %v2780_v12 }
 0x1da   :  { %697 = vmatprep.mubr.f32.mxu1 %v3143_v53  ;;  %2046 = vmatpush1.msk.msra.mxu1 %vm554_vm4, %v2776_v11 }
 0x2a4   :  { %v451_v17 = vpop.f32.mrb[2].mxu0 }
 0x2a5   :  { %v2256_v18 = vpop.f32.mrb[3].mxu0 }
 0x2ac   :  { %v524_v21 = vpop.f32.mrb[6].mxu1 }
 0x2ad   :  { %v525_v22 = vadd.f32 1e-05, %v524_v21  ;;  %v2261_v23 = vpop.f32.mrb[7].mxu1 }
 0x2af   :  { %2461 = vrsqrt.f32 %v525_v22  ;;  %v2487_v22 = vmov 683565275  }
 0x2b9   :  { %v2462_v25 = vpop.eup %2461 }
 0x2ba   :  { %v534_v29 = vmul.f32 %v2462_v25, %v532_v24 }
 0x2bc   :  { %v535_v31 = vmul.f32 %v534_v29, %v451_v17  ;;  %2044 = vmatmul.mubr.msk.f32.vlgmr.msra.gmra.mrb[4].mxu0 %vm550_vm5, %v534_v29  ;;  %v3147_v29 = vmov 2475754826  }
 0x2bd   :  { %991 = vmatprep.mubr.bf16.mxu0 %v2483_v61 }
 0x2be   :  { %v540_v32 = vsub.f32 %v538_v30, %v535_v31  ;;  %v3145_v31 = vmov 2131351028  }
 0x2c0   :  { %2047 = vmatmul.mubr.msk.f32.vlgmr.msra.gmra.mrb[8].mxu1 %vm550_vm5, %v540_v32 }
 0x2c1   :  { %1041 = vmatprep.mubr.bf16.mxu1 %v2483_v61 }
 0x38f   :  { %v625_v33 = vpop.f32.mrb[4].mxu0 }
 0x390   :  { %v627_v36 = vpop.f32.mrb[5].mxu0  ;;  %v704_v37 = vmul.f32 %v625_v33, %v2730_v50  ;;  %v2490_v33 = vmov 2102212464  }
 0x391   :  { %v705_v38 = vmul.f32 %v627_v36, %v2651_v26 }
 0x393   :  { %v699_v39 = vpop.f32.mrb[8].mxu1 }
 0x394   :  { %v2799_v43 = vadd.f32 %v704_v37, %v699_v39  ;;  %v701_v44 = vpop.f32.mrb[9].mxu1  ;;  %v2491_v37 = vmov 920167782  }
 0x395   :  { %v2801_v45 = vadd.f32 %v705_v38, %v701_v44 }
 0x396   :  { %v2804_v48 = vmul.f32 %v710_v42, %v2799_v43 }
 0x397   :  { %v2807_v49 = vmul.f32 %v710_v42, %v2801_v45 }
 0x398   :  { %v714_v52 = vand.u32 2147483647, %v2804_v48  ;;  %v717_v54 = vand.u32 2139095040, %v2804_v48 }
 0x399   :  { %v821_v55 = vand.u32 2139095040, %v2807_v49  ;;  %v818_v58 = vand.u32 2147483647, %v2807_v49 }
 0x39a   :  { %v718_v56 = vshrl.u32 %v717_v54, 23  ;;  %v721_v57 = vand.u32 8388607, %v714_v52 }
 0x39b   :  { %v822_v59 = vshrl.u32 %v821_v55, 23  ;;  %v2817_v2 = vand.u32 8388607, %v818_v58 }
 0x39c   :  { %v2048_v60 = vadd.s32 4294967169, %v718_v56  ;;  %v722_v1 = vor.u32 8388608, %v721_v57  ;;  %v2492_v56 = vmov 1326507024  }
 0x39d   :  { %v2052_v62 = vadd.s32 4294967169, %v822_v59  ;;  %v826_v18 = vor.u32 8388608, %v2817_v2 }
 0x39e   :  { %v724_v0 = vadd.s32 1, %v2048_v60  ;;  %v2819_v17 = vshll.u32 %v722_v1, 8 }
 0x39f   :  { %v828_v4 = vadd.s32 1, %v2052_v62 }
 0x3a0   :  { %vm725_vm6 = vcmp.gt.s32.totalorder %v724_v0, 0 }
 0x3a1   :  { %v726_v5 = vsel %vm725_vm6, %v724_v0, 0  ;;  %vm829_vm7 = vcmp.gt.s32.totalorder %v828_v4, 0 }
 0x3a2   :  { %v727_v6 = vshrl.u32 %v726_v5, 5  ;;  %v728_v9 = vand.u32 31, %v726_v5  ;;  %v830_v10 = vsel %vm829_vm7, %v828_v4, 0 }
 0x3a3   :  { %v2823_v24 = vshrl.u32 %v830_v10, 5  ;;  %v832_v25 = vand.u32 31, %v830_v10 }
 0x3a4   :  { %v729_v21 = vsub.s32 32, %v728_v9  ;;  %v731_v23 = vshll.u32 %v2487_v22, %v728_v9  ;;  %v734_v30 = vshll.u32 %v3147_v29, %v728_v9  ;;  %v737_v32 = vshll.u32 %v3145_v31, %v728_v9 }
 0x3a5   :  { %v740_v36 = vshll.u32 %v2490_v33, %v728_v9  ;;  %v743_v38 = vshll.u32 %v2491_v37, %v728_v9  ;;  %vm746_vm8 = vcmp.lt.s32.totalorder %v727_v6, 1  ;;  %vm747_vm9 = vcmp.lt.s32.totalorder %v727_v6, 2 }
 0x3a6   :  { %v732_v39 = vshrl.u32 %v3147_v29, %v729_v21  ;;  %v735_v42 = vshrl.u32 %v3145_v31, %v729_v21  ;;  %v738_v44 = vshrl.u32 %v2490_v33, %v729_v21  ;;  %v730_v54 = vshrl.u32 %v2487_v22, %v729_v21 }
 0x3a7   :  { %v741_v55 = vshrl.u32 %v2491_v37, %v729_v21  ;;  %v744_v57 = vshrl.u32 %v2492_v56, %v729_v21  ;;  %v833_v0 = vsub.s32 32, %v832_v25  ;;  %vm748_vm10 = vcmp.lt.s32.totalorder %v727_v6, 3 }
 0x3a8   :  { %v733_v59 = vor.u32 %v732_v39, %v731_v23  ;;  %v736_v60 = vor.u32 %v735_v42, %v734_v30  ;;  %v739_v62 = vor.u32 %v738_v44, %v737_v32  ;;  %vm749_vm11 = vcmp.lt.s32.totalorder %v727_v6, 4 }
 0x3a9   :  { %v742_v1 = vor.u32 %v741_v55, %v740_v36  ;;  %v745_v2 = vor.u32 %v744_v57, %v743_v38  ;;  %v835_v21 = vshll.u32 %v2487_v22, %v832_v25  ;;  %v836_v32 = vshrl.u32 %v3147_v29, %v833_v0 }
 0x3aa   :  { %v750_v4 = vsel %vm746_vm8, %v730_v54, %v733_v59  ;;  %v751_v5 = vsel %vm749_vm11, %v739_v62, 2102212464  ;;  %v754_v9 = vsel %vm746_vm8, %v733_v59, %v736_v60  ;;  %v758_v10 = vsel %vm746_vm8, %v736_v60, %v739_v62 }
 0x3ab   :  { %v752_v16 = vsel %vm748_vm10, %v736_v60, %v751_v5  ;;  %v755_v15 = vsel %vm749_vm11, %v742_v1, 920167782  ;;  %v759_v53 = vsel %vm749_vm11, %v745_v2, 1326507024  ;;  %v838_v36 = vshll.u32 %v3147_v29, %v832_v25 }
 0x3ac   :  { %v756_v23 = vsel %vm748_vm10, %v739_v62, %v755_v15  ;;  %v760_v30 = vsel %vm748_vm10, %v742_v1, %v759_v53  ;;  %v753_v38 = vsel %vm747_vm9, %v750_v4, %v752_v16  ;;  %v839_v44 = vshrl.u32 %v3145_v31, %v833_v0 }
 0x3ad   :  { %v757_v39 = vsel %vm747_vm9, %v754_v9, %v756_v23  ;;  %v761_v42 = vsel %vm747_vm9, %v758_v10, %v760_v30  ;;  %v837_v53 = vor.u32 %v836_v32, %v835_v21  ;;  %v841_v60 = vshll.u32 %v3145_v31, %v832_v25 }
 0x3ae   :  { %v2846_v54 = vmul.u32.u64.low %v2819_v17, %v761_v42  ;;  %v2847_v55 = vmul.u32.u64.high %v2819_v17, %v761_v42, %v2846_v54  ;;  %v2850_v57 = vmul.u32.u64.low %v2819_v17, %v757_v39  ;;  %v2851_v15 = vmul.u32.u64.high %v2819_v17, %v757_v39, %v2850_v57 }
 0x3af   :  { %v840_v59 = vor.u32 %v839_v44, %v838_v36  ;;  %v842_v16 = vshrl.u32 %v2490_v33, %v833_v0  ;;  %v844_v62 = vshll.u32 %v2490_v33, %v832_v25  ;;  %v845_v6 = vshrl.u32 %v2491_v37, %v833_v0 }
 0x3b0   :  { %v848_v1 = vshrl.u32 %v2492_v56, %v833_v0  ;;  %v866_v2 = vshll.u32 %v826_v18, 8  ;;  %v769_v4 = vmul.u32 %v2819_v17, %v753_v38  ;;  %v834_v5 = vshrl.u32 %v2487_v22, %v833_v0 }
 0x3b1   :  { %v843_v9 = vor.u32 %v842_v16, %v841_v60  ;;  %v847_v10 = vshll.u32 %v2491_v37, %v832_v25  ;;  %vm771_vm12 = vc.u32 %v2847_v55, %v2850_v57  ;;  %v772_v21 = vadd.s32 1, %v2851_v15 }
 0x3b2   :  { %v846_v23 = vor.u32 %v845_v6, %v844_v62  ;;  %vm850_vm13 = vcmp.lt.s32.totalorder %v2823_v24, 1  ;;  %vm852_vm14 = vcmp.lt.s32.totalorder %v2823_v24, 3  ;;  %vm853_vm15 = vcmp.lt.s32.totalorder %v2823_v24, 4 }
 0x3b3   :  { %v849_v30 = vor.u32 %v848_v1, %v847_v10  ;;  %v858_v18 = vsel %vm850_vm13, %v837_v53, %v840_v59  ;;  %v773_v17 = vsel %vm771_vm12, %v772_v21, %v2851_v15  ;;  %v855_v32 = vsel %vm853_vm15, %v843_v9, 2102212464 }
 0x3b4   :  { %v859_v0 = vsel %vm853_vm15, %v846_v23, 920167782  ;;  %v862_v36 = vsel %vm850_vm13, %v840_v59, %v843_v9  ;;  %v774_v38 = vadd.s32 %v773_v17, %v769_v4  ;;  %vm851_vm3 = vcmp.lt.s32.totalorder %v2823_v24, 2 }
 0x3b5   :  { %v860_v25 = vsel %vm852_vm14, %v843_v9, %v859_v0  ;;  %v863_v39 = vsel %vm853_vm15, %v849_v30, 1326507024  ;;  %v854_v42 = vsel %vm850_vm13, %v834_v5, %v837_v53  ;;  %v856_v44 = vsel %vm852_vm14, %v840_v59, %v855_v32 }
 0x3b6   :  { %v861_v54 = vsel %vm851_vm3, %v858_v18, %v860_v25  ;;  %v864_v60 = vsel %vm852_vm14, %v846_v23, %v863_v39  ;;  %v775_v16 = vadd.s32 536870912, %v774_v38  ;;  %v857_v21 = vsel %vm851_vm3, %v854_v42, %v856_v44 }
 0x3b7   :  { %v865_v62 = vsel %vm851_vm3, %v862_v36, %v864_v60  ;;  %v2868_v6 = vmul.u32.u64.low %v866_v2, %v861_v54  ;;  %v2869_v1 = vmul.u32.u64.high %v866_v2, %v861_v54, %v2868_v6  ;;  %v873_v24 = vmul.u32 %v866_v2, %v857_v21 }
 0x3b8   :  { %v2871_v10 = vmul.u32.u64.low %v866_v2, %v865_v62  ;;  %v2872_v31 = vmul.u32.u64.high %v866_v2, %v865_v62, %v2871_v10  ;;  %v776_v15 = vshrl.u32 %v775_v16, 30  ;;  %v770_v42 = vadd.s32 %v2850_v57, %v2847_v55 }
 0x3b9   :  { %v876_v4 = vadd.s32 1, %v2869_v1  ;;  %vm716_vm9 = vcmp.lt.s32.totalorder %v2804_v48, 0  ;;  %vm715_vm10 = vcmp.le.f32.partialorder %v714_v52, 0.7853982  ;;  %vm820_vm11 = vcmp.lt.s32.totalorder %v2807_v49, 0 }
 0x3ba   :  { %v777_v29 = vshll.u32 %v776_v15, 30  ;;  %vm875_vm6 = vc.u32 %v2872_v31, %v2868_v6  ;;  %v800_v57 = vsub.s32 4, %v776_v15  ;;  %vm819_vm12 = vcmp.le.f32.partialorder %v818_v58, 0.7853982 }
 0x3bb   :  { %v877_v59 = vsel %vm875_vm6, %v876_v4, %v2869_v1  ;;  %vm806_vm3 = vweird.f32 %v2804_v48 }
 0x3bc   :  { %v778_v53 = vsub.s32 %v774_v38, %v777_v29  ;;  %v878_v5 = vadd.s32 %v877_v59, %v873_v24 }
 0x3be   :  { %v780_v9 = vsub.s32 0, %v778_v53  ;;  %v879_v23 = vadd.s32 536870912, %v878_v5 }
 0x3c0   :  { %v2049_v30 = vmin.u32 %v780_v9, %v778_v53  ;;  %v880_v18 = vshrl.u32 %v879_v23, 30 }
 0x3c2   :  { %v782_v17 = vclz %v2049_v30  ;;  %v881_v32 = vshll.u32 %v880_v18, 30 }
 0x3c4   :  { %v2050_v0 = vadd.s32 4294967294, %v782_v17  ;;  %v882_v36 = vsub.s32 %v878_v5, %v881_v32  ;;  %v874_v5 = vadd.s32 %v2868_v6, %v2872_v31 }
 0x3c6   :  { %vm2051_vm7 = vcmp.lt.s32.totalorder %v2050_v0, 0  ;;  %v884_v39 = vsub.s32 0, %v882_v36 }
 0x3c7   :  { %v785_v25 = vsel %vm2051_vm7, 0, %v2050_v0 }
 0x3c8   :  { %v786_v2 = vsub.s32 32, %v785_v25  ;;  %v790_v44 = vsub.s32 4294967266, %v785_v25  ;;  %v2053_v54 = vmin.u32 %v884_v39, %v882_v36  ;;  %v787_v29 = vshll.u32 %v778_v53, %v785_v25 }
 0x3ca   :  { %v788_v38 = vshrl.u32 %v770_v42, %v786_v2  ;;  %v791_v60 = vadd.s32 127, %v790_v44  ;;  %v886_v16 = vclz %v2053_v54  ;;  %v801_v42 = vsel %vm716_vm9, %v800_v57, %v776_v15  ;;  %v926_v57 = vpop.permute.xlu1 %925 }
 0x3cb   :  { %v803_v54 = vsel %vm715_vm10, 0, %v801_v42 }
 0x3cc   :  { %v789_v62 = vor.u32 %v788_v38, %v787_v29  ;;  %v792_v1 = vshll.u32 %v791_v60, 23  ;;  %v2054_v10 = vadd.s32 4294967294, %v886_v16  ;;  %v904_v29 = vsub.s32 4, %v880_v18 }
 0x3cd   :  { %v807_v38 = vadd.s32 3, %v803_v54 }
 0x3ce   :  { %v793_v21 = vor.u32 4788187, %v792_v1  ;;  %vm2055_vm8 = vcmp.lt.s32.totalorder %v2054_v10, 0  ;;  %v796_v24 = vcvt.s32.f32 %v789_v62  ;;  %v905_v52 = vsel %vm820_vm11, %v904_v29, %v880_v18 }
 0x3cf   :  { %v889_v59 = vsel %vm2055_vm8, 0, %v2054_v10  ;;  %v808_v15 = vand.u32 3, %v807_v38  ;;  %v907_v10 = vsel %vm819_vm12, 0, %v905_v52 }
 0x3d0   :  { %v794_v4 = vand.u32 2147483647, %v793_v21  ;;  %v890_v9 = vsub.s32 32, %v889_v59  ;;  %v894_v23 = vsub.s32 4294967266, %v889_v59  ;;  %v891_v30 = vshll.u32 %v882_v36, %v889_v59 }
 0x3d1   :  { %vm813_vm13 = vcmp.eq.s32.totalorder %v808_v15, 2  ;;  %vm810_vm14 = vcmp.eq.s32.totalorder %v808_v15, 0  ;;  %vm809_vm15 = vcmp.lt.s32.totalorder %v808_v15, 2 }
 0x3d2   :  { %v797_v55 = vmul.f32 %v796_v24, %v794_v4  ;;  %v892_v17 = vshrl.u32 %v874_v5, %v890_v9  ;;  %v895_v53 = vadd.s32 127, %v894_v23  ;;  %v911_v5 = vadd.s32 3, %v907_v10 }
 0x3d4   :  { %v798_v32 = vxor.u32 2147483648, %v797_v55  ;;  %v893_v0 = vor.u32 %v892_v17, %v891_v30  ;;  %v896_v25 = vshll.u32 %v895_v53, 23  ;;  %v912_v23 = vand.u32 3, %v911_v5 }
 0x3d6   :  { %v799_v39 = vsel %vm716_vm9, %v798_v32, %v797_v55  ;;  %v897_v2 = vor.u32 4788187, %v896_v25  ;;  %v900_v44 = vcvt.s32.f32 %v893_v0  ;;  %vm917_vm6 = vcmp.eq.s32.totalorder %v912_v23, 2 }
 0x3d7   :  { %v802_v31 = vsel %vm715_vm10, %v2804_v48, %v799_v39  ;;  %vm914_vm7 = vcmp.eq.s32.totalorder %v912_v23, 0  ;;  %vm913_vm8 = vcmp.lt.s32.totalorder %v912_v23, 2  ;;  %vm910_vm9 = vweird.f32 %v2807_v49  ;;  %v2061_v23 = vld [vmem:[%s3133_s7 + $0x8] sm:$0xf] }
 0x3d8   :  { %2463 = vcosq.f32 %v802_v31  ;;  %v898_v6 = vand.u32 2147483647, %v897_v2  ;;  %vm1054_vm10 = vcmask 1022976  }
 0x3d9   :  { %2465 = vsinq.f32 %v802_v31 }
 0x3da   :  { %v901_v36 = vmul.f32 %v900_v44, %v898_v6 }
 0x3dc   :  { %v902_v60 = vxor.u32 2147483648, %v901_v36 }
 0x3de   :  { %v903_v16 = vsel %vm820_vm11, %v902_v60, %v901_v36  ;;  %vm938_vm11 = vcmask 23552  }
 0x3df   :  { %v906_v62 = vsel %vm819_vm12, %v2807_v49, %v903_v16  ;;  %v1115_v49 = vld [vmem:[%s3132_s8] sm:$0xff] }
 0x3e0   :  { %2467 = vcosq.f32 %v906_v62 }
 0x3e1   :  { %2469 = vsinq.f32 %v906_v62 }
 0x3e2   :  { %v2464_v1 = vpop.eup %2463 }
 0x3e3   :  { %v2466_v21 = vpop.eup %2465  ;;  %v814_v4 = vxor.u32 2147483648, %v2464_v1 }
 0x3e4   :  { %v811_v24 = vxor.u32 2147483648, %v2466_v21 }
 0x3e5   :  { %v815_v59 = vsel %vm813_vm13, %v814_v4, %v2466_v21 }
 0x3e6   :  { %v812_v9 = vsel %vm810_vm14, %v2464_v1, %v811_v24 }
 0x3e7   :  { %v816_v58 = vsel %vm809_vm15, %v812_v9, %v815_v59 }
 0x3e8   :  { %v817_v18 = vsel %vm806_vm3, nan, %v816_v58 }
 0x3e9   :  { %v922_v55 = vmul.f32 %v817_v18, %v817_v18  ;;  %v943_v18 = vld [vmem:[%s3133_s7] sm:$0xf] }
 0x3ea   :  { %v2468_v30 = vpop.eup %2467 }
 0x3eb   :  { %v2470_v17 = vpop.eup %2469  ;;  %v918_v53 = vxor.u32 2147483648, %v2468_v30  ;;  %v928_v0 = vmul.f32 %v926_v57, %v922_v55 }
 0x3ec   :  { %v915_v32 = vxor.u32 2147483648, %v2470_v17 }
 0x3ed   :  { %v919_v25 = vsel %vm917_vm6, %v918_v53, %v2470_v17  ;;  %v930_v48 = vadd.f32 %v928_v0, %v2799_v43  ;;  %v2056_v43 = vld [vmem:[%s3133_s7 + $0x4] sm:$0xf] }
 0x3ee   :  { %v916_v39 = vsel %vm914_vm7, %v2468_v30, %v915_v32 }
 0x3ef   :  { %v920_v42 = vsel %vm913_vm8, %v916_v39, %v919_v25  ;;  %v948_v44 = vpack.c.bf16 %v930_v48, %v930_v48 }
 0x3f0   :  { %v921_v2 = vsel %vm910_vm9, nan, %v920_v42 }
 0x3f1   :  { %v923_v31 = vmul.f32 %v921_v2, %v921_v2  ;;  %v954_v38 = vsel %vm381_vm2, %v948_v44, 0 }
 0x3f3   :  { %v929_v6 = vmul.f32 %v926_v57, %v923_v31 }
 0x3f5   :  { %v931_v54 = vadd.f32 %v929_v6, %v2801_v45 }
 0x3f7   :  { %v2449_v36 = vpack.i.bf16 %v931_v54, %v930_v48  ;;  %v949_v29 = vpack.c.bf16 %v931_v54, %v931_v54 }
 0x3f9   :  { %2450 = vrot.lane.b32.xlu0 %v2449_v36, %s2493_s3  ;;  %2445 = vrot.lane.b32.xlu1 %v2449_v36, %s2494_s6 }
 0x3fa   :  { %2057 = vmatprep.subr.msk.bf16.mxu0 %vm381_vm2, %v949_v29 }
 0x3fb   :  { %960 = vmatpush1.bf16.msra.mxu0 %v954_v38 }
 0x3fd   :  { %1118 = vperm.xlu1 %2454, %v1115_v49   ;;  %v1137_v49 = vld [vmem:[%s3135_s10] sm:$0xff] }
 0x3fe   :  { %2058 = vmatmul.mubr.msk.bf16.vlgmr.msra.gmra.mrb[8].mxu0 %vm230_vm1, %v2056_v43 }
 0x3ff   :  { %1104 = vmatprep.mubr.bf16.mxu0 %v2483_v61 }
 0x401   :  { %2456 = vset.pattern.permute.xlu1 %v2484_v63 }
 0x46b   :  { %v2451_v45 = vpop.permute.xlu0 %2450  ;;  %v2446_v60 = vpop.permute.xlu1 %2445 }
 0x46c   :  { %v2453_v16 = vunpack.i.h.bf16 %v2451_v45  ;;  %v2452_v52 = vunpack.i.l.bf16 %v2451_v45  ;;  %v2448_v15 = vunpack.i.h.bf16 %v2446_v60  ;;  %v2447_v62 = vunpack.i.l.bf16 %v2446_v60  ;;  %v1136_v60 = vld [vmem:[%s3136_s9] sm:$0xff] }
 0x46d   :  { %1573 = vperm.xlu0 %2455, %v1136_v60   ;;  %1579 = vperm.xlu1 %2456, %v1136_v60  }
 0x46e   :  { %v1058_v1 = vsel %vm1054_vm10, %v2453_v16, 0.0  ;;  %v939_v10 = vsel %vm938_vm11, %v2447_v62, %v2448_v15  ;;  %v942_v21 = vsel %vm938_vm11, 0.0, %v2447_v62  ;;  %v1055_v4 = vsel %vm1054_vm10, %v2452_v52, %v2453_v16 }
 0x46f   :  { %v1062_v24 = vpack.c.bf16 %v1058_v1, %v1058_v1  ;;  %v944_v59 = vpack.c.bf16 %v942_v21, %v942_v21  ;;  %v945_v5 = vpack.c.bf16 %v939_v10, %v939_v10  ;;  %v1061_v9 = vpack.c.bf16 %v1055_v4, %v1055_v4  ;;  %v1138_v1 = vld [vmem:[%s3137_s11] sm:$0xff] }
 0x470   :  { %v3150_v16 = vmov 2   ;;  %v3151_v52 = vmov 3  }
 0x471   :  { %2059 = vmatprep.subr.msk.bf16.mxu1 %vm381_vm2, %v945_v5  ;;  %2062 = vmatprep.subr.msk.bf16.mxu0 %vm381_vm2, %v1062_v24  ;;  %v1004_v63 = vsel %vm381_vm2, %v944_v59, 0  ;;  %v1067_v58 = vsel %vm381_vm2, %v1061_v9, 0 }
 0x472   :  { %1010 = vmatpush1.bf16.msra.mxu1 %v1004_v63  ;;  %1073 = vmatpush1.bf16.msra.mxu0 %v1067_v58 }
 0x473   :  { %2347 = vmatprep.subr.bf16.mxu1 %v2579_v3  ;;  %2379 = vmatprep.subr.bf16.mxu0 %v2579_v3  ;;  %v3149_v3 = vmov 0.0  }
 0x474   :  { %2457 = vset.pattern.permute.xlu1 %v3150_v16  ;;  %2458 = vset.pattern.permute.xlu0 %v3151_v52 }
 0x475   :  { %2060 = vmatmul.mubr.msk.bf16.vlgmr.msra.gmra.mrb[12].mxu1 %vm230_vm1, %v943_v18  ;;  %2063 = vmatmul.mubr.msk.bf16.vlgmr.msra.gmra.mrb[12].mxu0 %vm230_vm1, %v2061_v23 }
 0x476   :  { %2349 = vmatpush3.bf16.msra.mxu1 %v2590_v7  ;;  %2381 = vmatpush3.bf16.msra.mxu0 %v2590_v7 }
 0x477   :  { %2351 = vmatprep.subr.bf16.mxu1 %v2592_v8  ;;  %2383 = vmatprep.subr.bf16.mxu0 %v2592_v8 }
 0x478   :  { %1736 = vperm.xlu1 %2457, %v1136_v60   ;;  %1952 = vperm.xlu0 %2458, %v1136_v60  }
 0x47a   :  { %2353 = vmatpush3.bf16.msra.mxu1 %v2610_v13  ;;  %2385 = vmatpush3.bf16.msra.mxu0 %v2610_v13 }
 0x47b   :  { %2355 = vmatprep.subr.bf16.mxu1 %v2614_v14  ;;  %2387 = vmatprep.subr.bf16.mxu0 %v2614_v14 }
 0x47c   :  { %2459 = vset.pattern.permute.xlu1 %v2483_v61  ;;  %2460 = vset.pattern.permute.xlu0 %v2483_v61 }
 0x47e   :  { %2357 = vmatpush3.bf16.msra.mxu1 %v2630_v19  ;;  %2389 = vmatpush3.bf16.msra.mxu0 %v2630_v19  ;;  %v1124_v19 = vlaneseq }
 0x47f   :  { %2359 = vmatprep.subr.bf16.mxu1 %v2634_v20  ;;  %2391 = vmatprep.subr.bf16.mxu0 %v2634_v20 }
 0x480   :  { %v1125_v20 = vshrl.u32 %v1124_v19, 7 }
 0x482   :  { %2361 = vmatpush3.bf16.msra.mxu1 %v2655_v27  ;;  %2393 = vmatpush3.bf16.msra.mxu0 %v2655_v27  ;;  %v1126_v27 = vsub.s32 0, %v1125_v20 }
 0x483   :  { %2363 = vmatprep.subr.bf16.mxu1 %v2659_v28  ;;  %2395 = vmatprep.subr.bf16.mxu0 %v2659_v28  ;;  %v1119_v28 = vpop.permute.xlu1 %1118 }
 0x486   :  { %2365 = vmatpush3.bf16.msra.mxu1 %v2678_v34  ;;  %2397 = vmatpush3.bf16.msra.mxu0 %v2678_v34 }
 0x487   :  { %2367 = vmatprep.subr.bf16.mxu1 %v2682_v35  ;;  %2399 = vmatprep.subr.bf16.mxu0 %v2682_v35 }
 0x48a   :  { %2369 = vmatpush3.bf16.msra.mxu1 %v2698_v40  ;;  %2401 = vmatpush3.bf16.msra.mxu0 %v2698_v40  ;;  %v51_v40 = vld [vmem:[%s3134_s1] sm:$0x3] }
 0x48b   :  { %2371 = vmatprep.subr.bf16.mxu1 %v2702_v41  ;;  %2403 = vmatprep.subr.bf16.mxu0 %v2702_v41  ;;  %v1130_v41 = vsub.s32 1, %v1125_v20  ;;  %v2951_v0 = vrot.slane %v51_v40, %v1126_v27 }
 0x48d   :  { %v2953_v39 = vrot.slane %v51_v40, %v1130_v41 }
 0x48e   :  { %2373 = vmatpush3.bf16.msra.mxu1 %v2718_v46  ;;  %2405 = vmatpush3.bf16.msra.mxu0 %v2718_v46 }
 0x48f   :  { %2375 = vmatprep.subr.bf16.mxu1 %v2722_v47  ;;  %2407 = vmatprep.subr.bf16.mxu0 %v2722_v47 }
 0x492   :  { %2377 = vmatpush3.bf16.msra.mxu1 %v2734_v51  ;;  %2409 = vmatpush3.bf16.msra.mxu0 %v2734_v51 }
 0x493   :  { %2262 = vmatprep.subr.mxu1 %v3149_v3  ;;  %2272 = vmatprep.subr.mxu0 %v3149_v3 }
 0x4d1   :  { %v993_v7 = vpop.f32.mrb[8].mxu0 }
 0x4d2   :  { %v995_v8 = vpop.f32.mrb[9].mxu0 }
 0x4d3   :  { %v997_v13 = vpop.f32.mrb[10].mxu0 }
 0x4d4   :  { %v998_v14 = vpop.f32.mrb[11].mxu0 }
 0x4ec   :  { %v1574_v23 = vpop.permute.xlu0 %1573  ;;  %v1580_v13 = vpop.permute.xlu1 %1579 }
 0x548   :  { %v1043_v34 = vpop.f32.mrb[12].mxu1  ;;  %v1106_v35 = vpop.f32.mrb[12].mxu0 }
 0x549   :  { %v1044_v46 = vadd.f32 %v1043_v34, %v993_v7  ;;  %v1045_v47 = vpop.f32.mrb[13].mxu1  ;;  %v1108_v51 = vpop.f32.mrb[13].mxu0 }
 0x54a   :  { %v1046_v55 = vadd.f32 %v1045_v47, %v995_v8  ;;  %v1047_v57 = vpop.f32.mrb[14].mxu1  ;;  %v1110_v30 = vpop.f32.mrb[14].mxu0 }
 0x54b   :  { %v1113_v17 = vadd.f32 %v1106_v35, %v1044_v46  ;;  %v1048_v53 = vpop.f32.mrb[15].mxu1  ;;  %v1111_v32 = vpop.f32.mrb[15].mxu0 }
 0x54c   :  { %v1114_v25 = vadd.f32 %v1108_v51, %v1046_v55  ;;  %v1737_v34 = vpop.permute.xlu1 %1736 }
 0x54d   :  { %v1121_v42 = vadd.f32 %v1119_v28, %v1113_v17 }
 0x54e   :  { %v1122_v2 = vadd.f32 %v1119_v28, %v1114_v25 }
 0x54f   :  { %v2956_v48 = vmul.f32 %v2951_v0, %v1121_v42 }
 0x550   :  { %v2959_v31 = vmul.f32 %v2953_v39, %v1122_v2 }
 0x551   :  { %v1209_v44 = vmul.f32 %v2956_v48, %v2956_v48 }
 0x552   :  { %1203 = vmatprep.mubr.f32.mxu1 %v2959_v31  ;;  %v1210_v6 = vmul.f32 %v2959_v31, %v2959_v31 }
 0x553   :  { %1204 = vmatmul.mubr.f32.vlgmr.msra.gmra.mrb[10].mxu1 %v2956_v48 }
 0x554   :  { %1275 = vmatprep.mubr.f32.mxu0 %v1210_v6  ;;  %2264 = vmatprep.mubr.msk.f32.mxu1 %vm2482_vm0, %v3149_v3 }
 0x555   :  { %1276 = vmatmul.mubr.f32.vlgmr.msra.gmra.mrb[6].mxu0 %v1209_v44 }
 0x556   :  { %2274 = vmatprep.mubr.msk.f32.mxu0 %vm2482_vm0, %v3149_v3 }
 0x626   :  { %v2196_v54 = vpop.f32.mrb[10].mxu1 }
 0x627   :  { %v2197_v36 = vpop.f32.mrb[11].mxu1 }
 0x628   :  { %v2198_v29 = vadd.f32 %v2197_v36, %v2196_v54  ;;  %v2231_v38 = vpop.f32.mrb[6].mxu0 }
 0x629   :  { %v2232_v43 = vpop.f32.mrb[7].mxu0 }
 0x62a   :  { %v2233_v45 = vadd.f32 %v2232_v43, %v2231_v38  ;;  %2263 = vmatpush3.msra.mxu1 %v2198_v29 }
 0x62b   :  { %2265 = vmatmul.mubr.msk.f32.vlgmr.msra.gmra.mrb[16].mxu1 %vm230_vm1, %v1137_v49  ;;  %2267 = vmatprep.subr.mxu1 %v3149_v3 }
 0x62c   :  { %2268 = vmatpush3.msra.mxu1 %v2233_v45  ;;  %2269 = vmatprep.mubr.msk.f32.mxu1 %vm2482_vm0, %v3149_v3 }
 0x62d   :  { %2277 = vmatprep.subr.mxu1 %v3149_v3 }
 0x62f   :  { %2270 = vmatmul.mubr.msk.f32.vlgmr.msra.gmra.mrb[18].mxu1 %vm230_vm1, %v1137_v49 }
 0x630   :  { %2279 = vmatprep.mubr.msk.f32.mxu1 %vm2482_vm0, %v3149_v3 }
 0x6fe   :  { %v1350_v15 = vpop.f32.mrb[16].mxu1 }
 0x6ff   :  { %v2266_v62 = vpop.f32.mrb[17].mxu1  ;;  %2273 = vmatpush3.msra.mxu0 %v1350_v15  ;;  %v1424_v10 = vmul.f32 %v1350_v15, %v1350_v15 }
 0x700   :  { %2275 = vmatmul.mubr.msk.f32.vlgmr.msra.gmra.mrb[16].mxu0 %vm230_vm1, %v1138_v1  ;;  %2068 = vmatprep.subr.msk.mxu0 %vm554_vm4, %v2780_v12 }
 0x701   :  { %2069 = vmatpush1.msk.msra.mxu0 %vm554_vm4, %v2776_v11  ;;  %1650 = vmatprep.mubr.f32.mxu0 %v3149_v3 }
 0x702   :  { %v1420_v21 = vpop.f32.mrb[18].mxu1 }
 0x703   :  { %v1425_v4 = vsub.f32 %v1420_v21, %v1424_v10  ;;  %v2271_v24 = vpop.f32.mrb[19].mxu1 }
 0x705   :  { %v1426_v59 = vmax.f32 %v1425_v4, 0.0 }
 0x707   :  { %2278 = vmatpush3.msra.mxu1 %v1426_v59  ;;  %v3152_v59 = vmov 2475754826  }
 0x708   :  { %2280 = vmatmul.mubr.msk.f32.vlgmr.msra.gmra.mrb[20].mxu1 %vm230_vm1, %v1138_v1  ;;  %2071 = vmatprep.subr.msk.mxu1 %vm554_vm4, %v2780_v12 }
 0x709   :  { %2072 = vmatpush1.msk.msra.mxu1 %vm554_vm4, %v2776_v11  ;;  %1724 = vmatprep.mubr.f32.mxu1 %v3149_v3  ;;  %v1962_v11 = vld [vmem:[%s3138_s13] sm:$0xff] }
 0x70a   :  { %1965 = vperm.xlu1 %2459, %v1962_v11  }
 0x7d3   :  { %v1496_v5 = vpop.f32.mrb[16].mxu0 }
 0x7d4   :  { %v2276_v9 = vpop.f32.mrb[17].mxu0 }
 0x7db   :  { %v1566_v63 = vpop.f32.mrb[20].mxu1 }
 0x7dc   :  { %v1567_v58 = vadd.f32 1e-05, %v1566_v63  ;;  %v2281_v18 = vpop.f32.mrb[21].mxu1 }
 0x7dd   :  { %v3153_v18 = vmov 2131351028  }
 0x7de   :  { %2471 = vrsqrt.f32 %v1567_v58 }
 0x7e8   :  { %v2472_v7 = vpop.eup %2471 }
 0x7e9   :  { %v1576_v8 = vmul.f32 %v2472_v7, %v1574_v23 }
 0x7eb   :  { %v1577_v14 = vmul.f32 %v1576_v8, %v1496_v5  ;;  %2070 = vmatmul.mubr.msk.f32.vlgmr.msra.gmra.mrb[18].mxu0 %vm550_vm5, %v1576_v8 }
 0x7ec   :  { %2009 = vmatprep.mubr.bf16.mxu0 %v2483_v61 }
 0x7ed   :  { %v1582_v12 = vsub.f32 %v1580_v13, %v1577_v14 }
 0x7ef   :  { %2073 = vmatmul.mubr.msk.f32.vlgmr.msra.gmra.mrb[22].mxu1 %vm550_vm5, %v1582_v12 }
 0x8be   :  { %v1652_v3 = vpop.f32.mrb[18].mxu0 }
 0x8bf   :  { %v1654_v19 = vpop.f32.mrb[19].mxu0  ;;  %v1731_v20 = vmul.f32 %v1652_v3, %v2956_v48 }
 0x8c0   :  { %v1732_v27 = vmul.f32 %v1654_v19, %v2959_v31 }
 0x8c2   :  { %v1726_v28 = vpop.f32.mrb[22].mxu1 }
 0x8c3   :  { %v3012_v35 = vadd.f32 %v1731_v20, %v1726_v28  ;;  %v1728_v40 = vpop.f32.mrb[23].mxu1 }
 0x8c4   :  { %v3014_v61 = vadd.f32 %v1732_v27, %v1728_v40 }
 0x8c5   :  { %v3017_v41 = vmul.f32 %v1737_v34, %v3012_v35 }
 0x8c6   :  { %v3020_v46 = vmul.f32 %v1737_v34, %v3014_v61 }
 0x8c7   :  { %v1744_v47 = vand.u32 2139095040, %v3017_v41  ;;  %v1741_v51 = vand.u32 2147483647, %v3017_v41 }
 0x8c8   :  { %v1848_v55 = vand.u32 2139095040, %v3020_v46  ;;  %v1845_v32 = vand.u32 2147483647, %v3020_v46 }
 0x8c9   :  { %v1745_v57 = vshrl.u32 %v1744_v47, 23  ;;  %v1748_v53 = vand.u32 8388607, %v1741_v51 }
 0x8ca   :  { %v1849_v30 = vshrl.u32 %v1848_v55, 23  ;;  %v3030_v31 = vand.u32 8388607, %v1845_v32 }
 0x8cb   :  { %v2074_v17 = vadd.s32 4294967169, %v1745_v57  ;;  %v1749_v48 = vor.u32 8388608, %v1748_v53 }
 0x8cc   :  { %v2078_v25 = vadd.s32 4294967169, %v1849_v30  ;;  %v1853_v45 = vor.u32 8388608, %v3030_v31 }
 0x8cd   :  { %v1751_v42 = vadd.s32 1, %v2074_v17  ;;  %v3034_v43 = vshll.u32 %v1749_v48, 8 }
 0x8ce   :  { %v1855_v2 = vadd.s32 1, %v2078_v25 }
 0x8cf   :  { %vm1752_vm0 = vcmp.gt.s32.totalorder %v1751_v42, 0 }
 0x8d0   :  { %v1753_v6 = vsel %vm1752_vm0, %v1751_v42, 0  ;;  %vm1856_vm4 = vcmp.gt.s32.totalorder %v1855_v2, 0  ;;  %vm1743_vm0 = vcmp.lt.s32.totalorder %v3017_v41, 0 }
 0x8d1   :  { %v1754_v44 = vshrl.u32 %v1753_v6, 5  ;;  %v1755_v54 = vand.u32 31, %v1753_v6  ;;  %v1857_v36 = vsel %vm1856_vm4, %v1855_v2, 0  ;;  %vm1742_vm4 = vcmp.le.f32.partialorder %v1741_v51, 0.7853982 }
 0x8d2   :  { %v1859_v29 = vand.u32 31, %v1857_v36  ;;  %v3032_v49 = vshrl.u32 %v1857_v36, 5 }
 0x8d3   :  { %v1756_v38 = vsub.s32 32, %v1755_v54  ;;  %v1767_v60 = vshll.u32 %v2490_v33, %v1755_v54  ;;  %v1770_v16 = vshll.u32 %v2491_v37, %v1755_v54  ;;  %vm1776_vm5 = vcmp.lt.s32.totalorder %v1754_v44, 4 }
 0x8d4   :  { %v1860_v52 = vsub.s32 32, %v1859_v29  ;;  %v1871_v1 = vshll.u32 %v2490_v33, %v1859_v29  ;;  %v1874_v10 = vshll.u32 %v2491_v37, %v1859_v29  ;;  %v1758_v24 = vshll.u32 %v2487_v22, %v1755_v54 }
 0x8d5   :  { %v1768_v15 = vshrl.u32 %v2491_v37, %v1756_v38  ;;  %v1771_v62 = vshrl.u32 %v2492_v56, %v1756_v38  ;;  %v1759_v5 = vshrl.u32 %v3152_v59, %v1756_v38  ;;  %v1761_v58 = vshll.u32 %v3152_v59, %v1755_v54 }
 0x8d6   :  { %v1872_v21 = vshrl.u32 %v2491_v37, %v1860_v52  ;;  %v1875_v4 = vshrl.u32 %v2492_v56, %v1860_v52  ;;  %v1762_v23 = vshrl.u32 %v3153_v18, %v1756_v38  ;;  %vm1880_vm12 = vcmp.lt.s32.totalorder %v3032_v49, 4 }
 0x8d7   :  { %v1769_v9 = vor.u32 %v1768_v15, %v1767_v60  ;;  %v1772_v63 = vor.u32 %v1771_v62, %v1770_v16  ;;  %v1760_v7 = vor.u32 %v1759_v5, %v1758_v24  ;;  %v1764_v8 = vshll.u32 %v3153_v18, %v1755_v54 }
 0x8d8   :  { %v1765_v13 = vshrl.u32 %v2490_v33, %v1756_v38  ;;  %v1757_v14 = vshrl.u32 %v2487_v22, %v1756_v38  ;;  %v1763_v12 = vor.u32 %v1762_v23, %v1761_v58  ;;  %v1873_v11 = vor.u32 %v1872_v21, %v1871_v1 }
 0x8d9   :  { %v1782_v37 = vsel %vm1776_vm5, %v1769_v9, 920167782  ;;  %v1786_v56 = vsel %vm1776_vm5, %v1772_v63, 1326507024  ;;  %v1876_v3 = vor.u32 %v1875_v4, %v1874_v10  ;;  %vm1773_vm13 = vcmp.lt.s32.totalorder %v1754_v44, 1 }
 0x8da   :  { %v1766_v19 = vor.u32 %v1765_v13, %v1764_v8  ;;  %vm1774_vm14 = vcmp.lt.s32.totalorder %v1754_v44, 2  ;;  %vm1775_vm15 = vcmp.lt.s32.totalorder %v1754_v44, 3  ;;  %v1777_v20 = vsel %vm1773_vm13, %v1757_v14, %v1760_v7 }
 0x8db   :  { %v1781_v27 = vsel %vm1773_vm13, %v1760_v7, %v1763_v12  ;;  %v1787_v47 = vsel %vm1775_vm15, %v1769_v9, %v1786_v56  ;;  %v1862_v17 = vshll.u32 %v2487_v22, %v1859_v29  ;;  %v1863_v2 = vshrl.u32 %v3152_v59, %v1860_v52 }
 0x8dc   :  { %v1778_v28 = vsel %vm1776_vm5, %v1766_v19, 2102212464  ;;  %v1783_v34 = vsel %vm1775_vm15, %v1766_v19, %v1782_v37  ;;  %v1785_v40 = vsel %vm1773_vm13, %v1763_v12, %v1766_v19  ;;  %v1890_v48 = vsel %vm1880_vm12, %v1876_v3, 1326507024 }
 0x8dd   :  { %v1779_v55 = vsel %vm1775_vm15, %v1763_v12, %v1778_v28  ;;  %v1784_v57 = vsel %vm1774_vm14, %v1781_v27, %v1783_v34  ;;  %v1788_v30 = vsel %vm1774_vm14, %v1785_v40, %v1787_v47  ;;  %v1865_v44 = vshll.u32 %v3152_v59, %v1859_v29 }
 0x8de   :  { %v1780_v53 = vsel %vm1774_vm14, %v1777_v20, %v1779_v55  ;;  %v3058_v25 = vmul.u32.u64.low %v3034_v43, %v1788_v30  ;;  %v3059_v42 = vmul.u32.u64.high %v3034_v43, %v1788_v30, %v3058_v25  ;;  %v1864_v54 = vor.u32 %v1863_v2, %v1862_v17 }
 0x8df   :  { %v3065_v31 = vmul.u32.u64.low %v3034_v43, %v1784_v57  ;;  %v3066_v6 = vmul.u32.u64.high %v3034_v43, %v1784_v57, %v3065_v31  ;;  %v1866_v36 = vshrl.u32 %v3153_v18, %v1860_v52  ;;  %v1868_v38 = vshll.u32 %v3153_v18, %v1859_v29 }
 0x8e0   :  { %v1869_v60 = vshrl.u32 %v2490_v33, %v1860_v52  ;;  %v1886_v16 = vsel %vm1880_vm12, %v1873_v11, 920167782  ;;  %v1796_v15 = vmul.u32 %v3034_v43, %v1780_v53  ;;  %v1861_v62 = vshrl.u32 %v2487_v22, %v1860_v52 }
 0x8e1   :  { %v1893_v1 = vshll.u32 %v1853_v45, 8  ;;  %vm1798_vm3 = vc.u32 %v3059_v42, %v3065_v31  ;;  %v1867_v10 = vor.u32 %v1866_v36, %v1865_v44  ;;  %vm1879_vm6 = vcmp.lt.s32.totalorder %v3032_v49, 3 }
 0x8e2   :  { %v1870_v21 = vor.u32 %v1869_v60, %v1868_v38  ;;  %v1799_v4 = vadd.s32 1, %v3066_v6  ;;  %vm1877_vm7 = vcmp.lt.s32.totalorder %v3032_v49, 1  ;;  %vm1878_vm8 = vcmp.lt.s32.totalorder %v3032_v49, 2 }
 0x8e3   :  { %v1891_v33 = vsel %vm1879_vm6, %v1873_v11, %v1890_v48  ;;  %v1885_v43 = vsel %vm1877_vm7, %v1864_v54, %v1867_v10  ;;  %v1881_v52 = vsel %vm1877_vm7, %v1861_v62, %v1864_v54  ;;  %v1797_v17 = vadd.s32 %v3065_v31, %v3059_v42 }
 0x8e4   :  { %v1882_v29 = vsel %vm1880_vm12, %v1870_v21, 2102212464  ;;  %v1887_v24 = vsel %vm1879_vm6, %v1870_v21, %v1886_v16  ;;  %v1889_v22 = vsel %vm1877_vm7, %v1867_v10, %v1870_v21  ;;  %v1800_v45 = vsel %vm1798_vm3, %v1799_v4, %v3066_v6 }
 0x8e5   :  { %v1888_v59 = vsel %vm1878_vm8, %v1885_v43, %v1887_v24  ;;  %v1892_v5 = vsel %vm1878_vm8, %v1889_v22, %v1891_v33  ;;  %v1801_v9 = vadd.s32 %v1800_v45, %v1796_v15  ;;  %v1883_v63 = vsel %vm1879_vm6, %v1867_v10, %v1882_v29 }
 0x8e6   :  { %v3088_v58 = vmul.u32.u64.low %v1893_v1, %v1892_v5  ;;  %v3089_v18 = vmul.u32.u64.high %v1893_v1, %v1892_v5, %v3088_v58  ;;  %v3091_v23 = vmul.u32.u64.low %v1893_v1, %v1888_v59  ;;  %v3092_v7 = vmul.u32.u64.high %v1893_v1, %v1888_v59, %v3091_v23 }
 0x8e7   :  { %v1802_v8 = vadd.s32 536870912, %v1801_v9  ;;  %v1884_v13 = vsel %vm1878_vm8, %v1881_v52, %v1883_v63  ;;  %vm1847_vm5 = vcmp.lt.s32.totalorder %v3020_v46, 0  ;;  %vm1846_vm12 = vcmp.le.f32.partialorder %v1845_v32, 0.7853982 }
 0x8e8   :  { %vm1902_vm9 = vc.u32 %v3089_v18, %v3091_v23  ;;  %v1903_v56 = vadd.s32 1, %v3092_v7  ;;  %v1900_v12 = vmul.u32 %v1893_v1, %v1884_v13  ;;  %v1901_v10 = vadd.s32 %v3091_v23, %v3089_v18 }
 0x8e9   :  { %v1803_v37 = vshrl.u32 %v1802_v8, 30  ;;  %vm1833_vm3 = vweird.f32 %v3017_v41 }
 0x8ea   :  { %v1904_v11 = vsel %vm1902_vm9, %v1903_v56, %v3092_v7  ;;  %vm1937_vm9 = vweird.f32 %v3020_v46 }
 0x8eb   :  { %v1804_v14 = vshll.u32 %v1803_v37, 30  ;;  %v1905_v19 = vadd.s32 %v1904_v11, %v1900_v12  ;;  %v1827_v31 = vsub.s32 4, %v1803_v37 }
 0x8ed   :  { %v1805_v3 = vsub.s32 %v1801_v9, %v1804_v14  ;;  %v1906_v27 = vadd.s32 536870912, %v1905_v19  ;;  %v1828_v59 = vsel %vm1743_vm0, %v1827_v31, %v1803_v37 }
 0x8ee   :  { %v1830_v63 = vsel %vm1742_vm4, 0, %v1828_v59 }
 0x8ef   :  { %v1807_v20 = vsub.s32 0, %v1805_v3  ;;  %v1907_v34 = vshrl.u32 %v1906_v27, 30  ;;  %v1834_v8 = vadd.s32 3, %v1830_v63 }
 0x8f1   :  { %v2075_v28 = vmin.u32 %v1807_v20, %v1805_v3  ;;  %v1908_v47 = vshll.u32 %v1907_v34, 30  ;;  %v1931_v7 = vsub.s32 4, %v1907_v34  ;;  %v1835_v37 = vand.u32 3, %v1834_v8 }
 0x8f3   :  { %v1809_v40 = vclz %v2075_v28  ;;  %v1909_v49 = vsub.s32 %v1905_v19, %v1908_v47  ;;  %v1932_v56 = vsel %vm1847_vm5, %v1931_v7, %v1907_v34  ;;  %vm1840_vm13 = vcmp.eq.s32.totalorder %v1835_v37, 2  ;;  %v1953_v47 = vpop.permute.xlu0 %1952 }
 0x8f4   :  { %v1934_v11 = vsel %vm1846_vm12, 0, %v1932_v56  ;;  %vm1837_vm14 = vcmp.eq.s32.totalorder %v1835_v37, 0  ;;  %vm1836_vm15 = vcmp.lt.s32.totalorder %v1835_v37, 2 }
 0x8f5   :  { %v2076_v55 = vadd.s32 4294967294, %v1809_v40  ;;  %v1911_v30 = vsub.s32 0, %v1909_v49  ;;  %v1938_v28 = vadd.s32 3, %v1934_v11 }
 0x8f7   :  { %vm2077_vm10 = vcmp.lt.s32.totalorder %v2076_v55, 0  ;;  %v2079_v2 = vmin.u32 %v1911_v30, %v1909_v49 }
 0x8f8   :  { %v1812_v57 = vsel %vm2077_vm10, 0, %v2076_v55  ;;  %v1939_v55 = vand.u32 3, %v1938_v28 }
 0x8f9   :  { %v1813_v53 = vsub.s32 32, %v1812_v57  ;;  %v1817_v25 = vsub.s32 4294967266, %v1812_v57  ;;  %v1814_v48 = vshll.u32 %v1805_v3, %v1812_v57  ;;  %v1913_v54 = vclz %v2079_v2 }
 0x8fa   :  { %vm1944_vm6 = vcmp.eq.s32.totalorder %v1939_v55, 2  ;;  %vm1941_vm7 = vcmp.eq.s32.totalorder %v1939_v55, 0  ;;  %vm1940_vm8 = vcmp.lt.s32.totalorder %v1939_v55, 2 }
 0x8fb   :  { %v1815_v6 = vshrl.u32 %v1797_v17, %v1813_v53  ;;  %v1818_v44 = vadd.s32 127, %v1817_v25  ;;  %v2080_v60 = vadd.s32 4294967294, %v1913_v54 }
 0x8fd   :  { %v1816_v36 = vor.u32 %v1815_v6, %v1814_v48  ;;  %v1819_v38 = vshll.u32 %v1818_v44, 23  ;;  %vm2081_vm11 = vcmp.lt.s32.totalorder %v2080_v60, 0 }
 0x8fe   :  { %v1916_v1 = vsel %vm2081_vm11, 0, %v2080_v60 }
 0x8ff   :  { %v1820_v16 = vor.u32 4788187, %v1819_v38  ;;  %v1823_v62 = vcvt.s32.f32 %v1816_v36  ;;  %v1917_v21 = vsub.s32 32, %v1916_v1  ;;  %v1921_v4 = vsub.s32 4294967266, %v1916_v1 }
 0x900   :  { %v1918_v33 = vshll.u32 %v1909_v49, %v1916_v1 }
 0x901   :  { %v1821_v15 = vand.u32 2147483647, %v1820_v16  ;;  %v1919_v29 = vshrl.u32 %v1901_v10, %v1917_v21  ;;  %v1922_v43 = vadd.s32 127, %v1921_v4 }
 0x903   :  { %v1824_v42 = vmul.f32 %v1823_v62, %v1821_v15  ;;  %v1920_v22 = vor.u32 %v1919_v29, %v1918_v33  ;;  %v1923_v45 = vshll.u32 %v1922_v43, 23  ;;  %v1959_v62 = vld [vmem:[%s3139_s12] sm:$0xf] }
 0x905   :  { %v1825_v24 = vxor.u32 2147483648, %v1824_v42  ;;  %v1924_v9 = vor.u32 4788187, %v1923_v45  ;;  %v1927_v18 = vcvt.s32.f32 %v1920_v22 }
 0x907   :  { %v1826_v52 = vsel %vm1743_vm0, %v1825_v24, %v1824_v42  ;;  %v1925_v58 = vand.u32 2147483647, %v1924_v9 }
 0x908   :  { %v1829_v5 = vsel %vm1742_vm4, %v3017_v41, %v1826_v52 }
 0x909   :  { %2473 = vcosq.f32 %v1829_v5  ;;  %v1928_v23 = vmul.f32 %v1927_v18, %v1925_v58 }
 0x90a   :  { %2475 = vsinq.f32 %v1829_v5 }
 0x90b   :  { %v1929_v13 = vxor.u32 2147483648, %v1928_v23 }
 0x90d   :  { %v1930_v51 = vsel %vm1847_vm5, %v1929_v13, %v1928_v23 }
 0x90e   :  { %v1933_v14 = vsel %vm1846_vm12, %v3020_v46, %v1930_v51  ;;  %v1966_v46 = vpop.permute.xlu1 %1965 }
 0x90f   :  { %2477 = vcosq.f32 %v1933_v14 }
 0x910   :  { %2479 = vsinq.f32 %v1933_v14 }
 0x913   :  { %v2474_v12 = vpop.eup %2473 }
 0x914   :  { %v2476_v3 = vpop.eup %2475  ;;  %v1841_v19 = vxor.u32 2147483648, %v2474_v12 }
 0x915   :  { %v1838_v20 = vxor.u32 2147483648, %v2476_v3 }
 0x916   :  { %v1842_v27 = vsel %vm1840_vm13, %v1841_v19, %v2476_v3 }
 0x917   :  { %v1839_v40 = vsel %vm1837_vm14, %v2474_v12, %v1838_v20 }
 0x918   :  { %v1843_v32 = vsel %vm1836_vm15, %v1839_v40, %v1842_v27 }
 0x919   :  { %v1844_v34 = vsel %vm1833_vm3, nan, %v1843_v32  ;;  %v2478_v57 = vpop.eup %2477 }
 0x91a   :  { %v1949_v49 = vmul.f32 %v1844_v34, %v1844_v34  ;;  %v2480_v30 = vpop.eup %2479  ;;  %v1945_v17 = vxor.u32 2147483648, %v2478_v57 }
 0x91b   :  { %v1942_v25 = vxor.u32 2147483648, %v2480_v30 }
 0x91c   :  { %v1955_v53 = vmul.f32 %v1953_v47, %v1949_v49  ;;  %v1946_v2 = vsel %vm1944_vm6, %v1945_v17, %v2480_v30 }
 0x91d   :  { %v1943_v48 = vsel %vm1941_vm7, %v2478_v57, %v1942_v25 }
 0x91e   :  { %v1947_v6 = vsel %vm1940_vm8, %v1943_v48, %v1946_v2  ;;  %v1957_v41 = vadd.f32 %v1955_v53, %v3012_v35 }
 0x91f   :  { %v1948_v44 = vsel %vm1937_vm9, nan, %v1947_v6 }
 0x920   :  { %v1950_v54 = vmul.f32 %v1948_v44, %v1948_v44  ;;  %v1960_v38 = vpack.c.bf16 %v1957_v41, %v1957_v41 }
 0x922   :  { %v1956_v36 = vmul.f32 %v1953_v47, %v1950_v54  ;;  %v1972_v15 = vsel %vm381_vm2, %v1960_v38, 0 }
 0x924   :  { %v1958_v60 = vadd.f32 %v1956_v36, %v3014_v61 }
 0x926   :  { %v1961_v16 = vpack.c.bf16 %v1958_v60, %v1958_v60 }
 0x928   :  { %2082 = vmatprep.subr.msk.bf16.mxu0 %vm381_vm2, %v1961_v16 }
 0x929   :  { %1978 = vmatpush1.bf16.msra.mxu0 %v1972_v15 }
 0x92c   :  { %2083 = vmatmul.mubr.msk.bf16.vlgmr.msra.gmra.mrb[20].mxu0 %vm230_vm1, %v1959_v62 }
 0x9ff   :  { %v2011_v35 = vpop.f32.mrb[20].mxu0 }
 0xa00   :  { %v2013_v1 = vpop.f32.mrb[21].mxu0  ;;  %v2012_v10 = vadd.f32 %v2011_v35, %v1966_v46 }
 0xa01   :  { %v2015_v21 = vpop.f32.mrb[22].mxu0  ;;  %v2014_v4 = vadd.f32 %v2013_v1, %v1966_v46 }
 0xa02   :  { %v2018_v61 = vadd.f32 %v2012_v10, %v2730_v50  ;;  %v2016_v42 = vpop.f32.mrb[23].mxu0 }
 0xa03   :  { %v2019_v31 = vadd.f32 %v2014_v4, %v2651_v26 }
 0xa04   :  { %v2020_v33 = vmul.f32 %v2018_v61, %v2951_v0 }
 0xa05   :  { %v2021_v29 = vmul.f32 %v2019_v31, %v2953_v39 }
 0xa07   :  { %v2085_v43 = vpack.c.bf16 %v2021_v29, %v2020_v33 }
 0xa09   :  { %2030 = vst [vmem:[%s3140_s14] sm:$0xff] %v2085_v43 }

// kernel: autoencoder_forward.13
= control target key start
LH: loop header
LB: loop body
LE: loop exit
PB: predicated region body
PF: predicated region fallthrough
CT: control target
= control target key end

     0   :  { %s3266_s0 = inlined_call_operand.vmem [shape: f32[2,256], index: 0, kind: input, shape index: {}]   ;;  %s3267_s1 = inlined_call_operand.vmem [shape: f32[1,256], index: 1, kind: input, shape index: {}]   ;;  %s3268_s2 = inlined_call_operand.hbm [shape: f32[256,2], index: 2, kind: input, shape index: {}]   ;;  %s3269_s3 = inlined_call_operand.vmem [shape: f32[2,256], index: 3, kind: input, shape index: {}]   ;;  %s3270_s4 = inlined_call_operand.vmem [shape: f32[2,4], index: 4, kind: input, shape index: {}]   ;;  %s3271_s5 = inlined_call_operand.vmem [shape: f32[2,2], index: 5, kind: input, shape index: {}]   ;;  %s3272_s6 = inlined_call_operand.vmem [shape: f32[2,2], index: 6, kind: input, shape index: {}]   ;;  %s3273_s7 = inlined_call_operand.vmem [shape: bf16[3,8,2], index: 7, kind: input, shape index: {}]   ;;  %s3274_s8 = inlined_call_operand.vmem [shape: f32[8,1], index: 8, kind: input, shape index: {}]   ;;  %s3275_s9 = inlined_call_operand.vmem [shape: f32[8,4], index: 9, kind: input, shape index: {}]   ;;  %s3276_s10 = inlined_call_operand.vmem [shape: f32[8,8], index: 10, kind: input, shape index: {}]   ;;  %s3277_s11 = inlined_call_operand.vmem [shape: f32[8,8], index: 11, kind: input, shape index: {}]   ;;  %s3278_s12 = inlined_call_operand.vmem [shape: bf16[1,8,8], index: 12, kind: input, shape index: {}]   ;;  %s3279_s13 = inlined_call_operand.vmem [shape: f32[8,1], index: 13, kind: input, shape index: {}]   ;;  %s3280_s14 = inlined_call_operand.vmem [shape: bf16[8,2], index: 14, kind: input, shape index: {}]   ;;  %s3281_s15 = inlined_call_operand.vmem [shape: f32[8,1], index: 15, kind: input, shape index: {}]   ;;  %s3282_s16 = inlined_call_operand.vmem [shape: bf16[8,256], index: 16, kind: output, shape index: {}]  }
   0x1   :  { %3291 = sst [smem:[#allocation5_spill]] %s3266_s0 }
   0x2   :  { %21 = vsyncpa [#allocation3], 0  ;;  %s2670_s21 = smov [#allocation2]   ;;  %s2646_s25 = scalar_lea.hbm %s3268_s2, 4096 }
   0x3   :  { %s31_s22 = sshll.u32 %s2670_s21, 4  ;;  %p2647_p0 = scmp.ne.s32.totalorder %s3268_s2, %s2646_s25  ;;  %s32_s22 = int_to_ptr.vmem [resolvable:$true] %s31_s22 }
   0x4   :  { %p2650_p1 = scmp.lt.u32.totalorder %s2646_s25, %s3268_s2 }
   0x6   :  { %p2652_p2 = pnand %p2650_p1, %p2647_p0 }
   0x8   :  { %2655 = shalt.err (!%p2652_p2)
}
   0x9   :  { %s2656_s30 = scalar_lea.vmem %s32_s22, 4096  ;;  %p2661_p4 = scmp.lt.s32.totalorder %s32_s22, %s32_s22 }
   0xa   :  { %p2657_p3 = scmp.ne.s32.totalorder %s32_s22, %s2656_s30  ;;  %p2662_p5 = scmp.lt.s32.totalorder %s2656_s30, %s2656_s30 }
   0xc   :  { %p2663_p6 = por %p2662_p5, %p2661_p4 }
   0xe   :  { %p2664_p7 = pnand %p2663_p6, %p2657_p3 }
  0x10   :  { %2667 = shalt.err (!%p2664_p7)
}
  0x11   :  { %s2671_s0 = smov 128   ;;  %s2672_s17 = smov 8  }
  0x12   :  { %37 = dma.hbm_to_vmem [thread:$0]  %s3268_s2, 4096, %s32_s22, [#allocation3], %s2671_s0, %s2671_s0, %s2672_s17  }
  0x13   :  { %2668 = dma.done.wait [#allocation3], 4096  }
  0x14   :  { %2669 = vsyncadd [#allocation3], 4294963200  ;;  %v2673_v0 = vmov 1983009808   ;;  %v110_v2 = vlaneseq  ;;  %v86_v3 = vld [vmem:[#allocation2 + $0x80] sm:$0xff]  ;;  %v87_v4 = vld [vmem:[#allocation2 + $0x88] sm:$0xff] }
  0x15   :  { %v108_v1 = vunpack.c.l.s4 %v2673_v0  ;;  %v70_v5 = vld [vmem:[#allocation2] sm:$0xff]  ;;  %v2785_v6 = vpack.c.bf16 %v87_v4, %v86_v3  ;;  %v71_v7 = vld [vmem:[#allocation2 + $0x8] sm:$0xff]  ;;  %v88_v8 = vld [vmem:[#allocation2 + $0x90] sm:$0xff]  ;;  %s3292_s21 = sld [smem:[#allocation5_spill]]  ;;  %v3285_v60 = vmov 0.0   ;;  %vm2675_vm0 = vmmov 0  }
  0x16   :  { %v89_v9 = vld [vmem:[#allocation2 + $0x98] sm:$0xff]  ;;  %v2787_v10 = vpack.c.bf16 %v71_v7, %v70_v5  ;;  %v72_v12 = vld [vmem:[#allocation2 + $0x10] sm:$0xff]  ;;  %v90_v14 = vld [vmem:[#allocation2 + $0xa0] sm:$0xff]  ;;  %v2793_v17 = vshrl.u32 %v110_v2, 7  ;;  %vm273_vm1 = vcmask 1041408   ;;  %vm269_vm2 = vcmask 15360  }
  0x17   :  { %v2789_v11 = vpack.c.bf16 %v89_v9, %v88_v8  ;;  %v73_v13 = vld [vmem:[#allocation2 + $0x18] sm:$0xff]  ;;  %2444 = vmatprep.subr.bf16.mxu0 %v2785_v6  ;;  %2476 = vmatprep.subr.bf16.mxu1 %v2785_v6  ;;  %v91_v15 = vld [vmem:[#allocation2 + $0xa8] sm:$0xff]  ;;  %v109_v16 = vunpack.c.0.s8 %v108_v1  ;;  %v74_v20 = vld [vmem:[#allocation2 + $0x20] sm:$0xff]  ;;  %v2676_v5 = vmov 0   ;;  %v2677_v7 = vmov 1  }
  0x18   :  { %2446 = vmatpush3.bf16.msra.mxu0 %v2787_v10  ;;  %2478 = vmatpush3.bf16.msra.mxu1 %v2787_v10  ;;  %v2797_v18 = vpack.c.bf16 %v73_v13, %v72_v12  ;;  %v2801_v19 = vpack.c.bf16 %v91_v15, %v90_v14  ;;  %v75_v21 = vld [vmem:[#allocation2 + $0x28] sm:$0xff]  ;;  %v92_v22 = vld [vmem:[#allocation2 + $0xb0] sm:$0xff]  ;;  %v93_v23 = vld [vmem:[#allocation2 + $0xb8] sm:$0xff] }
  0x19   :  { %2448 = vmatprep.subr.bf16.mxu0 %v2789_v11  ;;  %2480 = vmatprep.subr.bf16.mxu1 %v2789_v11  ;;  %v2804_v24 = vsub.s32 %v109_v16, %v2793_v17  ;;  %v2808_v25 = vpack.c.bf16 %v75_v21, %v74_v20  ;;  %v2812_v26 = vpack.c.bf16 %v93_v23, %v92_v22  ;;  %v76_v27 = vld [vmem:[#allocation2 + $0x30] sm:$0xff]  ;;  %v77_v28 = vld [vmem:[#allocation2 + $0x38] sm:$0xff]  ;;  %v94_v29 = vld [vmem:[#allocation2 + $0xc0] sm:$0xff]  ;;  %v3284_v23 = vmov 2  }
  0x1a   :  { %v95_v30 = vld [vmem:[#allocation2 + $0xc8] sm:$0xff]  ;;  %v2827_v34 = vpack.c.bf16 %v77_v28, %v76_v27  ;;  %v78_v36 = vld [vmem:[#allocation2 + $0x40] sm:$0xff]  ;;  %v96_v40 = vld [vmem:[#allocation2 + $0xd0] sm:$0xff]  ;;  %2605 = vset.pattern.permute.xlu0 %v2676_v5  ;;  %2607 = vset.pattern.permute.xlu1 %v3284_v23  ;;  %v3283_v27 = vmov 3  }
  0x1b   :  { %v2817_v31 = vld [vmem:[%s3292_s21] sm:$0xf]  ;;  %v2831_v35 = vpack.c.bf16 %v95_v30, %v94_v29  ;;  %v79_v37 = vld [vmem:[#allocation2 + $0x48] sm:$0xff]  ;;  %v97_v41 = vld [vmem:[#allocation2 + $0xd8] sm:$0xff] }
  0x1c   :  { %2450 = vmatpush3.bf16.msra.mxu0 %v2797_v18  ;;  %2482 = vmatpush3.bf16.msra.mxu1 %v2797_v18  ;;  %v2821_v32 = vrot.slane %v2817_v31, %v2804_v24  ;;  %v187_v33 = vmul.f32 %v2817_v31, %v2817_v31  ;;  %v2841_v43 = vpack.c.bf16 %v79_v37, %v78_v36  ;;  %v80_v45 = vld [vmem:[#allocation2 + $0x50] sm:$0xff]  ;;  %v81_v46 = vld [vmem:[#allocation2 + $0x58] sm:$0xff]  ;;  %v98_v47 = vld [vmem:[#allocation2 + $0xe0] sm:$0xff] }
  0x1d   :  { %2452 = vmatprep.subr.bf16.mxu0 %v2801_v19  ;;  %2484 = vmatprep.subr.bf16.mxu1 %v2801_v19  ;;  %v2845_v44 = vpack.c.bf16 %v97_v41, %v96_v40  ;;  %v99_v48 = vld [vmem:[#allocation2 + $0xe8] sm:$0xff]  ;;  %v2849_v49 = vpack.c.bf16 %v81_v46, %v80_v45  ;;  %v82_v51 = vld [vmem:[#allocation2 + $0x60] sm:$0xff]  ;;  %v100_v53 = vld [vmem:[#allocation2 + $0xf0] sm:$0xff] }
  0x1e   :  { %v2835_v38 = vcombine.high %v2821_v32, %v2821_v32  ;;  %v195_v39 = vrot.slane %v187_v33, %v2804_v24  ;;  %v2853_v50 = vpack.c.bf16 %v99_v48, %v98_v47  ;;  %v83_v52 = vld [vmem:[#allocation2 + $0x68] sm:$0xff]  ;;  %v101_v54 = vld [vmem:[#allocation2 + $0xf8] sm:$0xff]  ;;  %v84_v57 = vld [vmem:[#allocation2 + $0x70] sm:$0xff] }
  0x1f   :  { %v2857_v55 = vpack.c.bf16 %v83_v52, %v82_v51  ;;  %v2861_v56 = vpack.c.bf16 %v101_v54, %v100_v53  ;;  %v85_v58 = vld [vmem:[#allocation2 + $0x78] sm:$0xff]  ;;  %v104_v3 = vld [vmem:[%s3271_s5] sm:$0x3] }
  0x20   :  { %2454 = vmatpush3.bf16.msra.mxu0 %v2808_v25  ;;  %2486 = vmatpush3.bf16.msra.mxu1 %v2808_v25  ;;  %v196_v42 = vcombine.high %v195_v39, %v195_v39  ;;  %v2865_v59 = vpack.c.bf16 %v85_v58, %v84_v57  ;;  %v103_v4 = vld [vmem:[%s3270_s4] sm:$0x3] }
  0x21   :  { %2456 = vmatprep.subr.bf16.mxu0 %v2812_v26  ;;  %2488 = vmatprep.subr.bf16.mxu1 %v2812_v26  ;;  %v105_v15 = vld [vmem:[%s3272_s6] sm:$0x3]  ;;  %s2687_s6 = smov 1  }
  0x22   :  { %181 = vmatprep.mubr.f32.mxu0 %v2835_v38  ;;  %263 = vmatprep.mubr.f32.mxu1 %v196_v42  ;;  %v2909_v21 = vld.sshfl [vmem:[%s3269_s3] sm:$0x33 pattern:$0x76325410]  ;;  %s2686_s3 = smov 127  }
  0x23   :  { %575 = vperm.xlu0 %2605, %v103_v4   ;;  %v2913_v22 = vcombine.high %v2909_v21, %v2909_v21  ;;  %771 = vperm.xlu1 %2607, %v103_v4  }
  0x24   :  { %2458 = vmatpush3.bf16.msra.mxu0 %v2827_v34  ;;  %2490 = vmatpush3.bf16.msra.mxu1 %v2827_v34 }
  0x25   :  { %2460 = vmatprep.subr.bf16.mxu0 %v2831_v35  ;;  %2492 = vmatprep.subr.bf16.mxu1 %v2831_v35 }
  0x27   :  { %2606 = vset.pattern.permute.xlu0 %v2677_v7  ;;  %2608 = vset.pattern.permute.xlu1 %v3283_v27 }
  0x28   :  { %2462 = vmatpush3.bf16.msra.mxu0 %v2841_v43  ;;  %2494 = vmatpush3.bf16.msra.mxu1 %v2841_v43 }
  0x29   :  { %2464 = vmatprep.subr.bf16.mxu0 %v2845_v44  ;;  %2496 = vmatprep.subr.bf16.mxu1 %v2845_v44 }
  0x2a   :  { %581 = vperm.xlu0 %2606, %v103_v4   ;;  %998 = vperm.xlu1 %2608, %v103_v4  }
  0x2c   :  { %2466 = vmatpush3.bf16.msra.mxu0 %v2849_v49  ;;  %2498 = vmatpush3.bf16.msra.mxu1 %v2849_v49 }
  0x2d   :  { %2468 = vmatprep.subr.bf16.mxu0 %v2853_v50  ;;  %2500 = vmatprep.subr.bf16.mxu1 %v2853_v50 }
  0x2e   :  { %2620 = vset.pattern.permute.xlu0 %v2676_v5  ;;  %2619 = vset.pattern.permute.xlu1 %v2676_v5 }
  0x30   :  { %2470 = vmatpush3.bf16.msra.mxu0 %v2857_v55  ;;  %2502 = vmatpush3.bf16.msra.mxu1 %v2857_v55 }
  0x31   :  { %2472 = vmatprep.subr.bf16.mxu0 %v2861_v56  ;;  %2504 = vmatprep.subr.bf16.mxu1 %v2861_v56 }
  0x34   :  { %2474 = vmatpush3.bf16.msra.mxu0 %v2865_v59  ;;  %2506 = vmatpush3.bf16.msra.mxu1 %v2865_v59 }
  0x35   :  { %2403 = vmatprep.subr.mxu0 %v3285_v60  ;;  %2408 = vmatprep.subr.mxu1 %v3285_v60 }
  0x37   :  { %182 = vmatmul.mubr.f32.vlgmr.msra.gmra.mrb[0].mxu0 %v2821_v32  ;;  %264 = vmatmul.mubr.f32.vlgmr.msra.gmra.mrb[0].mxu1 %v195_v39 }
  0x38   :  { %2405 = vmatprep.mubr.msk.f32.mxu0 %vm2675_vm0, %v3285_v60  ;;  %2410 = vmatprep.mubr.msk.f32.mxu1 %vm2675_vm0, %v3285_v60 }
  0xa2   :  { %v576_v37 = vpop.permute.xlu0 %575 }
  0xa9   :  { %v582_v41 = vpop.permute.xlu0 %581 }
 0x10a   :  { %v2279_v61 = vpop.f32.mrb[0].mxu0  ;;  %v2314_v62 = vpop.f32.mrb[0].mxu1 }
 0x10b   :  { %v2280_v63 = vpop.f32.mrb[1].mxu0  ;;  %v2315_v0 = vpop.f32.mrb[1].mxu1 }
 0x10c   :  { %v2281_v1 = vadd.f32 %v2280_v63, %v2279_v61  ;;  %v2316_v2 = vadd.f32 %v2315_v0, %v2314_v62  ;;  %v772_v62 = vpop.permute.xlu1 %771 }
 0x10e   :  { %2404 = vmatpush3.msk.msra.mxu0 %vm273_vm1, %v2281_v1  ;;  %2409 = vmatpush3.msk.msra.mxu1 %vm273_vm1, %v2316_v2 }
 0x10f   :  { %2406 = vmatmul.mubr.msk.f32.vlgmr.msra.gmra.mrb[2].mxu0 %vm269_vm2, %v104_v3  ;;  %2411 = vmatmul.mubr.msk.f32.vlgmr.msra.gmra.mrb[2].mxu1 %vm269_vm2, %v104_v3 }
 0x110   :  { %2413 = vmatprep.subr.mxu0 %v3285_v60  ;;  %2418 = vmatprep.subr.mxu1 %v3285_v60 }
 0x111   :  { %2420 = vmatprep.mubr.msk.f32.mxu1 %vm2675_vm0, %v3285_v60  ;;  %2415 = vmatprep.mubr.msk.f32.mxu0 %vm2675_vm0, %v3285_v60 }
 0x1e2   :  { %v343_v8 = vpop.f32.mrb[2].mxu0  ;;  %v416_v9 = vpop.f32.mrb[2].mxu1 }
 0x1e3   :  { %v420_v12 = vmul.f32 %v343_v8, %v343_v8  ;;  %v2407_v13 = vpop.f32.mrb[3].mxu0  ;;  %2414 = vmatpush3.msk.msra.mxu0 %vm273_vm1, %v343_v8  ;;  %v2412_v14 = vpop.f32.mrb[3].mxu1 }
 0x1e4   :  { %2416 = vmatmul.mubr.msk.f32.vlgmr.msra.gmra.mrb[4].mxu0 %vm269_vm2, %v105_v15  ;;  %2201 = vmatprep.subr.msk.mxu0 %vm273_vm1, %v2913_v22 }
 0x1e5   :  { %v421_v16 = vsub.f32 %v416_v9, %v420_v12  ;;  %665 = vmatprep.mubr.f32.mxu0 %v3285_v60  ;;  %2202 = vmatpush1.msk.msra.mxu0 %vm273_vm1, %v2909_v21 }
 0x1e7   :  { %v422_v20 = vmax.f32 %v421_v16, 0.0 }
 0x1e9   :  { %2419 = vmatpush3.msk.msra.mxu1 %vm273_vm1, %v422_v20 }
 0x1ea   :  { %2421 = vmatmul.mubr.msk.f32.vlgmr.msra.gmra.mrb[4].mxu1 %vm269_vm2, %v105_v15  ;;  %2204 = vmatprep.subr.msk.mxu1 %vm273_vm1, %v2913_v22 }
 0x1eb   :  { %739 = vmatprep.mubr.f32.mxu1 %v3285_v60  ;;  %2205 = vmatpush1.msk.msra.mxu1 %vm273_vm1, %v2909_v21 }
 0x2b7   :  { %v495_v28 = vpop.f32.mrb[4].mxu0 }
 0x2b8   :  { %v2417_v29 = vpop.f32.mrb[5].mxu0 }
 0x2bd   :  { %v568_v30 = vpop.f32.mrb[4].mxu1 }
 0x2be   :  { %v569_v33 = vadd.f32 1e-05, %v568_v30  ;;  %v2422_v36 = vpop.f32.mrb[5].mxu1 }
 0x2c0   :  { %2626 = vrsqrt.f32 %v569_v33 }
 0x2ca   :  { %v2627_v39 = vpop.eup %2626 }
 0x2cb   :  { %v578_v40 = vmul.f32 %v2627_v39, %v576_v37 }
 0x2cd   :  { %v579_v42 = vmul.f32 %v578_v40, %v495_v28  ;;  %2203 = vmatmul.mubr.msk.f32.vlgmr.msra.gmra.mrb[6].mxu0 %vm269_vm2, %v578_v40  ;;  %v2680_v40 = vmov 683565275  }
 0x2ce   :  { %1084 = vmatprep.mubr.bf16.mxu0 %v2676_v5 }
 0x2cf   :  { %v584_v45 = vsub.f32 %v582_v41, %v579_v42 }
 0x2d1   :  { %2206 = vmatmul.mubr.msk.f32.vlgmr.msra.gmra.mrb[6].mxu1 %vm269_vm2, %v584_v45  ;;  %v3289_v45 = vmov 2475754826  }
 0x2d2   :  { %1134 = vmatprep.mubr.bf16.mxu1 %v2676_v5 }
 0x3a0   :  { %v667_v46 = vpop.f32.mrb[6].mxu0 }
 0x3a1   :  { %v669_v47 = vpop.f32.mrb[7].mxu0 }
 0x3a2   :  { %v748_v48 = vcombine.low %v667_v46, %v669_v47  ;;  %v3287_v47 = vmov 2131351028  }
 0x3a4   :  { %v755_v51 = vrot.slane %v748_v48, %v2804_v24  ;;  %v741_v52 = vpop.f32.mrb[6].mxu1 }
 0x3a5   :  { %v743_v53 = vpop.f32.mrb[7].mxu1 }
 0x3a6   :  { %v760_v54 = vcombine.low %v741_v52, %v743_v53  ;;  %v757_v57 = vmul.f32 %v755_v51, %v2817_v31  ;;  %v2683_v51 = vmov 2102212464   ;;  %v2684_v53 = vmov 920167782  }
 0x3a8   :  { %v767_v58 = vrot.slane %v760_v54, %v2804_v24 }
 0x3aa   :  { %v2933_v61 = vadd.f32 %v767_v58, %v757_v57 }
 0x3ac   :  { %v781_v63 = vrot.slane %v2933_v61, %v2804_v24 }
 0x3ae   :  { %v782_v0 = vcombine.high %v781_v63, %v781_v63  ;;  %v2937_v1 = vmul.f32 %v781_v63, %v772_v62 }
 0x3b0   :  { %v2939_v2 = vmul.f32 %v782_v0, %v772_v62  ;;  %v787_v3 = vand.u32 2147483647, %v2937_v1  ;;  %v790_v4 = vand.u32 2139095040, %v2937_v1 }
 0x3b2   :  { %v791_v8 = vshrl.u32 %v790_v4, 23  ;;  %v794_v31 = vand.u32 8388607, %v787_v3  ;;  %v894_v9 = vand.u32 2139095040, %v2939_v2  ;;  %v891_v13 = vand.u32 2147483647, %v2939_v2 }
 0x3b3   :  { %v2685_v4 = vmov 1326507024  }
 0x3b4   :  { %v2207_v12 = vadd.s32 4294967169, %v791_v8  ;;  %v895_v14 = vshrl.u32 %v894_v9, 23  ;;  %v795_v16 = vor.u32 8388608, %v794_v31  ;;  %v898_v28 = vand.u32 8388607, %v891_v13 }
 0x3b6   :  { %v797_v15 = vadd.s32 1, %v2207_v12  ;;  %v2211_v20 = vadd.s32 4294967169, %v895_v14  ;;  %v2949_v37 = vshll.u32 %v795_v16, 8  ;;  %v899_v42 = vor.u32 8388608, %v898_v28 }
 0x3b8   :  { %vm798_vm3 = vcmp.gt.s32.totalorder %v797_v15, 0  ;;  %v901_v30 = vadd.s32 1, %v2211_v20 }
 0x3b9   :  { %v799_v29 = vsel %vm798_vm3, %v797_v15, 0 }
 0x3ba   :  { %v800_v33 = vshrl.u32 %v799_v29, 5  ;;  %v801_v36 = vand.u32 31, %v799_v29  ;;  %vm902_vm4 = vcmp.gt.s32.totalorder %v901_v30, 0 }
 0x3bb   :  { %v903_v14 = vsel %vm902_vm4, %v901_v30, 0  ;;  %vm789_vm4 = vcmp.lt.s32.totalorder %v2937_v1, 0 }
 0x3bc   :  { %v802_v39 = vsub.s32 32, %v801_v36  ;;  %v804_v41 = vshll.u32 %v2680_v40, %v801_v36  ;;  %v807_v46 = vshll.u32 %v3289_v45, %v801_v36  ;;  %v810_v48 = vshll.u32 %v3287_v47, %v801_v36 }
 0x3bd   :  { %v813_v52 = vshll.u32 %v2683_v51, %v801_v36  ;;  %v816_v54 = vshll.u32 %v2684_v53, %v801_v36  ;;  %vm819_vm5 = vcmp.lt.s32.totalorder %v800_v33, 1  ;;  %vm821_vm6 = vcmp.lt.s32.totalorder %v800_v33, 3 }
 0x3be   :  { %v805_v57 = vshrl.u32 %v3289_v45, %v802_v39  ;;  %v808_v58 = vshrl.u32 %v3287_v47, %v802_v39  ;;  %v811_v62 = vshrl.u32 %v2683_v51, %v802_v39  ;;  %v803_v63 = vshrl.u32 %v2680_v40, %v802_v39 }
 0x3bf   :  { %v814_v0 = vshrl.u32 %v2684_v53, %v802_v39  ;;  %v817_v8 = vshrl.u32 %v2685_v4, %v802_v39  ;;  %vm822_vm7 = vcmp.lt.s32.totalorder %v800_v33, 4  ;;  %v905_v20 = vand.u32 31, %v903_v14 }
 0x3c0   :  { %v806_v31 = vor.u32 %v805_v57, %v804_v41  ;;  %v809_v9 = vor.u32 %v808_v58, %v807_v46  ;;  %v812_v12 = vor.u32 %v811_v62, %v810_v48  ;;  %vm820_vm8 = vcmp.lt.s32.totalorder %v800_v33, 2 }
 0x3c1   :  { %v815_v15 = vor.u32 %v814_v0, %v813_v52  ;;  %v818_v16 = vor.u32 %v817_v8, %v816_v54  ;;  %v906_v41 = vsub.s32 32, %v905_v20  ;;  %v939_v48 = vshll.u32 %v899_v42, 8 }
 0x3c2   :  { %v823_v28 = vsel %vm819_vm5, %v803_v63, %v806_v31  ;;  %v824_v29 = vsel %vm822_vm7, %v812_v12, 2102212464  ;;  %v827_v36 = vsel %vm819_vm5, %v806_v31, %v809_v9  ;;  %v831_v27 = vsel %vm819_vm5, %v809_v9, %v812_v12 }
 0x3c3   :  { %v825_v23 = vsel %vm821_vm6, %v809_v9, %v824_v29  ;;  %v828_v39 = vsel %vm822_vm7, %v815_v15, 920167782  ;;  %v832_v60 = vsel %vm822_vm7, %v818_v16, 1326507024  ;;  %v904_v58 = vshrl.u32 %v903_v14, 5 }
 0x3c4   :  { %v829_v46 = vsel %vm821_vm6, %v812_v12, %v828_v39  ;;  %v833_v30 = vsel %vm821_vm6, %v815_v15, %v832_v60  ;;  %v826_v52 = vsel %vm820_vm8, %v823_v28, %v825_v23  ;;  %v908_v31 = vshll.u32 %v2680_v40, %v905_v20 }
 0x3c5   :  { %v830_v54 = vsel %vm820_vm8, %v827_v36, %v829_v46  ;;  %v834_v57 = vsel %vm820_vm8, %v831_v27, %v833_v30  ;;  %v909_v9 = vshrl.u32 %v3289_v45, %v906_v41  ;;  %v911_v60 = vshll.u32 %v3289_v45, %v905_v20 }
 0x3c6   :  { %v2970_v62 = vmul.u32.u64.low %v2949_v37, %v834_v57  ;;  %v2971_v63 = vmul.u32.u64.high %v2949_v37, %v834_v57, %v2970_v62  ;;  %v2974_v0 = vmul.u32.u64.low %v2949_v37, %v830_v54  ;;  %v2975_v8 = vmul.u32.u64.high %v2949_v37, %v830_v54, %v2974_v0 }
 0x3c7   :  { %v912_v23 = vshrl.u32 %v3287_v47, %v906_v41  ;;  %v914_v27 = vshll.u32 %v3287_v47, %v905_v20  ;;  %v915_v33 = vshrl.u32 %v2683_v51, %v906_v41  ;;  %v917_v42 = vshll.u32 %v2683_v51, %v905_v20 }
 0x3c8   :  { %v918_v12 = vshrl.u32 %v2684_v53, %v906_v41  ;;  %v910_v14 = vor.u32 %v909_v9, %v908_v31  ;;  %v920_v16 = vshll.u32 %v2684_v53, %v905_v20  ;;  %v921_v28 = vshrl.u32 %v2685_v4, %v906_v41 }
 0x3c9   :  { %v913_v15 = vor.u32 %v912_v23, %v911_v60  ;;  %v842_v29 = vmul.u32 %v2949_v37, %v826_v52  ;;  %vm844_vm9 = vc.u32 %v2971_v63, %v2974_v0  ;;  %v845_v36 = vadd.s32 1, %v2975_v8 }
 0x3ca   :  { %v916_v39 = vor.u32 %v915_v33, %v914_v27  ;;  %v907_v46 = vshrl.u32 %v2680_v40, %v906_v41  ;;  %v919_v30 = vor.u32 %v918_v12, %v917_v42  ;;  %v922_v54 = vor.u32 %v921_v28, %v920_v16 }
 0x3cb   :  { %vm923_vm10 = vcmp.lt.s32.totalorder %v904_v58, 1  ;;  %v846_v57 = vsel %vm844_vm9, %v845_v36, %v2975_v8  ;;  %vm925_vm11 = vcmp.lt.s32.totalorder %v904_v58, 3  ;;  %vm926_vm12 = vcmp.lt.s32.totalorder %v904_v58, 4 }
 0x3cc   :  { %v931_v20 = vsel %vm923_vm10, %v910_v14, %v913_v15  ;;  %v847_v62 = vadd.s32 %v846_v57, %v842_v29  ;;  %v928_v31 = vsel %vm926_vm12, %v916_v39, 2102212464  ;;  %v932_v9 = vsel %vm926_vm12, %v919_v30, 920167782 }
 0x3cd   :  { %v935_v37 = vsel %vm923_vm10, %v913_v15, %v916_v39  ;;  %vm924_vm13 = vcmp.lt.s32.totalorder %v904_v58, 2  ;;  %v927_v52 = vsel %vm923_vm10, %v907_v46, %v910_v14  ;;  %v933_v60 = vsel %vm925_vm11, %v916_v39, %v932_v9 }
 0x3ce   :  { %v936_v23 = vsel %vm926_vm12, %v922_v54, 1326507024  ;;  %v848_v47 = vadd.s32 536870912, %v847_v62  ;;  %v929_v27 = vsel %vm925_vm11, %v913_v15, %v928_v31  ;;  %v934_v33 = vsel %vm924_vm13, %v931_v20, %v933_v60 }
 0x3cf   :  { %v937_v41 = vsel %vm925_vm11, %v919_v30, %v936_v23  ;;  %v2994_v12 = vmul.u32.u64.low %v939_v48, %v934_v33  ;;  %v2995_v16 = vmul.u32.u64.high %v939_v48, %v934_v33, %v2994_v12  ;;  %v930_v29 = vsel %vm924_vm13, %v927_v52, %v929_v27 }
 0x3d0   :  { %v938_v42 = vsel %vm924_vm13, %v935_v37, %v937_v41  ;;  %v849_v8 = vshrl.u32 %v848_v47, 30  ;;  %v946_v14 = vmul.u32 %v939_v48, %v930_v29  ;;  %v843_v60 = vadd.s32 %v2974_v0, %v2971_v63 }
 0x3d1   :  { %v2997_v28 = vmul.u32.u64.low %v939_v48, %v938_v42  ;;  %v2998_v36 = vmul.u32.u64.high %v939_v48, %v938_v42, %v2997_v28  ;;  %v949_v45 = vadd.s32 1, %v2995_v16  ;;  %vm788_vm5 = vcmp.le.f32.partialorder %v787_v3, 0.7853982 }
 0x3d2   :  { %v850_v57 = vshll.u32 %v849_v8, 30  ;;  %vm893_vm6 = vcmp.lt.s32.totalorder %v2939_v2, 0  ;;  %vm892_vm7 = vcmp.le.f32.partialorder %v891_v13, 0.7853982  ;;  %vm879_vm11 = vweird.f32 %v2937_v1 }
 0x3d3   :  { %vm948_vm14 = vc.u32 %v2998_v36, %v2994_v12 }
 0x3d4   :  { %v851_v58 = vsub.s32 %v847_v62, %v850_v57  ;;  %v950_v15 = vsel %vm948_vm14, %v949_v45, %v2995_v16 }
 0x3d5   :  { %v951_v46 = vadd.s32 %v950_v15, %v946_v14 }
 0x3d6   :  { %v853_v39 = vsub.s32 0, %v851_v58 }
 0x3d7   :  { %v952_v54 = vadd.s32 536870912, %v951_v46 }
 0x3d8   :  { %v2208_v30 = vmin.u32 %v853_v39, %v851_v58 }
 0x3d9   :  { %v953_v31 = vshrl.u32 %v952_v54, 30 }
 0x3da   :  { %v855_v20 = vclz %v2208_v30  ;;  %v947_v30 = vadd.s32 %v2994_v12, %v2998_v36 }
 0x3db   :  { %v954_v9 = vshll.u32 %v953_v31, 30 }
 0x3dc   :  { %v2209_v47 = vadd.s32 4294967294, %v855_v20 }
 0x3dd   :  { %v955_v37 = vsub.s32 %v951_v46, %v954_v9  ;;  %v873_v9 = vsub.s32 4, %v849_v8 }
 0x3de   :  { %vm2210_vm15 = vcmp.lt.s32.totalorder %v2209_v47, 0 }
 0x3df   :  { %v858_v52 = vsel %vm2210_vm15, 0, %v2209_v47  ;;  %v957_v23 = vsub.s32 0, %v955_v37  ;;  %v874_v12 = vsel %vm789_vm4, %v873_v9, %v849_v8  ;;  %vm983_vm15 = vweird.f32 %v2939_v2 }
 0x3e0   :  { %v859_v62 = vsub.s32 32, %v858_v52  ;;  %v863_v48 = vsub.s32 4294967266, %v858_v52  ;;  %v860_v27 = vshll.u32 %v851_v58, %v858_v52 }
 0x3e1   :  { %v2212_v41 = vmin.u32 %v957_v23, %v955_v37 }
 0x3e2   :  { %v861_v33 = vshrl.u32 %v843_v60, %v859_v62  ;;  %v864_v45 = vadd.s32 127, %v863_v48 }
 0x3e3   :  { %v959_v28 = vclz %v2212_v41 }
 0x3e4   :  { %v862_v42 = vor.u32 %v861_v33, %v860_v27  ;;  %v865_v16 = vshll.u32 %v864_v45, 23  ;;  %v876_v33 = vsel %vm788_vm5, 0, %v874_v12  ;;  %v977_v45 = vsub.s32 4, %v953_v31 }
 0x3e5   :  { %v2213_v57 = vadd.s32 4294967294, %v959_v28 }
 0x3e6   :  { %v866_v29 = vor.u32 4788187, %v865_v16  ;;  %v869_v15 = vcvt.s32.f32 %v862_v42  ;;  %v880_v42 = vadd.s32 3, %v876_v33  ;;  %v978_v3 = vsel %vm893_vm6, %v977_v45, %v953_v31 }
 0x3e7   :  { %vm2214_vm3 = vcmp.lt.s32.totalorder %v2213_v57, 0 }
 0x3e8   :  { %v867_v14 = vand.u32 2147483647, %v866_v29  ;;  %v962_v39 = vsel %vm2214_vm3, 0, %v2213_v57  ;;  %v881_v57 = vand.u32 3, %v880_v42  ;;  %vm1045_vm3 = vcmask 1040384  }
 0x3e9   :  { %v963_v63 = vsub.s32 32, %v962_v39  ;;  %v967_v0 = vsub.s32 4294967266, %v962_v39  ;;  %v964_v20 = vshll.u32 %v955_v37, %v962_v39 }
 0x3ea   :  { %v870_v46 = vmul.f32 %v869_v15, %v867_v14  ;;  %v980_v14 = vsel %vm892_vm7, 0, %v978_v3  ;;  %vm883_vm8 = vcmp.eq.s32.totalorder %v881_v57, 0  ;;  %vm886_vm9 = vcmp.eq.s32.totalorder %v881_v57, 2 }
 0x3eb   :  { %v965_v58 = vshrl.u32 %v947_v30, %v963_v63  ;;  %v968_v47 = vadd.s32 127, %v967_v0  ;;  %vm882_vm10 = vcmp.lt.s32.totalorder %v881_v57, 2 }
 0x3ec   :  { %v871_v54 = vxor.u32 2147483648, %v870_v46 }
 0x3ed   :  { %v966_v60 = vor.u32 %v965_v58, %v964_v20  ;;  %v969_v62 = vshll.u32 %v968_v47, 23 }
 0x3ee   :  { %v872_v52 = vsel %vm789_vm4, %v871_v54, %v870_v46  ;;  %v984_v46 = vadd.s32 3, %v980_v14  ;;  %vm1147_vm4 = vcmask 1039360  }
 0x3ef   :  { %v875_v48 = vsel %vm788_vm5, %v2937_v1, %v872_v52  ;;  %v970_v23 = vor.u32 4788187, %v969_v62  ;;  %v973_v27 = vcvt.s32.f32 %v966_v60  ;;  %vm1028_vm5 = vcmask 7168  }
 0x3f0   :  { %2628 = vcosq.f32 %v875_v48  ;;  %v985_v0 = vand.u32 3, %v984_v46 }
 0x3f1   :  { %2630 = vsinq.f32 %v875_v48  ;;  %v971_v36 = vand.u32 2147483647, %v970_v23  ;;  %v999_v48 = vpop.permute.xlu1 %998 }
 0x3f2   :  { %vm990_vm12 = vcmp.eq.s32.totalorder %v985_v0, 2  ;;  %vm987_vm13 = vcmp.eq.s32.totalorder %v985_v0, 0  ;;  %vm986_vm14 = vcmp.lt.s32.totalorder %v985_v0, 2 }
 0x3f3   :  { %v974_v37 = vmul.f32 %v973_v27, %v971_v36 }
 0x3f5   :  { %v975_v41 = vxor.u32 2147483648, %v974_v37 }
 0x3f7   :  { %v976_v16 = vsel %vm893_vm6, %v975_v41, %v974_v37  ;;  %vm1374_vm6 = vcmask 64512  }
 0x3f8   :  { %v979_v28 = vsel %vm892_vm7, %v2939_v2, %v976_v16 }
 0x3f9   :  { %2632 = vcosq.f32 %v979_v28 }
 0x3fa   :  { %v2629_v29 = vpop.eup %2628  ;;  %2634 = vsinq.f32 %v979_v28  ;;  %v1208_v28 = vld [vmem:[%s3274_s8] sm:$0xff] }
 0x3fb   :  { %v2631_v8 = vpop.eup %2630  ;;  %v887_v39 = vxor.u32 2147483648, %v2629_v29 }
 0x3fc   :  { %v884_v15 = vxor.u32 2147483648, %v2631_v8 }
 0x3fd   :  { %v888_v63 = vsel %vm886_vm9, %v887_v39, %v2631_v8 }
 0x3fe   :  { %v885_v30 = vsel %vm883_vm8, %v2629_v29, %v884_v15 }
 0x3ff   :  { %v889_v54 = vsel %vm882_vm10, %v885_v30, %v888_v63 }
 0x400   :  { %v890_v58 = vsel %vm879_vm11, nan, %v889_v54 }
 0x401   :  { %v995_v62 = vmul.f32 %v890_v58, %v890_v58  ;;  %v1033_v58 = vld [vmem:[%s3273_s7] sm:$0xf] }
 0x403   :  { %v2633_v13 = vpop.eup %2632  ;;  %v1001_v36 = vmul.f32 %v999_v48, %v995_v62 }
 0x404   :  { %v2635_v31 = vpop.eup %2634  ;;  %v991_v20 = vxor.u32 2147483648, %v2633_v13 }
 0x405   :  { %v988_v47 = vxor.u32 2147483648, %v2635_v31 }
 0x406   :  { %v992_v9 = vsel %vm990_vm12, %v991_v20, %v2635_v31 }
 0x407   :  { %v989_v52 = vsel %vm987_vm13, %v2633_v13, %v988_v47  ;;  %v2220_v47 = vld [vmem:[%s3273_s7 + $0x8] sm:$0xf] }
 0x408   :  { %v993_v60 = vsel %vm986_vm14, %v989_v52, %v992_v9 }
 0x409   :  { %v994_v23 = vsel %vm983_vm15, nan, %v993_v60 }
 0x40a   :  { %v996_v12 = vmul.f32 %v994_v23, %v994_v23 }
 0x40c   :  { %v1002_v27 = vmul.f32 %v999_v48, %v996_v12 }
 0x40e   :  { %v1005_v37 = vcombine.low %v1001_v36, %v1002_v27 }
 0x410   :  { %v1012_v1 = vrot.slane %v1005_v37, %v2804_v24 }
 0x412   :  { %v1014_v33 = vadd.f32 %v1012_v1, %v2933_v61 }
 0x414   :  { %v1022_v45 = vrot.slane %v1014_v33, %v2804_v24  ;;  %v2215_v24 = vld [vmem:[%s3273_s7 + $0x4] sm:$0xf] }
 0x416   :  { %v1023_v41 = vcombine.high %v1022_v45, %v1022_v45  ;;  %v1040_v42 = vpack.c.bf16 %v1022_v45, %v1022_v45 }
 0x418   :  { %v2614_v16 = vpack.i.bf16 %v1023_v41, %v1022_v45  ;;  %v1041_v3 = vpack.c.bf16 %v1023_v41, %v1023_v41  ;;  %v1047_v2 = vsel %vm1045_vm3, %v1040_v42, 0 }
 0x41a   :  { %2615 = vrot.lane.b32.xlu0 %v2614_v16, %s2686_s3  ;;  %2610 = vrot.lane.b32.xlu1 %v2614_v16, %s2687_s6 }
 0x41b   :  { %2216 = vmatprep.subr.msk.bf16.mxu0 %vm1045_vm3, %v1041_v3  ;;  %v1230_v3 = vld [vmem:[%s3276_s10] sm:$0xff] }
 0x41c   :  { %1053 = vmatpush1.bf16.msra.mxu0 %v1047_v2 }
 0x41e   :  { %1211 = vperm.xlu1 %2619, %v1208_v28  }
 0x41f   :  { %2217 = vmatmul.mubr.msk.bf16.vlgmr.msra.gmra.mrb[8].mxu0 %vm269_vm2, %v2215_v24  ;;  %v1229_v24 = vld [vmem:[%s3275_s9] sm:$0xff] }
 0x420   :  { %1197 = vmatprep.mubr.bf16.mxu0 %v2676_v5  ;;  %1667 = vperm.xlu0 %2620, %v1229_v24  }
 0x422   :  { %2621 = vset.pattern.permute.xlu1 %v2677_v7 }
 0x423   :  { %1673 = vperm.xlu1 %2621, %v1229_v24  }
 0x48c   :  { %v2616_v61 = vpop.permute.xlu0 %2615  ;;  %v2611_v29 = vpop.permute.xlu1 %2610 }
 0x48d   :  { %v2618_v8 = vunpack.i.h.bf16 %v2616_v61  ;;  %v2617_v57 = vunpack.i.l.bf16 %v2616_v61  ;;  %v2613_v14 = vunpack.i.h.bf16 %v2611_v29  ;;  %v2612_v15 = vunpack.i.l.bf16 %v2611_v29 }
 0x48e   :  { %v3294_v61 = vmov 2   ;;  %v3295_v29 = vmov 3  }
 0x48f   :  { %v1151_v39 = vsel %vm1147_vm4, %v2618_v8, 0.0  ;;  %v1029_v46 = vsel %vm1028_vm5, %v2612_v15, %v2613_v14  ;;  %v1032_v30 = vsel %vm1028_vm5, 0.0, %v2612_v15  ;;  %v1148_v63 = vsel %vm1147_vm4, %v2617_v57, %v2618_v8  ;;  %2622 = vset.pattern.permute.xlu1 %v3294_v61  ;;  %2623 = vset.pattern.permute.xlu0 %v3295_v29  ;;  %v1231_v14 = vld [vmem:[%s3277_s11] sm:$0xff] }
 0x490   :  { %v1155_v0 = vpack.c.bf16 %v1151_v39, %v1151_v39  ;;  %v1034_v54 = vpack.c.bf16 %v1032_v30, %v1032_v30  ;;  %v1035_v13 = vpack.c.bf16 %v1029_v46, %v1029_v46  ;;  %v1154_v31 = vpack.c.bf16 %v1148_v63, %v1148_v63  ;;  %1830 = vperm.xlu1 %2622, %v1229_v24  }
 0x491   :  { %2046 = vperm.xlu0 %2623, %v1229_v24  }
 0x492   :  { %2218 = vmatprep.subr.msk.bf16.mxu1 %vm1045_vm3, %v1035_v13  ;;  %2221 = vmatprep.subr.msk.bf16.mxu0 %vm1045_vm3, %v1155_v0  ;;  %v1097_v7 = vsel %vm1045_vm3, %v1034_v54, 0  ;;  %v1160_v20 = vsel %vm1045_vm3, %v1154_v31, 0  ;;  %v2115_v0 = vpack.c.bf16 %v2835_v38, %v2835_v38 }
 0x493   :  { %1103 = vmatpush1.bf16.msra.mxu1 %v1097_v7  ;;  %1166 = vmatpush1.bf16.msra.mxu0 %v1160_v20 }
 0x494   :  { %2508 = vmatprep.subr.bf16.mxu1 %v2785_v6  ;;  %2540 = vmatprep.subr.bf16.mxu0 %v2785_v6  ;;  %v3293_v6 = vmov 0.0  }
 0x495   :  { %2624 = vset.pattern.permute.xlu1 %v2676_v5  ;;  %2625 = vset.pattern.permute.xlu0 %v2676_v5 }
 0x496   :  { %2219 = vmatmul.mubr.msk.bf16.vlgmr.msra.gmra.mrb[8].mxu1 %vm269_vm2, %v1033_v58  ;;  %2222 = vmatmul.mubr.msk.bf16.vlgmr.msra.gmra.mrb[12].mxu0 %vm269_vm2, %v2220_v47 }
 0x497   :  { %2510 = vmatpush3.bf16.msra.mxu1 %v2787_v10  ;;  %2542 = vmatpush3.bf16.msra.mxu0 %v2787_v10 }
 0x498   :  { %2512 = vmatprep.subr.bf16.mxu1 %v2789_v11  ;;  %2544 = vmatprep.subr.bf16.mxu0 %v2789_v11 }
 0x49b   :  { %2514 = vmatpush3.bf16.msra.mxu1 %v2797_v18  ;;  %2546 = vmatpush3.bf16.msra.mxu0 %v2797_v18 }
 0x49c   :  { %2516 = vmatprep.subr.bf16.mxu1 %v2801_v19  ;;  %2548 = vmatprep.subr.bf16.mxu0 %v2801_v19 }
 0x49f   :  { %2518 = vmatpush3.bf16.msra.mxu1 %v2808_v25  ;;  %2550 = vmatpush3.bf16.msra.mxu0 %v2808_v25  ;;  %v1219_v25 = vsub.s32 0, %v2793_v17  ;;  %v1668_v38 = vpop.permute.xlu0 %1667 }
 0x4a0   :  { %2520 = vmatprep.subr.bf16.mxu1 %v2812_v26  ;;  %2552 = vmatprep.subr.bf16.mxu0 %v2812_v26  ;;  %v1212_v26 = vpop.permute.xlu1 %1211 }
 0x4a3   :  { %2522 = vmatpush3.bf16.msra.mxu1 %v2827_v34  ;;  %2554 = vmatpush3.bf16.msra.mxu0 %v2827_v34 }
 0x4a4   :  { %2524 = vmatprep.subr.bf16.mxu1 %v2831_v35  ;;  %2556 = vmatprep.subr.bf16.mxu0 %v2831_v35 }
 0x4a7   :  { %2526 = vmatpush3.bf16.msra.mxu1 %v2841_v43  ;;  %2558 = vmatpush3.bf16.msra.mxu0 %v2841_v43  ;;  %v69_v43 = vld [vmem:[%s3267_s1] sm:$0x3] }
 0x4a8   :  { %2528 = vmatprep.subr.bf16.mxu1 %v2845_v44  ;;  %2560 = vmatprep.subr.bf16.mxu0 %v2845_v44  ;;  %v1223_v44 = vsub.s32 1, %v2793_v17  ;;  %v3081_v48 = vrot.slane %v69_v43, %v1219_v25 }
 0x4aa   :  { %v3083_v12 = vrot.slane %v69_v43, %v1223_v44 }
 0x4ab   :  { %2530 = vmatpush3.bf16.msra.mxu1 %v2849_v49  ;;  %2562 = vmatpush3.bf16.msra.mxu0 %v2849_v49 }
 0x4ac   :  { %2532 = vmatprep.subr.bf16.mxu1 %v2853_v50  ;;  %2564 = vmatprep.subr.bf16.mxu0 %v2853_v50 }
 0x4af   :  { %2534 = vmatpush3.bf16.msra.mxu1 %v2857_v55  ;;  %2566 = vmatpush3.bf16.msra.mxu0 %v2857_v55 }
 0x4b0   :  { %2536 = vmatprep.subr.bf16.mxu1 %v2861_v56  ;;  %2568 = vmatprep.subr.bf16.mxu0 %v2861_v56 }
 0x4b3   :  { %2538 = vmatpush3.bf16.msra.mxu1 %v2865_v59  ;;  %2570 = vmatpush3.bf16.msra.mxu0 %v2865_v59 }
 0x4b4   :  { %2423 = vmatprep.subr.mxu1 %v3293_v6  ;;  %2433 = vmatprep.subr.mxu0 %v3293_v6 }
 0x4f2   :  { %v1086_v10 = vpop.f32.mrb[8].mxu0 }
 0x4f3   :  { %v1088_v11 = vpop.f32.mrb[9].mxu0 }
 0x4f4   :  { %v1090_v18 = vpop.f32.mrb[10].mxu0 }
 0x4f5   :  { %v1091_v19 = vpop.f32.mrb[11].mxu0  ;;  %v2113_v18 = vld [vmem:[%s3280_s14] sm:$0xf] }
 0x4f6   :  { %v2056_v19 = vld [vmem:[%s3279_s13] sm:$0xff] }
 0x4f7   :  { %2059 = vperm.xlu1 %2624, %v2056_v19  }
 0x569   :  { %v1136_v34 = vpop.f32.mrb[8].mxu1  ;;  %v1199_v35 = vpop.f32.mrb[12].mxu0 }
 0x56a   :  { %v1137_v49 = vadd.f32 %v1136_v34, %v1086_v10  ;;  %v1138_v50 = vpop.f32.mrb[9].mxu1  ;;  %v1201_v55 = vpop.f32.mrb[13].mxu0 }
 0x56b   :  { %v1139_v56 = vadd.f32 %v1138_v50, %v1088_v11  ;;  %v1140_v59 = vpop.f32.mrb[10].mxu1  ;;  %v1203_v9 = vpop.f32.mrb[14].mxu0 }
 0x56c   :  { %v1206_v52 = vadd.f32 %v1199_v35, %v1137_v49  ;;  %v1141_v60 = vpop.f32.mrb[11].mxu1  ;;  %v1204_v62 = vpop.f32.mrb[15].mxu0 }
 0x56d   :  { %v1207_v23 = vadd.f32 %v1201_v55, %v1139_v56  ;;  %v1674_v10 = vpop.permute.xlu1 %1673 }
 0x56e   :  { %v1214_v36 = vadd.f32 %v1212_v26, %v1206_v52 }
 0x56f   :  { %v1215_v27 = vadd.f32 %v1212_v26, %v1207_v23 }
 0x570   :  { %v3086_v37 = vmul.f32 %v3081_v48, %v1214_v36 }
 0x571   :  { %v3089_v17 = vmul.f32 %v3083_v12, %v1215_v27  ;;  %v1831_v43 = vpop.permute.xlu1 %1830 }
 0x572   :  { %v1302_v33 = vmul.f32 %v3086_v37, %v3086_v37 }
 0x573   :  { %1296 = vmatprep.mubr.f32.mxu1 %v3089_v17  ;;  %v1303_v1 = vmul.f32 %v3089_v17, %v3089_v17 }
 0x574   :  { %1297 = vmatmul.mubr.f32.vlgmr.msra.gmra.mrb[12].mxu1 %v3086_v37 }
 0x575   :  { %1368 = vmatprep.mubr.f32.mxu0 %v1303_v1  ;;  %2425 = vmatprep.mubr.msk.f32.mxu1 %vm2675_vm0, %v3293_v6 }
 0x576   :  { %1369 = vmatmul.mubr.f32.vlgmr.msra.gmra.mrb[16].mxu0 %v1302_v33 }
 0x577   :  { %2435 = vmatprep.mubr.msk.f32.mxu0 %vm2675_vm0, %v3293_v6 }
 0x647   :  { %v2357_v45 = vpop.f32.mrb[12].mxu1 }
 0x648   :  { %v2358_v41 = vpop.f32.mrb[13].mxu1 }
 0x649   :  { %v2359_v42 = vadd.f32 %v2358_v41, %v2357_v45  ;;  %v2392_v16 = vpop.f32.mrb[16].mxu0 }
 0x64a   :  { %v2393_v2 = vpop.f32.mrb[17].mxu0 }
 0x64b   :  { %v2394_v28 = vadd.f32 %v2393_v2, %v2392_v16  ;;  %2424 = vmatpush3.msra.mxu1 %v2359_v42 }
 0x64c   :  { %2426 = vmatmul.mubr.msk.f32.vlgmr.msra.gmra.mrb[14].mxu1 %vm1374_vm6, %v1230_v3  ;;  %2428 = vmatprep.subr.mxu1 %v3293_v6 }
 0x64d   :  { %2429 = vmatpush3.msra.mxu1 %v2394_v28  ;;  %2430 = vmatprep.mubr.msk.f32.mxu1 %vm2675_vm0, %v3293_v6 }
 0x64e   :  { %2438 = vmatprep.subr.mxu1 %v3293_v6 }
 0x650   :  { %2431 = vmatmul.mubr.msk.f32.vlgmr.msra.gmra.mrb[16].mxu1 %vm1374_vm6, %v1230_v3 }
 0x651   :  { %2440 = vmatprep.mubr.msk.f32.mxu1 %vm2675_vm0, %v3293_v6 }
 0x71f   :  { %v1444_v8 = vpop.f32.mrb[14].mxu1 }
 0x720   :  { %v2427_v57 = vpop.f32.mrb[15].mxu1  ;;  %2434 = vmatpush3.msra.mxu0 %v1444_v8  ;;  %v1518_v15 = vmul.f32 %v1444_v8, %v1444_v8 }
 0x721   :  { %2436 = vmatmul.mubr.msk.f32.vlgmr.msra.gmra.mrb[18].mxu0 %vm1374_vm6, %v1231_v14  ;;  %2227 = vmatprep.subr.msk.mxu0 %vm273_vm1, %v2913_v22 }
 0x722   :  { %2228 = vmatpush1.msk.msra.mxu0 %vm273_vm1, %v2909_v21  ;;  %1744 = vmatprep.mubr.f32.mxu0 %v3293_v6 }
 0x723   :  { %v1514_v39 = vpop.f32.mrb[16].mxu1 }
 0x724   :  { %v1519_v46 = vsub.f32 %v1514_v39, %v1518_v15  ;;  %v2432_v30 = vpop.f32.mrb[17].mxu1 }
 0x726   :  { %v1520_v63 = vmax.f32 %v1519_v46, 0.0 }
 0x728   :  { %2439 = vmatpush3.msra.mxu1 %v1520_v63 }
 0x729   :  { %2441 = vmatmul.mubr.msk.f32.vlgmr.msra.gmra.mrb[18].mxu1 %vm1374_vm6, %v1231_v14  ;;  %2230 = vmatprep.subr.msk.mxu1 %vm273_vm1, %v2913_v22  ;;  %v2114_v22 = vpack.c.bf16 %v2821_v32, %v2821_v32 }
 0x72a   :  { %2231 = vmatpush1.msk.msra.mxu1 %vm273_vm1, %v2909_v21  ;;  %1818 = vmatprep.mubr.f32.mxu1 %v3293_v6 }
 0x72b   :  { %2243 = vmatprep.subr.msk.bf16.mxu1 %vm1045_vm3, %v2115_v0  ;;  %v2120_v6 = vsel %vm1045_vm3, %v2114_v22, 0 }
 0x7f4   :  { %v1590_v54 = vpop.f32.mrb[18].mxu0 }
 0x7f5   :  { %v2437_v13 = vpop.f32.mrb[19].mxu0 }
 0x7f6   :  { %v3296_v13 = vmov 2475754826  }
 0x7fc   :  { %v1660_v31 = vpop.f32.mrb[18].mxu1 }
 0x7fd   :  { %v1661_v7 = vadd.f32 1e-05, %v1660_v31  ;;  %v2442_v20 = vpop.f32.mrb[19].mxu1 }
 0x7ff   :  { %2636 = vrsqrt.f32 %v1661_v7 }
 0x809   :  { %v2637_v58 = vpop.eup %2636 }
 0x80a   :  { %v1670_v47 = vmul.f32 %v2637_v58, %v1668_v38  ;;  %v3297_v58 = vmov 2131351028  }
 0x80c   :  { %v1671_v11 = vmul.f32 %v1670_v47, %v1590_v54  ;;  %2229 = vmatmul.mubr.msk.f32.vlgmr.msra.gmra.mrb[20].mxu0 %vm269_vm2, %v1670_v47 }
 0x80d   :  { %2104 = vmatprep.mubr.bf16.mxu0 %v2676_v5 }
 0x80e   :  { %v1676_v21 = vsub.f32 %v1674_v10, %v1671_v11 }
 0x810   :  { %2232 = vmatmul.mubr.msk.f32.vlgmr.msra.gmra.mrb[20].mxu1 %vm269_vm2, %v1676_v21 }
 0x811   :  { %2157 = vmatprep.mubr.bf16.mxu1 %v2676_v5  ;;  %2126 = vmatpush1.bf16.msra.mxu1 %v2120_v6  ;;  %v2168_v5 = vld [vmem:[%s3281_s15] sm:$0xff] }
 0x812   :  { %2171 = vperm.xlu1 %2624, %v2168_v5  }
 0x814   :  { %2244 = vmatmul.mubr.msk.bf16.vlgmr.msra.gmra.mrb[24].mxu1 %vm269_vm2, %v2113_v18 }
 0x8df   :  { %v1746_v32 = vpop.f32.mrb[20].mxu0 }
 0x8e0   :  { %v1748_v25 = vpop.f32.mrb[21].mxu0  ;;  %v1825_v26 = vmul.f32 %v1746_v32, %v3086_v37 }
 0x8e1   :  { %v1826_v34 = vmul.f32 %v1748_v25, %v3089_v17 }
 0x8e3   :  { %v1820_v35 = vpop.f32.mrb[20].mxu1 }
 0x8e4   :  { %v3156_v44 = vadd.f32 %v1825_v26, %v1820_v35  ;;  %v1822_v49 = vpop.f32.mrb[21].mxu1 }
 0x8e5   :  { %v3158_v50 = vadd.f32 %v1826_v34, %v1822_v49 }
 0x8e6   :  { %v3161_v55 = vmul.f32 %v1831_v43, %v3156_v44 }
 0x8e7   :  { %v3164_v56 = vmul.f32 %v1831_v43, %v3158_v50 }
 0x8e8   :  { %v1838_v59 = vand.u32 2139095040, %v3161_v55  ;;  %v1835_v9 = vand.u32 2147483647, %v3161_v55  ;;  %vm1837_vm5 = vcmp.lt.s32.totalorder %v3161_v55, 0 }
 0x8e9   :  { %v1942_v52 = vand.u32 2139095040, %v3164_v56  ;;  %v1939_v27 = vand.u32 2147483647, %v3164_v56 }
 0x8ea   :  { %v1839_v60 = vshrl.u32 %v1838_v59, 23  ;;  %v1842_v36 = vand.u32 8388607, %v1835_v9 }
 0x8eb   :  { %v1943_v62 = vshrl.u32 %v1942_v52, 23  ;;  %v3174_v45 = vand.u32 8388607, %v1939_v27 }
 0x8ec   :  { %v2233_v23 = vadd.s32 4294967169, %v1839_v60  ;;  %v1843_v33 = vor.u32 8388608, %v1842_v36 }
 0x8ed   :  { %v2237_v37 = vadd.s32 4294967169, %v1943_v62  ;;  %v1947_v29 = vor.u32 8388608, %v3174_v45 }
 0x8ee   :  { %v1845_v17 = vadd.s32 1, %v2233_v23  ;;  %v3178_v61 = vshll.u32 %v1843_v33, 8 }
 0x8ef   :  { %v1949_v1 = vadd.s32 1, %v2237_v37 }
 0x8f0   :  { %vm1846_vm0 = vcmp.gt.s32.totalorder %v1845_v17, 0 }
 0x8f1   :  { %v1847_v41 = vsel %vm1846_vm0, %v1845_v17, 0  ;;  %vm1950_vm1 = vcmp.gt.s32.totalorder %v1949_v1, 0  ;;  %vm1836_vm0 = vcmp.le.f32.partialorder %v1835_v9, 0.7853982 }
 0x8f2   :  { %v1848_v42 = vshrl.u32 %v1847_v41, 5  ;;  %v1849_v16 = vand.u32 31, %v1847_v41  ;;  %v1951_v3 = vsel %vm1950_vm1, %v1949_v1, 0  ;;  %vm1941_vm1 = vcmp.lt.s32.totalorder %v3164_v56, 0 }
 0x8f3   :  { %v1953_v2 = vand.u32 31, %v1951_v3  ;;  %v3176_v24 = vshrl.u32 %v1951_v3, 5 }
 0x8f4   :  { %v1850_v28 = vsub.s32 32, %v1849_v16  ;;  %v1861_v8 = vshll.u32 %v2683_v51, %v1849_v16  ;;  %v1864_v57 = vshll.u32 %v2684_v53, %v1849_v16  ;;  %vm1870_vm2 = vcmp.lt.s32.totalorder %v1848_v42, 4 }
 0x8f5   :  { %v1954_v14 = vsub.s32 32, %v1953_v2  ;;  %v1965_v46 = vshll.u32 %v2683_v51, %v1953_v2  ;;  %v1968_v30 = vshll.u32 %v2684_v53, %v1953_v2  ;;  %v1852_v54 = vshll.u32 %v2680_v40, %v1849_v16 }
 0x8f6   :  { %v1862_v15 = vshrl.u32 %v2684_v53, %v1850_v28  ;;  %v1865_v39 = vshrl.u32 %v2685_v4, %v1850_v28  ;;  %v1853_v31 = vshrl.u32 %v3296_v13, %v1850_v28  ;;  %v1855_v38 = vshll.u32 %v3296_v13, %v1849_v16 }
 0x8f7   :  { %v1966_v63 = vshrl.u32 %v2684_v53, %v1954_v14  ;;  %v1969_v0 = vshrl.u32 %v2685_v4, %v1954_v14  ;;  %v1856_v47 = vshrl.u32 %v3297_v58, %v1850_v28  ;;  %vm1974_vm7 = vcmp.lt.s32.totalorder %v3176_v24, 4 }
 0x8f8   :  { %v1863_v7 = vor.u32 %v1862_v15, %v1861_v8  ;;  %v1866_v20 = vor.u32 %v1865_v39, %v1864_v57  ;;  %v1854_v10 = vor.u32 %v1853_v31, %v1852_v54  ;;  %v1858_v11 = vshll.u32 %v3297_v58, %v1849_v16 }
 0x8f9   :  { %v1859_v21 = vshrl.u32 %v2683_v51, %v1850_v28  ;;  %v1851_v22 = vshrl.u32 %v2680_v40, %v1850_v28  ;;  %v1857_v6 = vor.u32 %v1856_v47, %v1855_v38  ;;  %v1967_v18 = vor.u32 %v1966_v63, %v1965_v46 }
 0x8fa   :  { %v1876_v53 = vsel %vm1870_vm2, %v1863_v7, 920167782  ;;  %v1880_v4 = vsel %vm1870_vm2, %v1866_v20, 1326507024  ;;  %v1970_v19 = vor.u32 %v1969_v0, %v1968_v30  ;;  %vm1867_vm8 = vcmp.lt.s32.totalorder %v1848_v42, 1 }
 0x8fb   :  { %v1860_v5 = vor.u32 %v1859_v21, %v1858_v11  ;;  %vm1868_vm9 = vcmp.lt.s32.totalorder %v1848_v42, 2  ;;  %vm1869_vm10 = vcmp.lt.s32.totalorder %v1848_v42, 3  ;;  %v1871_v32 = vsel %vm1867_vm8, %v1851_v22, %v1854_v10 }
 0x8fc   :  { %v1875_v25 = vsel %vm1867_vm8, %v1854_v10, %v1857_v6  ;;  %v1881_v43 = vsel %vm1869_vm10, %v1863_v7, %v1880_v4  ;;  %v1956_v60 = vshll.u32 %v2680_v40, %v1953_v2  ;;  %v1957_v37 = vshrl.u32 %v3296_v13, %v1954_v14 }
 0x8fd   :  { %v1872_v26 = vsel %vm1870_vm2, %v1860_v5, 2102212464  ;;  %v1877_v34 = vsel %vm1869_vm10, %v1860_v5, %v1876_v53  ;;  %v1879_v35 = vsel %vm1867_vm8, %v1857_v6, %v1860_v5  ;;  %v1984_v17 = vsel %vm1974_vm7, %v1970_v19, 1326507024 }
 0x8fe   :  { %v1873_v49 = vsel %vm1869_vm10, %v1857_v6, %v1872_v26  ;;  %v1878_v59 = vsel %vm1868_vm9, %v1875_v25, %v1877_v34  ;;  %v1882_v52 = vsel %vm1868_vm9, %v1879_v35, %v1881_v43  ;;  %v1959_v45 = vshll.u32 %v3296_v13, %v1953_v2 }
 0x8ff   :  { %v1874_v62 = vsel %vm1868_vm9, %v1871_v32, %v1873_v49  ;;  %v3202_v23 = vmul.u32.u64.low %v3178_v61, %v1882_v52  ;;  %v3203_v36 = vmul.u32.u64.high %v3178_v61, %v1882_v52, %v3202_v23  ;;  %v1958_v41 = vor.u32 %v1957_v37, %v1956_v60 }
 0x900   :  { %v3209_v1 = vmul.u32.u64.low %v3178_v61, %v1878_v59  ;;  %v3210_v33 = vmul.u32.u64.high %v3178_v61, %v1878_v59, %v3209_v1  ;;  %v1960_v42 = vshrl.u32 %v3297_v58, %v1954_v14  ;;  %v1962_v16 = vshll.u32 %v3297_v58, %v1953_v2 }
 0x901   :  { %v1963_v3 = vshrl.u32 %v2683_v51, %v1954_v14  ;;  %v1980_v28 = vsel %vm1974_vm7, %v1967_v18, 920167782  ;;  %v1890_v8 = vmul.u32 %v3178_v61, %v1874_v62  ;;  %v1955_v57 = vshrl.u32 %v2680_v40, %v1954_v14 }
 0x902   :  { %v1987_v15 = vshll.u32 %v1947_v29, 8  ;;  %vm1892_vm11 = vc.u32 %v3203_v36, %v3209_v1  ;;  %v1961_v39 = vor.u32 %v1960_v42, %v1959_v45  ;;  %vm1973_vm12 = vcmp.lt.s32.totalorder %v3176_v24, 3 }
 0x903   :  { %v1964_v46 = vor.u32 %v1963_v3, %v1962_v16  ;;  %v1893_v30 = vadd.s32 1, %v3210_v33  ;;  %vm1971_vm13 = vcmp.lt.s32.totalorder %v3176_v24, 1  ;;  %vm1972_vm14 = vcmp.lt.s32.totalorder %v3176_v24, 2 }
 0x904   :  { %v1985_v51 = vsel %vm1973_vm12, %v1967_v18, %v1984_v17  ;;  %v1979_v61 = vsel %vm1971_vm13, %v1958_v41, %v1961_v39  ;;  %v1975_v14 = vsel %vm1971_vm13, %v1955_v57, %v1958_v41  ;;  %v1891_v59 = vadd.s32 %v3209_v1, %v3203_v36 }
 0x905   :  { %v1976_v2 = vsel %vm1974_vm7, %v1964_v46, 2102212464  ;;  %v1981_v63 = vsel %vm1973_vm12, %v1964_v46, %v1980_v28  ;;  %v1983_v40 = vsel %vm1971_vm13, %v1961_v39, %v1964_v46  ;;  %v1894_v29 = vsel %vm1892_vm11, %v1893_v30, %v3210_v33 }
 0x906   :  { %v1982_v0 = vsel %vm1972_vm14, %v1979_v61, %v1981_v63  ;;  %v1986_v54 = vsel %vm1972_vm14, %v1983_v40, %v1985_v51  ;;  %v1895_v13 = vadd.s32 %v1894_v29, %v1890_v8  ;;  %v1977_v31 = vsel %vm1973_vm12, %v1961_v39, %v1976_v2 }
 0x907   :  { %v3232_v7 = vmul.u32.u64.low %v1987_v15, %v1986_v54  ;;  %v3233_v20 = vmul.u32.u64.high %v1987_v15, %v1986_v54, %v3232_v7  ;;  %v3235_v38 = vmul.u32.u64.low %v1987_v15, %v1982_v0  ;;  %v3236_v58 = vmul.u32.u64.high %v1987_v15, %v1982_v0, %v3235_v38 }
 0x908   :  { %v1896_v47 = vadd.s32 536870912, %v1895_v13  ;;  %v1978_v10 = vsel %vm1972_vm14, %v1975_v14, %v1977_v31  ;;  %vm1940_vm2 = vcmp.le.f32.partialorder %v1939_v27, 0.7853982  ;;  %vm1927_vm10 = vweird.f32 %v3161_v55 }
 0x909   :  { %vm1996_vm15 = vc.u32 %v3233_v20, %v3235_v38  ;;  %v1997_v21 = vadd.s32 1, %v3236_v58  ;;  %v1994_v4 = vmul.u32 %v1987_v15, %v1978_v10  ;;  %v1995_v57 = vadd.s32 %v3235_v38, %v3233_v20 }
 0x90a   :  { %v1897_v11 = vshrl.u32 %v1896_v47, 30  ;;  %vm2031_vm14 = vweird.f32 %v3164_v56 }
 0x90b   :  { %v1998_v22 = vsel %vm1996_vm15, %v1997_v21, %v3236_v58  ;;  %vm2065_vm15 = vcmask 1043456  }
 0x90c   :  { %v1898_v53 = vshll.u32 %v1897_v11, 30  ;;  %v1999_v18 = vadd.s32 %v1998_v22, %v1994_v4  ;;  %v1921_v1 = vsub.s32 4, %v1897_v11 }
 0x90e   :  { %v1899_v6 = vsub.s32 %v1895_v13, %v1898_v53  ;;  %v2000_v5 = vadd.s32 536870912, %v1999_v18  ;;  %v1922_v29 = vsel %vm1837_vm5, %v1921_v1, %v1897_v11 }
 0x90f   :  { %v1924_v54 = vsel %vm1836_vm0, 0, %v1922_v29 }
 0x910   :  { %v1901_v19 = vsub.s32 0, %v1899_v6  ;;  %v2001_v25 = vshrl.u32 %v2000_v5, 30  ;;  %v1928_v38 = vadd.s32 3, %v1924_v54 }
 0x912   :  { %v2234_v32 = vmin.u32 %v1901_v19, %v1899_v6  ;;  %v2002_v34 = vshll.u32 %v2001_v25, 30  ;;  %v2025_v20 = vsub.s32 4, %v2001_v25  ;;  %v1929_v10 = vand.u32 3, %v1928_v38 }
 0x914   :  { %v1903_v26 = vclz %v2234_v32  ;;  %v2003_v24 = vsub.s32 %v1999_v18, %v2002_v34  ;;  %v2026_v47 = vsel %vm1941_vm1, %v2025_v20, %v2001_v25  ;;  %vm1934_vm7 = vcmp.eq.s32.totalorder %v1929_v10, 2  ;;  %v2047_v25 = vpop.permute.xlu0 %2046 }
 0x915   :  { %v2028_v53 = vsel %vm1940_vm2, 0, %v2026_v47  ;;  %vm1931_vm8 = vcmp.eq.s32.totalorder %v1929_v10, 0  ;;  %vm1930_vm9 = vcmp.lt.s32.totalorder %v1929_v10, 2 }
 0x916   :  { %v2235_v35 = vadd.s32 4294967294, %v1903_v26  ;;  %v2005_v49 = vsub.s32 0, %v2003_v24  ;;  %v2032_v19 = vadd.s32 3, %v2028_v53 }
 0x918   :  { %vm2236_vm3 = vcmp.lt.s32.totalorder %v2235_v35, 0  ;;  %v2238_v62 = vmin.u32 %v2005_v49, %v2003_v24  ;;  %v2033_v26 = vand.u32 3, %v2032_v19 }
 0x919   :  { %v1906_v43 = vsel %vm2236_vm3, 0, %v2235_v35 }
 0x91a   :  { %v1907_v52 = vsub.s32 32, %v1906_v43  ;;  %v1911_v60 = vsub.s32 4294967266, %v1906_v43  ;;  %v1908_v23 = vshll.u32 %v1899_v6, %v1906_v43  ;;  %v2007_v33 = vclz %v2238_v62 }
 0x91b   :  { %vm2038_vm11 = vcmp.eq.s32.totalorder %v2033_v26, 2  ;;  %vm2035_vm12 = vcmp.eq.s32.totalorder %v2033_v26, 0  ;;  %vm2034_vm13 = vcmp.lt.s32.totalorder %v2033_v26, 2 }
 0x91c   :  { %v1909_v37 = vshrl.u32 %v1891_v59, %v1907_v52  ;;  %v1912_v17 = vadd.s32 127, %v1911_v60  ;;  %v2239_v42 = vadd.s32 4294967294, %v2007_v33 }
 0x91e   :  { %v1910_v45 = vor.u32 %v1909_v37, %v1908_v23  ;;  %v1913_v41 = vshll.u32 %v1912_v17, 23  ;;  %vm2240_vm4 = vcmp.lt.s32.totalorder %v2239_v42, 0 }
 0x91f   :  { %v2010_v8 = vsel %vm2240_vm4, 0, %v2239_v42 }
 0x920   :  { %v1914_v16 = vor.u32 4788187, %v1913_v41  ;;  %v1917_v28 = vcvt.s32.f32 %v1910_v45  ;;  %v2011_v15 = vsub.s32 32, %v2010_v8  ;;  %v2015_v39 = vsub.s32 4294967266, %v2010_v8 }
 0x921   :  { %v2012_v46 = vshll.u32 %v2003_v24, %v2010_v8  ;;  %v2060_v8 = vpop.permute.xlu1 %2059 }
 0x922   :  { %v1915_v3 = vand.u32 2147483647, %v1914_v16  ;;  %v2013_v30 = vshrl.u32 %v1995_v57, %v2011_v15  ;;  %v2016_v51 = vadd.s32 127, %v2015_v39  ;;  %v2053_v16 = vld [vmem:[%s3278_s12] sm:$0xf] }
 0x924   :  { %v1918_v36 = vmul.f32 %v1917_v28, %v1915_v3  ;;  %v2014_v61 = vor.u32 %v2013_v30, %v2012_v46  ;;  %v2017_v63 = vshll.u32 %v2016_v51, 23 }
 0x925   :  { %v2172_v51 = vpop.permute.xlu1 %2171 }
 0x926   :  { %v1919_v2 = vxor.u32 2147483648, %v1918_v36  ;;  %v2018_v0 = vor.u32 4788187, %v2017_v63  ;;  %v2021_v31 = vcvt.s32.f32 %v2014_v61 }
 0x928   :  { %v1920_v40 = vsel %vm1837_vm5, %v1919_v2, %v1918_v36  ;;  %v2019_v13 = vand.u32 2147483647, %v2018_v0 }
 0x929   :  { %v1923_v14 = vsel %vm1836_vm0, %v3161_v55, %v1920_v40 }
 0x92a   :  { %2638 = vcosq.f32 %v1923_v14  ;;  %v2022_v7 = vmul.f32 %v2021_v31, %v2019_v13 }
 0x92b   :  { %2640 = vsinq.f32 %v1923_v14 }
 0x92c   :  { %v2023_v58 = vxor.u32 2147483648, %v2022_v7 }
 0x92e   :  { %v2024_v9 = vsel %vm1941_vm1, %v2023_v58, %v2022_v7 }
 0x92f   :  { %v2027_v11 = vsel %vm1940_vm2, %v3164_v56, %v2024_v9  ;;  %v2159_v56 = vpop.f32.mrb[24].mxu1 }
 0x930   :  { %2642 = vcosq.f32 %v2027_v11  ;;  %v2161_v3 = vpop.f32.mrb[25].mxu1 }
 0x931   :  { %2644 = vsinq.f32 %v2027_v11 }
 0x934   :  { %v2639_v21 = vpop.eup %2638 }
 0x935   :  { %v2641_v4 = vpop.eup %2640  ;;  %v1935_v22 = vxor.u32 2147483648, %v2639_v21 }
 0x936   :  { %v1932_v6 = vxor.u32 2147483648, %v2641_v4 }
 0x937   :  { %v1936_v18 = vsel %vm1934_vm7, %v1935_v22, %v2641_v4 }
 0x938   :  { %v1933_v5 = vsel %vm1931_vm8, %v2639_v21, %v1932_v6 }
 0x939   :  { %v1937_v27 = vsel %vm1930_vm9, %v1933_v5, %v1936_v18 }
 0x93a   :  { %v1938_v32 = vsel %vm1927_vm10, nan, %v1937_v27  ;;  %v2643_v35 = vpop.eup %2642 }
 0x93b   :  { %v2043_v34 = vmul.f32 %v1938_v32, %v1938_v32  ;;  %v2645_v24 = vpop.eup %2644  ;;  %v2039_v43 = vxor.u32 2147483648, %v2643_v35 }
 0x93c   :  { %v2036_v59 = vxor.u32 2147483648, %v2645_v24 }
 0x93d   :  { %v2049_v49 = vmul.f32 %v2047_v25, %v2043_v34  ;;  %v2040_v52 = vsel %vm2038_vm11, %v2039_v43, %v2645_v24 }
 0x93e   :  { %v2037_v60 = vsel %vm2035_vm12, %v2643_v35, %v2036_v59 }
 0x93f   :  { %v2041_v62 = vsel %vm2034_vm13, %v2037_v60, %v2040_v52  ;;  %v2051_v55 = vadd.f32 %v2049_v49, %v3156_v44  ;;  %v2163_v44 = vpop.f32.mrb[26].mxu1 }
 0x940   :  { %v2042_v23 = vsel %vm2031_vm14, nan, %v2041_v62  ;;  %v2164_v28 = vpop.f32.mrb[27].mxu1 }
 0x941   :  { %v2044_v37 = vmul.f32 %v2042_v23, %v2042_v23  ;;  %v2054_v33 = vpack.c.bf16 %v2051_v55, %v2051_v55 }
 0x943   :  { %v2050_v17 = vmul.f32 %v2047_v25, %v2044_v37  ;;  %v2067_v42 = vsel %vm2065_vm15, %v2054_v33, 0 }
 0x945   :  { %v2052_v45 = vadd.f32 %v2050_v17, %v3158_v50 }
 0x947   :  { %v2055_v41 = vpack.c.bf16 %v2052_v45, %v2052_v45 }
 0x949   :  { %2241 = vmatprep.subr.msk.bf16.mxu0 %vm2065_vm15, %v2055_v41 }
 0x94a   :  { %2073 = vmatpush1.bf16.msra.mxu0 %v2067_v42 }
 0x94d   :  { %2242 = vmatmul.mubr.msk.bf16.vlgmr.msra.gmra.mrb[24].mxu0 %vm1374_vm6, %v2053_v16 }
 0xa20   :  { %v2106_v57 = vpop.f32.mrb[24].mxu0 }
 0xa21   :  { %v2107_v15 = vadd.f32 %v2106_v57, %v2060_v8  ;;  %v2108_v39 = vpop.f32.mrb[25].mxu0 }
 0xa22   :  { %v2109_v36 = vadd.f32 %v2108_v39, %v2060_v8  ;;  %v2110_v50 = vpop.f32.mrb[26].mxu0 }
 0xa23   :  { %v2166_v1 = vadd.f32 %v2159_v56, %v2107_v15  ;;  %v2111_v46 = vpop.f32.mrb[27].mxu0 }
 0xa24   :  { %v2167_v30 = vadd.f32 %v2161_v3, %v2109_v36 }
 0xa25   :  { %v2174_v2 = vadd.f32 %v2172_v51, %v2166_v1 }
 0xa26   :  { %v2175_v61 = vadd.f32 %v2172_v51, %v2167_v30 }
 0xa27   :  { %v2176_v63 = vmul.f32 %v2174_v2, %v3081_v48 }
 0xa28   :  { %v2177_v40 = vmul.f32 %v2175_v61, %v3083_v12 }
 0xa2a   :  { %v2246_v29 = vpack.c.bf16 %v2177_v40, %v2176_v63 }
 0xa2c   :  { %2186 = vst [vmem:[%s3282_s16] sm:$0xff] %v2246_v29 }
 0xa2d   :  { %2191 = vsyncpa [#allocation3], 1 }

// kernel: autoencoder_forward.16
= control target key start
LH: loop header
LB: loop body
LE: loop exit
PB: predicated region body
PF: predicated region fallthrough
CT: control target
= control target key end

     0   :  { %v3143_v53 = vmov 0.0   ;;  %vm2482_vm0 = vmmov 0   ;;  %vm230_vm1 = vcmask 64512   ;;  %v2483_v61 = vmov 0   ;;  %s3126_s2 = inlined_call_operand.vmem [shape: f32[256,2], index: 2, kind: input, shape index: {}]   ;;  %s3127_s0 = inlined_call_operand.vmem [shape: bf16[8,256], index: 0, kind: input, shape index: {}]   ;;  %s3128_s5 = inlined_call_operand.vmem [shape: f32[4,8], index: 5, kind: input, shape index: {}]   ;;  %s3129_s4 = inlined_call_operand.vmem [shape: f32[8,4], index: 4, kind: input, shape index: {}, may-alias: {4,9}]   ;;  %s3130_s6 = inlined_call_operand.vmem [shape: f32[8,4], index: 6, kind: input, shape index: {}]   ;;  %s3131_s3 = inlined_call_operand.vmem [shape: f32[2,256], index: 3, kind: input, shape index: {}]   ;;  %s3132_s8 = inlined_call_operand.vmem [shape: f32[8,1], index: 8, kind: input, shape index: {}]   ;;  %s3133_s7 = inlined_call_operand.vmem [shape: bf16[3,8,8], index: 7, kind: input, shape index: {}]   ;;  %s3134_s1 = inlined_call_operand.vmem [shape: f32[1,256], index: 1, kind: input, shape index: {}]   ;;  %s3135_s10 = inlined_call_operand.vmem [shape: f32[8,8], index: 10, kind: input, shape index: {}]   ;;  %s3136_s9 = inlined_call_operand.vmem [shape: f32[8,4], index: 9, kind: input, shape index: {}, may-alias: {4,9}]   ;;  %s3137_s11 = inlined_call_operand.vmem [shape: f32[8,8], index: 11, kind: input, shape index: {}]   ;;  %s3138_s13 = inlined_call_operand.vmem [shape: f32[8,1], index: 13, kind: input, shape index: {}]   ;;  %s3139_s12 = inlined_call_operand.vmem [shape: bf16[1,8,8], index: 12, kind: input, shape index: {}]   ;;  %s3140_s14 = inlined_call_operand.vmem [shape: bf16[8,256], index: 14, kind: output, shape index: {}]  }
   0x1   :  { %v68_v0 = vld [vmem:[%s3126_s2 + $0x80] sm:$0xff]  ;;  %v69_v1 = vld [vmem:[%s3126_s2 + $0x88] sm:$0xff]  ;;  %v70_v5 = vld [vmem:[%s3126_s2 + $0x90] sm:$0xff]  ;;  %2440 = vset.pattern.permute.xlu0 %v2483_v61  ;;  %v2484_v63 = vmov 1   ;;  %vm381_vm2 = vcmask 1043456   ;;  %vm377_vm3 = vcmask 31744  }
   0x2   :  { %v52_v2 = vld [vmem:[%s3126_s2] sm:$0xff]  ;;  %v2579_v3 = vpack.c.bf16 %v69_v1, %v68_v0  ;;  %v53_v4 = vld [vmem:[%s3126_s2 + $0x8] sm:$0xff]  ;;  %v71_v6 = vld [vmem:[%s3126_s2 + $0x98] sm:$0xff]  ;;  %vm554_vm4 = vcmask 1041408   ;;  %vm550_vm5 = vcmask 15360  }
   0x3   :  { %v2590_v7 = vpack.c.bf16 %v53_v4, %v52_v2  ;;  %v2592_v8 = vpack.c.bf16 %v71_v6, %v70_v5  ;;  %v54_v9 = vld [vmem:[%s3126_s2 + $0x10] sm:$0xff]  ;;  %v55_v10 = vld [vmem:[%s3126_s2 + $0x18] sm:$0xff]  ;;  %v72_v11 = vld [vmem:[%s3126_s2 + $0xa0] sm:$0xff] }
   0x4   :  { %2283 = vmatprep.subr.bf16.mxu0 %v2579_v3  ;;  %2315 = vmatprep.subr.bf16.mxu1 %v2579_v3  ;;  %v73_v12 = vld [vmem:[%s3126_s2 + $0xa8] sm:$0xff]  ;;  %v2610_v13 = vpack.c.bf16 %v55_v10, %v54_v9  ;;  %v56_v15 = vld [vmem:[%s3126_s2 + $0x20] sm:$0xff]  ;;  %v74_v17 = vld [vmem:[%s3126_s2 + $0xb0] sm:$0xff] }
   0x5   :  { %2285 = vmatpush3.bf16.msra.mxu0 %v2590_v7  ;;  %2317 = vmatpush3.bf16.msra.mxu1 %v2590_v7  ;;  %v2614_v14 = vpack.c.bf16 %v73_v12, %v72_v11  ;;  %v57_v16 = vld [vmem:[%s3126_s2 + $0x28] sm:$0xff]  ;;  %v75_v18 = vld [vmem:[%s3126_s2 + $0xb8] sm:$0xff]  ;;  %v58_v21 = vld [vmem:[%s3126_s2 + $0x30] sm:$0xff] }
   0x6   :  { %2287 = vmatprep.subr.bf16.mxu0 %v2592_v8  ;;  %2319 = vmatprep.subr.bf16.mxu1 %v2592_v8  ;;  %v2630_v19 = vpack.c.bf16 %v57_v16, %v56_v15  ;;  %v2634_v20 = vpack.c.bf16 %v75_v18, %v74_v17  ;;  %v59_v22 = vld [vmem:[%s3126_s2 + $0x38] sm:$0xff]  ;;  %v76_v23 = vld [vmem:[%s3126_s2 + $0xc0] sm:$0xff]  ;;  %v77_v24 = vld [vmem:[%s3126_s2 + $0xc8] sm:$0xff]  ;;  %v3142_v15 = vmov 2   ;;  %v3141_v16 = vmov 3  }
   0x7   :  { %v48_v25 = vld [vmem:[%s3127_s0] sm:$0xff]  ;;  %v2655_v27 = vpack.c.bf16 %v59_v22, %v58_v21  ;;  %v2659_v28 = vpack.c.bf16 %v77_v24, %v76_v23  ;;  %v61_v30 = vld [vmem:[%s3126_s2 + $0x48] sm:$0xff]  ;;  %v78_v32 = vld [vmem:[%s3126_s2 + $0xd0] sm:$0xff]  ;;  %2442 = vset.pattern.permute.xlu1 %v3142_v15 }
   0x8   :  { %v2651_v26 = vunpack.c.h.bf16 %v48_v25  ;;  %v60_v29 = vld [vmem:[%s3126_s2 + $0x40] sm:$0xff]  ;;  %v79_v33 = vld [vmem:[%s3126_s2 + $0xd8] sm:$0xff]  ;;  %v62_v36 = vld [vmem:[%s3126_s2 + $0x50] sm:$0xff]  ;;  %v2730_v50 = vunpack.c.l.bf16 %v48_v25 }
   0x9   :  { %2289 = vmatpush3.bf16.msra.mxu0 %v2610_v13  ;;  %2321 = vmatpush3.bf16.msra.mxu1 %v2610_v13  ;;  %v2678_v34 = vpack.c.bf16 %v61_v30, %v60_v29  ;;  %v2682_v35 = vpack.c.bf16 %v79_v33, %v78_v32  ;;  %v63_v37 = vld [vmem:[%s3126_s2 + $0x58] sm:$0xff]  ;;  %v80_v38 = vld [vmem:[%s3126_s2 + $0xe0] sm:$0xff]  ;;  %v81_v39 = vld [vmem:[%s3126_s2 + $0xe8] sm:$0xff] }
   0xa   :  { %2291 = vmatprep.subr.bf16.mxu0 %v2614_v14  ;;  %2323 = vmatprep.subr.bf16.mxu1 %v2614_v14  ;;  %v159_v31 = vmul.f32 %v2651_v26, %v2651_v26  ;;  %v2698_v40 = vpack.c.bf16 %v63_v37, %v62_v36  ;;  %v2702_v41 = vpack.c.bf16 %v81_v39, %v80_v38  ;;  %v64_v42 = vld [vmem:[%s3126_s2 + $0x60] sm:$0xff]  ;;  %v65_v43 = vld [vmem:[%s3126_s2 + $0x68] sm:$0xff]  ;;  %v82_v44 = vld [vmem:[%s3126_s2 + $0xf0] sm:$0xff] }
   0xb   :  { %152 = vmatprep.mubr.f32.mxu0 %v2651_v26  ;;  %v83_v45 = vld [vmem:[%s3126_s2 + $0xf8] sm:$0xff]  ;;  %v2718_v46 = vpack.c.bf16 %v65_v43, %v64_v42  ;;  %v66_v48 = vld [vmem:[%s3126_s2 + $0x70] sm:$0xff]  ;;  %v158_v52 = vmul.f32 %v2730_v50, %v2730_v50  ;;  %v86_v60 = vld [vmem:[%s3128_s5] sm:$0xf] }
   0xc   :  { %224 = vmatprep.mubr.f32.mxu1 %v159_v31  ;;  %v2722_v47 = vpack.c.bf16 %v83_v45, %v82_v44  ;;  %v67_v49 = vld [vmem:[%s3126_s2 + $0x78] sm:$0xff]  ;;  %v85_v62 = vld [vmem:[%s3129_s4] sm:$0xff] }
   0xd   :  { %2293 = vmatpush3.bf16.msra.mxu0 %v2630_v19  ;;  %2325 = vmatpush3.bf16.msra.mxu1 %v2630_v19  ;;  %v2734_v51 = vpack.c.bf16 %v67_v49, %v66_v48  ;;  %v87_v2 = vld [vmem:[%s3130_s6] sm:$0xff]  ;;  %s2494_s6 = smov 9  }
   0xe   :  { %2295 = vmatprep.subr.bf16.mxu0 %v2634_v20  ;;  %2327 = vmatprep.subr.bf16.mxu1 %v2634_v20  ;;  %v2776_v11 = vld.sshfl [vmem:[%s3131_s3] sm:$0x33 pattern:$0x76325410]  ;;  %s2493_s3 = smov 119  }
   0xf   :  { %531 = vperm.xlu0 %2440, %v85_v62   ;;  %v2780_v12 = vcombine.high %v2776_v11, %v2776_v11  ;;  %709 = vperm.xlu1 %2442, %v85_v62  }
  0x11   :  { %2297 = vmatpush3.bf16.msra.mxu0 %v2655_v27  ;;  %2329 = vmatpush3.bf16.msra.mxu1 %v2655_v27 }
  0x12   :  { %2299 = vmatprep.subr.bf16.mxu0 %v2659_v28  ;;  %2331 = vmatprep.subr.bf16.mxu1 %v2659_v28 }
  0x13   :  { %2441 = vset.pattern.permute.xlu0 %v2484_v63  ;;  %2443 = vset.pattern.permute.xlu1 %v3141_v16 }
  0x14   :  { %537 = vperm.xlu0 %2441, %v85_v62   ;;  %925 = vperm.xlu1 %2443, %v85_v62  }
  0x15   :  { %2301 = vmatpush3.bf16.msra.mxu0 %v2678_v34  ;;  %2333 = vmatpush3.bf16.msra.mxu1 %v2678_v34 }
  0x16   :  { %2303 = vmatprep.subr.bf16.mxu0 %v2682_v35  ;;  %2335 = vmatprep.subr.bf16.mxu1 %v2682_v35 }
  0x18   :  { %2455 = vset.pattern.permute.xlu0 %v2483_v61  ;;  %2454 = vset.pattern.permute.xlu1 %v2483_v61 }
  0x19   :  { %2305 = vmatpush3.bf16.msra.mxu0 %v2698_v40  ;;  %2337 = vmatpush3.bf16.msra.mxu1 %v2698_v40 }
  0x1a   :  { %2307 = vmatprep.subr.bf16.mxu0 %v2702_v41  ;;  %2339 = vmatprep.subr.bf16.mxu1 %v2702_v41 }
  0x1d   :  { %2309 = vmatpush3.bf16.msra.mxu0 %v2718_v46  ;;  %2341 = vmatpush3.bf16.msra.mxu1 %v2718_v46 }
  0x1e   :  { %2311 = vmatprep.subr.bf16.mxu0 %v2722_v47  ;;  %2343 = vmatprep.subr.bf16.mxu1 %v2722_v47 }
  0x21   :  { %2313 = vmatpush3.bf16.msra.mxu0 %v2734_v51  ;;  %2345 = vmatpush3.bf16.msra.mxu1 %v2734_v51 }
  0x22   :  { %2242 = vmatprep.subr.mxu1 %v3143_v53  ;;  %2252 = vmatprep.subr.mxu0 %v3143_v53 }
  0x24   :  { %153 = vmatmul.mubr.f32.vlgmr.msra.gmra.mrb[0].mxu0 %v2730_v50  ;;  %225 = vmatmul.mubr.f32.vlgmr.msra.gmra.mrb[0].mxu1 %v158_v52 }
  0x25   :  { %2244 = vmatprep.mubr.msk.f32.mxu1 %vm2482_vm0, %v3143_v53  ;;  %2254 = vmatprep.mubr.msk.f32.mxu0 %vm2482_vm0, %v3143_v53 }
  0x8e   :  { %v532_v24 = vpop.permute.xlu0 %531  ;;  %v710_v42 = vpop.permute.xlu1 %709 }
  0x93   :  { %v538_v30 = vpop.permute.xlu0 %537 }
  0xf7   :  { %v2118_v54 = vpop.f32.mrb[0].mxu0  ;;  %v2153_v55 = vpop.f32.mrb[0].mxu1 }
  0xf8   :  { %v2119_v56 = vpop.f32.mrb[1].mxu0  ;;  %v2154_v57 = vpop.f32.mrb[1].mxu1 }
  0xf9   :  { %v2120_v58 = vadd.f32 %v2119_v56, %v2118_v54  ;;  %v2155_v59 = vadd.f32 %v2154_v57, %v2153_v55 }
  0xfb   :  { %2243 = vmatpush3.msra.mxu1 %v2120_v58 }
  0xfc   :  { %2245 = vmatmul.mubr.msk.f32.vlgmr.msra.gmra.mrb[2].mxu1 %vm230_vm1, %v86_v60  ;;  %2247 = vmatprep.subr.mxu1 %v3143_v53 }
  0xfd   :  { %2248 = vmatpush3.msra.mxu1 %v2155_v59  ;;  %2249 = vmatprep.mubr.msk.f32.mxu1 %vm2482_vm0, %v3143_v53 }
  0xfe   :  { %2257 = vmatprep.subr.mxu1 %v3143_v53 }
 0x100   :  { %2250 = vmatmul.mubr.msk.f32.vlgmr.msra.gmra.mrb[4].mxu1 %vm230_vm1, %v86_v60 }
 0x101   :  { %2259 = vmatprep.mubr.msk.f32.mxu1 %vm2482_vm0, %v3143_v53 }
 0x1cf   :  { %v300_v0 = vpop.f32.mrb[2].mxu1 }
 0x1d0   :  { %v2246_v1 = vpop.f32.mrb[3].mxu1  ;;  %2253 = vmatpush3.msk.msra.mxu0 %vm381_vm2, %v300_v0  ;;  %v374_v4 = vmul.f32 %v300_v0, %v300_v0 }
 0x1d1   :  { %2255 = vmatmul.mubr.msk.f32.vlgmr.msra.gmra.mrb[2].mxu0 %vm377_vm3, %v87_v2  ;;  %2042 = vmatprep.subr.msk.mxu0 %vm554_vm4, %v2780_v12 }
 0x1d2   :  { %623 = vmatprep.mubr.f32.mxu0 %v3143_v53  ;;  %2043 = vmatpush1.msk.msra.mxu0 %vm554_vm4, %v2776_v11 }
 0x1d3   :  { %v370_v5 = vpop.f32.mrb[4].mxu1 }
 0x1d4   :  { %v375_v6 = vsub.f32 %v370_v5, %v374_v4  ;;  %v2251_v9 = vpop.f32.mrb[5].mxu1 }
 0x1d6   :  { %v376_v10 = vmax.f32 %v375_v6, 0.0 }
 0x1d8   :  { %2258 = vmatpush3.msk.msra.mxu1 %vm381_vm2, %v376_v10 }
 0x1d9   :  { %2260 = vmatmul.mubr.msk.f32.vlgmr.msra.gmra.mrb[6].mxu1 %vm377_vm3, %v87_v2  ;;  %2045 = vmatprep.subr.msk.mxu1 %vm554_vm4, %v2780_v12 }
 0x1da   :  { %697 = vmatprep.mubr.f32.mxu1 %v3143_v53  ;;  %2046 = vmatpush1.msk.msra.mxu1 %vm554_vm4, %v2776_v11 }
 0x2a4   :  { %v451_v17 = vpop.f32.mrb[2].mxu0 }
 0x2a5   :  { %v2256_v18 = vpop.f32.mrb[3].mxu0 }
 0x2ac   :  { %v524_v21 = vpop.f32.mrb[6].mxu1 }
 0x2ad   :  { %v525_v22 = vadd.f32 1e-05, %v524_v21  ;;  %v2261_v23 = vpop.f32.mrb[7].mxu1 }
 0x2af   :  { %2461 = vrsqrt.f32 %v525_v22  ;;  %v2487_v22 = vmov 683565275  }
 0x2b9   :  { %v2462_v25 = vpop.eup %2461 }
 0x2ba   :  { %v534_v29 = vmul.f32 %v2462_v25, %v532_v24 }
 0x2bc   :  { %v535_v31 = vmul.f32 %v534_v29, %v451_v17  ;;  %2044 = vmatmul.mubr.msk.f32.vlgmr.msra.gmra.mrb[4].mxu0 %vm550_vm5, %v534_v29  ;;  %v3147_v29 = vmov 2475754826  }
 0x2bd   :  { %991 = vmatprep.mubr.bf16.mxu0 %v2483_v61 }
 0x2be   :  { %v540_v32 = vsub.f32 %v538_v30, %v535_v31  ;;  %v3145_v31 = vmov 2131351028  }
 0x2c0   :  { %2047 = vmatmul.mubr.msk.f32.vlgmr.msra.gmra.mrb[8].mxu1 %vm550_vm5, %v540_v32 }
 0x2c1   :  { %1041 = vmatprep.mubr.bf16.mxu1 %v2483_v61 }
 0x38f   :  { %v625_v33 = vpop.f32.mrb[4].mxu0 }
 0x390   :  { %v627_v36 = vpop.f32.mrb[5].mxu0  ;;  %v704_v37 = vmul.f32 %v625_v33, %v2730_v50  ;;  %v2490_v33 = vmov 2102212464  }
 0x391   :  { %v705_v38 = vmul.f32 %v627_v36, %v2651_v26 }
 0x393   :  { %v699_v39 = vpop.f32.mrb[8].mxu1 }
 0x394   :  { %v2799_v43 = vadd.f32 %v704_v37, %v699_v39  ;;  %v701_v44 = vpop.f32.mrb[9].mxu1  ;;  %v2491_v37 = vmov 920167782  }
 0x395   :  { %v2801_v45 = vadd.f32 %v705_v38, %v701_v44 }
 0x396   :  { %v2804_v48 = vmul.f32 %v710_v42, %v2799_v43 }
 0x397   :  { %v2807_v49 = vmul.f32 %v710_v42, %v2801_v45 }
 0x398   :  { %v714_v52 = vand.u32 2147483647, %v2804_v48  ;;  %v717_v54 = vand.u32 2139095040, %v2804_v48 }
 0x399   :  { %v821_v55 = vand.u32 2139095040, %v2807_v49  ;;  %v818_v58 = vand.u32 2147483647, %v2807_v49 }
 0x39a   :  { %v718_v56 = vshrl.u32 %v717_v54, 23  ;;  %v721_v57 = vand.u32 8388607, %v714_v52 }
 0x39b   :  { %v822_v59 = vshrl.u32 %v821_v55, 23  ;;  %v2817_v2 = vand.u32 8388607, %v818_v58 }
 0x39c   :  { %v2048_v60 = vadd.s32 4294967169, %v718_v56  ;;  %v722_v1 = vor.u32 8388608, %v721_v57  ;;  %v2492_v56 = vmov 1326507024  }
 0x39d   :  { %v2052_v62 = vadd.s32 4294967169, %v822_v59  ;;  %v826_v18 = vor.u32 8388608, %v2817_v2 }
 0x39e   :  { %v724_v0 = vadd.s32 1, %v2048_v60  ;;  %v2819_v17 = vshll.u32 %v722_v1, 8 }
 0x39f   :  { %v828_v4 = vadd.s32 1, %v2052_v62 }
 0x3a0   :  { %vm725_vm6 = vcmp.gt.s32.totalorder %v724_v0, 0 }
 0x3a1   :  { %v726_v5 = vsel %vm725_vm6, %v724_v0, 0  ;;  %vm829_vm7 = vcmp.gt.s32.totalorder %v828_v4, 0 }
 0x3a2   :  { %v727_v6 = vshrl.u32 %v726_v5, 5  ;;  %v728_v9 = vand.u32 31, %v726_v5  ;;  %v830_v10 = vsel %vm829_vm7, %v828_v4, 0 }
 0x3a3   :  { %v2823_v24 = vshrl.u32 %v830_v10, 5  ;;  %v832_v25 = vand.u32 31, %v830_v10 }
 0x3a4   :  { %v729_v21 = vsub.s32 32, %v728_v9  ;;  %v731_v23 = vshll.u32 %v2487_v22, %v728_v9  ;;  %v734_v30 = vshll.u32 %v3147_v29, %v728_v9  ;;  %v737_v32 = vshll.u32 %v3145_v31, %v728_v9 }
 0x3a5   :  { %v740_v36 = vshll.u32 %v2490_v33, %v728_v9  ;;  %v743_v38 = vshll.u32 %v2491_v37, %v728_v9  ;;  %vm746_vm8 = vcmp.lt.s32.totalorder %v727_v6, 1  ;;  %vm747_vm9 = vcmp.lt.s32.totalorder %v727_v6, 2 }
 0x3a6   :  { %v732_v39 = vshrl.u32 %v3147_v29, %v729_v21  ;;  %v735_v42 = vshrl.u32 %v3145_v31, %v729_v21  ;;  %v738_v44 = vshrl.u32 %v2490_v33, %v729_v21  ;;  %v730_v54 = vshrl.u32 %v2487_v22, %v729_v21 }
 0x3a7   :  { %v741_v55 = vshrl.u32 %v2491_v37, %v729_v21  ;;  %v744_v57 = vshrl.u32 %v2492_v56, %v729_v21  ;;  %v833_v0 = vsub.s32 32, %v832_v25  ;;  %vm748_vm10 = vcmp.lt.s32.totalorder %v727_v6, 3 }
 0x3a8   :  { %v733_v59 = vor.u32 %v732_v39, %v731_v23  ;;  %v736_v60 = vor.u32 %v735_v42, %v734_v30  ;;  %v739_v62 = vor.u32 %v738_v44, %v737_v32  ;;  %vm749_vm11 = vcmp.lt.s32.totalorder %v727_v6, 4 }
 0x3a9   :  { %v742_v1 = vor.u32 %v741_v55, %v740_v36  ;;  %v745_v2 = vor.u32 %v744_v57, %v743_v38  ;;  %v835_v21 = vshll.u32 %v2487_v22, %v832_v25  ;;  %v836_v32 = vshrl.u32 %v3147_v29, %v833_v0 }
 0x3aa   :  { %v750_v4 = vsel %vm746_vm8, %v730_v54, %v733_v59  ;;  %v751_v5 = vsel %vm749_vm11, %v739_v62, 2102212464  ;;  %v754_v9 = vsel %vm746_vm8, %v733_v59, %v736_v60  ;;  %v758_v10 = vsel %vm746_vm8, %v736_v60, %v739_v62 }
 0x3ab   :  { %v752_v16 = vsel %vm748_vm10, %v736_v60, %v751_v5  ;;  %v755_v15 = vsel %vm749_vm11, %v742_v1, 920167782  ;;  %v759_v53 = vsel %vm749_vm11, %v745_v2, 1326507024  ;;  %v838_v36 = vshll.u32 %v3147_v29, %v832_v25 }
 0x3ac   :  { %v756_v23 = vsel %vm748_vm10, %v739_v62, %v755_v15  ;;  %v760_v30 = vsel %vm748_vm10, %v742_v1, %v759_v53  ;;  %v753_v38 = vsel %vm747_vm9, %v750_v4, %v752_v16  ;;  %v839_v44 = vshrl.u32 %v3145_v31, %v833_v0 }
 0x3ad   :  { %v757_v39 = vsel %vm747_vm9, %v754_v9, %v756_v23  ;;  %v761_v42 = vsel %vm747_vm9, %v758_v10, %v760_v30  ;;  %v837_v53 = vor.u32 %v836_v32, %v835_v21  ;;  %v841_v60 = vshll.u32 %v3145_v31, %v832_v25 }
 0x3ae   :  { %v2846_v54 = vmul.u32.u64.low %v2819_v17, %v761_v42  ;;  %v2847_v55 = vmul.u32.u64.high %v2819_v17, %v761_v42, %v2846_v54  ;;  %v2850_v57 = vmul.u32.u64.low %v2819_v17, %v757_v39  ;;  %v2851_v15 = vmul.u32.u64.high %v2819_v17, %v757_v39, %v2850_v57 }
 0x3af   :  { %v840_v59 = vor.u32 %v839_v44, %v838_v36  ;;  %v842_v16 = vshrl.u32 %v2490_v33, %v833_v0  ;;  %v844_v62 = vshll.u32 %v2490_v33, %v832_v25  ;;  %v845_v6 = vshrl.u32 %v2491_v37, %v833_v0 }
 0x3b0   :  { %v848_v1 = vshrl.u32 %v2492_v56, %v833_v0  ;;  %v866_v2 = vshll.u32 %v826_v18, 8  ;;  %v769_v4 = vmul.u32 %v2819_v17, %v753_v38  ;;  %v834_v5 = vshrl.u32 %v2487_v22, %v833_v0 }
 0x3b1   :  { %v843_v9 = vor.u32 %v842_v16, %v841_v60  ;;  %v847_v10 = vshll.u32 %v2491_v37, %v832_v25  ;;  %vm771_vm12 = vc.u32 %v2847_v55, %v2850_v57  ;;  %v772_v21 = vadd.s32 1, %v2851_v15 }
 0x3b2   :  { %v846_v23 = vor.u32 %v845_v6, %v844_v62  ;;  %vm850_vm13 = vcmp.lt.s32.totalorder %v2823_v24, 1  ;;  %vm852_vm14 = vcmp.lt.s32.totalorder %v2823_v24, 3  ;;  %vm853_vm15 = vcmp.lt.s32.totalorder %v2823_v24, 4 }
 0x3b3   :  { %v849_v30 = vor.u32 %v848_v1, %v847_v10  ;;  %v858_v18 = vsel %vm850_vm13, %v837_v53, %v840_v59  ;;  %v773_v17 = vsel %vm771_vm12, %v772_v21, %v2851_v15  ;;  %v855_v32 = vsel %vm853_vm15, %v843_v9, 2102212464 }
 0x3b4   :  { %v859_v0 = vsel %vm853_vm15, %v846_v23, 920167782  ;;  %v862_v36 = vsel %vm850_vm13, %v840_v59, %v843_v9  ;;  %v774_v38 = vadd.s32 %v773_v17, %v769_v4  ;;  %vm851_vm3 = vcmp.lt.s32.totalorder %v2823_v24, 2 }
 0x3b5   :  { %v860_v25 = vsel %vm852_vm14, %v843_v9, %v859_v0  ;;  %v863_v39 = vsel %vm853_vm15, %v849_v30, 1326507024  ;;  %v854_v42 = vsel %vm850_vm13, %v834_v5, %v837_v53  ;;  %v856_v44 = vsel %vm852_vm14, %v840_v59, %v855_v32 }
 0x3b6   :  { %v861_v54 = vsel %vm851_vm3, %v858_v18, %v860_v25  ;;  %v864_v60 = vsel %vm852_vm14, %v846_v23, %v863_v39  ;;  %v775_v16 = vadd.s32 536870912, %v774_v38  ;;  %v857_v21 = vsel %vm851_vm3, %v854_v42, %v856_v44 }
 0x3b7   :  { %v865_v62 = vsel %vm851_vm3, %v862_v36, %v864_v60  ;;  %v2868_v6 = vmul.u32.u64.low %v866_v2, %v861_v54  ;;  %v2869_v1 = vmul.u32.u64.high %v866_v2, %v861_v54, %v2868_v6  ;;  %v873_v24 = vmul.u32 %v866_v2, %v857_v21 }
 0x3b8   :  { %v2871_v10 = vmul.u32.u64.low %v866_v2, %v865_v62  ;;  %v2872_v31 = vmul.u32.u64.high %v866_v2, %v865_v62, %v2871_v10  ;;  %v776_v15 = vshrl.u32 %v775_v16, 30  ;;  %v770_v42 = vadd.s32 %v2850_v57, %v2847_v55 }
 0x3b9   :  { %v876_v4 = vadd.s32 1, %v2869_v1  ;;  %vm716_vm9 = vcmp.lt.s32.totalorder %v2804_v48, 0  ;;  %vm715_vm10 = vcmp.le.f32.partialorder %v714_v52, 0.7853982  ;;  %vm820_vm11 = vcmp.lt.s32.totalorder %v2807_v49, 0 }
 0x3ba   :  { %v777_v29 = vshll.u32 %v776_v15, 30  ;;  %vm875_vm6 = vc.u32 %v2872_v31, %v2868_v6  ;;  %v800_v57 = vsub.s32 4, %v776_v15  ;;  %vm819_vm12 = vcmp.le.f32.partialorder %v818_v58, 0.7853982 }
 0x3bb   :  { %v877_v59 = vsel %vm875_vm6, %v876_v4, %v2869_v1  ;;  %vm806_vm3 = vweird.f32 %v2804_v48 }
 0x3bc   :  { %v778_v53 = vsub.s32 %v774_v38, %v777_v29  ;;  %v878_v5 = vadd.s32 %v877_v59, %v873_v24 }
 0x3be   :  { %v780_v9 = vsub.s32 0, %v778_v53  ;;  %v879_v23 = vadd.s32 536870912, %v878_v5 }
 0x3c0   :  { %v2049_v30 = vmin.u32 %v780_v9, %v778_v53  ;;  %v880_v18 = vshrl.u32 %v879_v23, 30 }
 0x3c2   :  { %v782_v17 = vclz %v2049_v30  ;;  %v881_v32 = vshll.u32 %v880_v18, 30 }
 0x3c4   :  { %v2050_v0 = vadd.s32 4294967294, %v782_v17  ;;  %v882_v36 = vsub.s32 %v878_v5, %v881_v32  ;;  %v874_v5 = vadd.s32 %v2868_v6, %v2872_v31 }
 0x3c6   :  { %vm2051_vm7 = vcmp.lt.s32.totalorder %v2050_v0, 0  ;;  %v884_v39 = vsub.s32 0, %v882_v36 }
 0x3c7   :  { %v785_v25 = vsel %vm2051_vm7, 0, %v2050_v0 }
 0x3c8   :  { %v786_v2 = vsub.s32 32, %v785_v25  ;;  %v790_v44 = vsub.s32 4294967266, %v785_v25  ;;  %v2053_v54 = vmin.u32 %v884_v39, %v882_v36  ;;  %v787_v29 = vshll.u32 %v778_v53, %v785_v25 }
 0x3ca   :  { %v788_v38 = vshrl.u32 %v770_v42, %v786_v2  ;;  %v791_v60 = vadd.s32 127, %v790_v44  ;;  %v886_v16 = vclz %v2053_v54  ;;  %v801_v42 = vsel %vm716_vm9, %v800_v57, %v776_v15  ;;  %v926_v57 = vpop.permute.xlu1 %925 }
 0x3cb   :  { %v803_v54 = vsel %vm715_vm10, 0, %v801_v42 }
 0x3cc   :  { %v789_v62 = vor.u32 %v788_v38, %v787_v29  ;;  %v792_v1 = vshll.u32 %v791_v60, 23  ;;  %v2054_v10 = vadd.s32 4294967294, %v886_v16  ;;  %v904_v29 = vsub.s32 4, %v880_v18 }
 0x3cd   :  { %v807_v38 = vadd.s32 3, %v803_v54 }
 0x3ce   :  { %v793_v21 = vor.u32 4788187, %v792_v1  ;;  %vm2055_vm8 = vcmp.lt.s32.totalorder %v2054_v10, 0  ;;  %v796_v24 = vcvt.s32.f32 %v789_v62  ;;  %v905_v52 = vsel %vm820_vm11, %v904_v29, %v880_v18 }
 0x3cf   :  { %v889_v59 = vsel %vm2055_vm8, 0, %v2054_v10  ;;  %v808_v15 = vand.u32 3, %v807_v38  ;;  %v907_v10 = vsel %vm819_vm12, 0, %v905_v52 }
 0x3d0   :  { %v794_v4 = vand.u32 2147483647, %v793_v21  ;;  %v890_v9 = vsub.s32 32, %v889_v59  ;;  %v894_v23 = vsub.s32 4294967266, %v889_v59  ;;  %v891_v30 = vshll.u32 %v882_v36, %v889_v59 }
 0x3d1   :  { %vm813_vm13 = vcmp.eq.s32.totalorder %v808_v15, 2  ;;  %vm810_vm14 = vcmp.eq.s32.totalorder %v808_v15, 0  ;;  %vm809_vm15 = vcmp.lt.s32.totalorder %v808_v15, 2 }
 0x3d2   :  { %v797_v55 = vmul.f32 %v796_v24, %v794_v4  ;;  %v892_v17 = vshrl.u32 %v874_v5, %v890_v9  ;;  %v895_v53 = vadd.s32 127, %v894_v23  ;;  %v911_v5 = vadd.s32 3, %v907_v10 }
 0x3d4   :  { %v798_v32 = vxor.u32 2147483648, %v797_v55  ;;  %v893_v0 = vor.u32 %v892_v17, %v891_v30  ;;  %v896_v25 = vshll.u32 %v895_v53, 23  ;;  %v912_v23 = vand.u32 3, %v911_v5 }
 0x3d6   :  { %v799_v39 = vsel %vm716_vm9, %v798_v32, %v797_v55  ;;  %v897_v2 = vor.u32 4788187, %v896_v25  ;;  %v900_v44 = vcvt.s32.f32 %v893_v0  ;;  %vm917_vm6 = vcmp.eq.s32.totalorder %v912_v23, 2 }
 0x3d7   :  { %v802_v31 = vsel %vm715_vm10, %v2804_v48, %v799_v39  ;;  %vm914_vm7 = vcmp.eq.s32.totalorder %v912_v23, 0  ;;  %vm913_vm8 = vcmp.lt.s32.totalorder %v912_v23, 2  ;;  %vm910_vm9 = vweird.f32 %v2807_v49  ;;  %v2061_v23 = vld [vmem:[%s3133_s7 + $0x8] sm:$0xf] }
 0x3d8   :  { %2463 = vcosq.f32 %v802_v31  ;;  %v898_v6 = vand.u32 2147483647, %v897_v2  ;;  %vm1054_vm10 = vcmask 973824  }
 0x3d9   :  { %2465 = vsinq.f32 %v802_v31 }
 0x3da   :  { %v901_v36 = vmul.f32 %v900_v44, %v898_v6 }
 0x3dc   :  { %v902_v60 = vxor.u32 2147483648, %v901_v36 }
 0x3de   :  { %v903_v16 = vsel %vm820_vm11, %v902_v60, %v901_v36  ;;  %vm938_vm11 = vcmask 72704  }
 0x3df   :  { %v906_v62 = vsel %vm819_vm12, %v2807_v49, %v903_v16  ;;  %v1115_v49 = vld [vmem:[%s3132_s8] sm:$0xff] }
 0x3e0   :  { %2467 = vcosq.f32 %v906_v62 }
 0x3e1   :  { %2469 = vsinq.f32 %v906_v62 }
 0x3e2   :  { %v2464_v1 = vpop.eup %2463 }
 0x3e3   :  { %v2466_v21 = vpop.eup %2465  ;;  %v814_v4 = vxor.u32 2147483648, %v2464_v1 }
 0x3e4   :  { %v811_v24 = vxor.u32 2147483648, %v2466_v21 }
 0x3e5   :  { %v815_v59 = vsel %vm813_vm13, %v814_v4, %v2466_v21 }
 0x3e6   :  { %v812_v9 = vsel %vm810_vm14, %v2464_v1, %v811_v24 }
 0x3e7   :  { %v816_v58 = vsel %vm809_vm15, %v812_v9, %v815_v59 }
 0x3e8   :  { %v817_v18 = vsel %vm806_vm3, nan, %v816_v58 }
 0x3e9   :  { %v922_v55 = vmul.f32 %v817_v18, %v817_v18  ;;  %v943_v18 = vld [vmem:[%s3133_s7] sm:$0xf] }
 0x3ea   :  { %v2468_v30 = vpop.eup %2467 }
 0x3eb   :  { %v2470_v17 = vpop.eup %2469  ;;  %v918_v53 = vxor.u32 2147483648, %v2468_v30  ;;  %v928_v0 = vmul.f32 %v926_v57, %v922_v55 }
 0x3ec   :  { %v915_v32 = vxor.u32 2147483648, %v2470_v17 }
 0x3ed   :  { %v919_v25 = vsel %vm917_vm6, %v918_v53, %v2470_v17  ;;  %v930_v48 = vadd.f32 %v928_v0, %v2799_v43  ;;  %v2056_v43 = vld [vmem:[%s3133_s7 + $0x4] sm:$0xf] }
 0x3ee   :  { %v916_v39 = vsel %vm914_vm7, %v2468_v30, %v915_v32 }
 0x3ef   :  { %v920_v42 = vsel %vm913_vm8, %v916_v39, %v919_v25  ;;  %v948_v44 = vpack.c.bf16 %v930_v48, %v930_v48 }
 0x3f0   :  { %v921_v2 = vsel %vm910_vm9, nan, %v920_v42 }
 0x3f1   :  { %v923_v31 = vmul.f32 %v921_v2, %v921_v2  ;;  %v954_v38 = vsel %vm381_vm2, %v948_v44, 0 }
 0x3f3   :  { %v929_v6 = vmul.f32 %v926_v57, %v923_v31 }
 0x3f5   :  { %v931_v54 = vadd.f32 %v929_v6, %v2801_v45 }
 0x3f7   :  { %v2449_v36 = vpack.i.bf16 %v931_v54, %v930_v48  ;;  %v949_v29 = vpack.c.bf16 %v931_v54, %v931_v54 }
 0x3f9   :  { %2450 = vrot.lane.b32.xlu0 %v2449_v36, %s2493_s3  ;;  %2445 = vrot.lane.b32.xlu1 %v2449_v36, %s2494_s6 }
 0x3fa   :  { %2057 = vmatprep.subr.msk.bf16.mxu0 %vm381_vm2, %v949_v29 }
 0x3fb   :  { %960 = vmatpush1.bf16.msra.mxu0 %v954_v38 }
 0x3fd   :  { %1118 = vperm.xlu1 %2454, %v1115_v49   ;;  %v1137_v49 = vld [vmem:[%s3135_s10] sm:$0xff] }
 0x3fe   :  { %2058 = vmatmul.mubr.msk.bf16.vlgmr.msra.gmra.mrb[8].mxu0 %vm230_vm1, %v2056_v43 }
 0x3ff   :  { %1104 = vmatprep.mubr.bf16.mxu0 %v2483_v61 }
 0x401   :  { %2456 = vset.pattern.permute.xlu1 %v2484_v63 }
 0x46b   :  { %v2451_v45 = vpop.permute.xlu0 %2450  ;;  %v2446_v60 = vpop.permute.xlu1 %2445 }
 0x46c   :  { %v2453_v16 = vunpack.i.h.bf16 %v2451_v45  ;;  %v2452_v52 = vunpack.i.l.bf16 %v2451_v45  ;;  %v2448_v15 = vunpack.i.h.bf16 %v2446_v60  ;;  %v2447_v62 = vunpack.i.l.bf16 %v2446_v60  ;;  %v1136_v60 = vld [vmem:[%s3136_s9] sm:$0xff] }
 0x46d   :  { %1573 = vperm.xlu0 %2455, %v1136_v60   ;;  %1579 = vperm.xlu1 %2456, %v1136_v60  }
 0x46e   :  { %v1058_v1 = vsel %vm1054_vm10, %v2453_v16, 0.0  ;;  %v939_v10 = vsel %vm938_vm11, %v2447_v62, %v2448_v15  ;;  %v942_v21 = vsel %vm938_vm11, 0.0, %v2447_v62  ;;  %v1055_v4 = vsel %vm1054_vm10, %v2452_v52, %v2453_v16 }
 0x46f   :  { %v1062_v24 = vpack.c.bf16 %v1058_v1, %v1058_v1  ;;  %v944_v59 = vpack.c.bf16 %v942_v21, %v942_v21  ;;  %v945_v5 = vpack.c.bf16 %v939_v10, %v939_v10  ;;  %v1061_v9 = vpack.c.bf16 %v1055_v4, %v1055_v4  ;;  %v1138_v1 = vld [vmem:[%s3137_s11] sm:$0xff] }
 0x470   :  { %v3150_v16 = vmov 2   ;;  %v3151_v52 = vmov 3  }
 0x471   :  { %2059 = vmatprep.subr.msk.bf16.mxu1 %vm381_vm2, %v945_v5  ;;  %2062 = vmatprep.subr.msk.bf16.mxu0 %vm381_vm2, %v1062_v24  ;;  %v1004_v63 = vsel %vm381_vm2, %v944_v59, 0  ;;  %v1067_v58 = vsel %vm381_vm2, %v1061_v9, 0 }
 0x472   :  { %1010 = vmatpush1.bf16.msra.mxu1 %v1004_v63  ;;  %1073 = vmatpush1.bf16.msra.mxu0 %v1067_v58 }
 0x473   :  { %2347 = vmatprep.subr.bf16.mxu1 %v2579_v3  ;;  %2379 = vmatprep.subr.bf16.mxu0 %v2579_v3  ;;  %v3149_v3 = vmov 0.0  }
 0x474   :  { %2457 = vset.pattern.permute.xlu1 %v3150_v16  ;;  %2458 = vset.pattern.permute.xlu0 %v3151_v52 }
 0x475   :  { %2060 = vmatmul.mubr.msk.bf16.vlgmr.msra.gmra.mrb[12].mxu1 %vm230_vm1, %v943_v18  ;;  %2063 = vmatmul.mubr.msk.bf16.vlgmr.msra.gmra.mrb[12].mxu0 %vm230_vm1, %v2061_v23 }
 0x476   :  { %2349 = vmatpush3.bf16.msra.mxu1 %v2590_v7  ;;  %2381 = vmatpush3.bf16.msra.mxu0 %v2590_v7 }
 0x477   :  { %2351 = vmatprep.subr.bf16.mxu1 %v2592_v8  ;;  %2383 = vmatprep.subr.bf16.mxu0 %v2592_v8 }
 0x478   :  { %1736 = vperm.xlu1 %2457, %v1136_v60   ;;  %1952 = vperm.xlu0 %2458, %v1136_v60  }
 0x47a   :  { %2353 = vmatpush3.bf16.msra.mxu1 %v2610_v13  ;;  %2385 = vmatpush3.bf16.msra.mxu0 %v2610_v13 }
 0x47b   :  { %2355 = vmatprep.subr.bf16.mxu1 %v2614_v14  ;;  %2387 = vmatprep.subr.bf16.mxu0 %v2614_v14 }
 0x47c   :  { %2459 = vset.pattern.permute.xlu1 %v2483_v61  ;;  %2460 = vset.pattern.permute.xlu0 %v2483_v61 }
 0x47e   :  { %2357 = vmatpush3.bf16.msra.mxu1 %v2630_v19  ;;  %2389 = vmatpush3.bf16.msra.mxu0 %v2630_v19  ;;  %v1124_v19 = vlaneseq }
 0x47f   :  { %2359 = vmatprep.subr.bf16.mxu1 %v2634_v20  ;;  %2391 = vmatprep.subr.bf16.mxu0 %v2634_v20 }
 0x480   :  { %v1125_v20 = vshrl.u32 %v1124_v19, 7 }
 0x482   :  { %2361 = vmatpush3.bf16.msra.mxu1 %v2655_v27  ;;  %2393 = vmatpush3.bf16.msra.mxu0 %v2655_v27  ;;  %v1126_v27 = vsub.s32 0, %v1125_v20 }
 0x483   :  { %2363 = vmatprep.subr.bf16.mxu1 %v2659_v28  ;;  %2395 = vmatprep.subr.bf16.mxu0 %v2659_v28  ;;  %v1119_v28 = vpop.permute.xlu1 %1118 }
 0x486   :  { %2365 = vmatpush3.bf16.msra.mxu1 %v2678_v34  ;;  %2397 = vmatpush3.bf16.msra.mxu0 %v2678_v34 }
 0x487   :  { %2367 = vmatprep.subr.bf16.mxu1 %v2682_v35  ;;  %2399 = vmatprep.subr.bf16.mxu0 %v2682_v35 }
 0x48a   :  { %2369 = vmatpush3.bf16.msra.mxu1 %v2698_v40  ;;  %2401 = vmatpush3.bf16.msra.mxu0 %v2698_v40  ;;  %v51_v40 = vld [vmem:[%s3134_s1] sm:$0x3] }
 0x48b   :  { %2371 = vmatprep.subr.bf16.mxu1 %v2702_v41  ;;  %2403 = vmatprep.subr.bf16.mxu0 %v2702_v41  ;;  %v1130_v41 = vsub.s32 1, %v1125_v20  ;;  %v2951_v0 = vrot.slane %v51_v40, %v1126_v27 }
 0x48d   :  { %v2953_v39 = vrot.slane %v51_v40, %v1130_v41 }
 0x48e   :  { %2373 = vmatpush3.bf16.msra.mxu1 %v2718_v46  ;;  %2405 = vmatpush3.bf16.msra.mxu0 %v2718_v46 }
 0x48f   :  { %2375 = vmatprep.subr.bf16.mxu1 %v2722_v47  ;;  %2407 = vmatprep.subr.bf16.mxu0 %v2722_v47 }
 0x492   :  { %2377 = vmatpush3.bf16.msra.mxu1 %v2734_v51  ;;  %2409 = vmatpush3.bf16.msra.mxu0 %v2734_v51 }
 0x493   :  { %2262 = vmatprep.subr.mxu1 %v3149_v3  ;;  %2272 = vmatprep.subr.mxu0 %v3149_v3 }
 0x4d1   :  { %v993_v7 = vpop.f32.mrb[8].mxu0 }
 0x4d2   :  { %v995_v8 = vpop.f32.mrb[9].mxu0 }
 0x4d3   :  { %v997_v13 = vpop.f32.mrb[10].mxu0 }
 0x4d4   :  { %v998_v14 = vpop.f32.mrb[11].mxu0 }
 0x4ec   :  { %v1574_v23 = vpop.permute.xlu0 %1573  ;;  %v1580_v13 = vpop.permute.xlu1 %1579 }
 0x548   :  { %v1043_v34 = vpop.f32.mrb[12].mxu1  ;;  %v1106_v35 = vpop.f32.mrb[12].mxu0 }
 0x549   :  { %v1044_v46 = vadd.f32 %v1043_v34, %v993_v7  ;;  %v1045_v47 = vpop.f32.mrb[13].mxu1  ;;  %v1108_v51 = vpop.f32.mrb[13].mxu0 }
 0x54a   :  { %v1046_v55 = vadd.f32 %v1045_v47, %v995_v8  ;;  %v1047_v57 = vpop.f32.mrb[14].mxu1  ;;  %v1110_v30 = vpop.f32.mrb[14].mxu0 }
 0x54b   :  { %v1113_v17 = vadd.f32 %v1106_v35, %v1044_v46  ;;  %v1048_v53 = vpop.f32.mrb[15].mxu1  ;;  %v1111_v32 = vpop.f32.mrb[15].mxu0 }
 0x54c   :  { %v1114_v25 = vadd.f32 %v1108_v51, %v1046_v55  ;;  %v1737_v34 = vpop.permute.xlu1 %1736 }
 0x54d   :  { %v1121_v42 = vadd.f32 %v1119_v28, %v1113_v17 }
 0x54e   :  { %v1122_v2 = vadd.f32 %v1119_v28, %v1114_v25 }
 0x54f   :  { %v2956_v48 = vmul.f32 %v2951_v0, %v1121_v42 }
 0x550   :  { %v2959_v31 = vmul.f32 %v2953_v39, %v1122_v2 }
 0x551   :  { %v1209_v44 = vmul.f32 %v2956_v48, %v2956_v48 }
 0x552   :  { %1203 = vmatprep.mubr.f32.mxu1 %v2959_v31  ;;  %v1210_v6 = vmul.f32 %v2959_v31, %v2959_v31 }
 0x553   :  { %1204 = vmatmul.mubr.f32.vlgmr.msra.gmra.mrb[10].mxu1 %v2956_v48 }
 0x554   :  { %1275 = vmatprep.mubr.f32.mxu0 %v1210_v6  ;;  %2264 = vmatprep.mubr.msk.f32.mxu1 %vm2482_vm0, %v3149_v3 }
 0x555   :  { %1276 = vmatmul.mubr.f32.vlgmr.msra.gmra.mrb[6].mxu0 %v1209_v44 }
 0x556   :  { %2274 = vmatprep.mubr.msk.f32.mxu0 %vm2482_vm0, %v3149_v3 }
 0x626   :  { %v2196_v54 = vpop.f32.mrb[10].mxu1 }
 0x627   :  { %v2197_v36 = vpop.f32.mrb[11].mxu1 }
 0x628   :  { %v2198_v29 = vadd.f32 %v2197_v36, %v2196_v54  ;;  %v2231_v38 = vpop.f32.mrb[6].mxu0 }
 0x629   :  { %v2232_v43 = vpop.f32.mrb[7].mxu0 }
 0x62a   :  { %v2233_v45 = vadd.f32 %v2232_v43, %v2231_v38  ;;  %2263 = vmatpush3.msra.mxu1 %v2198_v29 }
 0x62b   :  { %2265 = vmatmul.mubr.msk.f32.vlgmr.msra.gmra.mrb[16].mxu1 %vm230_vm1, %v1137_v49  ;;  %2267 = vmatprep.subr.mxu1 %v3149_v3 }
 0x62c   :  { %2268 = vmatpush3.msra.mxu1 %v2233_v45  ;;  %2269 = vmatprep.mubr.msk.f32.mxu1 %vm2482_vm0, %v3149_v3 }
 0x62d   :  { %2277 = vmatprep.subr.mxu1 %v3149_v3 }
 0x62f   :  { %2270 = vmatmul.mubr.msk.f32.vlgmr.msra.gmra.mrb[18].mxu1 %vm230_vm1, %v1137_v49 }
 0x630   :  { %2279 = vmatprep.mubr.msk.f32.mxu1 %vm2482_vm0, %v3149_v3 }
 0x6fe   :  { %v1350_v15 = vpop.f32.mrb[16].mxu1 }
 0x6ff   :  { %v2266_v62 = vpop.f32.mrb[17].mxu1  ;;  %2273 = vmatpush3.msra.mxu0 %v1350_v15  ;;  %v1424_v10 = vmul.f32 %v1350_v15, %v1350_v15 }
 0x700   :  { %2275 = vmatmul.mubr.msk.f32.vlgmr.msra.gmra.mrb[16].mxu0 %vm230_vm1, %v1138_v1  ;;  %2068 = vmatprep.subr.msk.mxu0 %vm554_vm4, %v2780_v12 }
 0x701   :  { %2069 = vmatpush1.msk.msra.mxu0 %vm554_vm4, %v2776_v11  ;;  %1650 = vmatprep.mubr.f32.mxu0 %v3149_v3 }
 0x702   :  { %v1420_v21 = vpop.f32.mrb[18].mxu1 }
 0x703   :  { %v1425_v4 = vsub.f32 %v1420_v21, %v1424_v10  ;;  %v2271_v24 = vpop.f32.mrb[19].mxu1 }
 0x705   :  { %v1426_v59 = vmax.f32 %v1425_v4, 0.0 }
 0x707   :  { %2278 = vmatpush3.msra.mxu1 %v1426_v59  ;;  %v3152_v59 = vmov 2475754826  }
 0x708   :  { %2280 = vmatmul.mubr.msk.f32.vlgmr.msra.gmra.mrb[20].mxu1 %vm230_vm1, %v1138_v1  ;;  %2071 = vmatprep.subr.msk.mxu1 %vm554_vm4, %v2780_v12 }
 0x709   :  { %2072 = vmatpush1.msk.msra.mxu1 %vm554_vm4, %v2776_v11  ;;  %1724 = vmatprep.mubr.f32.mxu1 %v3149_v3  ;;  %v1962_v11 = vld [vmem:[%s3138_s13] sm:$0xff] }
 0x70a   :  { %1965 = vperm.xlu1 %2459, %v1962_v11  }
 0x7d3   :  { %v1496_v5 = vpop.f32.mrb[16].mxu0 }
 0x7d4   :  { %v2276_v9 = vpop.f32.mrb[17].mxu0 }
 0x7db   :  { %v1566_v63 = vpop.f32.mrb[20].mxu1 }
 0x7dc   :  { %v1567_v58 = vadd.f32 1e-05, %v1566_v63  ;;  %v2281_v18 = vpop.f32.mrb[21].mxu1 }
 0x7dd   :  { %v3153_v18 = vmov 2131351028  }
 0x7de   :  { %2471 = vrsqrt.f32 %v1567_v58 }
 0x7e8   :  { %v2472_v7 = vpop.eup %2471 }
 0x7e9   :  { %v1576_v8 = vmul.f32 %v2472_v7, %v1574_v23 }
 0x7eb   :  { %v1577_v14 = vmul.f32 %v1576_v8, %v1496_v5  ;;  %2070 = vmatmul.mubr.msk.f32.vlgmr.msra.gmra.mrb[18].mxu0 %vm550_vm5, %v1576_v8 }
 0x7ec   :  { %2009 = vmatprep.mubr.bf16.mxu0 %v2483_v61 }
 0x7ed   :  { %v1582_v12 = vsub.f32 %v1580_v13, %v1577_v14 }
 0x7ef   :  { %2073 = vmatmul.mubr.msk.f32.vlgmr.msra.gmra.mrb[22].mxu1 %vm550_vm5, %v1582_v12 }
 0x8be   :  { %v1652_v3 = vpop.f32.mrb[18].mxu0 }
 0x8bf   :  { %v1654_v19 = vpop.f32.mrb[19].mxu0  ;;  %v1731_v20 = vmul.f32 %v1652_v3, %v2956_v48 }
 0x8c0   :  { %v1732_v27 = vmul.f32 %v1654_v19, %v2959_v31 }
 0x8c2   :  { %v1726_v28 = vpop.f32.mrb[22].mxu1 }
 0x8c3   :  { %v3012_v35 = vadd.f32 %v1731_v20, %v1726_v28  ;;  %v1728_v40 = vpop.f32.mrb[23].mxu1 }
 0x8c4   :  { %v3014_v61 = vadd.f32 %v1732_v27, %v1728_v40 }
 0x8c5   :  { %v3017_v41 = vmul.f32 %v1737_v34, %v3012_v35 }
 0x8c6   :  { %v3020_v46 = vmul.f32 %v1737_v34, %v3014_v61 }
 0x8c7   :  { %v1744_v47 = vand.u32 2139095040, %v3017_v41  ;;  %v1741_v51 = vand.u32 2147483647, %v3017_v41 }
 0x8c8   :  { %v1848_v55 = vand.u32 2139095040, %v3020_v46  ;;  %v1845_v32 = vand.u32 2147483647, %v3020_v46 }
 0x8c9   :  { %v1745_v57 = vshrl.u32 %v1744_v47, 23  ;;  %v1748_v53 = vand.u32 8388607, %v1741_v51 }
 0x8ca   :  { %v1849_v30 = vshrl.u32 %v1848_v55, 23  ;;  %v3030_v31 = vand.u32 8388607, %v1845_v32 }
 0x8cb   :  { %v2074_v17 = vadd.s32 4294967169, %v1745_v57  ;;  %v1749_v48 = vor.u32 8388608, %v1748_v53 }
 0x8cc   :  { %v2078_v25 = vadd.s32 4294967169, %v1849_v30  ;;  %v1853_v45 = vor.u32 8388608, %v3030_v31 }
 0x8cd   :  { %v1751_v42 = vadd.s32 1, %v2074_v17  ;;  %v3034_v43 = vshll.u32 %v1749_v48, 8 }
 0x8ce   :  { %v1855_v2 = vadd.s32 1, %v2078_v25 }
 0x8cf   :  { %vm1752_vm0 = vcmp.gt.s32.totalorder %v1751_v42, 0 }
 0x8d0   :  { %v1753_v6 = vsel %vm1752_vm0, %v1751_v42, 0  ;;  %vm1856_vm4 = vcmp.gt.s32.totalorder %v1855_v2, 0  ;;  %vm1743_vm0 = vcmp.lt.s32.totalorder %v3017_v41, 0 }
 0x8d1   :  { %v1754_v44 = vshrl.u32 %v1753_v6, 5  ;;  %v1755_v54 = vand.u32 31, %v1753_v6  ;;  %v1857_v36 = vsel %vm1856_vm4, %v1855_v2, 0  ;;  %vm1742_vm4 = vcmp.le.f32.partialorder %v1741_v51, 0.7853982 }
 0x8d2   :  { %v1859_v29 = vand.u32 31, %v1857_v36  ;;  %v3032_v49 = vshrl.u32 %v1857_v36, 5 }
 0x8d3   :  { %v1756_v38 = vsub.s32 32, %v1755_v54  ;;  %v1767_v60 = vshll.u32 %v2490_v33, %v1755_v54  ;;  %v1770_v16 = vshll.u32 %v2491_v37, %v1755_v54  ;;  %vm1776_vm5 = vcmp.lt.s32.totalorder %v1754_v44, 4 }
 0x8d4   :  { %v1860_v52 = vsub.s32 32, %v1859_v29  ;;  %v1871_v1 = vshll.u32 %v2490_v33, %v1859_v29  ;;  %v1874_v10 = vshll.u32 %v2491_v37, %v1859_v29  ;;  %v1758_v24 = vshll.u32 %v2487_v22, %v1755_v54 }
 0x8d5   :  { %v1768_v15 = vshrl.u32 %v2491_v37, %v1756_v38  ;;  %v1771_v62 = vshrl.u32 %v2492_v56, %v1756_v38  ;;  %v1759_v5 = vshrl.u32 %v3152_v59, %v1756_v38  ;;  %v1761_v58 = vshll.u32 %v3152_v59, %v1755_v54 }
 0x8d6   :  { %v1872_v21 = vshrl.u32 %v2491_v37, %v1860_v52  ;;  %v1875_v4 = vshrl.u32 %v2492_v56, %v1860_v52  ;;  %v1762_v23 = vshrl.u32 %v3153_v18, %v1756_v38  ;;  %vm1880_vm12 = vcmp.lt.s32.totalorder %v3032_v49, 4 }
 0x8d7   :  { %v1769_v9 = vor.u32 %v1768_v15, %v1767_v60  ;;  %v1772_v63 = vor.u32 %v1771_v62, %v1770_v16  ;;  %v1760_v7 = vor.u32 %v1759_v5, %v1758_v24  ;;  %v1764_v8 = vshll.u32 %v3153_v18, %v1755_v54 }
 0x8d8   :  { %v1765_v13 = vshrl.u32 %v2490_v33, %v1756_v38  ;;  %v1757_v14 = vshrl.u32 %v2487_v22, %v1756_v38  ;;  %v1763_v12 = vor.u32 %v1762_v23, %v1761_v58  ;;  %v1873_v11 = vor.u32 %v1872_v21, %v1871_v1 }
 0x8d9   :  { %v1782_v37 = vsel %vm1776_vm5, %v1769_v9, 920167782  ;;  %v1786_v56 = vsel %vm1776_vm5, %v1772_v63, 1326507024  ;;  %v1876_v3 = vor.u32 %v1875_v4, %v1874_v10  ;;  %vm1773_vm13 = vcmp.lt.s32.totalorder %v1754_v44, 1 }
 0x8da   :  { %v1766_v19 = vor.u32 %v1765_v13, %v1764_v8  ;;  %vm1774_vm14 = vcmp.lt.s32.totalorder %v1754_v44, 2  ;;  %vm1775_vm15 = vcmp.lt.s32.totalorder %v1754_v44, 3  ;;  %v1777_v20 = vsel %vm1773_vm13, %v1757_v14, %v1760_v7 }
 0x8db   :  { %v1781_v27 = vsel %vm1773_vm13, %v1760_v7, %v1763_v12  ;;  %v1787_v47 = vsel %vm1775_vm15, %v1769_v9, %v1786_v56  ;;  %v1862_v17 = vshll.u32 %v2487_v22, %v1859_v29  ;;  %v1863_v2 = vshrl.u32 %v3152_v59, %v1860_v52 }
 0x8dc   :  { %v1778_v28 = vsel %vm1776_vm5, %v1766_v19, 2102212464  ;;  %v1783_v34 = vsel %vm1775_vm15, %v1766_v19, %v1782_v37  ;;  %v1785_v40 = vsel %vm1773_vm13, %v1763_v12, %v1766_v19  ;;  %v1890_v48 = vsel %vm1880_vm12, %v1876_v3, 1326507024 }
 0x8dd   :  { %v1779_v55 = vsel %vm1775_vm15, %v1763_v12, %v1778_v28  ;;  %v1784_v57 = vsel %vm1774_vm14, %v1781_v27, %v1783_v34  ;;  %v1788_v30 = vsel %vm1774_vm14, %v1785_v40, %v1787_v47  ;;  %v1865_v44 = vshll.u32 %v3152_v59, %v1859_v29 }
 0x8de   :  { %v1780_v53 = vsel %vm1774_vm14, %v1777_v20, %v1779_v55  ;;  %v3058_v25 = vmul.u32.u64.low %v3034_v43, %v1788_v30  ;;  %v3059_v42 = vmul.u32.u64.high %v3034_v43, %v1788_v30, %v3058_v25  ;;  %v1864_v54 = vor.u32 %v1863_v2, %v1862_v17 }
 0x8df   :  { %v3065_v31 = vmul.u32.u64.low %v3034_v43, %v1784_v57  ;;  %v3066_v6 = vmul.u32.u64.high %v3034_v43, %v1784_v57, %v3065_v31  ;;  %v1866_v36 = vshrl.u32 %v3153_v18, %v1860_v52  ;;  %v1868_v38 = vshll.u32 %v3153_v18, %v1859_v29 }
 0x8e0   :  { %v1869_v60 = vshrl.u32 %v2490_v33, %v1860_v52  ;;  %v1886_v16 = vsel %vm1880_vm12, %v1873_v11, 920167782  ;;  %v1796_v15 = vmul.u32 %v3034_v43, %v1780_v53  ;;  %v1861_v62 = vshrl.u32 %v2487_v22, %v1860_v52 }
 0x8e1   :  { %v1893_v1 = vshll.u32 %v1853_v45, 8  ;;  %vm1798_vm3 = vc.u32 %v3059_v42, %v3065_v31  ;;  %v1867_v10 = vor.u32 %v1866_v36, %v1865_v44  ;;  %vm1879_vm6 = vcmp.lt.s32.totalorder %v3032_v49, 3 }
 0x8e2   :  { %v1870_v21 = vor.u32 %v1869_v60, %v1868_v38  ;;  %v1799_v4 = vadd.s32 1, %v3066_v6  ;;  %vm1877_vm7 = vcmp.lt.s32.totalorder %v3032_v49, 1  ;;  %vm1878_vm8 = vcmp.lt.s32.totalorder %v3032_v49, 2 }
 0x8e3   :  { %v1891_v33 = vsel %vm1879_vm6, %v1873_v11, %v1890_v48  ;;  %v1885_v43 = vsel %vm1877_vm7, %v1864_v54, %v1867_v10  ;;  %v1881_v52 = vsel %vm1877_vm7, %v1861_v62, %v1864_v54  ;;  %v1797_v17 = vadd.s32 %v3065_v31, %v3059_v42 }
 0x8e4   :  { %v1882_v29 = vsel %vm1880_vm12, %v1870_v21, 2102212464  ;;  %v1887_v24 = vsel %vm1879_vm6, %v1870_v21, %v1886_v16  ;;  %v1889_v22 = vsel %vm1877_vm7, %v1867_v10, %v1870_v21  ;;  %v1800_v45 = vsel %vm1798_vm3, %v1799_v4, %v3066_v6 }
 0x8e5   :  { %v1888_v59 = vsel %vm1878_vm8, %v1885_v43, %v1887_v24  ;;  %v1892_v5 = vsel %vm1878_vm8, %v1889_v22, %v1891_v33  ;;  %v1801_v9 = vadd.s32 %v1800_v45, %v1796_v15  ;;  %v1883_v63 = vsel %vm1879_vm6, %v1867_v10, %v1882_v29 }
 0x8e6   :  { %v3088_v58 = vmul.u32.u64.low %v1893_v1, %v1892_v5  ;;  %v3089_v18 = vmul.u32.u64.high %v1893_v1, %v1892_v5, %v3088_v58  ;;  %v3091_v23 = vmul.u32.u64.low %v1893_v1, %v1888_v59  ;;  %v3092_v7 = vmul.u32.u64.high %v1893_v1, %v1888_v59, %v3091_v23 }
 0x8e7   :  { %v1802_v8 = vadd.s32 536870912, %v1801_v9  ;;  %v1884_v13 = vsel %vm1878_vm8, %v1881_v52, %v1883_v63  ;;  %vm1847_vm5 = vcmp.lt.s32.totalorder %v3020_v46, 0  ;;  %vm1846_vm12 = vcmp.le.f32.partialorder %v1845_v32, 0.7853982 }
 0x8e8   :  { %vm1902_vm9 = vc.u32 %v3089_v18, %v3091_v23  ;;  %v1903_v56 = vadd.s32 1, %v3092_v7  ;;  %v1900_v12 = vmul.u32 %v1893_v1, %v1884_v13  ;;  %v1901_v10 = vadd.s32 %v3091_v23, %v3089_v18 }
 0x8e9   :  { %v1803_v37 = vshrl.u32 %v1802_v8, 30  ;;  %vm1833_vm3 = vweird.f32 %v3017_v41 }
 0x8ea   :  { %v1904_v11 = vsel %vm1902_vm9, %v1903_v56, %v3092_v7  ;;  %vm1937_vm9 = vweird.f32 %v3020_v46 }
 0x8eb   :  { %v1804_v14 = vshll.u32 %v1803_v37, 30  ;;  %v1905_v19 = vadd.s32 %v1904_v11, %v1900_v12  ;;  %v1827_v31 = vsub.s32 4, %v1803_v37 }
 0x8ed   :  { %v1805_v3 = vsub.s32 %v1801_v9, %v1804_v14  ;;  %v1906_v27 = vadd.s32 536870912, %v1905_v19  ;;  %v1828_v59 = vsel %vm1743_vm0, %v1827_v31, %v1803_v37 }
 0x8ee   :  { %v1830_v63 = vsel %vm1742_vm4, 0, %v1828_v59 }
 0x8ef   :  { %v1807_v20 = vsub.s32 0, %v1805_v3  ;;  %v1907_v34 = vshrl.u32 %v1906_v27, 30  ;;  %v1834_v8 = vadd.s32 3, %v1830_v63 }
 0x8f1   :  { %v2075_v28 = vmin.u32 %v1807_v20, %v1805_v3  ;;  %v1908_v47 = vshll.u32 %v1907_v34, 30  ;;  %v1931_v7 = vsub.s32 4, %v1907_v34  ;;  %v1835_v37 = vand.u32 3, %v1834_v8 }
 0x8f3   :  { %v1809_v40 = vclz %v2075_v28  ;;  %v1909_v49 = vsub.s32 %v1905_v19, %v1908_v47  ;;  %v1932_v56 = vsel %vm1847_vm5, %v1931_v7, %v1907_v34  ;;  %vm1840_vm13 = vcmp.eq.s32.totalorder %v1835_v37, 2  ;;  %v1953_v47 = vpop.permute.xlu0 %1952 }
 0x8f4   :  { %v1934_v11 = vsel %vm1846_vm12, 0, %v1932_v56  ;;  %vm1837_vm14 = vcmp.eq.s32.totalorder %v1835_v37, 0  ;;  %vm1836_vm15 = vcmp.lt.s32.totalorder %v1835_v37, 2 }
 0x8f5   :  { %v2076_v55 = vadd.s32 4294967294, %v1809_v40  ;;  %v1911_v30 = vsub.s32 0, %v1909_v49  ;;  %v1938_v28 = vadd.s32 3, %v1934_v11 }
 0x8f7   :  { %vm2077_vm10 = vcmp.lt.s32.totalorder %v2076_v55, 0  ;;  %v2079_v2 = vmin.u32 %v1911_v30, %v1909_v49 }
 0x8f8   :  { %v1812_v57 = vsel %vm2077_vm10, 0, %v2076_v55  ;;  %v1939_v55 = vand.u32 3, %v1938_v28 }
 0x8f9   :  { %v1813_v53 = vsub.s32 32, %v1812_v57  ;;  %v1817_v25 = vsub.s32 4294967266, %v1812_v57  ;;  %v1814_v48 = vshll.u32 %v1805_v3, %v1812_v57  ;;  %v1913_v54 = vclz %v2079_v2 }
 0x8fa   :  { %vm1944_vm6 = vcmp.eq.s32.totalorder %v1939_v55, 2  ;;  %vm1941_vm7 = vcmp.eq.s32.totalorder %v1939_v55, 0  ;;  %vm1940_vm8 = vcmp.lt.s32.totalorder %v1939_v55, 2 }
 0x8fb   :  { %v1815_v6 = vshrl.u32 %v1797_v17, %v1813_v53  ;;  %v1818_v44 = vadd.s32 127, %v1817_v25  ;;  %v2080_v60 = vadd.s32 4294967294, %v1913_v54 }
 0x8fd   :  { %v1816_v36 = vor.u32 %v1815_v6, %v1814_v48  ;;  %v1819_v38 = vshll.u32 %v1818_v44, 23  ;;  %vm2081_vm11 = vcmp.lt.s32.totalorder %v2080_v60, 0 }
 0x8fe   :  { %v1916_v1 = vsel %vm2081_vm11, 0, %v2080_v60 }
 0x8ff   :  { %v1820_v16 = vor.u32 4788187, %v1819_v38  ;;  %v1823_v62 = vcvt.s32.f32 %v1816_v36  ;;  %v1917_v21 = vsub.s32 32, %v1916_v1  ;;  %v1921_v4 = vsub.s32 4294967266, %v1916_v1 }
 0x900   :  { %v1918_v33 = vshll.u32 %v1909_v49, %v1916_v1 }
 0x901   :  { %v1821_v15 = vand.u32 2147483647, %v1820_v16  ;;  %v1919_v29 = vshrl.u32 %v1901_v10, %v1917_v21  ;;  %v1922_v43 = vadd.s32 127, %v1921_v4 }
 0x903   :  { %v1824_v42 = vmul.f32 %v1823_v62, %v1821_v15  ;;  %v1920_v22 = vor.u32 %v1919_v29, %v1918_v33  ;;  %v1923_v45 = vshll.u32 %v1922_v43, 23  ;;  %v1959_v62 = vld [vmem:[%s3139_s12] sm:$0xf] }
 0x905   :  { %v1825_v24 = vxor.u32 2147483648, %v1824_v42  ;;  %v1924_v9 = vor.u32 4788187, %v1923_v45  ;;  %v1927_v18 = vcvt.s32.f32 %v1920_v22 }
 0x907   :  { %v1826_v52 = vsel %vm1743_vm0, %v1825_v24, %v1824_v42  ;;  %v1925_v58 = vand.u32 2147483647, %v1924_v9 }
 0x908   :  { %v1829_v5 = vsel %vm1742_vm4, %v3017_v41, %v1826_v52 }
 0x909   :  { %2473 = vcosq.f32 %v1829_v5  ;;  %v1928_v23 = vmul.f32 %v1927_v18, %v1925_v58 }
 0x90a   :  { %2475 = vsinq.f32 %v1829_v5 }
 0x90b   :  { %v1929_v13 = vxor.u32 2147483648, %v1928_v23 }
 0x90d   :  { %v1930_v51 = vsel %vm1847_vm5, %v1929_v13, %v1928_v23 }
 0x90e   :  { %v1933_v14 = vsel %vm1846_vm12, %v3020_v46, %v1930_v51  ;;  %v1966_v46 = vpop.permute.xlu1 %1965 }
 0x90f   :  { %2477 = vcosq.f32 %v1933_v14 }
 0x910   :  { %2479 = vsinq.f32 %v1933_v14 }
 0x913   :  { %v2474_v12 = vpop.eup %2473 }
 0x914   :  { %v2476_v3 = vpop.eup %2475  ;;  %v1841_v19 = vxor.u32 2147483648, %v2474_v12 }
 0x915   :  { %v1838_v20 = vxor.u32 2147483648, %v2476_v3 }
 0x916   :  { %v1842_v27 = vsel %vm1840_vm13, %v1841_v19, %v2476_v3 }
 0x917   :  { %v1839_v40 = vsel %vm1837_vm14, %v2474_v12, %v1838_v20 }
 0x918   :  { %v1843_v32 = vsel %vm1836_vm15, %v1839_v40, %v1842_v27 }
 0x919   :  { %v1844_v34 = vsel %vm1833_vm3, nan, %v1843_v32  ;;  %v2478_v57 = vpop.eup %2477 }
 0x91a   :  { %v1949_v49 = vmul.f32 %v1844_v34, %v1844_v34  ;;  %v2480_v30 = vpop.eup %2479  ;;  %v1945_v17 = vxor.u32 2147483648, %v2478_v57 }
 0x91b   :  { %v1942_v25 = vxor.u32 2147483648, %v2480_v30 }
 0x91c   :  { %v1955_v53 = vmul.f32 %v1953_v47, %v1949_v49  ;;  %v1946_v2 = vsel %vm1944_vm6, %v1945_v17, %v2480_v30 }
 0x91d   :  { %v1943_v48 = vsel %vm1941_vm7, %v2478_v57, %v1942_v25 }
 0x91e   :  { %v1947_v6 = vsel %vm1940_vm8, %v1943_v48, %v1946_v2  ;;  %v1957_v41 = vadd.f32 %v1955_v53, %v3012_v35 }
 0x91f   :  { %v1948_v44 = vsel %vm1937_vm9, nan, %v1947_v6 }
 0x920   :  { %v1950_v54 = vmul.f32 %v1948_v44, %v1948_v44  ;;  %v1960_v38 = vpack.c.bf16 %v1957_v41, %v1957_v41 }
 0x922   :  { %v1956_v36 = vmul.f32 %v1953_v47, %v1950_v54  ;;  %v1972_v15 = vsel %vm381_vm2, %v1960_v38, 0 }
 0x924   :  { %v1958_v60 = vadd.f32 %v1956_v36, %v3014_v61 }
 0x926   :  { %v1961_v16 = vpack.c.bf16 %v1958_v60, %v1958_v60 }
 0x928   :  { %2082 = vmatprep.subr.msk.bf16.mxu0 %vm381_vm2, %v1961_v16 }
 0x929   :  { %1978 = vmatpush1.bf16.msra.mxu0 %v1972_v15 }
 0x92c   :  { %2083 = vmatmul.mubr.msk.bf16.vlgmr.msra.gmra.mrb[20].mxu0 %vm230_vm1, %v1959_v62 }
 0x9ff   :  { %v2011_v35 = vpop.f32.mrb[20].mxu0 }
 0xa00   :  { %v2013_v1 = vpop.f32.mrb[21].mxu0  ;;  %v2012_v10 = vadd.f32 %v2011_v35, %v1966_v46 }
 0xa01   :  { %v2015_v21 = vpop.f32.mrb[22].mxu0  ;;  %v2014_v4 = vadd.f32 %v2013_v1, %v1966_v46 }
 0xa02   :  { %v2018_v61 = vadd.f32 %v2012_v10, %v2730_v50  ;;  %v2016_v42 = vpop.f32.mrb[23].mxu0 }
 0xa03   :  { %v2019_v31 = vadd.f32 %v2014_v4, %v2651_v26 }
 0xa04   :  { %v2020_v33 = vmul.f32 %v2018_v61, %v2951_v0 }
 0xa05   :  { %v2021_v29 = vmul.f32 %v2019_v31, %v2953_v39 }
 0xa07   :  { %v2085_v43 = vpack.c.bf16 %v2021_v29, %v2020_v33 }
 0xa09   :  { %2030 = vst [vmem:[%s3140_s14] sm:$0xff] %v2085_v43 }

// kernel: autoencoder_forward.18
= control target key start
LH: loop header
LB: loop body
LE: loop exit
PB: predicated region body
PF: predicated region fallthrough
CT: control target
= control target key end

     0   :  { %v531_v0 = vmov 0   ;;  %v532_v2 = vmov 1   ;;  %v533_v4 = vmov 0.0   ;;  %v534_v28 = vmov 683565275   ;;  %s684_s2 = inlined_call_operand.vmem [shape: f32[16,2], index: 2, kind: input, shape index: {}]   ;;  %s685_s0 = inlined_call_operand.vmem [shape: bf16[16,128], index: 0, kind: input, shape index: {}]   ;;  %s686_s4 = inlined_call_operand.vmem [shape: f32[8,1], index: 4, kind: input, shape index: {}]   ;;  %s687_s3 = inlined_call_operand.vmem [shape: bf16[3,8,16], index: 3, kind: input, shape index: {}]   ;;  %s688_s1 = inlined_call_operand.vmem [shape: f32[1,128], index: 1, kind: input, shape index: {}]   ;;  %s689_s5 = inlined_call_operand.vmem [shape: bf16[8,128], index: 5, kind: output, shape index: {}]  }
   0x1   :  { %511 = vset.pattern.permute.xlu0 %v531_v0  ;;  %v25_v1 = vld [vmem:[%s684_s2] sm:$0xff]  ;;  %512 = vset.pattern.permute.xlu1 %v532_v2  ;;  %v26_v3 = vld [vmem:[%s684_s2 + $0x8] sm:$0xff]  ;;  %v535_v32 = vmov 2475754826   ;;  %v536_v34 = vmov 2131351028  }
   0x2   :  { %29 = vperm.xlu0 %511, %v25_v1   ;;  %250 = vperm.xlu1 %512, %v25_v1   ;;  %v584_v5 = vld [vmem:[%s685_s0] sm:$0xff]   ;;  %v537_v36 = vmov 2102212464   ;;  %v538_v38 = vmov 920167782   ;;  %s541_s0 = smov 127  }
   0x3   :  { %473 = vmatprep.subr.bf16.mxu0 %v533_v4  ;;  %479 = vmatprep.subr.bf16.mxu1 %v533_v4  ;;  %v465_v6 = vunpack.c.l.bf16 %v584_v5  ;;  %v466_v9 = vunpack.c.h.bf16 %v584_v5  ;;  %v539_v45 = vmov 1326507024   ;;  %s542_s2 = smov 1  }
   0x6   :  { %34 = vperm.xlu0 %511, %v26_v3   ;;  %254 = vperm.xlu1 %512, %v26_v3  }
  0x81   :  { %v30_v7 = vpop.permute.xlu0 %29 }
  0x82   :  { %v589_v8 = vmul.f32 %v465_v6, %v30_v7 }
  0x84   :  { %v39_v10 = vand.u32 2147483647, %v589_v8  ;;  %v42_v11 = vand.u32 2139095040, %v589_v8  ;;  %vm41_vm14 = vcmp.lt.s32.totalorder %v589_v8, 0 }
  0x85   :  { %v35_v12 = vpop.permute.xlu0 %34 }
  0x86   :  { %v43_v13 = vshrl.u32 %v42_v11, 23  ;;  %v596_v14 = vmul.f32 %v466_v9, %v35_v12  ;;  %v46_v15 = vand.u32 8388607, %v39_v10  ;;  %vm40_vm15 = vcmp.le.f32.partialorder %v39_v10, 0.7853982 }
  0x88   :  { %v441_v16 = vadd.s32 4294967169, %v43_v13  ;;  %v146_v17 = vand.u32 2139095040, %v596_v14  ;;  %v47_v19 = vor.u32 8388608, %v46_v15  ;;  %v143_v21 = vand.u32 2147483647, %v596_v14 }
  0x8a   :  { %v49_v18 = vadd.s32 1, %v441_v16  ;;  %v147_v20 = vshrl.u32 %v146_v17, 23  ;;  %v602_v26 = vshll.u32 %v47_v19, 8  ;;  %v150_v30 = vand.u32 8388607, %v143_v21 }
  0x8c   :  { %vm50_vm0 = vcmp.gt.s32.totalorder %v49_v18, 0  ;;  %v445_v23 = vadd.s32 4294967169, %v147_v20  ;;  %v151_v60 = vor.u32 8388608, %v150_v30 }
  0x8d   :  { %v51_v22 = vsel %vm50_vm0, %v49_v18, 0  ;;  %vm145_vm0 = vcmp.lt.s32.totalorder %v596_v14, 0 }
  0x8e   :  { %v52_v24 = vshrl.u32 %v51_v22, 5  ;;  %v53_v25 = vand.u32 31, %v51_v22  ;;  %v153_v31 = vadd.s32 1, %v445_v23  ;;  %v191_v16 = vshll.u32 %v151_v60, 8 }
  0x90   :  { %v54_v27 = vsub.s32 32, %v53_v25  ;;  %v56_v29 = vshll.u32 %v534_v28, %v53_v25  ;;  %v59_v33 = vshll.u32 %v535_v32, %v53_v25  ;;  %v62_v35 = vshll.u32 %v536_v34, %v53_v25 }
  0x91   :  { %v65_v37 = vshll.u32 %v537_v36, %v53_v25  ;;  %v68_v39 = vshll.u32 %v538_v38, %v53_v25  ;;  %vm71_vm1 = vcmp.lt.s32.totalorder %v52_v24, 1  ;;  %vm73_vm2 = vcmp.lt.s32.totalorder %v52_v24, 3 }
  0x92   :  { %v57_v40 = vshrl.u32 %v535_v32, %v54_v27  ;;  %v60_v41 = vshrl.u32 %v536_v34, %v54_v27  ;;  %v63_v42 = vshrl.u32 %v537_v36, %v54_v27  ;;  %v55_v43 = vshrl.u32 %v534_v28, %v54_v27 }
  0x93   :  { %v66_v44 = vshrl.u32 %v538_v38, %v54_v27  ;;  %v69_v46 = vshrl.u32 %v539_v45, %v54_v27  ;;  %vm154_vm3 = vcmp.gt.s32.totalorder %v153_v31, 0  ;;  %vm74_vm4 = vcmp.lt.s32.totalorder %v52_v24, 4 }
  0x94   :  { %v58_v47 = vor.u32 %v57_v40, %v56_v29  ;;  %v61_v48 = vor.u32 %v60_v41, %v59_v33  ;;  %v64_v49 = vor.u32 %v63_v42, %v62_v35  ;;  %v155_v52 = vsel %vm154_vm3, %v153_v31, 0 }
  0x95   :  { %v67_v50 = vor.u32 %v66_v44, %v65_v37  ;;  %v70_v51 = vor.u32 %v69_v46, %v68_v39  ;;  %vm72_vm5 = vcmp.lt.s32.totalorder %v52_v24, 2  ;;  %v157_v63 = vand.u32 31, %v155_v52 }
  0x96   :  { %v75_v53 = vsel %vm71_vm1, %v55_v43, %v58_v47  ;;  %v76_v54 = vsel %vm74_vm4, %v64_v49, 2102212464  ;;  %v79_v55 = vsel %vm71_vm1, %v58_v47, %v61_v48  ;;  %v83_v56 = vsel %vm71_vm1, %v61_v48, %v64_v49 }
  0x97   :  { %v77_v57 = vsel %vm73_vm2, %v61_v48, %v76_v54  ;;  %v80_v58 = vsel %vm74_vm4, %v67_v50, 920167782  ;;  %v84_v59 = vsel %vm74_vm4, %v70_v51, 1326507024  ;;  %v156_v13 = vshrl.u32 %v155_v52, 5 }
  0x98   :  { %v81_v61 = vsel %vm73_vm2, %v64_v49, %v80_v58  ;;  %v85_v62 = vsel %vm73_vm2, %v67_v50, %v84_v59  ;;  %v78_v0 = vsel %vm72_vm5, %v75_v53, %v77_v57  ;;  %v158_v15 = vsub.s32 32, %v157_v63 }
  0x99   :  { %v82_v1 = vsel %vm72_vm5, %v79_v55, %v81_v61  ;;  %v86_v2 = vsel %vm72_vm5, %v83_v56, %v85_v62  ;;  %v94_v17 = vmul.u32 %v602_v26, %v78_v0  ;;  %v160_v18 = vshll.u32 %v534_v28, %v157_v63 }
  0x9a   :  { %v615_v3 = vmul.u32.u64.low %v602_v26, %v86_v2  ;;  %v616_v7 = vmul.u32.u64.high %v602_v26, %v86_v2, %v615_v3  ;;  %v619_v11 = vmul.u32.u64.low %v602_v26, %v82_v1  ;;  %v620_v12 = vmul.u32.u64.high %v602_v26, %v82_v1, %v619_v11 }
  0x9b   :  { %v163_v19 = vshll.u32 %v535_v32, %v157_v63  ;;  %v166_v20 = vshll.u32 %v536_v34, %v157_v63  ;;  %v161_v22 = vshrl.u32 %v535_v32, %v158_v15  ;;  %v164_v23 = vshrl.u32 %v536_v34, %v158_v15 }
  0x9c   :  { %v167_v24 = vshrl.u32 %v537_v36, %v158_v15  ;;  %v169_v25 = vshll.u32 %v537_v36, %v157_v63  ;;  %vm96_vm6 = vc.u32 %v616_v7, %v619_v11  ;;  %v97_v27 = vadd.s32 1, %v620_v12 }
  0x9d   :  { %v170_v29 = vshrl.u32 %v538_v38, %v158_v15  ;;  %v172_v30 = vshll.u32 %v538_v38, %v157_v63  ;;  %v162_v31 = vor.u32 %v161_v22, %v160_v18  ;;  %v165_v33 = vor.u32 %v164_v23, %v163_v19 }
  0x9e   :  { %v168_v35 = vor.u32 %v167_v24, %v166_v20  ;;  %v173_v37 = vshrl.u32 %v539_v45, %v158_v15  ;;  %v98_v26 = vsel %vm96_vm6, %v97_v27, %v620_v12  ;;  %vm175_vm7 = vcmp.lt.s32.totalorder %v156_v13, 1 }
  0x9f   :  { %v171_v39 = vor.u32 %v170_v29, %v169_v25  ;;  %vm178_vm8 = vcmp.lt.s32.totalorder %v156_v13, 4  ;;  %v99_v32 = vadd.s32 %v98_v26, %v94_v17  ;;  %vm177_vm9 = vcmp.lt.s32.totalorder %v156_v13, 3 }
  0xa0   :  { %v174_v34 = vor.u32 %v173_v37, %v172_v30  ;;  %v180_v36 = vsel %vm178_vm8, %v168_v35, 2102212464  ;;  %v159_v40 = vshrl.u32 %v534_v28, %v158_v15  ;;  %v183_v41 = vsel %vm175_vm7, %v162_v31, %v165_v33 }
  0xa1   :  { %v184_v42 = vsel %vm178_vm8, %v171_v39, 920167782  ;;  %v187_v43 = vsel %vm175_vm7, %v165_v33, %v168_v35  ;;  %v100_v44 = vadd.s32 536870912, %v99_v32  ;;  %vm176_vm10 = vcmp.lt.s32.totalorder %v156_v13, 2 }
  0xa2   :  { %v185_v38 = vsel %vm177_vm9, %v168_v35, %v184_v42  ;;  %v188_v46 = vsel %vm178_vm8, %v174_v34, 1326507024  ;;  %v179_v47 = vsel %vm175_vm7, %v159_v40, %v162_v31  ;;  %v181_v45 = vsel %vm177_vm9, %v165_v33, %v180_v36 }
  0xa3   :  { %v186_v48 = vsel %vm176_vm10, %v183_v41, %v185_v38  ;;  %v189_v49 = vsel %vm177_vm9, %v171_v39, %v188_v46  ;;  %v101_v50 = vshrl.u32 %v100_v44, 30  ;;  %v182_v56 = vsel %vm176_vm10, %v179_v47, %v181_v45 }
  0xa4   :  { %v190_v51 = vsel %vm176_vm10, %v187_v43, %v189_v49  ;;  %v630_v52 = vmul.u32.u64.low %v191_v16, %v186_v48  ;;  %v631_v53 = vmul.u32.u64.high %v191_v16, %v186_v48, %v630_v52  ;;  %v198_v59 = vmul.u32 %v191_v16, %v182_v56 }
  0xa5   :  { %v633_v54 = vmul.u32.u64.low %v191_v16, %v190_v51  ;;  %v634_v55 = vmul.u32.u64.high %v191_v16, %v190_v51, %v633_v54  ;;  %v102_v28 = vshll.u32 %v101_v50, 30  ;;  %v95_v17 = vadd.s32 %v619_v11, %v616_v7 }
  0xa6   :  { %v201_v58 = vadd.s32 1, %v631_v53  ;;  %v125_v34 = vsub.s32 4, %v101_v50  ;;  %vm144_vm1 = vcmp.le.f32.partialorder %v143_v21, 0.7853982  ;;  %vm131_vm5 = vweird.f32 %v589_v8 }
  0xa7   :  { %v103_v57 = vsub.s32 %v99_v32, %v102_v28  ;;  %vm200_vm11 = vc.u32 %v634_v55, %v630_v52  ;;  %v199_v39 = vadd.s32 %v630_v52, %v634_v55  ;;  %vm540_vm7 = vmmov 0  }
  0xa8   :  { %v202_v61 = vsel %vm200_vm11, %v201_v58, %v631_v53  ;;  %v126_v46 = vsel %vm41_vm14, %v125_v34, %v101_v50  ;;  %475 = vmatprep.mubr.msk.bf16.mxu0 %vm540_vm7, %v533_v4  ;;  %481 = vmatprep.mubr.msk.bf16.mxu1 %vm540_vm7, %v533_v4  ;;  %vm235_vm10 = vweird.f32 %v596_v14  ;;  %vm277_vm11 = vcmask 130048  }
  0xa9   :  { %v105_v60 = vsub.s32 0, %v103_v57  ;;  %v203_v62 = vadd.s32 %v202_v61, %v198_v59  ;;  %v128_v49 = vsel %vm40_vm15, 0, %v126_v46 }
  0xaa   :  { %v132_v53 = vadd.s32 3, %v128_v49 }
  0xab   :  { %v442_v63 = vmin.u32 %v105_v60, %v103_v57  ;;  %v204_v0 = vadd.s32 536870912, %v203_v62 }
  0xac   :  { %v133_v56 = vand.u32 3, %v132_v53 }
  0xad   :  { %v107_v1 = vclz %v442_v63  ;;  %v205_v2 = vshrl.u32 %v204_v0, 30 }
  0xae   :  { %vm135_vm2 = vcmp.eq.s32.totalorder %v133_v56, 0  ;;  %vm138_vm3 = vcmp.eq.s32.totalorder %v133_v56, 2  ;;  %vm134_vm4 = vcmp.lt.s32.totalorder %v133_v56, 2 }
  0xaf   :  { %v443_v3 = vadd.s32 4294967294, %v107_v1  ;;  %v206_v12 = vshll.u32 %v205_v2, 30  ;;  %v229_v52 = vsub.s32 4, %v205_v2 }
  0xb1   :  { %vm444_vm12 = vcmp.lt.s32.totalorder %v443_v3, 0  ;;  %v207_v15 = vsub.s32 %v203_v62, %v206_v12  ;;  %v230_v10 = vsel %vm145_vm0, %v229_v52, %v205_v2 }
  0xb2   :  { %v110_v13 = vsel %vm444_vm12, 0, %v443_v3  ;;  %v232_v60 = vsel %vm144_vm1, 0, %v230_v10  ;;  %vm269_vm12 = vcmask 7168  }
  0xb3   :  { %v111_v18 = vsub.s32 32, %v110_v13  ;;  %v115_v16 = vsub.s32 4294967266, %v110_v13  ;;  %v209_v19 = vsub.s32 0, %v207_v15  ;;  %v112_v20 = vshll.u32 %v103_v57, %v110_v13  ;;  %v251_v13 = vpop.permute.xlu1 %250 }
  0xb4   :  { %v236_v63 = vadd.s32 3, %v232_v60 }
  0xb5   :  { %v113_v22 = vshrl.u32 %v95_v17, %v111_v18  ;;  %v116_v23 = vadd.s32 127, %v115_v16  ;;  %v446_v24 = vmin.u32 %v209_v19, %v207_v15 }
  0xb6   :  { %v237_v1 = vand.u32 3, %v236_v63 }
  0xb7   :  { %v114_v25 = vor.u32 %v113_v22, %v112_v20  ;;  %v117_v27 = vshll.u32 %v116_v23, 23  ;;  %v211_v29 = vclz %v446_v24  ;;  %v255_v23 = vpop.permute.xlu1 %254 }
  0xb8   :  { %vm242_vm6 = vcmp.eq.s32.totalorder %v237_v1, 2  ;;  %vm239_vm8 = vcmp.eq.s32.totalorder %v237_v1, 0  ;;  %vm238_vm9 = vcmp.lt.s32.totalorder %v237_v1, 2 }
  0xb9   :  { %v118_v30 = vor.u32 4788187, %v117_v27  ;;  %v447_v31 = vadd.s32 4294967294, %v211_v29  ;;  %v121_v35 = vcvt.s32.f32 %v114_v25 }
  0xbb   :  { %v119_v33 = vand.u32 2147483647, %v118_v30  ;;  %vm448_vm13 = vcmp.lt.s32.totalorder %v447_v31, 0 }
  0xbc   :  { %v214_v26 = vsel %vm448_vm13, 0, %v447_v31  ;;  %v449_v31 = vld [vmem:[%s687_s3 + $0x4] sm:$0xf]  ;;  %vm451_vm13 = vmneg %vm269_vm12 }
  0xbd   :  { %v122_v37 = vmul.f32 %v121_v35, %v119_v33  ;;  %v215_v7 = vsub.s32 32, %v214_v26  ;;  %v219_v11 = vsub.s32 4294967266, %v214_v26  ;;  %v216_v36 = vshll.u32 %v207_v15, %v214_v26 }
  0xbf   :  { %v123_v32 = vxor.u32 2147483648, %v122_v37  ;;  %v217_v40 = vshrl.u32 %v199_v39, %v215_v7  ;;  %v220_v41 = vadd.s32 127, %v219_v11  ;;  %v272_v7 = vld [vmem:[%s687_s3] sm:$0xf] }
  0xc1   :  { %v124_v42 = vsel %vm41_vm14, %v123_v32, %v122_v37  ;;  %v218_v43 = vor.u32 %v217_v40, %v216_v36  ;;  %v221_v44 = vshll.u32 %v220_v41, 23  ;;  %vm370_vm14 = vcmask 1039360  }
  0xc2   :  { %v127_v38 = vsel %vm40_vm15, %v589_v8, %v124_v42  ;;  %vm453_vm15 = vmpackc.low %vm451_vm13, %vm451_vm13 }
  0xc3   :  { %523 = vcosq.f32 %v127_v38  ;;  %v222_v47 = vor.u32 4788187, %v221_v44  ;;  %v225_v48 = vcvt.s32.f32 %v218_v43 }
  0xc4   :  { %525 = vsinq.f32 %v127_v38 }
  0xc5   :  { %v223_v45 = vand.u32 2147483647, %v222_v47 }
  0xc7   :  { %v226_v51 = vmul.f32 %v225_v48, %v223_v45 }
  0xc9   :  { %v227_v54 = vxor.u32 2147483648, %v226_v51 }
  0xcb   :  { %v228_v55 = vsel %vm145_vm0, %v227_v54, %v226_v51  ;;  %vm458_vm0 = vmpackc.low %vm370_vm14, %vm370_vm14  ;;  %v462_v51 = vld [vmem:[%s688_s1] ss:$0 sm:$0xff] }
  0xcc   :  { %v231_v50 = vsel %vm144_vm1, %v596_v14, %v228_v55  ;;  %v420_v14 = vld [vmem:[%s686_s4] sm:$0xff] }
  0xcd   :  { %v524_v28 = vpop.eup %523  ;;  %527 = vcosq.f32 %v231_v50 }
  0xce   :  { %v526_v57 = vpop.eup %525  ;;  %v139_v58 = vxor.u32 2147483648, %v524_v28  ;;  %529 = vsinq.f32 %v231_v50 }
  0xcf   :  { %v136_v59 = vxor.u32 2147483648, %v526_v57 }
  0xd0   :  { %v140_v62 = vsel %vm138_vm3, %v139_v58, %v526_v57 }
  0xd1   :  { %v137_v61 = vsel %vm135_vm2, %v524_v28, %v136_v59 }
  0xd2   :  { %v141_v0 = vsel %vm134_vm4, %v137_v61, %v140_v62 }
  0xd3   :  { %v142_v2 = vsel %vm131_vm5, nan, %v141_v0 }
  0xd4   :  { %v247_v17 = vmul.f32 %v142_v2, %v142_v2 }
  0xd6   :  { %v257_v20 = vmul.f32 %v251_v13, %v247_v17 }
  0xd7   :  { %v528_v21 = vpop.eup %527 }
  0xd8   :  { %v530_v3 = vpop.eup %529  ;;  %v243_v12 = vxor.u32 2147483648, %v528_v21  ;;  %v259_v25 = vadd.f32 %v465_v6, %v257_v20 }
  0xd9   :  { %v240_v15 = vxor.u32 2147483648, %v530_v3 }
  0xda   :  { %v244_v18 = vsel %vm242_vm6, %v243_v12, %v530_v3 }
  0xdb   :  { %v241_v16 = vsel %vm239_vm8, %v528_v21, %v240_v15 }
  0xdc   :  { %v245_v8 = vsel %vm238_vm9, %v241_v16, %v244_v18 }
  0xdd   :  { %v246_v19 = vsel %vm235_vm10, nan, %v245_v8 }
  0xde   :  { %v248_v22 = vmul.f32 %v246_v19, %v246_v19 }
  0xe0   :  { %v258_v24 = vmul.f32 %v255_v23, %v248_v22 }
  0xe2   :  { %v260_v27 = vadd.f32 %v466_v9, %v258_v24 }
  0xe4   :  { %v518_v29 = vpack.i.bf16 %v260_v27, %v259_v25  ;;  %v276_v30 = vpack.c.bf16 %v260_v27, %v259_v25 }
  0xe6   :  { %519 = vrot.lane.b32.xlu1 %v518_v29, %s541_s0  ;;  %514 = vrot.lane.b32.xlu0 %v518_v29, %s542_s2 }
  0xe7   :  { %474 = vmatpush3.bf16.msra.mxu0 %v276_v30 }
  0xe8   :  { %485 = vmatprep.subr.bf16.mxu0 %v533_v4 }
  0xea   :  { %423 = vperm.xlu0 %511, %v420_v14   ;;  %476 = vmatmul.mubr.msk.bf16.vlgmr.msra.gmra.mrb[0].mxu0 %vm277_vm11, %v449_v31 }
  0xeb   :  { %487 = vmatprep.mubr.msk.bf16.mxu0 %vm540_vm7, %v533_v4  ;;  %v457_v4 = vld [vmem:[%s687_s3 + $0x8] sm:$0xf] }
 0x158   :  { %v520_v5 = vpop.permute.xlu1 %519  ;;  %v515_v6 = vpop.permute.xlu0 %514 }
 0x159   :  { %v522_v9 = vunpack.i.h.bf16 %v520_v5  ;;  %v521_v33 = vunpack.i.l.bf16 %v520_v5  ;;  %v517_v35 = vunpack.i.h.bf16 %v515_v6  ;;  %v516_v37 = vunpack.i.l.bf16 %v515_v6 }
 0x15b   :  { %v459_v26 = vpack.c.bf16 %v522_v9, %v521_v33  ;;  %v454_v39 = vpack.c.bf16 %v517_v35, %v516_v37 }
 0x15d   :  { %480 = vmatpush3.bf16.msk.msra.mxu1 %vm453_vm15, %v454_v39  ;;  %486 = vmatpush3.bf16.msk.msra.mxu0 %vm458_vm0, %v459_v26 }
 0x160   :  { %482 = vmatmul.mubr.msk.bf16.vlgmr.msra.gmra.mrb[0].mxu1 %vm277_vm11, %v272_v7  ;;  %488 = vmatmul.mubr.msk.bf16.vlgmr.msra.gmra.mrb[4].mxu0 %vm277_vm11, %v457_v4 }
 0x169   :  { %v424_v49 = vpop.permute.xlu0 %423 }
 0x1bd   :  { %v315_v11 = vpop.f32.mrb[0].mxu0 }
 0x1be   :  { %v477_v32 = vpop.f32.mrb[1].mxu0 }
 0x1bf   :  { %v318_v34 = vpop.f32.mrb[2].mxu0 }
 0x1c0   :  { %v478_v36 = vpop.f32.mrb[3].mxu0 }
 0x233   :  { %v358_v40 = vpop.f32.mrb[0].mxu1  ;;  %v413_v41 = vpop.f32.mrb[4].mxu0 }
 0x234   :  { %v359_v42 = vadd.f32 %v358_v40, %v315_v11  ;;  %v483_v43 = vpop.f32.mrb[1].mxu1  ;;  %v489_v44 = vpop.f32.mrb[5].mxu0 }
 0x235   :  { %v361_v38 = vpop.f32.mrb[2].mxu1  ;;  %v416_v46 = vpop.f32.mrb[6].mxu0 }
 0x236   :  { %v419_v47 = vadd.f32 %v413_v41, %v359_v42  ;;  %v484_v45 = vpop.f32.mrb[3].mxu1  ;;  %v490_v48 = vpop.f32.mrb[7].mxu0 }
 0x238   :  { %v426_v52 = vadd.f32 %v424_v49, %v419_v47 }
 0x23a   :  { %v434_v53 = vmul.f32 %v462_v51, %v426_v52 }
 0x23c   :  { %v435_v54 = vpack.c.bf16 %v434_v53, %v434_v53 }
 0x23e   :  { %436 = vst [vmem:[%s689_s5] sm:$0xf] %v435_v54 }

// kernel: autoencoder_forward.17
= control target key start
LH: loop header
LB: loop body
LE: loop exit
PB: predicated region body
PF: predicated region fallthrough
CT: control target
= control target key end

     0   :  { %v853_v0 = vmov 0   ;;  %v854_v2 = vmov 1   ;;  %v855_v29 = vmov 683565275   ;;  %v856_v33 = vmov 2475754826   ;;  %s1118_s2 = inlined_call_operand.vmem [shape: f32[8,2], index: 2, kind: input, shape index: {}]   ;;  %s1119_s3 = inlined_call_operand.vmem [shape: bf16[4,16,8], index: 3, kind: input, shape index: {}]   ;;  %s1120_s0 = inlined_call_operand.vmem [shape: bf16[8,256], index: 0, kind: input, shape index: {}]   ;;  %s1121_s4 = inlined_call_operand.vmem [shape: f32[16,1], index: 4, kind: input, shape index: {}]   ;;  %s1122_s5 = inlined_call_operand.vmem [shape: f32[256,128], index: 5, kind: input, shape index: {}]   ;;  %s1123_s1 = inlined_call_operand.vmem [shape: f32[1,128], index: 1, kind: input, shape index: {}]   ;;  %s1124_s6 = inlined_call_operand.vmem [shape: bf16[16,128], index: 6, kind: output, shape index: {}]  }
   0x1   :  { %822 = vset.pattern.permute.xlu0 %v853_v0  ;;  %v27_v1 = vld [vmem:[%s1118_s2] sm:$0xff]  ;;  %321 = vmatprep.mubr.bf16.mxu0 %v853_v0  ;;  %v857_v35 = vmov 2131351028   ;;  %v858_v37 = vmov 2102212464   ;;  %s862_s26 = smov 127  }
   0x2   :  { %30 = vperm.xlu0 %822, %v27_v1   ;;  %840 = vset.pattern.permute.xlu1 %v853_v0  ;;  %v909_v3 = vld [vmem:[%s1120_s0] sm:$0xff]  ;;  %v859_v39 = vmov 920167782   ;;  %v860_v46 = vmov 1326507024   ;;  %s861_s0 = smov 1  }
   0x3   :  { %v25_v4 = vunpack.c.l.bf16 %v909_v3  ;;  %v26_v5 = vunpack.c.h.bf16 %v909_v3  ;;  %s863_s27 = smov 126   ;;  %v539_v3 = vld [vmem:[%s1121_s4] sm:$0xff] }
   0x6   :  { %823 = vset.pattern.permute.xlu0 %v854_v2 }
   0x7   :  { %246 = vperm.xlu0 %823, %v27_v1  }
   0xb   :  { %839 = vset.pattern.permute.xlu0 %v853_v0 }
   0xc   :  { %543 = vperm.xlu0 %839, %v539_v3  }
  0x81   :  { %v31_v6 = vpop.permute.xlu0 %30 }
  0x82   :  { %v915_v7 = vmul.f32 %v31_v6, %v25_v4  ;;  %v919_v8 = vmul.f32 %v31_v6, %v26_v5 }
  0x84   :  { %v35_v9 = vand.u32 2147483647, %v915_v7  ;;  %v38_v10 = vand.u32 2139095040, %v915_v7  ;;  %v142_v11 = vand.u32 2139095040, %v919_v8  ;;  %v139_v14 = vand.u32 2147483647, %v919_v8 }
  0x85   :  { %vm37_vm14 = vcmp.lt.s32.totalorder %v915_v7, 0 }
  0x86   :  { %v39_v12 = vshrl.u32 %v38_v10, 23  ;;  %v42_v13 = vand.u32 8388607, %v35_v9  ;;  %v143_v15 = vshrl.u32 %v142_v11, 23  ;;  %v929_v20 = vand.u32 8388607, %v139_v14 }
  0x87   :  { %vm36_vm15 = vcmp.le.f32.partialorder %v35_v9, 0.7853982 }
  0x88   :  { %v685_v16 = vadd.s32 4294967169, %v39_v12  ;;  %v689_v17 = vadd.s32 4294967169, %v143_v15  ;;  %v43_v19 = vor.u32 8388608, %v42_v13  ;;  %v147_v27 = vor.u32 8388608, %v929_v20 }
  0x8a   :  { %v45_v18 = vadd.s32 1, %v685_v16  ;;  %v149_v21 = vadd.s32 1, %v689_v17  ;;  %v931_v26 = vshll.u32 %v43_v19, 8 }
  0x8c   :  { %vm46_vm0 = vcmp.gt.s32.totalorder %v45_v18, 0  ;;  %vm150_vm1 = vcmp.gt.s32.totalorder %v149_v21, 0 }
  0x8d   :  { %v47_v22 = vsel %vm46_vm0, %v45_v18, 0  ;;  %v151_v25 = vsel %vm150_vm1, %v149_v21, 0  ;;  %vm141_vm0 = vcmp.lt.s32.totalorder %v919_v8, 0  ;;  %vm140_vm1 = vcmp.le.f32.partialorder %v139_v14, 0.7853982 }
  0x8e   :  { %v48_v23 = vshrl.u32 %v47_v22, 5  ;;  %v49_v24 = vand.u32 31, %v47_v22  ;;  %v934_v31 = vshrl.u32 %v151_v25, 5  ;;  %v153_v32 = vand.u32 31, %v151_v25 }
  0x90   :  { %v50_v28 = vsub.s32 32, %v49_v24  ;;  %v52_v30 = vshll.u32 %v855_v29, %v49_v24  ;;  %v55_v34 = vshll.u32 %v856_v33, %v49_v24  ;;  %v58_v36 = vshll.u32 %v857_v35, %v49_v24 }
  0x91   :  { %v61_v38 = vshll.u32 %v858_v37, %v49_v24  ;;  %v64_v40 = vshll.u32 %v859_v39, %v49_v24  ;;  %vm67_vm2 = vcmp.lt.s32.totalorder %v48_v23, 1  ;;  %vm68_vm3 = vcmp.lt.s32.totalorder %v48_v23, 2 }
  0x92   :  { %v53_v41 = vshrl.u32 %v856_v33, %v50_v28  ;;  %v56_v42 = vshrl.u32 %v857_v35, %v50_v28  ;;  %v59_v43 = vshrl.u32 %v858_v37, %v50_v28  ;;  %v51_v44 = vshrl.u32 %v855_v29, %v50_v28 }
  0x93   :  { %v62_v45 = vshrl.u32 %v859_v39, %v50_v28  ;;  %v65_v47 = vshrl.u32 %v860_v46, %v50_v28  ;;  %v154_v51 = vsub.s32 32, %v153_v32  ;;  %vm69_vm4 = vcmp.lt.s32.totalorder %v48_v23, 3 }
  0x94   :  { %v54_v48 = vor.u32 %v53_v41, %v52_v30  ;;  %v57_v49 = vor.u32 %v56_v42, %v55_v34  ;;  %v60_v50 = vor.u32 %v59_v43, %v58_v36  ;;  %vm70_vm5 = vcmp.lt.s32.totalorder %v48_v23, 4 }
  0x95   :  { %v63_v52 = vor.u32 %v62_v45, %v61_v38  ;;  %v66_v53 = vor.u32 %v65_v47, %v64_v40  ;;  %v156_v61 = vshll.u32 %v855_v29, %v153_v32  ;;  %v157_v1 = vshrl.u32 %v856_v33, %v154_v51 }
  0x96   :  { %v71_v54 = vsel %vm67_vm2, %v51_v44, %v54_v48  ;;  %v72_v55 = vsel %vm70_vm5, %v60_v50, 2102212464  ;;  %v75_v56 = vsel %vm67_vm2, %v54_v48, %v57_v49  ;;  %v79_v57 = vsel %vm67_vm2, %v57_v49, %v60_v50 }
  0x97   :  { %v73_v58 = vsel %vm69_vm4, %v57_v49, %v72_v55  ;;  %v76_v59 = vsel %vm70_vm5, %v63_v52, 920167782  ;;  %v80_v60 = vsel %vm70_vm5, %v66_v53, 1326507024  ;;  %v159_v2 = vshll.u32 %v856_v33, %v153_v32 }
  0x98   :  { %v77_v62 = vsel %vm69_vm4, %v60_v50, %v76_v59  ;;  %v81_v63 = vsel %vm69_vm4, %v63_v52, %v80_v60  ;;  %v74_v6 = vsel %vm68_vm3, %v71_v54, %v73_v58  ;;  %v160_v12 = vshrl.u32 %v857_v35, %v154_v51 }
  0x99   :  { %v78_v10 = vsel %vm68_vm3, %v75_v56, %v77_v62  ;;  %v82_v11 = vsel %vm68_vm3, %v79_v57, %v81_v63  ;;  %v158_v18 = vor.u32 %v157_v1, %v156_v61  ;;  %v162_v20 = vshll.u32 %v857_v35, %v153_v32 }
  0x9a   :  { %v943_v13 = vmul.u32.u64.low %v931_v26, %v82_v11  ;;  %v944_v15 = vmul.u32.u64.high %v931_v26, %v82_v11, %v943_v13  ;;  %v947_v16 = vmul.u32.u64.low %v931_v26, %v78_v10  ;;  %v948_v17 = vmul.u32.u64.high %v931_v26, %v78_v10, %v947_v16 }
  0x9b   :  { %v161_v19 = vor.u32 %v160_v12, %v159_v2  ;;  %v163_v21 = vshrl.u32 %v858_v37, %v154_v51  ;;  %v165_v22 = vshll.u32 %v858_v37, %v153_v32  ;;  %v166_v24 = vshrl.u32 %v859_v39, %v154_v51 }
  0x9c   :  { %v169_v25 = vshrl.u32 %v860_v46, %v154_v51  ;;  %v187_v28 = vshll.u32 %v147_v27, 8  ;;  %v90_v23 = vmul.u32 %v931_v26, %v74_v6  ;;  %v155_v30 = vshrl.u32 %v855_v29, %v154_v51 }
  0x9d   :  { %v164_v33 = vor.u32 %v163_v21, %v162_v20  ;;  %v168_v34 = vshll.u32 %v859_v39, %v153_v32  ;;  %vm92_vm6 = vc.u32 %v944_v15, %v947_v16  ;;  %v93_v36 = vadd.s32 1, %v948_v17 }
  0x9e   :  { %v167_v38 = vor.u32 %v166_v24, %v165_v22  ;;  %vm171_vm7 = vcmp.lt.s32.totalorder %v934_v31, 1  ;;  %vm173_vm8 = vcmp.lt.s32.totalorder %v934_v31, 3  ;;  %vm174_vm9 = vcmp.lt.s32.totalorder %v934_v31, 4 }
  0x9f   :  { %v170_v40 = vor.u32 %v169_v25, %v168_v34  ;;  %v179_v35 = vsel %vm171_vm7, %v158_v18, %v161_v19  ;;  %v94_v27 = vsel %vm92_vm6, %v93_v36, %v948_v17  ;;  %v176_v37 = vsel %vm174_vm9, %v164_v33, 2102212464 }
  0xa0   :  { %v180_v26 = vsel %vm174_vm9, %v167_v38, 920167782  ;;  %v183_v29 = vsel %vm171_vm7, %v161_v19, %v164_v33  ;;  %v95_v41 = vadd.s32 %v94_v27, %v90_v23  ;;  %vm172_vm10 = vcmp.lt.s32.totalorder %v934_v31, 2 }
  0xa1   :  { %v181_v32 = vsel %vm173_vm8, %v164_v33, %v180_v26  ;;  %v184_v39 = vsel %vm174_vm9, %v170_v40, 1326507024  ;;  %v175_v42 = vsel %vm171_vm7, %v155_v30, %v158_v18  ;;  %v177_v43 = vsel %vm173_vm8, %v161_v19, %v176_v37 }
  0xa2   :  { %v182_v44 = vsel %vm172_vm10, %v179_v35, %v181_v32  ;;  %v185_v45 = vsel %vm173_vm8, %v167_v38, %v184_v39  ;;  %v96_v46 = vadd.s32 536870912, %v95_v41  ;;  %v178_v53 = vsel %vm172_vm10, %v175_v42, %v177_v43 }
  0xa3   :  { %v186_v47 = vsel %vm172_vm10, %v183_v29, %v185_v45  ;;  %v958_v48 = vmul.u32.u64.low %v187_v28, %v182_v44  ;;  %v959_v49 = vmul.u32.u64.high %v187_v28, %v182_v44, %v958_v48  ;;  %v194_v31 = vmul.u32 %v187_v28, %v178_v53 }
  0xa4   :  { %v961_v50 = vmul.u32.u64.low %v187_v28, %v186_v47  ;;  %v962_v51 = vmul.u32.u64.high %v187_v28, %v186_v47, %v961_v50  ;;  %v97_v52 = vshrl.u32 %v96_v46, 30  ;;  %v91_v12 = vadd.s32 %v947_v16, %v944_v15 }
  0xa5   :  { %v197_v55 = vadd.s32 1, %v959_v49  ;;  %vm127_vm5 = vweird.f32 %v915_v7  ;;  %vm231_vm9 = vweird.f32 %v919_v8  ;;  %vm282_vm10 = vcmask 1043456  }
  0xa6   :  { %v98_v54 = vshll.u32 %v97_v52, 30  ;;  %vm196_vm11 = vc.u32 %v962_v51, %v958_v48  ;;  %v195_v36 = vadd.s32 %v958_v48, %v962_v51  ;;  %v121_v16 = vsub.s32 4, %v97_v52 }
  0xa7   :  { %v198_v57 = vsel %vm196_vm11, %v197_v55, %v959_v49  ;;  %vm278_vm11 = vcmask 64512  }
  0xa8   :  { %v99_v56 = vsub.s32 %v95_v41, %v98_v54  ;;  %v199_v58 = vadd.s32 %v198_v57, %v194_v31  ;;  %v122_v39 = vsel %vm37_vm14, %v121_v16, %v97_v52  ;;  %v557_v16 = vld [vmem:[%s1122_s5 + $0x10] sm:$0xff] }
  0xa9   :  { %v124_v46 = vsel %vm36_vm15, 0, %v122_v39  ;;  %v560_v39 = vld [vmem:[%s1122_s5 + $0x28] sm:$0xff] }
  0xaa   :  { %v101_v59 = vsub.s32 0, %v99_v56  ;;  %v200_v60 = vadd.s32 536870912, %v199_v58  ;;  %v128_v49 = vadd.s32 3, %v124_v46  ;;  %v561_v46 = vld [vmem:[%s1122_s5 + $0x30] sm:$0xff] }
  0xac   :  { %v686_v61 = vmin.u32 %v101_v59, %v99_v56  ;;  %v201_v62 = vshrl.u32 %v200_v60, 30  ;;  %v129_v52 = vand.u32 3, %v128_v49  ;;  %v580_v49 = vld [vmem:[%s1122_s5 + $0xc8] sm:$0xff] }
  0xae   :  { %v103_v63 = vclz %v686_v61  ;;  %v202_v1 = vshll.u32 %v201_v62, 30  ;;  %v225_v48 = vsub.s32 4, %v201_v62  ;;  %vm134_vm2 = vcmp.eq.s32.totalorder %v129_v52, 2 }
  0xaf   :  { %vm131_vm3 = vcmp.eq.s32.totalorder %v129_v52, 0  ;;  %vm130_vm4 = vcmp.lt.s32.totalorder %v129_v52, 2  ;;  %v564_v52 = vld [vmem:[%s1122_s5 + $0x48] sm:$0xff] }
  0xb0   :  { %v687_v2 = vadd.s32 4294967294, %v103_v63  ;;  %v203_v6 = vsub.s32 %v199_v58, %v202_v1  ;;  %v226_v9 = vsel %vm141_vm0, %v225_v48, %v201_v62  ;;  %v247_v62 = vpop.permute.xlu0 %246  ;;  %v579_v48 = vld [vmem:[%s1122_s5 + $0xc0] sm:$0xff] }
  0xb1   :  { %v228_v55 = vsel %vm140_vm1, 0, %v226_v9  ;;  %v563_v9 = vld [vmem:[%s1122_s5 + $0x40] sm:$0xff] }
  0xb2   :  { %vm688_vm12 = vcmp.lt.s32.totalorder %v687_v2, 0  ;;  %v205_v11 = vsub.s32 0, %v203_v6  ;;  %v232_v59 = vadd.s32 3, %v228_v55  ;;  %v777_v55 = vpack.c.bf16 %v564_v52, %v563_v9 }
  0xb3   :  { %v106_v10 = vsel %vm688_vm12, 0, %v687_v2  ;;  %vm259_vm12 = vcmask 7168  }
  0xb4   :  { %v107_v13 = vsub.s32 32, %v106_v10  ;;  %v111_v17 = vsub.s32 4294967266, %v106_v10  ;;  %v690_v18 = vmin.u32 %v205_v11, %v203_v6  ;;  %v108_v19 = vshll.u32 %v99_v56, %v106_v10 }
  0xb5   :  { %v233_v63 = vand.u32 3, %v232_v59  ;;  %v584_v59 = vld [vmem:[%s1122_s5 + $0xe8] sm:$0xff] }
  0xb6   :  { %v109_v20 = vshrl.u32 %v91_v12, %v107_v13  ;;  %v112_v21 = vadd.s32 127, %v111_v17  ;;  %v207_v22 = vclz %v690_v18 }
  0xb7   :  { %vm238_vm6 = vcmp.eq.s32.totalorder %v233_v63, 2  ;;  %vm235_vm7 = vcmp.eq.s32.totalorder %v233_v63, 0  ;;  %vm234_vm8 = vcmp.lt.s32.totalorder %v233_v63, 2 }
  0xb8   :  { %v110_v24 = vor.u32 %v109_v20, %v108_v19  ;;  %v113_v25 = vshll.u32 %v112_v21, 23  ;;  %v691_v28 = vadd.s32 4294967294, %v207_v22 }
  0xba   :  { %v114_v23 = vor.u32 4788187, %v113_v25  ;;  %vm692_vm13 = vcmp.lt.s32.totalorder %v691_v28, 0  ;;  %v117_v33 = vcvt.s32.f32 %v110_v24 }
  0xbb   :  { %v210_v34 = vsel %vm692_vm13, 0, %v691_v28  ;;  %vm393_vm13 = vcmask 1039360  }
  0xbc   :  { %v115_v30 = vand.u32 2147483647, %v114_v23  ;;  %v211_v38 = vsub.s32 32, %v210_v34  ;;  %v215_v40 = vsub.s32 4294967266, %v210_v34  ;;  %v212_v35 = vshll.u32 %v203_v6, %v210_v34  ;;  %v556_v34 = vld [vmem:[%s1122_s5 + $0x8] sm:$0xff] }
  0xbe   :  { %v118_v15 = vmul.f32 %v117_v33, %v115_v30  ;;  %v213_v27 = vshrl.u32 %v195_v36, %v211_v38  ;;  %v216_v37 = vadd.s32 127, %v215_v40  ;;  %v572_v30 = vld [vmem:[%s1122_s5 + $0x88] sm:$0xff]  ;;  %v555_v33 = vld [vmem:[%s1122_s5] sm:$0xff]  ;;  %v573_v40 = vld [vmem:[%s1122_s5 + $0x90] sm:$0xff] }
  0xbf   :  { %v761_v38 = vpack.c.bf16 %v556_v34, %v555_v33  ;;  %v843_v33 = vld [vmem:[%s1119_s3 + $0x10] sm:$0xff]  }
  0xc0   :  { %v119_v26 = vxor.u32 2147483648, %v118_v15  ;;  %v214_v29 = vor.u32 %v213_v27, %v212_v35  ;;  %v217_v41 = vshll.u32 %v216_v37, 23  ;;  %v558_v27 = vld [vmem:[%s1122_s5 + $0x18] sm:$0xff]  ;;  %v575_v37 = vld [vmem:[%s1122_s5 + $0xa0] sm:$0xff] }
  0xc2   :  { %v120_v32 = vsel %vm37_vm14, %v119_v26, %v118_v15  ;;  %v218_v42 = vor.u32 4788187, %v217_v41  ;;  %v221_v45 = vcvt.s32.f32 %v214_v29  ;;  %v574_v15 = vld [vmem:[%s1122_s5 + $0x98] sm:$0xff]  ;;  %v576_v26 = vld [vmem:[%s1122_s5 + $0xa8] sm:$0xff]  ;;  %v765_v29 = vpack.c.bf16 %v558_v27, %v557_v16  ;;  %v569_v16 = vld [vmem:[%s1122_s5 + $0x70] sm:$0xff] }
  0xc3   :  { %v123_v43 = vsel %vm36_vm15, %v915_v7, %v120_v32  ;;  %v763_v35 = vpack.c.bf16 %v574_v15, %v573_v40  ;;  %v767_v41 = vpack.c.bf16 %v576_v26, %v575_v37  ;;  %v559_v32 = vld [vmem:[%s1122_s5 + $0x20] sm:$0xff]  ;;  %vm468_vm14 = vcmask 1031168   ;;  %v585_v40 = vld [vmem:[%s1122_s5 + $0xf0] sm:$0xff]  ;;  %v586_v15 = vld [vmem:[%s1122_s5 + $0xf8] sm:$0xff]  ;;  %v544_v37 = vpop.permute.xlu0 %543 }
  0xc4   :  { %845 = vcosq.f32 %v123_v43  ;;  %v219_v44 = vand.u32 2147483647, %v218_v42  ;;  %v577_v42 = vld [vmem:[%s1122_s5 + $0xb0] sm:$0xff] }
  0xc5   :  { %847 = vsinq.f32 %v123_v43  ;;  %v578_v43 = vld [vmem:[%s1122_s5 + $0xb8] sm:$0xff] }
  0xc6   :  { %v222_v47 = vmul.f32 %v221_v45, %v219_v44  ;;  %v769_v44 = vpack.c.bf16 %v560_v39, %v559_v32  ;;  %v771_v45 = vpack.c.bf16 %v578_v43, %v577_v42 }
  0xc8   :  { %v223_v50 = vxor.u32 2147483648, %v222_v47 }
  0xca   :  { %v224_v51 = vsel %vm141_vm0, %v223_v50, %v222_v47  ;;  %v562_v47 = vld [vmem:[%s1122_s5 + $0x38] sm:$0xff] }
  0xcb   :  { %v227_v53 = vsel %vm140_vm1, %v919_v8, %v224_v51  ;;  %v571_v8 = vld [vmem:[%s1122_s5 + $0x80] sm:$0xff]  ;;  %v773_v50 = vpack.c.bf16 %v562_v47, %v561_v46  ;;  %v775_v51 = vpack.c.bf16 %v580_v49, %v579_v48 }
  0xcc   :  { %849 = vcosq.f32 %v227_v53  ;;  %v759_v36 = vpack.c.bf16 %v572_v30, %v571_v8 }
  0xcd   :  { %851 = vsinq.f32 %v227_v53  ;;  %v581_v53 = vld [vmem:[%s1122_s5 + $0xd0] sm:$0xff] }
  0xce   :  { %v846_v54 = vpop.eup %845  ;;  %760 = vmatprep.subr.bf16.mxu1 %v759_v36 }
  0xcf   :  { %v848_v31 = vpop.eup %847  ;;  %v135_v56 = vxor.u32 2147483648, %v846_v54  ;;  %762 = vmatpush3.bf16.msra.mxu1 %v761_v38  ;;  %v844_v38 = vld [vmem:[%s1119_s3 + $0x18] sm:$0xff]  }
  0xd0   :  { %v132_v57 = vxor.u32 2147483648, %v848_v31  ;;  %764 = vmatprep.subr.bf16.mxu1 %v763_v35  ;;  %v787_v35 = vpack.c.bf16 %v586_v15, %v585_v40 }
  0xd1   :  { %v136_v58 = vsel %vm134_vm2, %v135_v56, %v848_v31  ;;  %v565_v56 = vld [vmem:[%s1122_s5 + $0x50] sm:$0xff] }
  0xd2   :  { %v133_v60 = vsel %vm131_vm3, %v846_v54, %v132_v57  ;;  %v582_v54 = vld [vmem:[%s1122_s5 + $0xd8] sm:$0xff] }
  0xd3   :  { %v137_v14 = vsel %vm130_vm4, %v133_v60, %v136_v58  ;;  %766 = vmatpush3.bf16.msra.mxu1 %v765_v29  ;;  %v779_v31 = vpack.c.bf16 %v582_v54, %v581_v53  ;;  %v566_v57 = vld [vmem:[%s1122_s5 + $0x58] sm:$0xff]  ;;  %v583_v58 = vld [vmem:[%s1122_s5 + $0xe0] sm:$0xff] }
  0xd4   :  { %v138_v61 = vsel %vm127_vm5, nan, %v137_v14  ;;  %768 = vmatprep.subr.bf16.mxu1 %v767_v41  ;;  %v781_v60 = vpack.c.bf16 %v566_v57, %v565_v56  ;;  %v783_v14 = vpack.c.bf16 %v584_v59, %v583_v58 }
  0xd5   :  { %v243_v1 = vmul.f32 %v138_v61, %v138_v61  ;;  %v567_v61 = vld [vmem:[%s1122_s5 + $0x60] sm:$0xff] }
  0xd6   :  { %v850_v2 = vpop.eup %849 }
  0xd7   :  { %v852_v6 = vpop.eup %851  ;;  %v239_v10 = vxor.u32 2147483648, %v850_v2  ;;  %v249_v11 = vmul.f32 %v247_v62, %v243_v1  ;;  %770 = vmatpush3.bf16.msra.mxu1 %v769_v44 }
  0xd8   :  { %v236_v12 = vxor.u32 2147483648, %v852_v6  ;;  %772 = vmatprep.subr.bf16.mxu1 %v771_v45 }
  0xd9   :  { %v240_v13 = vsel %vm238_vm6, %v239_v10, %v852_v6  ;;  %v251_v7 = vadd.f32 %v249_v11, %v25_v4  ;;  %v841_v4 = vld [vmem:[%s1119_s3 + $0x8] sm:$0xff]  }
  0xda   :  { %v237_v17 = vsel %vm235_vm7, %v850_v2, %v236_v12 }
  0xdb   :  { %v241_v18 = vsel %vm234_vm8, %v237_v17, %v240_v13  ;;  %v271_v22 = vpack.c.bf16 %v251_v7, %v251_v7  ;;  %774 = vmatpush3.bf16.msra.mxu1 %v773_v50  ;;  %v711_v50 = vld [vmem:[%s1123_s1] ss:$0 sm:$0xff] }
  0xdc   :  { %v242_v19 = vsel %vm231_vm9, nan, %v241_v18  ;;  %776 = vmatprep.subr.bf16.mxu1 %v775_v51 }
  0xdd   :  { %v244_v20 = vmul.f32 %v242_v19, %v242_v19  ;;  %v284_v23 = vsel %vm282_vm10, %v271_v22, 0 }
  0xdf   :  { %v250_v21 = vmul.f32 %v247_v62, %v244_v20  ;;  %778 = vmatpush3.bf16.msra.mxu1 %v777_v55  ;;  %v568_v62 = vld [vmem:[%s1122_s5 + $0x68] sm:$0xff]  ;;  %v842_v20 = vld [vmem:[%s1119_s3] sm:$0xff]  }
  0xe0   :  { %780 = vmatprep.subr.bf16.mxu1 %v779_v31  ;;  %v785_v63 = vpack.c.bf16 %v568_v62, %v567_v61 }
  0xe1   :  { %v252_v24 = vadd.f32 %v250_v21, %v26_v5  ;;  %v540_v5 = vld [vmem:[%s1121_s4 + $0x8] sm:$0xff] }
  0xe3   :  { %v272_v25 = vpack.c.bf16 %v252_v24, %v252_v24  ;;  %v824_v28 = vpack.i.bf16 %v252_v24, %v251_v7  ;;  %782 = vmatpush3.bf16.msra.mxu1 %v781_v60 }
  0xe4   :  { %784 = vmatprep.subr.bf16.mxu1 %v783_v14 }
  0xe5   :  { %696 = vmatprep.subr.msk.bf16.mxu0 %vm282_vm10, %v272_v25  ;;  %825 = vrot.lane.b32.xlu1 %v824_v28, %s861_s0 }
  0xe6   :  { %290 = vmatpush1.bf16.msra.mxu0 %v284_v23 }
  0xe7   :  { %786 = vmatpush3.bf16.msra.mxu1 %v785_v63 }
  0xe8   :  { %788 = vmatprep.subr.bf16.mxu1 %v787_v35 }
  0xe9   :  { %830 = vrot.lane.b32.xlu1 %v824_v28, %s862_s26  ;;  %697 = vmatmul.mubr.msk.bf16.vlgmr.msra.gmra.mrb[0].mxu0 %vm278_vm11, %v841_v4 }
  0xea   :  { %378 = vmatprep.mubr.bf16.mxu0 %v853_v0 }
  0xed   :  { %835 = vrot.lane.b32.xlu1 %v824_v28, %s863_s27 }
  0xf1   :  { %548 = vperm.xlu1 %840, %v540_v5  }
 0x157   :  { %v826_v1 = vpop.permute.xlu1 %825 }
 0x158   :  { %v828_v2 = vunpack.i.h.bf16 %v826_v1  ;;  %v827_v6 = vunpack.i.l.bf16 %v826_v1 }
 0x15a   :  { %v260_v10 = vsel %vm259_vm12, %v827_v6, %v828_v2  ;;  %v263_v11 = vsel %vm259_vm12, 0.0, %v827_v6 }
 0x15b   :  { %v266_v12 = vpack.c.bf16 %v263_v11, %v263_v11  ;;  %v267_v13 = vpack.c.bf16 %v260_v10, %v260_v10  ;;  %v831_v17 = vpop.permute.xlu1 %830 }
 0x15c   :  { %v833_v18 = vunpack.i.h.bf16 %v831_v17  ;;  %v832_v7 = vunpack.i.l.bf16 %v831_v17 }
 0x15d   :  { %699 = vmatprep.subr.msk.bf16.mxu0 %vm282_vm10, %v267_v13  ;;  %v341_v19 = vsel %vm282_vm10, %v266_v12, 0 }
 0x15e   :  { %v397_v21 = vsel %vm393_vm13, %v833_v18, 0.0  ;;  %347 = vmatpush1.bf16.msra.mxu0 %v341_v19  ;;  %v394_v22 = vsel %vm393_vm13, %v832_v7, %v833_v18 }
 0x15f   :  { %v402_v24 = vpack.c.bf16 %v397_v21, %v397_v21  ;;  %v836_v25 = vpop.permute.xlu1 %835  ;;  %v401_v28 = vpack.c.bf16 %v394_v22, %v394_v22 }
 0x160   :  { %v838_v23 = vunpack.i.h.bf16 %v836_v25  ;;  %v837_v5 = vunpack.i.l.bf16 %v836_v25 }
 0x161   :  { %700 = vmatmul.mubr.msk.bf16.vlgmr.msra.gmra.mrb[0].mxu0 %vm278_vm11, %v842_v20  ;;  %704 = vmatprep.subr.msk.bf16.mxu0 %vm282_vm10, %v402_v24  ;;  %v412_v4 = vsel %vm282_vm10, %v401_v28, 0 }
 0x162   :  { %v472_v3 = vsel %vm468_vm14, %v838_v23, 0.0  ;;  %418 = vmatpush1.bf16.msra.mxu0 %v412_v4  ;;  %449 = vmatprep.mubr.bf16.mxu0 %v853_v0  ;;  %v469_v30 = vsel %vm468_vm14, %v837_v5, %v838_v23 }
 0x163   :  { %v477_v8 = vpack.c.bf16 %v472_v3, %v472_v3  ;;  %v476_v34 = vpack.c.bf16 %v469_v30, %v469_v30 }
 0x165   :  { %709 = vmatprep.subr.msk.bf16.mxu0 %vm282_vm10, %v477_v8  ;;  %v487_v36 = vsel %vm282_vm10, %v476_v34, 0 }
 0x16d   :  { %705 = vmatmul.mubr.msk.bf16.vlgmr.msra.gmra.mrb[0].mxu0 %vm278_vm11, %v843_v33 }
 0x16e   :  { %493 = vmatpush1.bf16.msra.mxu0 %v487_v36  ;;  %524 = vmatprep.mubr.bf16.mxu0 %v853_v0  ;;  %v570_v0 = vld [vmem:[%s1122_s5 + $0x78] sm:$0xff] }
 0x16f   :  { %v789_v27 = vpack.c.bf16 %v570_v0, %v569_v16 }
 0x170   :  { %v549_v41 = vpop.permute.xlu1 %548 }
 0x171   :  { %790 = vmatpush3.bf16.msra.mxu1 %v789_v27 }
 0x179   :  { %710 = vmatmul.mubr.msk.bf16.vlgmr.msra.gmra.mrb[0].mxu0 %vm278_vm11, %v844_v38 }
 0x24c   :  { %v526_v26 = vpop.f32.mrb[0].mxu0 }
 0x24d   :  { %v528_v29 = vpop.f32.mrb[1].mxu0  ;;  %v551_v42 = vadd.f32 %v544_v37, %v526_v26 }
 0x24e   :  { %v530_v32 = vpop.f32.mrb[2].mxu0  ;;  %v552_v39 = vadd.f32 %v544_v37, %v528_v29 }
 0x24f   :  { %v532_v43 = vpop.f32.mrb[3].mxu0  ;;  %v553_v45 = vadd.f32 %v549_v41, %v530_v32 }
 0x250   :  { %v554_v44 = vadd.f32 %v549_v41, %v532_v43  ;;  %651 = vmatprep.mubr.f32.mxu1 %v552_v39 }
 0x251   :  { %652 = vmatmul.mubr.f32.vlgmr.msra.gmra.mrb[0].mxu1 %v551_v42 }
 0x252   :  { %656 = vmatprep.mubr.f32.mxu1 %v554_v44 }
 0x255   :  { %657 = vmatmul.mubr.f32.gmra.mrb[2].mxu1 %v553_v45 }
 0x324   :  { %v753_v46 = vpop.f32.mrb[0].mxu1 }
 0x325   :  { %v754_v47 = vpop.f32.mrb[1].mxu1 }
 0x326   :  { %v755_v48 = vadd.f32 %v754_v47, %v753_v46 }
 0x328   :  { %v756_v49 = vpop.f32.mrb[2].mxu1  ;;  %v669_v52 = vmul.f32 %v755_v48, %v711_v50 }
 0x329   :  { %v757_v51 = vpop.f32.mrb[3].mxu1 }
 0x32a   :  { %v758_v9 = vadd.f32 %v757_v51, %v756_v49 }
 0x32c   :  { %v670_v53 = vmul.f32 %v758_v9, %v711_v50 }
 0x32e   :  { %v719_v54 = vpack.c.bf16 %v670_v53, %v669_v52 }
 0x330   :  { %720 = vst [vmem:[%s1124_s6] sm:$0xff] %v719_v54  }

// kernel: autoencoder_forward.20
= control target key start
LH: loop header
LB: loop body
LE: loop exit
PB: predicated region body
PF: predicated region fallthrough
CT: control target
= control target key end

     0   :  { %vm41_vm0 = vcmask 1041408   ;;  %v292_v1 = vmov 0.0   ;;  %vm293_vm1 = vmmov 0   ;;  %vm37_vm2 = vcmask 31744   ;;  %s294_s19 = smov 1   ;;  %s296_s23 = smov 127   ;;  %s355_s0 = inlined_call_operand.vmem [shape: bf16[4,128], index: 0, kind: input, shape index: {}]   ;;  %s356_s2 = inlined_call_operand.vmem [shape: bf16[3,16,4], index: 2, kind: input, shape index: {}]   ;;  %s357_s3 = inlined_call_operand.vmem [shape: f32[16,1], index: 3, kind: input, shape index: {}]   ;;  %s358_s1 = inlined_call_operand.vmem [shape: f32[1,128], index: 1, kind: input, shape index: {}]   ;;  %s359_s4 = inlined_call_operand.vmem [shape: bf16[16,128], index: 4, kind: output, shape index: {}]  }
   0x1   :  { %v18_v0 = vld [vmem:[%s355_s0] sm:$0x3]  ;;  %264 = vmatprep.subr.bf16.mxu0 %v292_v1  ;;  %266 = vmatprep.mubr.msk.bf16.mxu0 %vm293_vm1, %v292_v1  ;;  %v289_v4 = vld [vmem:[%s356_s2 + $0x8] sm:$0xff]   ;;  %v295_v6 = vmov 0   ;;  %vm24_vm3 = vcmask 7168   ;;  %vm141_vm4 = vcmask 1039360  }
   0x2   :  { %v19_v2 = vunpack.c.l.bf16 %v18_v0  ;;  %v43_v3 = vsel %vm41_vm0, %v18_v0, 0  ;;  %270 = vmatprep.subr.bf16.mxu1 %v292_v1  ;;  %272 = vmatprep.mubr.msk.bf16.mxu1 %vm293_vm1, %v292_v1  ;;  %v201_v5 = vld [vmem:[%s357_s3] sm:$0xff]  ;;  %v202_v7 = vld [vmem:[%s357_s3 + $0x8] sm:$0xff]  ;;  %v291_v17 = vld [vmem:[%s356_s2 + $0x10] sm:$0xff]  }
   0x3   :  { %265 = vmatpush3.bf16.msra.mxu0 %v43_v3  ;;  %287 = vset.pattern.permute.xlu1 %v295_v6  ;;  %v290_v13 = vld [vmem:[%s356_s2] sm:$0xff]  }
   0x4   :  { %21 = vrot.lane.b32.xlu0 %v19_v2, %s294_s19  ;;  %276 = vmatprep.subr.bf16.mxu0 %v292_v1  ;;  %v248_v37 = vld [vmem:[%s358_s1] ss:$0 sm:$0xff] }
   0x5   :  { %288 = vset.pattern.permute.xlu0 %v295_v6  ;;  %205 = vperm.xlu1 %287, %v201_v5  }
   0x6   :  { %267 = vmatmul.mubr.msk.bf16.vlgmr.msra.gmra.mrb[0].mxu0 %vm37_vm2, %v289_v4 }
   0x7   :  { %278 = vmatprep.mubr.msk.bf16.mxu0 %vm293_vm1, %v292_v1 }
   0x8   :  { %138 = vrot.lane.b32.xlu0 %v19_v2, %s296_s23 }
   0x9   :  { %210 = vperm.xlu1 %287, %v202_v7  }
  0x76   :  { %v22_v8 = vpop.permute.xlu0 %21 }
  0x77   :  { %v25_v9 = vsel %vm24_vm3, 0.0, %v22_v8 }
  0x78   :  { %v28_v10 = vpack.c.bf16 %v25_v9, %v25_v9 }
  0x7a   :  { %v139_v11 = vpop.permute.xlu0 %138  ;;  %v95_v12 = vsel %vm41_vm0, %v28_v10, 0 }
  0x7b   :  { %v142_v14 = vsel %vm141_vm4, %v139_v11, 0.0  ;;  %271 = vmatpush3.bf16.msra.mxu1 %v95_v12 }
  0x7c   :  { %v146_v15 = vpack.c.bf16 %v142_v14, %v142_v14 }
  0x7e   :  { %v156_v16 = vsel %vm41_vm0, %v146_v15, 0  ;;  %273 = vmatmul.mubr.msk.bf16.vlgmr.msra.gmra.mrb[0].mxu1 %vm37_vm2, %v290_v13 }
  0x7f   :  { %277 = vmatpush3.bf16.msra.mxu0 %v156_v16 }
  0x82   :  { %279 = vmatmul.mubr.msk.bf16.vlgmr.msra.gmra.mrb[4].mxu0 %vm37_vm2, %v291_v17 }
  0x84   :  { %v206_v26 = vpop.permute.xlu1 %205 }
  0x88   :  { %v211_v36 = vpop.permute.xlu1 %210 }
  0xd9   :  { %v79_v18 = vpop.f32.mrb[0].mxu0 }
  0xda   :  { %v268_v19 = vpop.f32.mrb[1].mxu0 }
  0xdb   :  { %v82_v20 = vpop.f32.mrb[2].mxu0 }
  0xdc   :  { %v269_v21 = vpop.f32.mrb[3].mxu0 }
 0x151   :  { %v131_v22 = vpop.f32.mrb[0].mxu1 }
 0x152   :  { %v132_v23 = vadd.f32 %v131_v22, %v79_v18  ;;  %v274_v24 = vpop.f32.mrb[1].mxu1 }
 0x153   :  { %v134_v25 = vpop.f32.mrb[2].mxu1 }
 0x154   :  { %v135_v27 = vadd.f32 %v134_v25, %v82_v20  ;;  %v275_v28 = vpop.f32.mrb[3].mxu1 }
 0x155   :  { %v192_v29 = vpop.f32.mrb[4].mxu0 }
 0x156   :  { %v199_v30 = vadd.f32 %v192_v29, %v132_v23  ;;  %v280_v31 = vpop.f32.mrb[5].mxu0 }
 0x157   :  { %v195_v32 = vpop.f32.mrb[6].mxu0 }
 0x158   :  { %v213_v33 = vadd.f32 %v206_v26, %v199_v30  ;;  %v200_v34 = vadd.f32 %v195_v32, %v135_v27  ;;  %v281_v35 = vpop.f32.mrb[7].mxu0 }
 0x15a   :  { %v214_v38 = vadd.f32 %v211_v36, %v200_v34  ;;  %v222_v39 = vmul.f32 %v248_v37, %v213_v33 }
 0x15c   :  { %v223_v40 = vmul.f32 %v248_v37, %v214_v38 }
 0x15e   :  { %v256_v41 = vpack.c.bf16 %v223_v40, %v222_v39 }
 0x160   :  { %257 = vst [vmem:[%s359_s4] sm:$0xff] %v256_v41  }

// kernel: autoencoder_forward.21
= control target key start
LH: loop header
LB: loop body
LE: loop exit
PB: predicated region body
PF: predicated region fallthrough
CT: control target
= control target key end

     0   :  { %v785_v0 = vmov 0   ;;  %v786_v2 = vmov 1   ;;  %v787_v52 = vmov 0.0   ;;  %s796_s16 = smov 127   ;;  %s1060_s2 = inlined_call_operand.vmem [shape: f32[16,2], index: 2, kind: input, shape index: {}]   ;;  %s1061_s5 = inlined_call_operand.vmem [shape: f32[128,256], index: 5, kind: input, shape index: {}]   ;;  %s1062_s0 = inlined_call_operand.vmem [shape: bf16[16,128], index: 0, kind: input, shape index: {}]   ;;  %s1063_s4 = inlined_call_operand.vmem [shape: f32[8,1], index: 4, kind: input, shape index: {}]   ;;  %s1064_s3 = inlined_call_operand.vmem [shape: bf16[4,8,16], index: 3, kind: input, shape index: {}]   ;;  %s1065_s1 = inlined_call_operand.vmem [shape: f32[1,256], index: 1, kind: input, shape index: {}]   ;;  %s1066_s6 = inlined_call_operand.vmem [shape: bf16[8,256], index: 6, kind: output, shape index: {}]  }
   0x1   :  { %745 = vset.pattern.permute.xlu0 %v785_v0  ;;  %v28_v1 = vld [vmem:[%s1060_s2] sm:$0xff]  ;;  %746 = vset.pattern.permute.xlu1 %v786_v2  ;;  %v29_v3 = vld [vmem:[%s1060_s2 + $0x8] sm:$0xff]  ;;  %v267_v5 = vld [vmem:[%s1061_s5 + $0x18] sm:$0xff] }
   0x2   :  { %32 = vperm.xlu0 %745, %v28_v1   ;;  %253 = vperm.xlu1 %746, %v28_v1   ;;  %v265_v4 = vld [vmem:[%s1061_s5 + $0x8] sm:$0xff]  ;;  %v264_v7 = vld [vmem:[%s1061_s5] sm:$0xff]  ;;  %v266_v8 = vld [vmem:[%s1061_s5 + $0x10] sm:$0xff] }
   0x3   :  { %454 = vmatprep.mubr.bf16.mxu1 %v785_v0  ;;  %v693_v6 = vpack.c.bf16 %v267_v5, %v265_v4  ;;  %v695_v9 = vpack.c.bf16 %v266_v8, %v264_v7  ;;  %v269_v10 = vld [vmem:[%s1061_s5 + $0x28] sm:$0xff]  ;;  %v271_v11 = vld [vmem:[%s1061_s5 + $0x38] sm:$0xff]  ;;  %v268_v13 = vld [vmem:[%s1061_s5 + $0x20] sm:$0xff]  ;;  %360 = vmatprep.mubr.f32.mxu0 %v787_v52 }
   0x4   :  { %v697_v12 = vpack.c.bf16 %v271_v11, %v269_v10  ;;  %v270_v14 = vld [vmem:[%s1061_s5 + $0x30] sm:$0xff]  ;;  %v273_v16 = vld [vmem:[%s1061_s5 + $0x48] sm:$0xff]  ;;  %v275_v17 = vld [vmem:[%s1061_s5 + $0x58] sm:$0xff] }
   0x5   :  { %694 = vmatprep.subr.bf16.mxu0 %v693_v6  ;;  %v699_v15 = vpack.c.bf16 %v270_v14, %v268_v13  ;;  %v701_v18 = vpack.c.bf16 %v275_v17, %v273_v16  ;;  %v272_v19 = vld [vmem:[%s1061_s5 + $0x40] sm:$0xff]  ;;  %v274_v20 = vld [vmem:[%s1061_s5 + $0x50] sm:$0xff]  ;;  %v277_v22 = vld [vmem:[%s1061_s5 + $0x68] sm:$0xff]  ;;  %v788_v13 = vmov 683565275  }
   0x6   :  { %37 = vperm.xlu0 %745, %v29_v3   ;;  %257 = vperm.xlu1 %746, %v29_v3   ;;  %v703_v21 = vpack.c.bf16 %v274_v20, %v272_v19  ;;  %v279_v23 = vld [vmem:[%s1061_s5 + $0x78] sm:$0xff]  ;;  %v276_v24 = vld [vmem:[%s1061_s5 + $0x60] sm:$0xff]  ;;  %v278_v26 = vld [vmem:[%s1061_s5 + $0x70] sm:$0xff]  ;;  %v789_v17 = vmov 2475754826  }
   0x7   :  { %696 = vmatpush1.bf16.msra.mxu0 %v695_v9  ;;  %v705_v25 = vpack.c.bf16 %v279_v23, %v277_v22  ;;  %v281_v27 = vld [vmem:[%s1061_s5 + $0x88] sm:$0xff]  ;;  %v283_v28 = vld [vmem:[%s1061_s5 + $0x98] sm:$0xff]  ;;  %v707_v29 = vpack.c.bf16 %v278_v26, %v276_v24  ;;  %v280_v31 = vld [vmem:[%s1061_s5 + $0x80] sm:$0xff]  ;;  %v790_v19 = vmov 2131351028  }
   0x8   :  { %698 = vmatprep.subr.bf16.mxu0 %v697_v12  ;;  %v709_v30 = vpack.c.bf16 %v283_v28, %v281_v27  ;;  %v282_v32 = vld [vmem:[%s1061_s5 + $0x90] sm:$0xff]  ;;  %v285_v33 = vld [vmem:[%s1061_s5 + $0xa8] sm:$0xff]  ;;  %v287_v34 = vld [vmem:[%s1061_s5 + $0xb8] sm:$0xff]  ;;  %v792_v23 = vmov 920167782  }
   0x9   :  { %v711_v35 = vpack.c.bf16 %v282_v32, %v280_v31  ;;  %v713_v36 = vpack.c.bf16 %v287_v34, %v285_v33  ;;  %v284_v37 = vld [vmem:[%s1061_s5 + $0xa0] sm:$0xff]  ;;  %v286_v38 = vld [vmem:[%s1061_s5 + $0xb0] sm:$0xff]  ;;  %v289_v40 = vld [vmem:[%s1061_s5 + $0xc8] sm:$0xff] }
   0xa   :  { %v715_v39 = vpack.c.bf16 %v286_v38, %v284_v37  ;;  %v291_v41 = vld [vmem:[%s1061_s5 + $0xd8] sm:$0xff]  ;;  %v288_v42 = vld [vmem:[%s1061_s5 + $0xc0] sm:$0xff]  ;;  %v290_v44 = vld [vmem:[%s1061_s5 + $0xd0] sm:$0xff] }
   0xb   :  { %700 = vmatpush1.bf16.msra.mxu0 %v699_v15  ;;  %v717_v43 = vpack.c.bf16 %v291_v41, %v289_v40  ;;  %v719_v45 = vpack.c.bf16 %v290_v44, %v288_v42  ;;  %v293_v46 = vld [vmem:[%s1061_s5 + $0xe8] sm:$0xff]  ;;  %v295_v47 = vld [vmem:[%s1061_s5 + $0xf8] sm:$0xff]  ;;  %v292_v49 = vld [vmem:[%s1061_s5 + $0xe0] sm:$0xff] }
   0xc   :  { %702 = vmatprep.subr.bf16.mxu0 %v701_v18  ;;  %v721_v48 = vpack.c.bf16 %v295_v47, %v293_v46  ;;  %v294_v50 = vld [vmem:[%s1061_s5 + $0xf0] sm:$0xff]  ;;  %v940_v53 = vld [vmem:[%s1062_s0] sm:$0xff]   ;;  %s794_s0 = smov 1   ;;  %s795_s5 = smov 2  }
   0xd   :  { %v723_v51 = vpack.c.bf16 %v294_v50, %v292_v49  ;;  %v691_v54 = vunpack.c.l.bf16 %v940_v53  ;;  %v692_v57 = vunpack.c.h.bf16 %v940_v53  ;;  %v624_v53 = vld [vmem:[%s1063_s4] sm:$0xff] }
   0xf   :  { %704 = vmatpush1.bf16.msra.mxu0 %v703_v21  ;;  %v791_v21 = vmov 2102212464  }
  0x10   :  { %706 = vmatprep.subr.bf16.mxu0 %v705_v25 }
  0x13   :  { %708 = vmatpush1.bf16.msra.mxu0 %v707_v29 }
  0x14   :  { %710 = vmatprep.subr.bf16.mxu0 %v709_v30  ;;  %v793_v30 = vmov 1326507024  }
  0x17   :  { %712 = vmatpush1.bf16.msra.mxu0 %v711_v35 }
  0x18   :  { %714 = vmatprep.subr.bf16.mxu0 %v713_v36 }
  0x1b   :  { %716 = vmatpush1.bf16.msra.mxu0 %v715_v39 }
  0x1c   :  { %718 = vmatprep.subr.bf16.mxu0 %v717_v43 }
  0x1f   :  { %720 = vmatpush1.bf16.msra.mxu0 %v719_v45 }
  0x20   :  { %722 = vmatprep.subr.bf16.mxu0 %v721_v48 }
  0x23   :  { %724 = vmatpush1.bf16.msra.mxu0 %v723_v51 }
  0x81   :  { %v33_v55 = vpop.permute.xlu0 %32 }
  0x82   :  { %v945_v56 = vmul.f32 %v691_v54, %v33_v55 }
  0x84   :  { %v42_v58 = vand.u32 2147483647, %v945_v56  ;;  %v45_v59 = vand.u32 2139095040, %v945_v56  ;;  %vm44_vm14 = vcmp.lt.s32.totalorder %v945_v56, 0 }
  0x85   :  { %v38_v60 = vpop.permute.xlu0 %37 }
  0x86   :  { %v46_v61 = vshrl.u32 %v45_v59, 23  ;;  %v952_v62 = vmul.f32 %v692_v57, %v38_v60  ;;  %v49_v63 = vand.u32 8388607, %v42_v58  ;;  %vm43_vm15 = vcmp.le.f32.partialorder %v42_v58, 0.7853982 }
  0x88   :  { %v659_v1 = vadd.s32 4294967169, %v46_v61  ;;  %v149_v2 = vand.u32 2139095040, %v952_v62  ;;  %v50_v4 = vor.u32 8388608, %v49_v63  ;;  %v146_v6 = vand.u32 2147483647, %v952_v62 }
  0x8a   :  { %v52_v3 = vadd.s32 1, %v659_v1  ;;  %v150_v5 = vshrl.u32 %v149_v2, 23  ;;  %v958_v11 = vshll.u32 %v50_v4, 8  ;;  %v153_v15 = vand.u32 8388607, %v146_v6 }
  0x8c   :  { %vm53_vm0 = vcmp.gt.s32.totalorder %v52_v3, 0  ;;  %v663_v8 = vadd.s32 4294967169, %v150_v5  ;;  %v154_v45 = vor.u32 8388608, %v153_v15 }
  0x8d   :  { %v54_v7 = vsel %vm53_vm0, %v52_v3, 0  ;;  %vm148_vm0 = vcmp.lt.s32.totalorder %v952_v62, 0 }
  0x8e   :  { %v55_v9 = vshrl.u32 %v54_v7, 5  ;;  %v56_v10 = vand.u32 31, %v54_v7  ;;  %v156_v16 = vadd.s32 1, %v663_v8  ;;  %v194_v2 = vshll.u32 %v154_v45, 8 }
  0x90   :  { %v57_v12 = vsub.s32 32, %v56_v10  ;;  %v59_v14 = vshll.u32 %v788_v13, %v56_v10  ;;  %v62_v18 = vshll.u32 %v789_v17, %v56_v10  ;;  %v65_v20 = vshll.u32 %v790_v19, %v56_v10 }
  0x91   :  { %v68_v22 = vshll.u32 %v791_v21, %v56_v10  ;;  %v71_v24 = vshll.u32 %v792_v23, %v56_v10  ;;  %vm74_vm1 = vcmp.lt.s32.totalorder %v55_v9, 1  ;;  %vm76_vm2 = vcmp.lt.s32.totalorder %v55_v9, 3 }
  0x92   :  { %v60_v25 = vshrl.u32 %v789_v17, %v57_v12  ;;  %v63_v26 = vshrl.u32 %v790_v19, %v57_v12  ;;  %v66_v27 = vshrl.u32 %v791_v21, %v57_v12  ;;  %v58_v28 = vshrl.u32 %v788_v13, %v57_v12 }
  0x93   :  { %v69_v29 = vshrl.u32 %v792_v23, %v57_v12  ;;  %v72_v31 = vshrl.u32 %v793_v30, %v57_v12  ;;  %vm157_vm3 = vcmp.gt.s32.totalorder %v156_v16, 0  ;;  %vm77_vm4 = vcmp.lt.s32.totalorder %v55_v9, 4 }
  0x94   :  { %v61_v32 = vor.u32 %v60_v25, %v59_v14  ;;  %v64_v33 = vor.u32 %v63_v26, %v62_v18  ;;  %v67_v34 = vor.u32 %v66_v27, %v65_v20  ;;  %v158_v37 = vsel %vm157_vm3, %v156_v16, 0 }
  0x95   :  { %v70_v35 = vor.u32 %v69_v29, %v68_v22  ;;  %v73_v36 = vor.u32 %v72_v31, %v71_v24  ;;  %vm75_vm5 = vcmp.lt.s32.totalorder %v55_v9, 2  ;;  %v160_v48 = vand.u32 31, %v158_v37 }
  0x96   :  { %v78_v38 = vsel %vm74_vm1, %v58_v28, %v61_v32  ;;  %v79_v39 = vsel %vm77_vm4, %v67_v34, 2102212464  ;;  %v82_v40 = vsel %vm74_vm1, %v61_v32, %v64_v33  ;;  %v86_v41 = vsel %vm74_vm1, %v64_v33, %v67_v34 }
  0x97   :  { %v80_v42 = vsel %vm76_vm2, %v64_v33, %v79_v39  ;;  %v83_v43 = vsel %vm77_vm4, %v70_v35, 920167782  ;;  %v87_v44 = vsel %vm77_vm4, %v73_v36, 1326507024  ;;  %v159_v63 = vshrl.u32 %v158_v37, 5 }
  0x98   :  { %v84_v46 = vsel %vm76_vm2, %v67_v34, %v83_v43  ;;  %v88_v47 = vsel %vm76_vm2, %v70_v35, %v87_v44  ;;  %v81_v49 = vsel %vm75_vm5, %v78_v38, %v80_v42  ;;  %v161_v1 = vsub.s32 32, %v160_v48 }
  0x99   :  { %v85_v50 = vsel %vm75_vm5, %v82_v40, %v84_v46  ;;  %v89_v51 = vsel %vm75_vm5, %v86_v41, %v88_v47  ;;  %v97_v3 = vmul.u32 %v958_v11, %v81_v49  ;;  %v163_v4 = vshll.u32 %v788_v13, %v160_v48 }
  0x9a   :  { %v971_v55 = vmul.u32.u64.low %v958_v11, %v89_v51  ;;  %v972_v59 = vmul.u32.u64.high %v958_v11, %v89_v51, %v971_v55  ;;  %v975_v60 = vmul.u32.u64.low %v958_v11, %v85_v50  ;;  %v976_v61 = vmul.u32.u64.high %v958_v11, %v85_v50, %v975_v60 }
  0x9b   :  { %v166_v5 = vshll.u32 %v789_v17, %v160_v48  ;;  %v169_v7 = vshll.u32 %v790_v19, %v160_v48  ;;  %v164_v8 = vshrl.u32 %v789_v17, %v161_v1  ;;  %v167_v9 = vshrl.u32 %v790_v19, %v161_v1 }
  0x9c   :  { %v170_v10 = vshrl.u32 %v791_v21, %v161_v1  ;;  %v172_v12 = vshll.u32 %v791_v21, %v160_v48  ;;  %vm99_vm6 = vc.u32 %v972_v59, %v975_v60  ;;  %v100_v14 = vadd.s32 1, %v976_v61 }
  0x9d   :  { %v173_v15 = vshrl.u32 %v792_v23, %v161_v1  ;;  %v175_v16 = vshll.u32 %v792_v23, %v160_v48  ;;  %v165_v18 = vor.u32 %v164_v8, %v163_v4  ;;  %v168_v20 = vor.u32 %v167_v9, %v166_v5 }
  0x9e   :  { %v171_v22 = vor.u32 %v170_v10, %v169_v7  ;;  %v176_v24 = vshrl.u32 %v793_v30, %v161_v1  ;;  %v101_v11 = vsel %vm99_vm6, %v100_v14, %v976_v61  ;;  %vm178_vm7 = vcmp.lt.s32.totalorder %v159_v63, 1 }
  0x9f   :  { %v174_v25 = vor.u32 %v173_v15, %v172_v12  ;;  %vm181_vm8 = vcmp.lt.s32.totalorder %v159_v63, 4  ;;  %v102_v17 = vadd.s32 %v101_v11, %v97_v3  ;;  %vm180_vm9 = vcmp.lt.s32.totalorder %v159_v63, 3 }
  0xa0   :  { %v177_v19 = vor.u32 %v176_v24, %v175_v16  ;;  %v183_v21 = vsel %vm181_vm8, %v171_v22, 2102212464  ;;  %v162_v26 = vshrl.u32 %v788_v13, %v161_v1  ;;  %v186_v27 = vsel %vm178_vm7, %v165_v18, %v168_v20 }
  0xa1   :  { %v187_v28 = vsel %vm181_vm8, %v174_v25, 920167782  ;;  %v190_v29 = vsel %vm178_vm7, %v168_v20, %v171_v22  ;;  %v103_v31 = vadd.s32 536870912, %v102_v17  ;;  %vm179_vm10 = vcmp.lt.s32.totalorder %v159_v63, 2 }
  0xa2   :  { %v188_v23 = vsel %vm180_vm9, %v171_v22, %v187_v28  ;;  %v191_v32 = vsel %vm181_vm8, %v177_v19, 1326507024  ;;  %v182_v33 = vsel %vm178_vm7, %v162_v26, %v165_v18  ;;  %v184_v30 = vsel %vm180_vm9, %v168_v20, %v183_v21 }
  0xa3   :  { %v189_v34 = vsel %vm179_vm10, %v186_v27, %v188_v23  ;;  %v192_v35 = vsel %vm180_vm9, %v174_v25, %v191_v32  ;;  %v104_v36 = vshrl.u32 %v103_v31, 30  ;;  %v185_v42 = vsel %vm179_vm10, %v182_v33, %v184_v30 }
  0xa4   :  { %v193_v37 = vsel %vm179_vm10, %v190_v29, %v192_v35  ;;  %v986_v38 = vmul.u32.u64.low %v194_v2, %v189_v34  ;;  %v987_v39 = vmul.u32.u64.high %v194_v2, %v189_v34, %v986_v38  ;;  %v201_v45 = vmul.u32 %v194_v2, %v185_v42 }
  0xa5   :  { %v989_v40 = vmul.u32.u64.low %v194_v2, %v193_v37  ;;  %v990_v41 = vmul.u32.u64.high %v194_v2, %v193_v37, %v989_v40  ;;  %v105_v13 = vshll.u32 %v104_v36, 30  ;;  %v98_v4 = vadd.s32 %v975_v60, %v972_v59 }
  0xa6   :  { %v204_v44 = vadd.s32 1, %v987_v39  ;;  %vm1005_vm1 = vcmp.le.f32.partialorder %v146_v6, 0.7853982  ;;  %vm134_vm5 = vweird.f32 %v945_v56  ;;  %vm238_vm9 = vweird.f32 %v952_v62 }
  0xa7   :  { %v106_v43 = vsub.s32 %v102_v17, %v105_v13  ;;  %vm203_vm11 = vc.u32 %v990_v41, %v986_v38  ;;  %v128_v17 = vsub.s32 4, %v104_v36  ;;  %v202_v59 = vadd.s32 %v986_v38, %v990_v41 }
  0xa8   :  { %v205_v47 = vsel %vm203_vm11, %v204_v44, %v987_v39  ;;  %vm405_vm10 = vcmask 7168  }
  0xa9   :  { %v108_v46 = vsub.s32 0, %v106_v43  ;;  %v206_v48 = vadd.s32 %v205_v47, %v201_v45  ;;  %v129_v31 = vsel %vm44_vm14, %v128_v17, %v104_v36  ;;  %vm1028_vm11 = vmneg %vm405_vm10 }
  0xaa   :  { %v131_v34 = vsel %vm43_vm15, 0, %v129_v31 }
  0xab   :  { %v660_v49 = vmin.u32 %v108_v46, %v106_v43  ;;  %v207_v50 = vadd.s32 536870912, %v206_v48  ;;  %v135_v38 = vadd.s32 3, %v131_v34 }
  0xad   :  { %v110_v51 = vclz %v660_v49  ;;  %v208_v55 = vshrl.u32 %v207_v50, 30  ;;  %v136_v13 = vand.u32 3, %v135_v38 }
  0xaf   :  { %v661_v61 = vadd.s32 4294967294, %v110_v51  ;;  %v209_v63 = vshll.u32 %v208_v55, 30  ;;  %v232_v40 = vsub.s32 4, %v208_v55  ;;  %vm141_vm2 = vcmp.eq.s32.totalorder %v136_v13, 2 }
  0xb0   :  { %vm138_vm3 = vcmp.eq.s32.totalorder %v136_v13, 0  ;;  %vm137_vm4 = vcmp.lt.s32.totalorder %v136_v13, 2 }
  0xb1   :  { %vm662_vm12 = vcmp.lt.s32.totalorder %v661_v61, 0  ;;  %v210_v3 = vsub.s32 %v206_v48, %v209_v63  ;;  %v233_v36 = vsel %vm148_vm0, %v232_v40, %v208_v55  ;;  %v254_v63 = vpop.permute.xlu1 %253 }
  0xb2   :  { %v113_v1 = vsel %vm662_vm12, 0, %v661_v61  ;;  %v235_v48 = vsel %vm1005_vm1, 0, %v233_v36  ;;  %vm670_vm12 = vmpackc.low %vm1028_vm11, %vm1028_vm11  ;;  %v394_v36 = vld [vmem:[%s1064_s3] sm:$0xf] }
  0xb3   :  { %v114_v5 = vsub.s32 32, %v113_v1  ;;  %v118_v2 = vsub.s32 4294967266, %v113_v1  ;;  %v212_v7 = vsub.s32 0, %v210_v3  ;;  %v115_v8 = vshll.u32 %v106_v43, %v113_v1 }
  0xb4   :  { %v239_v51 = vadd.s32 3, %v235_v48  ;;  %v680_v48 = vld [vmem:[%s1064_s3 + $0x8] sm:$0xf] }
  0xb5   :  { %v116_v9 = vshrl.u32 %v98_v4, %v114_v5  ;;  %v119_v10 = vadd.s32 127, %v118_v2  ;;  %v664_v12 = vmin.u32 %v212_v7, %v210_v3 }
  0xb7   :  { %v117_v14 = vor.u32 %v116_v9, %v115_v8  ;;  %v120_v15 = vshll.u32 %v119_v10, 23  ;;  %v214_v16 = vclz %v664_v12 }
  0xb9   :  { %v121_v18 = vor.u32 4788187, %v120_v15  ;;  %v665_v20 = vadd.s32 4294967294, %v214_v16  ;;  %v124_v24 = vcvt.s32.f32 %v117_v14  ;;  %v258_v15 = vpop.permute.xlu1 %257 }
  0xbb   :  { %v122_v22 = vand.u32 2147483647, %v121_v18  ;;  %vm666_vm13 = vcmp.lt.s32.totalorder %v665_v20, 0 }
  0xbc   :  { %v217_v25 = vsel %vm666_vm13, 0, %v665_v20  ;;  %vm385_vm13 = vcmask 15360  }
  0xbd   :  { %v125_v11 = vmul.f32 %v124_v24, %v122_v22  ;;  %v218_v60 = vsub.s32 32, %v217_v25  ;;  %v222_v19 = vsub.s32 4294967266, %v217_v25  ;;  %v219_v26 = vshll.u32 %v210_v3, %v217_v25 }
  0xbe   :  { %v240_v3 = vand.u32 3, %v239_v51 }
  0xbf   :  { %v126_v21 = vxor.u32 2147483648, %v125_v11  ;;  %v220_v27 = vshrl.u32 %v202_v59, %v218_v60  ;;  %v223_v28 = vadd.s32 127, %v222_v19 }
  0xc0   :  { %vm245_vm6 = vcmp.eq.s32.totalorder %v240_v3, 2  ;;  %vm242_vm7 = vcmp.eq.s32.totalorder %v240_v3, 0  ;;  %vm241_vm8 = vcmp.lt.s32.totalorder %v240_v3, 2 }
  0xc1   :  { %v127_v29 = vsel %vm44_vm14, %v126_v21, %v125_v11  ;;  %v221_v23 = vor.u32 %v220_v27, %v219_v26  ;;  %v224_v32 = vshll.u32 %v223_v28, 23  ;;  %vm674_vm14 = vmneg %vm385_vm13 }
  0xc2   :  { %v130_v33 = vsel %vm43_vm15, %v945_v56, %v127_v29  ;;  %vm418_vm15 = vcmask 130048  }
  0xc3   :  { %777 = vcosq.f32 %v130_v33  ;;  %v225_v30 = vor.u32 4788187, %v224_v32  ;;  %v228_v37 = vcvt.s32.f32 %v221_v23 }
  0xc4   :  { %779 = vsinq.f32 %v130_v33 }
  0xc5   :  { %v226_v35 = vand.u32 2147483647, %v225_v30 }
  0xc7   :  { %v229_v39 = vmul.f32 %v228_v37, %v226_v35  ;;  %v667_v37 = vld [vmem:[%s1064_s3 + $0x4] sm:$0xf] }
  0xc9   :  { %v230_v41 = vxor.u32 2147483648, %v229_v39 }
  0xcb   :  { %v231_v42 = vsel %vm148_vm0, %v230_v41, %v229_v39  ;;  %vm676_vm0 = vmpackc.low %vm674_vm14, %vm674_vm14 }
  0xcc   :  { %v234_v44 = vsel %vm1005_vm1, %v952_v62, %v231_v42  ;;  %vm565_vm1 = vcmask 1039360  }
  0xcd   :  { %v778_v43 = vpop.eup %777  ;;  %781 = vcosq.f32 %v234_v44 }
  0xce   :  { %v780_v45 = vpop.eup %779  ;;  %v142_v46 = vxor.u32 2147483648, %v778_v43  ;;  %783 = vsinq.f32 %v234_v44 }
  0xcf   :  { %v139_v47 = vxor.u32 2147483648, %v780_v45 }
  0xd0   :  { %v143_v6 = vsel %vm141_vm2, %v142_v46, %v780_v45  ;;  %vm683_vm2 = vmpackc.low %vm565_vm1, %vm565_vm1 }
  0xd1   :  { %v140_v49 = vsel %vm138_vm3, %v778_v43, %v139_v47 }
  0xd2   :  { %v144_v50 = vsel %vm137_vm4, %v140_v49, %v143_v6 }
  0xd3   :  { %v145_v55 = vsel %vm134_vm5, nan, %v144_v50  ;;  %v682_v50 = vld [vmem:[%s1064_s3 + $0xc] sm:$0xf] }
  0xd4   :  { %v250_v61 = vmul.f32 %v145_v55, %v145_v55 }
  0xd6   :  { %v260_v1 = vmul.f32 %v254_v63, %v250_v61 }
  0xd7   :  { %v782_v4 = vpop.eup %781 }
  0xd8   :  { %v262_v5 = vadd.f32 %v691_v54, %v260_v1  ;;  %v784_v2 = vpop.eup %783  ;;  %v246_v7 = vxor.u32 2147483648, %v782_v4 }
  0xd9   :  { %v243_v8 = vxor.u32 2147483648, %v784_v2 }
  0xda   :  { %361 = vmatmul.mubr.f32.vlgmr.msra.gmra.mrb[0].mxu0 %v262_v5  ;;  %v247_v9 = vsel %vm245_vm6, %v246_v7, %v784_v2 }
  0xdb   :  { %366 = vmatprep.mubr.f32.mxu0 %v787_v52  ;;  %v244_v56 = vsel %vm242_vm7, %v782_v4, %v243_v8  ;;  %v634_v8 = vlaneseq }
  0xdc   :  { %v248_v10 = vsel %vm241_vm8, %v244_v56, %v247_v9 }
  0xdd   :  { %v249_v12 = vsel %vm238_vm9, nan, %v248_v10  ;;  %v635_v10 = vshrl.u32 %v634_v8, 7 }
  0xde   :  { %v251_v14 = vmul.f32 %v249_v12, %v249_v12 }
  0xe0   :  { %v261_v16 = vmul.f32 %v258_v15, %v251_v14 }
  0xe2   :  { %v263_v54 = vadd.f32 %v692_v57, %v261_v16  ;;  %v636_v16 = vsub.s32 0, %v635_v10 }
  0xe4   :  { %367 = vmatmul.mubr.f32.gmra.mrb[2].mxu0 %v263_v54  ;;  %v632_v54 = vld [vmem:[%s1065_s1] sm:$0x3] }
 0x1ad   :  { %v1021_v18 = vpop.f32.mrb[0].mxu0 }
 0x1ae   :  { %v364_v20 = vpop.f32.mrb[1].mxu0 }
 0x1af   :  { %v747_v22 = vpack.i.bf16 %v364_v20, %v1021_v18 }
 0x1b1   :  { %748 = vrot.lane.b32.xlu0 %v747_v22, %s794_s0 }
 0x1b5   :  { %758 = vrot.lane.b32.xlu0 %v747_v22, %s795_s5 }
 0x1b7   :  { %v368_v52 = vpop.f32.mrb[2].mxu0 }
 0x1b8   :  { %v509_v62 = vpack.c.bf16 %v368_v52, %v1021_v18  ;;  %v370_v24 = vpop.f32.mrb[3].mxu0  ;;  %v640_v18 = vsub.s32 1, %v635_v10 }
 0x1b9   :  { %768 = vrot.lane.b32.xlu0 %v747_v22, %s796_s16  ;;  %v772_v11 = vpack.i.bf16 %v370_v24, %v368_v52  ;;  %v510_v25 = vpack.c.bf16 %v370_v24, %v364_v20  ;;  %v637_v52 = vrot.slane %v632_v54, %v636_v16 }
 0x1bb   :  { %753 = vrot.lane.b32.xlu1 %v772_v11, %s794_s0 }
 0x1bd   :  { %627 = vperm.xlu0 %745, %v624_v53  }
 0x1bf   :  { %763 = vrot.lane.b32.xlu1 %v772_v11, %s795_s5 }
 0x1c3   :  { %773 = vrot.lane.b32.xlu1 %v772_v11, %s796_s16 }
 0x223   :  { %v749_v57 = vpop.permute.xlu0 %748 }
 0x224   :  { %v751_v17 = vunpack.i.h.bf16 %v749_v57  ;;  %v750_v59 = vunpack.i.l.bf16 %v749_v57 }
 0x226   :  { %v406_v31 = vsel %vm405_vm10, %v750_v59, %v751_v17 }
 0x227   :  { %v759_v60 = vpop.permute.xlu0 %758 }
 0x228   :  { %v761_v28 = vunpack.i.h.bf16 %v759_v60  ;;  %v760_v29 = vunpack.i.l.bf16 %v759_v60 }
 0x22a   :  { %v386_v38 = vsel %vm385_vm13, %v760_v29, %v761_v28 }
 0x22b   :  { %v769_v42 = vpop.permute.xlu0 %768 }
 0x22c   :  { %v771_v43 = vunpack.i.h.bf16 %v769_v42  ;;  %v770_v46 = vunpack.i.l.bf16 %v769_v42 }
 0x22d   :  { %v754_v19 = vpop.permute.xlu1 %753 }
 0x22e   :  { %v756_v21 = vunpack.i.h.bf16 %v754_v19  ;;  %v755_v26 = vunpack.i.l.bf16 %v754_v19  ;;  %v566_v6 = vsel %vm565_vm1, %v770_v46, %v771_v43 }
 0x230   :  { %v407_v23 = vsel %vm405_vm10, %v755_v26, %v756_v21  ;;  %v671_v30 = vpack.c.bf16 %v755_v26, %v750_v59 }
 0x231   :  { %v764_v32 = vpop.permute.xlu1 %763  ;;  %v417_v33 = vpack.c.bf16 %v407_v23, %v406_v31 }
 0x232   :  { %v766_v34 = vunpack.i.h.bf16 %v764_v32  ;;  %v765_v35 = vunpack.i.l.bf16 %v764_v32 }
 0x233   :  { %422 = vmatprep.subr.bf16.mxu1 %v417_v33 }
 0x234   :  { %672 = vmatpush1.bf16.msk.msra.mxu1 %vm670_vm12, %v671_v30  ;;  %v387_v39 = vsel %vm385_vm13, %v765_v35, %v766_v34  ;;  %v677_v41 = vpack.c.bf16 %v765_v35, %v760_v29 }
 0x235   :  { %v396_v40 = vpack.c.bf16 %v387_v39, %v386_v38  ;;  %v774_v13 = vpop.permute.xlu1 %773 }
 0x236   :  { %v776_v58 = vunpack.i.h.bf16 %v774_v13  ;;  %v775_v45 = vunpack.i.l.bf16 %v774_v13 }
 0x237   :  { %673 = vmatmul.mubr.msk.bf16.vlgmr.msra.gmra.mrb[0].mxu1 %vm418_vm15, %v667_v37  ;;  %466 = vmatprep.subr.bf16.mxu1 %v396_v40 }
 0x238   :  { %678 = vmatpush1.bf16.msk.msra.mxu1 %vm676_vm0, %v677_v41  ;;  %498 = vmatprep.mubr.bf16.mxu1 %v785_v0  ;;  %v684_v44 = vpack.c.bf16 %v776_v58, %v771_v43  ;;  %v567_v47 = vsel %vm565_vm1, %v775_v45, %v776_v58 }
 0x239   :  { %514 = vmatprep.subr.bf16.mxu1 %v510_v25  ;;  %v576_v49 = vpack.c.bf16 %v567_v47, %v566_v6  ;;  %v641_v25 = vrot.slane %v632_v54, %v640_v18 }
 0x23c   :  { %v628_v24 = vpop.permute.xlu0 %627 }
 0x23f   :  { %679 = vmatmul.mubr.msk.bf16.vlgmr.msra.gmra.mrb[4].mxu1 %vm418_vm15, %v394_v36 }
 0x240   :  { %515 = vmatpush1.bf16.msra.mxu1 %v509_v62  ;;  %546 = vmatprep.mubr.bf16.mxu1 %v785_v0 }
 0x241   :  { %685 = vmatprep.subr.msk.bf16.mxu1 %vm683_vm2, %v684_v44 }
 0x247   :  { %681 = vmatmul.mubr.msk.bf16.vlgmr.msra.gmra.mrb[8].mxu1 %vm418_vm15, %v680_v48 }
 0x248   :  { %582 = vmatpush1.bf16.msra.mxu1 %v576_v49  ;;  %613 = vmatprep.mubr.bf16.mxu1 %v785_v0 }
 0x24f   :  { %686 = vmatmul.mubr.msk.bf16.vlgmr.msra.gmra.mrb[12].mxu1 %vm418_vm15, %v682_v50 }
 0x30a   :  { %v456_v51 = vpop.f32.mrb[0].mxu1 }
 0x30b   :  { %v458_v55 = vpop.f32.mrb[1].mxu1 }
 0x30c   :  { %v460_v61 = vpop.f32.mrb[2].mxu1 }
 0x30d   :  { %v461_v63 = vpop.f32.mrb[3].mxu1 }
 0x312   :  { %v500_v1 = vpop.f32.mrb[4].mxu1 }
 0x313   :  { %v501_v3 = vadd.f32 %v500_v1, %v456_v51  ;;  %v502_v4 = vpop.f32.mrb[5].mxu1 }
 0x314   :  { %v503_v5 = vadd.f32 %v502_v4, %v458_v55  ;;  %v504_v2 = vpop.f32.mrb[6].mxu1 }
 0x315   :  { %v505_v7 = vpop.f32.mrb[7].mxu1 }
 0x31a   :  { %v548_v9 = vpop.f32.mrb[8].mxu1 }
 0x31b   :  { %v555_v56 = vadd.f32 %v548_v9, %v501_v3  ;;  %v550_v0 = vpop.f32.mrb[9].mxu1 }
 0x31c   :  { %v556_v12 = vadd.f32 %v550_v0, %v503_v5  ;;  %v552_v14 = vpop.f32.mrb[10].mxu1 }
 0x31d   :  { %v553_v15 = vpop.f32.mrb[11].mxu1 }
 0x322   :  { %v615_v20 = vpop.f32.mrb[12].mxu1 }
 0x323   :  { %v622_v22 = vadd.f32 %v615_v20, %v555_v56  ;;  %v617_v62 = vpop.f32.mrb[13].mxu1 }
 0x324   :  { %v623_v11 = vadd.f32 %v617_v62, %v556_v12  ;;  %v619_v53 = vpop.f32.mrb[14].mxu1 }
 0x325   :  { %v630_v57 = vadd.f32 %v628_v24, %v622_v22  ;;  %v620_v17 = vpop.f32.mrb[15].mxu1 }
 0x326   :  { %v631_v59 = vadd.f32 %v628_v24, %v623_v11 }
 0x327   :  { %v644_v60 = vmul.f32 %v637_v52, %v630_v57 }
 0x328   :  { %v645_v19 = vmul.f32 %v641_v25, %v631_v59 }
 0x32a   :  { %v688_v21 = vpack.c.bf16 %v645_v19, %v644_v60 }
 0x32c   :  { %654 = vst [vmem:[%s1066_s6] sm:$0xff] %v688_v21 }

// kernel: autoencoder_forward.19
= control target key start
LH: loop header
LB: loop body
LE: loop exit
PB: predicated region body
PF: predicated region fallthrough
CT: control target
= control target key end

     0   :  { %v45_v9 = vlaneseq  ;;  %vm62_vm2 = vcmask 1043456   ;;  %s127_s0 = inlined_call_operand.vmem [shape: bf16[8,128], index: 0, kind: input, shape index: {}]   ;;  %s128_s1 = inlined_call_operand.vmem [shape: f32[4,128], index: 1, kind: input, shape index: {}]   ;;  %s129_s2 = inlined_call_operand.vmem [shape: f32[1,128], index: 2, kind: input, shape index: {}]   ;;  %s130_s3 = inlined_call_operand.vmem [shape: f32[4,128], index: 3, kind: output, shape index: {0}]   ;;  %s131_s4 = inlined_call_operand.vmem [shape: f32[1,128], index: 4, kind: output, shape index: {1}]  }
   0x1   :  { %v16_v0 = vld [vmem:[%s127_s0] sm:$0xf] }
   0x2   :  { %v17_v1 = vunpack.c.l.bf16 %v16_v0  ;;  %v46_v13 = vshrl.u32 %v45_v9, 7  ;;  %v37_v18 = vld [vmem:[%s129_s2] sm:$0x1] }
   0x3   :  { %v38_v19 = vld [vmem:[%s128_s1] sm:$0xf] }
   0x4   :  { %v19_v2 = vmin.f32 %v17_v1, 20.0  ;;  %vm18_vm1 = vcmp.gt.f32.partialorder %v17_v1, 20.0  ;;  %v47_v17 = vsub.s32 0, %v46_v13  ;;  %v52_v26 = vmul.f32 %v17_v1, %v17_v1 }
   0x6   :  { %v20_v3 = vmul.f32 1.442695, %v19_v2  ;;  %v48_v22 = vrot.slane %v37_v18, %v47_v17 }
   0x8   :  { %81 = vpow2.f32 %v20_v3 }
  0x12   :  { %v82_v4 = vpop.eup %81 }
  0x13   :  { %v22_v5 = vadd.f32 1.0, %v82_v4  ;;  %v25_v6 = vmul.f32 -0.5, %v82_v4  ;;  %v28_v8 = vand.u32 2147483647, %v82_v4 }
  0x15   :  { %83 = vlog2.f32 %v22_v5  ;;  %v26_v7 = vadd.f32 1.0, %v25_v6  ;;  %vm29_vm0 = vcmp.lt.f32.partialorder %v28_v8, 0.0004427343 }
  0x17   :  { %v27_v10 = vmul.f32 %v82_v4, %v26_v7 }
  0x1f   :  { %v84_v11 = vpop.eup %83 }
  0x20   :  { %v24_v12 = vmul.f32 0.6931472, %v84_v11 }
  0x22   :  { %v30_v14 = vsel %vm29_vm0, %v27_v10, %v24_v12 }
  0x23   :  { %v31_v15 = vsel %vm18_vm1, %v17_v1, %v30_v14 }
  0x24   :  { %v32_v16 = vadd.f32 0.01, %v31_v15 }
  0x26   :  { %85 = vlog2.f32 %v32_v16  ;;  %v40_v20 = vrot.slane %v32_v16, 4  ;;  %v33_v24 = vmul.f32 %v32_v16, %v32_v16 }
  0x28   :  { %v42_v21 = vmul.f32 %v40_v20, %v38_v19  ;;  %v54_v27 = vrot.slane %v33_v24, 4 }
  0x2a   :  { %v43_v23 = vadd.f32 %v42_v21, %v17_v1  ;;  %v56_v31 = vadd.f32 %v54_v27, %v52_v26 }
  0x2c   :  { %v50_v25 = vmul.f32 %v48_v22, %v43_v23 }
  0x2e   :  { %51 = vst [vmem:[%s130_s3] sm:$0xf] %v50_v25 }
  0x30   :  { %v86_v28 = vpop.eup %85 }
  0x31   :  { %v35_v29 = vmul.f32 0.6931472, %v86_v28 }
  0x33   :  { %v36_v30 = vmul.f32 2.0, %v35_v29 }
  0x35   :  { %v58_v32 = vrot.slane %v36_v30, 4 }
  0x37   :  { %v60_v33 = vsub.f32 %v56_v31, %v58_v32 }
  0x39   :  { %v80_v34 = vadd.f32 -1.0, %v60_v33 }
  0x3b   :  { %v63_v35 = vsel %vm62_vm2, %v80_v34, 0.0 }
  0x3c   :  { %v64_v36 = vrot.slane %v63_v35, 4 }
  0x3e   :  { %v65_v37 = vadd.f32 %v64_v36, %v63_v35 }
  0x40   :  { %v66_v38 = vrot.slane %v65_v37, 2 }
  0x42   :  { %v67_v39 = vadd.f32 %v66_v38, %v65_v37 }
  0x44   :  { %v68_v40 = vrot.slane %v67_v39, 1 }
  0x46   :  { %v69_v41 = vadd.f32 %v68_v40, %v67_v39 }
  0x48   :  { %v70_v42 = vmul.f32 %v69_v41, %v37_v18 }
  0x4a   :  { %71 = vst [vmem:[%s131_s4] sm:$0x1] %v70_v42 }

// kernel: autoencoder_forward.25
= control target key start
LH: loop header
LB: loop body
LE: loop exit
PB: predicated region body
PF: predicated region fallthrough
CT: control target
= control target key end

     0   :  { %v2489_v53 = vmov 0.0   ;;  %vm2490_vm0 = vmmov 0   ;;  %vm230_vm1 = vcmask 64512   ;;  %v2491_v61 = vmov 0   ;;  %s3134_s2 = inlined_call_operand.vmem [shape: f32[256,2], index: 2, kind: input, shape index: {}]   ;;  %s3135_s0 = inlined_call_operand.vmem [shape: bf16[8,256], index: 0, kind: input, shape index: {}]   ;;  %s3136_s5 = inlined_call_operand.vmem [shape: f32[8,8], index: 5, kind: input, shape index: {}]   ;;  %s3137_s4 = inlined_call_operand.vmem [shape: f32[8,4], index: 4, kind: input, shape index: {}]   ;;  %s3138_s6 = inlined_call_operand.vmem [shape: f32[8,8], index: 6, kind: input, shape index: {}]   ;;  %s3139_s3 = inlined_call_operand.vmem [shape: f32[2,256], index: 3, kind: input, shape index: {}]   ;;  %s3140_s8 = inlined_call_operand.vmem [shape: f32[2,1], index: 8, kind: input, shape index: {}]   ;;  %s3141_s7 = inlined_call_operand.vmem [shape: bf16[3,2,8], index: 7, kind: input, shape index: {}]   ;;  %s3142_s1 = inlined_call_operand.vmem [shape: f32[1,256], index: 1, kind: input, shape index: {}]   ;;  %s3143_s10 = inlined_call_operand.vmem [shape: f32[2,2], index: 10, kind: input, shape index: {}]   ;;  %s3144_s9 = inlined_call_operand.vmem [shape: f32[2,4], index: 9, kind: input, shape index: {}]   ;;  %s3145_s11 = inlined_call_operand.vmem [shape: f32[2,2], index: 11, kind: input, shape index: {}]   ;;  %s3146_s13 = inlined_call_operand.vmem [shape: f32[2,1], index: 13, kind: input, shape index: {}]   ;;  %s3147_s12 = inlined_call_operand.vmem [shape: bf16[1,2,2], index: 12, kind: input, shape index: {}]   ;;  %s3148_s14 = inlined_call_operand.vmem [shape: f32[2,256], index: 14, kind: output, shape index: {}]  }
   0x1   :  { %v68_v0 = vld [vmem:[%s3134_s2 + $0x80] sm:$0xff]  ;;  %v69_v1 = vld [vmem:[%s3134_s2 + $0x88] sm:$0xff]  ;;  %v70_v5 = vld [vmem:[%s3134_s2 + $0x90] sm:$0xff]  ;;  %2448 = vset.pattern.permute.xlu0 %v2491_v61  ;;  %v2492_v63 = vmov 1   ;;  %vm546_vm2 = vcmask 1041408   ;;  %vm542_vm3 = vcmask 15360  }
   0x2   :  { %v52_v2 = vld [vmem:[%s3134_s2] sm:$0xff]  ;;  %v2587_v3 = vpack.c.bf16 %v69_v1, %v68_v0  ;;  %v53_v4 = vld [vmem:[%s3134_s2 + $0x8] sm:$0xff]  ;;  %v71_v6 = vld [vmem:[%s3134_s2 + $0x98] sm:$0xff] }
   0x3   :  { %v2598_v7 = vpack.c.bf16 %v53_v4, %v52_v2  ;;  %v2600_v8 = vpack.c.bf16 %v71_v6, %v70_v5  ;;  %v54_v9 = vld [vmem:[%s3134_s2 + $0x10] sm:$0xff]  ;;  %v55_v10 = vld [vmem:[%s3134_s2 + $0x18] sm:$0xff]  ;;  %v72_v11 = vld [vmem:[%s3134_s2 + $0xa0] sm:$0xff] }
   0x4   :  { %2291 = vmatprep.subr.bf16.mxu0 %v2587_v3  ;;  %2323 = vmatprep.subr.bf16.mxu1 %v2587_v3  ;;  %v73_v12 = vld [vmem:[%s3134_s2 + $0xa8] sm:$0xff]  ;;  %v2618_v13 = vpack.c.bf16 %v55_v10, %v54_v9  ;;  %v56_v15 = vld [vmem:[%s3134_s2 + $0x20] sm:$0xff]  ;;  %v74_v17 = vld [vmem:[%s3134_s2 + $0xb0] sm:$0xff] }
   0x5   :  { %2293 = vmatpush3.bf16.msra.mxu0 %v2598_v7  ;;  %2325 = vmatpush3.bf16.msra.mxu1 %v2598_v7  ;;  %v2622_v14 = vpack.c.bf16 %v73_v12, %v72_v11  ;;  %v57_v16 = vld [vmem:[%s3134_s2 + $0x28] sm:$0xff]  ;;  %v75_v18 = vld [vmem:[%s3134_s2 + $0xb8] sm:$0xff]  ;;  %v58_v21 = vld [vmem:[%s3134_s2 + $0x30] sm:$0xff] }
   0x6   :  { %2295 = vmatprep.subr.bf16.mxu0 %v2600_v8  ;;  %2327 = vmatprep.subr.bf16.mxu1 %v2600_v8  ;;  %v2638_v19 = vpack.c.bf16 %v57_v16, %v56_v15  ;;  %v2642_v20 = vpack.c.bf16 %v75_v18, %v74_v17  ;;  %v59_v22 = vld [vmem:[%s3134_s2 + $0x38] sm:$0xff]  ;;  %v76_v23 = vld [vmem:[%s3134_s2 + $0xc0] sm:$0xff]  ;;  %v77_v24 = vld [vmem:[%s3134_s2 + $0xc8] sm:$0xff]  ;;  %v2493_v15 = vmov 2   ;;  %v3149_v16 = vmov 3  }
   0x7   :  { %v48_v25 = vld [vmem:[%s3135_s0] sm:$0xff]  ;;  %v2663_v27 = vpack.c.bf16 %v59_v22, %v58_v21  ;;  %v2667_v28 = vpack.c.bf16 %v77_v24, %v76_v23  ;;  %v61_v30 = vld [vmem:[%s3134_s2 + $0x48] sm:$0xff]  ;;  %v78_v32 = vld [vmem:[%s3134_s2 + $0xd0] sm:$0xff]  ;;  %2450 = vset.pattern.permute.xlu1 %v2493_v15 }
   0x8   :  { %v2659_v26 = vunpack.c.h.bf16 %v48_v25  ;;  %v60_v29 = vld [vmem:[%s3134_s2 + $0x40] sm:$0xff]  ;;  %v79_v33 = vld [vmem:[%s3134_s2 + $0xd8] sm:$0xff]  ;;  %v62_v36 = vld [vmem:[%s3134_s2 + $0x50] sm:$0xff]  ;;  %v2738_v50 = vunpack.c.l.bf16 %v48_v25 }
   0x9   :  { %2297 = vmatpush3.bf16.msra.mxu0 %v2618_v13  ;;  %2329 = vmatpush3.bf16.msra.mxu1 %v2618_v13  ;;  %v2686_v34 = vpack.c.bf16 %v61_v30, %v60_v29  ;;  %v2690_v35 = vpack.c.bf16 %v79_v33, %v78_v32  ;;  %v63_v37 = vld [vmem:[%s3134_s2 + $0x58] sm:$0xff]  ;;  %v80_v38 = vld [vmem:[%s3134_s2 + $0xe0] sm:$0xff]  ;;  %v81_v39 = vld [vmem:[%s3134_s2 + $0xe8] sm:$0xff] }
   0xa   :  { %2299 = vmatprep.subr.bf16.mxu0 %v2622_v14  ;;  %2331 = vmatprep.subr.bf16.mxu1 %v2622_v14  ;;  %v159_v31 = vmul.f32 %v2659_v26, %v2659_v26  ;;  %v2706_v40 = vpack.c.bf16 %v63_v37, %v62_v36  ;;  %v2710_v41 = vpack.c.bf16 %v81_v39, %v80_v38  ;;  %v64_v42 = vld [vmem:[%s3134_s2 + $0x60] sm:$0xff]  ;;  %v65_v43 = vld [vmem:[%s3134_s2 + $0x68] sm:$0xff]  ;;  %v82_v44 = vld [vmem:[%s3134_s2 + $0xf0] sm:$0xff] }
   0xb   :  { %152 = vmatprep.mubr.f32.mxu0 %v2659_v26  ;;  %v83_v45 = vld [vmem:[%s3134_s2 + $0xf8] sm:$0xff]  ;;  %v2726_v46 = vpack.c.bf16 %v65_v43, %v64_v42  ;;  %v66_v48 = vld [vmem:[%s3134_s2 + $0x70] sm:$0xff]  ;;  %v158_v52 = vmul.f32 %v2738_v50, %v2738_v50  ;;  %v86_v60 = vld [vmem:[%s3136_s5] sm:$0xff] }
   0xc   :  { %224 = vmatprep.mubr.f32.mxu1 %v159_v31  ;;  %v2730_v47 = vpack.c.bf16 %v83_v45, %v82_v44  ;;  %v67_v49 = vld [vmem:[%s3134_s2 + $0x78] sm:$0xff]  ;;  %v85_v62 = vld [vmem:[%s3137_s4] sm:$0xff] }
   0xd   :  { %2301 = vmatpush3.bf16.msra.mxu0 %v2638_v19  ;;  %2333 = vmatpush3.bf16.msra.mxu1 %v2638_v19  ;;  %v2742_v51 = vpack.c.bf16 %v67_v49, %v66_v48  ;;  %v87_v2 = vld [vmem:[%s3138_s6] sm:$0xff]  ;;  %s2502_s6 = smov 1  }
   0xe   :  { %2303 = vmatprep.subr.bf16.mxu0 %v2642_v20  ;;  %2335 = vmatprep.subr.bf16.mxu1 %v2642_v20  ;;  %v2784_v11 = vld.sshfl [vmem:[%s3139_s3] sm:$0x33 pattern:$0x76325410]  ;;  %s2501_s3 = smov 127  }
   0xf   :  { %523 = vperm.xlu0 %2448, %v85_v62   ;;  %v2788_v12 = vcombine.high %v2784_v11, %v2784_v11  ;;  %701 = vperm.xlu1 %2450, %v85_v62  }
  0x11   :  { %2305 = vmatpush3.bf16.msra.mxu0 %v2663_v27  ;;  %2337 = vmatpush3.bf16.msra.mxu1 %v2663_v27 }
  0x12   :  { %2307 = vmatprep.subr.bf16.mxu0 %v2667_v28  ;;  %2339 = vmatprep.subr.bf16.mxu1 %v2667_v28 }
  0x13   :  { %2449 = vset.pattern.permute.xlu0 %v2492_v63  ;;  %2451 = vset.pattern.permute.xlu1 %v3149_v16 }
  0x14   :  { %529 = vperm.xlu0 %2449, %v85_v62   ;;  %917 = vperm.xlu1 %2451, %v85_v62  }
  0x15   :  { %2309 = vmatpush3.bf16.msra.mxu0 %v2686_v34  ;;  %2341 = vmatpush3.bf16.msra.mxu1 %v2686_v34 }
  0x16   :  { %2311 = vmatprep.subr.bf16.mxu0 %v2690_v35  ;;  %2343 = vmatprep.subr.bf16.mxu1 %v2690_v35 }
  0x18   :  { %2463 = vset.pattern.permute.xlu0 %v2491_v61  ;;  %2462 = vset.pattern.permute.xlu1 %v2491_v61 }
  0x19   :  { %2313 = vmatpush3.bf16.msra.mxu0 %v2706_v40  ;;  %2345 = vmatpush3.bf16.msra.mxu1 %v2706_v40 }
  0x1a   :  { %2315 = vmatprep.subr.bf16.mxu0 %v2710_v41  ;;  %2347 = vmatprep.subr.bf16.mxu1 %v2710_v41 }
  0x1d   :  { %2317 = vmatpush3.bf16.msra.mxu0 %v2726_v46  ;;  %2349 = vmatpush3.bf16.msra.mxu1 %v2726_v46 }
  0x1e   :  { %2319 = vmatprep.subr.bf16.mxu0 %v2730_v47  ;;  %2351 = vmatprep.subr.bf16.mxu1 %v2730_v47 }
  0x21   :  { %2321 = vmatpush3.bf16.msra.mxu0 %v2742_v51  ;;  %2353 = vmatpush3.bf16.msra.mxu1 %v2742_v51 }
  0x22   :  { %2250 = vmatprep.subr.mxu1 %v2489_v53  ;;  %2260 = vmatprep.subr.mxu0 %v2489_v53 }
  0x24   :  { %153 = vmatmul.mubr.f32.vlgmr.msra.gmra.mrb[0].mxu0 %v2738_v50  ;;  %225 = vmatmul.mubr.f32.vlgmr.msra.gmra.mrb[0].mxu1 %v158_v52 }
  0x25   :  { %2252 = vmatprep.mubr.msk.f32.mxu1 %vm2490_vm0, %v2489_v53  ;;  %2262 = vmatprep.mubr.msk.f32.mxu0 %vm2490_vm0, %v2489_v53 }
  0x8e   :  { %v524_v24 = vpop.permute.xlu0 %523  ;;  %v702_v42 = vpop.permute.xlu1 %701 }
  0x93   :  { %v530_v30 = vpop.permute.xlu0 %529 }
  0xf7   :  { %v2126_v54 = vpop.f32.mrb[0].mxu0  ;;  %v2161_v55 = vpop.f32.mrb[0].mxu1 }
  0xf8   :  { %v2127_v56 = vpop.f32.mrb[1].mxu0  ;;  %v2162_v57 = vpop.f32.mrb[1].mxu1 }
  0xf9   :  { %v2128_v58 = vadd.f32 %v2127_v56, %v2126_v54  ;;  %v2163_v59 = vadd.f32 %v2162_v57, %v2161_v55 }
  0xfb   :  { %2251 = vmatpush3.msra.mxu1 %v2128_v58 }
  0xfc   :  { %2253 = vmatmul.mubr.msk.f32.vlgmr.msra.gmra.mrb[2].mxu1 %vm230_vm1, %v86_v60  ;;  %2255 = vmatprep.subr.mxu1 %v2489_v53 }
  0xfd   :  { %2256 = vmatpush3.msra.mxu1 %v2163_v59  ;;  %2257 = vmatprep.mubr.msk.f32.mxu1 %vm2490_vm0, %v2489_v53 }
  0xfe   :  { %2265 = vmatprep.subr.mxu1 %v2489_v53 }
 0x100   :  { %2258 = vmatmul.mubr.msk.f32.vlgmr.msra.gmra.mrb[4].mxu1 %vm230_vm1, %v86_v60 }
 0x101   :  { %2267 = vmatprep.mubr.msk.f32.mxu1 %vm2490_vm0, %v2489_v53 }
 0x1cf   :  { %v300_v0 = vpop.f32.mrb[2].mxu1 }
 0x1d0   :  { %v2254_v1 = vpop.f32.mrb[3].mxu1  ;;  %2261 = vmatpush3.msra.mxu0 %v300_v0  ;;  %v374_v4 = vmul.f32 %v300_v0, %v300_v0 }
 0x1d1   :  { %2263 = vmatmul.mubr.msk.f32.vlgmr.msra.gmra.mrb[2].mxu0 %vm230_vm1, %v87_v2  ;;  %2047 = vmatprep.subr.msk.mxu0 %vm546_vm2, %v2788_v12 }
 0x1d2   :  { %615 = vmatprep.mubr.f32.mxu0 %v2489_v53  ;;  %2048 = vmatpush1.msk.msra.mxu0 %vm546_vm2, %v2784_v11 }
 0x1d3   :  { %v370_v5 = vpop.f32.mrb[4].mxu1 }
 0x1d4   :  { %v375_v6 = vsub.f32 %v370_v5, %v374_v4  ;;  %v2259_v9 = vpop.f32.mrb[5].mxu1 }
 0x1d6   :  { %v376_v10 = vmax.f32 %v375_v6, 0.0 }
 0x1d8   :  { %2266 = vmatpush3.msra.mxu1 %v376_v10 }
 0x1d9   :  { %2268 = vmatmul.mubr.msk.f32.vlgmr.msra.gmra.mrb[6].mxu1 %vm230_vm1, %v87_v2  ;;  %2050 = vmatprep.subr.msk.mxu1 %vm546_vm2, %v2788_v12 }
 0x1da   :  { %689 = vmatprep.mubr.f32.mxu1 %v2489_v53  ;;  %2051 = vmatpush1.msk.msra.mxu1 %vm546_vm2, %v2784_v11 }
 0x2a4   :  { %v446_v17 = vpop.f32.mrb[2].mxu0 }
 0x2a5   :  { %v2264_v18 = vpop.f32.mrb[3].mxu0 }
 0x2a6   :  { %v2495_v18 = vmov 683565275  }
 0x2ac   :  { %v516_v21 = vpop.f32.mrb[6].mxu1 }
 0x2ad   :  { %v517_v22 = vadd.f32 1e-05, %v516_v21  ;;  %v2269_v23 = vpop.f32.mrb[7].mxu1 }
 0x2af   :  { %2469 = vrsqrt.f32 %v517_v22 }
 0x2b9   :  { %v2470_v25 = vpop.eup %2469 }
 0x2ba   :  { %v526_v29 = vmul.f32 %v2470_v25, %v524_v24  ;;  %v3152_v24 = vmov 2475754826  }
 0x2bc   :  { %v527_v31 = vmul.f32 %v526_v29, %v446_v17  ;;  %2049 = vmatmul.mubr.msk.f32.vlgmr.msra.gmra.mrb[4].mxu0 %vm542_vm3, %v526_v29  ;;  %v3150_v29 = vmov 2131351028  }
 0x2bd   :  { %984 = vmatprep.mubr.bf16.mxu0 %v2491_v61 }
 0x2be   :  { %v532_v32 = vsub.f32 %v530_v30, %v527_v31  ;;  %v2498_v31 = vmov 2102212464  }
 0x2c0   :  { %2052 = vmatmul.mubr.msk.f32.vlgmr.msra.gmra.mrb[8].mxu1 %vm542_vm3, %v532_v32 }
 0x2c1   :  { %1034 = vmatprep.mubr.bf16.mxu1 %v2491_v61 }
 0x38f   :  { %v617_v33 = vpop.f32.mrb[4].mxu0 }
 0x390   :  { %v619_v36 = vpop.f32.mrb[5].mxu0  ;;  %v696_v37 = vmul.f32 %v617_v33, %v2738_v50  ;;  %v2499_v33 = vmov 920167782  }
 0x391   :  { %v697_v38 = vmul.f32 %v619_v36, %v2659_v26 }
 0x393   :  { %v691_v39 = vpop.f32.mrb[8].mxu1 }
 0x394   :  { %v2807_v43 = vadd.f32 %v696_v37, %v691_v39  ;;  %v693_v44 = vpop.f32.mrb[9].mxu1 }
 0x395   :  { %v2809_v45 = vadd.f32 %v697_v38, %v693_v44 }
 0x396   :  { %v2812_v48 = vmul.f32 %v702_v42, %v2807_v43 }
 0x397   :  { %v2815_v49 = vmul.f32 %v702_v42, %v2809_v45 }
 0x398   :  { %v706_v52 = vand.u32 2147483647, %v2812_v48  ;;  %v709_v54 = vand.u32 2139095040, %v2812_v48 }
 0x399   :  { %v813_v50 = vand.u32 2139095040, %v2815_v49  ;;  %v810_v56 = vand.u32 2147483647, %v2815_v49 }
 0x39a   :  { %v710_v26 = vshrl.u32 %v709_v54, 23  ;;  %v713_v55 = vand.u32 8388607, %v706_v52  ;;  %v2500_v54 = vmov 1326507024  }
 0x39b   :  { %v814_v57 = vshrl.u32 %v813_v50, 23  ;;  %v2825_v0 = vand.u32 8388607, %v810_v56 }
 0x39c   :  { %v2053_v58 = vadd.s32 4294967169, %v710_v26  ;;  %v714_v62 = vor.u32 8388608, %v713_v55 }
 0x39d   :  { %v2057_v59 = vadd.s32 4294967169, %v814_v57  ;;  %v818_v10 = vor.u32 8388608, %v2825_v0 }
 0x39e   :  { %v716_v60 = vadd.s32 1, %v2053_v58  ;;  %v2827_v9 = vshll.u32 %v714_v62, 8 }
 0x39f   :  { %v820_v1 = vadd.s32 1, %v2057_v59 }
 0x3a0   :  { %vm717_vm4 = vcmp.gt.s32.totalorder %v716_v60, 0 }
 0x3a1   :  { %v718_v2 = vsel %vm717_vm4, %v716_v60, 0  ;;  %vm821_vm5 = vcmp.gt.s32.totalorder %v820_v1, 0 }
 0x3a2   :  { %v719_v4 = vshrl.u32 %v718_v2, 5  ;;  %v720_v5 = vand.u32 31, %v718_v2  ;;  %v822_v6 = vsel %vm821_vm5, %v820_v1, 0 }
 0x3a3   :  { %v2831_v22 = vshrl.u32 %v822_v6, 5  ;;  %v824_v23 = vand.u32 31, %v822_v6 }
 0x3a4   :  { %v721_v17 = vsub.s32 32, %v720_v5  ;;  %v723_v21 = vshll.u32 %v2495_v18, %v720_v5  ;;  %v726_v25 = vshll.u32 %v3152_v24, %v720_v5  ;;  %v729_v30 = vshll.u32 %v3150_v29, %v720_v5 }
 0x3a5   :  { %v732_v32 = vshll.u32 %v2498_v31, %v720_v5  ;;  %v735_v36 = vshll.u32 %v2499_v33, %v720_v5  ;;  %vm738_vm6 = vcmp.lt.s32.totalorder %v719_v4, 1  ;;  %vm739_vm7 = vcmp.lt.s32.totalorder %v719_v4, 2 }
 0x3a6   :  { %v724_v37 = vshrl.u32 %v3152_v24, %v721_v17  ;;  %v727_v38 = vshrl.u32 %v3150_v29, %v721_v17  ;;  %v730_v39 = vshrl.u32 %v2498_v31, %v721_v17  ;;  %v722_v42 = vshrl.u32 %v2495_v18, %v721_v17 }
 0x3a7   :  { %v733_v44 = vshrl.u32 %v2499_v33, %v721_v17  ;;  %v736_v50 = vshrl.u32 %v2500_v54, %v721_v17  ;;  %v825_v58 = vsub.s32 32, %v824_v23  ;;  %vm740_vm8 = vcmp.lt.s32.totalorder %v719_v4, 3 }
 0x3a8   :  { %v725_v26 = vor.u32 %v724_v37, %v723_v21  ;;  %v728_v55 = vor.u32 %v727_v38, %v726_v25  ;;  %v731_v57 = vor.u32 %v730_v39, %v729_v30  ;;  %vm741_vm9 = vcmp.lt.s32.totalorder %v719_v4, 4 }
 0x3a9   :  { %v734_v59 = vor.u32 %v733_v44, %v732_v32  ;;  %v737_v60 = vor.u32 %v736_v50, %v735_v36  ;;  %v827_v17 = vshll.u32 %v2495_v18, %v824_v23  ;;  %v828_v30 = vshrl.u32 %v3152_v24, %v825_v58 }
 0x3aa   :  { %v742_v62 = vsel %vm738_vm6, %v722_v42, %v725_v26  ;;  %v743_v0 = vsel %vm741_vm9, %v731_v57, 2102212464  ;;  %v746_v1 = vsel %vm738_vm6, %v725_v26, %v728_v55  ;;  %v750_v2 = vsel %vm738_vm6, %v728_v55, %v731_v57 }
 0x3ab   :  { %v744_v5 = vsel %vm740_vm8, %v728_v55, %v743_v0  ;;  %v747_v6 = vsel %vm741_vm9, %v734_v59, 920167782  ;;  %v751_v16 = vsel %vm741_vm9, %v737_v60, 1326507024  ;;  %v830_v32 = vshll.u32 %v3152_v24, %v824_v23 }
 0x3ac   :  { %v748_v21 = vsel %vm740_vm8, %v731_v57, %v747_v6  ;;  %v752_v25 = vsel %vm740_vm8, %v734_v59, %v751_v16  ;;  %v745_v36 = vsel %vm739_vm7, %v742_v62, %v744_v5  ;;  %v831_v39 = vshrl.u32 %v3150_v29, %v825_v58 }
 0x3ad   :  { %v749_v37 = vsel %vm739_vm7, %v746_v1, %v748_v21  ;;  %v753_v38 = vsel %vm739_vm7, %v750_v2, %v752_v25  ;;  %v829_v16 = vor.u32 %v828_v30, %v827_v17  ;;  %v833_v57 = vshll.u32 %v3150_v29, %v824_v23 }
 0x3ae   :  { %v2854_v42 = vmul.u32.u64.low %v2827_v9, %v753_v38  ;;  %v2855_v44 = vmul.u32.u64.high %v2827_v9, %v753_v38, %v2854_v42  ;;  %v2858_v50 = vmul.u32.u64.low %v2827_v9, %v749_v37  ;;  %v2859_v26 = vmul.u32.u64.high %v2827_v9, %v749_v37, %v2858_v50 }
 0x3af   :  { %v832_v55 = vor.u32 %v831_v39, %v830_v32  ;;  %v834_v59 = vshrl.u32 %v2498_v31, %v825_v58  ;;  %v836_v60 = vshll.u32 %v2498_v31, %v824_v23  ;;  %v837_v4 = vshrl.u32 %v2499_v33, %v825_v58 }
 0x3b0   :  { %v840_v62 = vshrl.u32 %v2500_v54, %v825_v58  ;;  %v858_v0 = vshll.u32 %v818_v10, 8  ;;  %v761_v1 = vmul.u32 %v2827_v9, %v745_v36  ;;  %v826_v2 = vshrl.u32 %v2495_v18, %v825_v58 }
 0x3b1   :  { %v835_v5 = vor.u32 %v834_v59, %v833_v57  ;;  %v839_v6 = vshll.u32 %v2499_v33, %v824_v23  ;;  %vm763_vm10 = vc.u32 %v2855_v44, %v2858_v50  ;;  %v764_v17 = vadd.s32 1, %v2859_v26 }
 0x3b2   :  { %v838_v21 = vor.u32 %v837_v4, %v836_v60  ;;  %vm842_vm11 = vcmp.lt.s32.totalorder %v2831_v22, 1  ;;  %vm844_vm12 = vcmp.lt.s32.totalorder %v2831_v22, 3  ;;  %vm845_vm13 = vcmp.lt.s32.totalorder %v2831_v22, 4 }
 0x3b3   :  { %v841_v25 = vor.u32 %v840_v62, %v839_v6  ;;  %v850_v10 = vsel %vm842_vm11, %v829_v16, %v832_v55  ;;  %v765_v9 = vsel %vm763_vm10, %v764_v17, %v2859_v26  ;;  %v847_v30 = vsel %vm845_vm13, %v835_v5, 2102212464 }
 0x3b4   :  { %v851_v58 = vsel %vm845_vm13, %v838_v21, 920167782  ;;  %v854_v32 = vsel %vm842_vm11, %v832_v55, %v835_v5  ;;  %v766_v36 = vadd.s32 %v765_v9, %v761_v1  ;;  %vm843_vm14 = vcmp.lt.s32.totalorder %v2831_v22, 2 }
 0x3b5   :  { %v852_v23 = vsel %vm844_vm12, %v835_v5, %v851_v58  ;;  %v855_v37 = vsel %vm845_vm13, %v841_v25, 1326507024  ;;  %v846_v38 = vsel %vm842_vm11, %v826_v2, %v829_v16  ;;  %v848_v39 = vsel %vm844_vm12, %v832_v55, %v847_v30 }
 0x3b6   :  { %v853_v42 = vsel %vm843_vm14, %v850_v10, %v852_v23  ;;  %v856_v57 = vsel %vm844_vm12, %v838_v21, %v855_v37  ;;  %v767_v59 = vadd.s32 536870912, %v766_v36  ;;  %v849_v17 = vsel %vm843_vm14, %v846_v38, %v848_v39 }
 0x3b7   :  { %v857_v60 = vsel %vm843_vm14, %v854_v32, %v856_v57  ;;  %v2876_v4 = vmul.u32.u64.low %v858_v0, %v853_v42  ;;  %v2877_v62 = vmul.u32.u64.high %v858_v0, %v853_v42, %v2876_v4  ;;  %v865_v22 = vmul.u32 %v858_v0, %v849_v17 }
 0x3b8   :  { %v2879_v6 = vmul.u32.u64.low %v858_v0, %v857_v60  ;;  %v2880_v29 = vmul.u32.u64.high %v858_v0, %v857_v60, %v2879_v6  ;;  %v768_v26 = vshrl.u32 %v767_v59, 30  ;;  %v762_v38 = vadd.s32 %v2858_v50, %v2855_v44 }
 0x3b9   :  { %v868_v1 = vadd.s32 1, %v2877_v62  ;;  %vm708_vm6 = vcmp.lt.s32.totalorder %v2812_v48, 0  ;;  %vm707_vm7 = vcmp.le.f32.partialorder %v706_v52, 0.7853982  ;;  %vm812_vm8 = vcmp.lt.s32.totalorder %v2815_v49, 0 }
 0x3ba   :  { %v769_v24 = vshll.u32 %v768_v26, 30  ;;  %vm867_vm15 = vc.u32 %v2880_v29, %v2876_v4  ;;  %v792_v50 = vsub.s32 4, %v768_v26  ;;  %vm811_vm9 = vcmp.le.f32.partialorder %v810_v56, 0.7853982 }
 0x3bb   :  { %v869_v55 = vsel %vm867_vm15, %v868_v1, %v2877_v62  ;;  %vm798_vm13 = vweird.f32 %v2812_v48 }
 0x3bc   :  { %v770_v16 = vsub.s32 %v766_v36, %v769_v24  ;;  %v870_v2 = vadd.s32 %v869_v55, %v865_v22 }
 0x3be   :  { %v772_v5 = vsub.s32 0, %v770_v16  ;;  %v871_v21 = vadd.s32 536870912, %v870_v2 }
 0x3c0   :  { %v2054_v25 = vmin.u32 %v772_v5, %v770_v16  ;;  %v872_v10 = vshrl.u32 %v871_v21, 30 }
 0x3c2   :  { %v774_v9 = vclz %v2054_v25  ;;  %v873_v30 = vshll.u32 %v872_v10, 30 }
 0x3c4   :  { %v2055_v58 = vadd.s32 4294967294, %v774_v9  ;;  %v874_v32 = vsub.s32 %v870_v2, %v873_v30  ;;  %v866_v2 = vadd.s32 %v2876_v4, %v2880_v29 }
 0x3c6   :  { %vm2056_vm4 = vcmp.lt.s32.totalorder %v2055_v58, 0  ;;  %v876_v37 = vsub.s32 0, %v874_v32 }
 0x3c7   :  { %v777_v23 = vsel %vm2056_vm4, 0, %v2055_v58 }
 0x3c8   :  { %v778_v0 = vsub.s32 32, %v777_v23  ;;  %v782_v39 = vsub.s32 4294967266, %v777_v23  ;;  %v2058_v42 = vmin.u32 %v876_v37, %v874_v32  ;;  %v779_v24 = vshll.u32 %v770_v16, %v777_v23 }
 0x3ca   :  { %v780_v36 = vshrl.u32 %v762_v38, %v778_v0  ;;  %v783_v57 = vadd.s32 127, %v782_v39  ;;  %v878_v59 = vclz %v2058_v42  ;;  %v793_v38 = vsel %vm708_vm6, %v792_v50, %v768_v26  ;;  %v918_v50 = vpop.permute.xlu1 %917 }
 0x3cb   :  { %v795_v42 = vsel %vm707_vm7, 0, %v793_v38 }
 0x3cc   :  { %v781_v60 = vor.u32 %v780_v36, %v779_v24  ;;  %v784_v62 = vshll.u32 %v783_v57, 23  ;;  %v2059_v6 = vadd.s32 4294967294, %v878_v59  ;;  %v896_v24 = vsub.s32 4, %v872_v10 }
 0x3cd   :  { %v799_v36 = vadd.s32 3, %v795_v42 }
 0x3ce   :  { %v785_v17 = vor.u32 4788187, %v784_v62  ;;  %vm2060_vm5 = vcmp.lt.s32.totalorder %v2059_v6, 0  ;;  %v788_v22 = vcvt.s32.f32 %v781_v60  ;;  %v897_v52 = vsel %vm812_vm8, %v896_v24, %v872_v10 }
 0x3cf   :  { %v881_v55 = vsel %vm2060_vm5, 0, %v2059_v6  ;;  %v800_v26 = vand.u32 3, %v799_v36  ;;  %v899_v6 = vsel %vm811_vm9, 0, %v897_v52  ;;  %vm902_vm5 = vweird.f32 %v2815_v49 }
 0x3d0   :  { %v786_v1 = vand.u32 2147483647, %v785_v17  ;;  %v882_v5 = vsub.s32 32, %v881_v55  ;;  %v886_v21 = vsub.s32 4294967266, %v881_v55  ;;  %v883_v25 = vshll.u32 %v874_v32, %v881_v55 }
 0x3d1   :  { %vm805_vm10 = vcmp.eq.s32.totalorder %v800_v26, 2  ;;  %vm802_vm11 = vcmp.eq.s32.totalorder %v800_v26, 0  ;;  %vm801_vm12 = vcmp.lt.s32.totalorder %v800_v26, 2 }
 0x3d2   :  { %v789_v44 = vmul.f32 %v788_v22, %v786_v1  ;;  %v884_v9 = vshrl.u32 %v866_v2, %v882_v5  ;;  %v887_v16 = vadd.s32 127, %v886_v21  ;;  %v903_v2 = vadd.s32 3, %v899_v6 }
 0x3d4   :  { %v790_v30 = vxor.u32 2147483648, %v789_v44  ;;  %v885_v58 = vor.u32 %v884_v9, %v883_v25  ;;  %v888_v23 = vshll.u32 %v887_v16, 23  ;;  %v904_v21 = vand.u32 3, %v903_v2 }
 0x3d6   :  { %v791_v37 = vsel %vm708_vm6, %v790_v30, %v789_v44  ;;  %v889_v0 = vor.u32 4788187, %v888_v23  ;;  %v892_v39 = vcvt.s32.f32 %v885_v58  ;;  %vm909_vm14 = vcmp.eq.s32.totalorder %v904_v21, 2 }
 0x3d7   :  { %v794_v29 = vsel %vm707_vm7, %v2812_v48, %v791_v37  ;;  %vm906_vm15 = vcmp.eq.s32.totalorder %v904_v21, 0  ;;  %vm905_vm4 = vcmp.lt.s32.totalorder %v904_v21, 2  ;;  %vm945_vm6 = vcmask 1043456   ;;  %v2066_v21 = vld [vmem:[%s3141_s7 + $0x2] sm:$0x1] }
 0x3d8   :  { %2471 = vcosq.f32 %v794_v29  ;;  %v890_v4 = vand.u32 2147483647, %v889_v0  ;;  %vm1047_vm7 = vcmask 1039360  }
 0x3d9   :  { %2473 = vsinq.f32 %v794_v29 }
 0x3da   :  { %v893_v32 = vmul.f32 %v892_v39, %v890_v4 }
 0x3dc   :  { %v894_v57 = vxor.u32 2147483648, %v893_v32 }
 0x3de   :  { %v895_v59 = vsel %vm812_vm8, %v894_v57, %v893_v32  ;;  %vm930_vm8 = vcmask 7168  }
 0x3df   :  { %v898_v60 = vsel %vm811_vm9, %v2815_v49, %v895_v59 }
 0x3e0   :  { %2475 = vcosq.f32 %v898_v60 }
 0x3e1   :  { %2477 = vsinq.f32 %v898_v60 }
 0x3e2   :  { %v2472_v62 = vpop.eup %2471 }
 0x3e3   :  { %v2474_v17 = vpop.eup %2473  ;;  %v806_v1 = vxor.u32 2147483648, %v2472_v62 }
 0x3e4   :  { %v803_v22 = vxor.u32 2147483648, %v2474_v17 }
 0x3e5   :  { %v807_v55 = vsel %vm805_vm10, %v806_v1, %v2474_v17 }
 0x3e6   :  { %v804_v5 = vsel %vm802_vm11, %v2472_v62, %v803_v22 }
 0x3e7   :  { %v808_v56 = vsel %vm801_vm12, %v804_v5, %v807_v55 }
 0x3e8   :  { %v809_v10 = vsel %vm798_vm13, nan, %v808_v56 }
 0x3e9   :  { %v914_v44 = vmul.f32 %v809_v10, %v809_v10  ;;  %v935_v10 = vld [vmem:[%s3141_s7] sm:$0x1] }
 0x3ea   :  { %v2476_v25 = vpop.eup %2475 }
 0x3eb   :  { %v2478_v9 = vpop.eup %2477  ;;  %v910_v16 = vxor.u32 2147483648, %v2476_v25  ;;  %v920_v58 = vmul.f32 %v918_v50, %v914_v44 }
 0x3ec   :  { %v907_v30 = vxor.u32 2147483648, %v2478_v9 }
 0x3ed   :  { %v911_v23 = vsel %vm909_vm14, %v910_v16, %v2478_v9  ;;  %v922_v48 = vadd.f32 %v920_v58, %v2807_v43  ;;  %v1108_v43 = vld [vmem:[%s3140_s8] sm:$0x3] }
 0x3ee   :  { %v908_v37 = vsel %vm906_vm15, %v2476_v25, %v907_v30 }
 0x3ef   :  { %v912_v38 = vsel %vm905_vm4, %v908_v37, %v911_v23  ;;  %v940_v39 = vpack.c.bf16 %v922_v48, %v922_v48 }
 0x3f0   :  { %v913_v0 = vsel %vm902_vm5, nan, %v912_v38 }
 0x3f1   :  { %v915_v29 = vmul.f32 %v913_v0, %v913_v0  ;;  %v947_v36 = vsel %vm945_vm6, %v940_v39, 0 }
 0x3f3   :  { %v921_v4 = vmul.f32 %v918_v50, %v915_v29 }
 0x3f5   :  { %v923_v42 = vadd.f32 %v921_v4, %v2809_v45  ;;  %v2061_v45 = vld [vmem:[%s3141_s7 + $0x1] sm:$0x1] }
 0x3f7   :  { %v2457_v32 = vpack.i.bf16 %v923_v42, %v922_v48  ;;  %v941_v24 = vpack.c.bf16 %v923_v42, %v923_v42 }
 0x3f9   :  { %2458 = vrot.lane.b32.xlu0 %v2457_v32, %s2501_s3  ;;  %2453 = vrot.lane.b32.xlu1 %v2457_v32, %s2502_s6 }
 0x3fa   :  { %2062 = vmatprep.subr.msk.bf16.mxu0 %vm945_vm6, %v941_v24 }
 0x3fb   :  { %953 = vmatpush1.bf16.msra.mxu0 %v947_v36  ;;  %v1130_v36 = vld [vmem:[%s3143_s10] sm:$0x3] }
 0x3fd   :  { %1111 = vperm.xlu1 %2462, %v1108_v43  }
 0x3fe   :  { %2063 = vmatmul.mubr.msk.bf16.vlgmr.msra.gmra.mrb[8].mxu0 %vm230_vm1, %v2061_v45 }
 0x3ff   :  { %1097 = vmatprep.mubr.bf16.mxu0 %v2491_v61 }
 0x401   :  { %2464 = vset.pattern.permute.xlu1 %v2492_v63 }
 0x46b   :  { %v2459_v49 = vpop.permute.xlu0 %2458  ;;  %v2454_v57 = vpop.permute.xlu1 %2453 }
 0x46c   :  { %v2461_v59 = vunpack.i.h.bf16 %v2459_v49  ;;  %v2460_v52 = vunpack.i.l.bf16 %v2459_v49  ;;  %v2456_v26 = vunpack.i.h.bf16 %v2454_v57  ;;  %v2455_v60 = vunpack.i.l.bf16 %v2454_v57  ;;  %v1129_v49 = vld [vmem:[%s3144_s9] sm:$0x3] }
 0x46d   :  { %1578 = vperm.xlu0 %2463, %v1129_v49   ;;  %1584 = vperm.xlu1 %2464, %v1129_v49   ;;  %v3154_v57 = vmov 3  }
 0x46e   :  { %v1051_v62 = vsel %vm1047_vm7, %v2461_v59, 0.0  ;;  %v931_v6 = vsel %vm930_vm8, %v2455_v60, %v2456_v26  ;;  %v934_v17 = vsel %vm930_vm8, 0.0, %v2455_v60  ;;  %v1048_v1 = vsel %vm1047_vm7, %v2460_v52, %v2461_v59  ;;  %v1131_v26 = vld [vmem:[%s3145_s11] sm:$0x3] }
 0x46f   :  { %v1055_v22 = vpack.c.bf16 %v1051_v62, %v1051_v62  ;;  %v936_v55 = vpack.c.bf16 %v934_v17, %v934_v17  ;;  %v937_v2 = vpack.c.bf16 %v931_v6, %v931_v6  ;;  %v1054_v5 = vpack.c.bf16 %v1048_v1, %v1048_v1 }
 0x471   :  { %2064 = vmatprep.subr.msk.bf16.mxu1 %vm945_vm6, %v937_v2  ;;  %2067 = vmatprep.subr.msk.bf16.mxu0 %vm945_vm6, %v1055_v22  ;;  %v997_v63 = vsel %vm945_vm6, %v936_v55, 0  ;;  %v1060_v56 = vsel %vm945_vm6, %v1054_v5, 0 }
 0x472   :  { %1003 = vmatpush1.bf16.msra.mxu1 %v997_v63  ;;  %1066 = vmatpush1.bf16.msra.mxu0 %v1060_v56 }
 0x473   :  { %2355 = vmatprep.subr.bf16.mxu1 %v2587_v3  ;;  %2387 = vmatprep.subr.bf16.mxu0 %v2587_v3 }
 0x474   :  { %2465 = vset.pattern.permute.xlu1 %v2493_v15  ;;  %2466 = vset.pattern.permute.xlu0 %v3154_v57 }
 0x475   :  { %2065 = vmatmul.mubr.msk.bf16.vlgmr.msra.gmra.mrb[12].mxu1 %vm230_vm1, %v935_v10  ;;  %2068 = vmatmul.mubr.msk.bf16.vlgmr.msra.gmra.mrb[12].mxu0 %vm230_vm1, %v2066_v21 }
 0x476   :  { %2357 = vmatpush3.bf16.msra.mxu1 %v2598_v7  ;;  %2389 = vmatpush3.bf16.msra.mxu0 %v2598_v7 }
 0x477   :  { %2359 = vmatprep.subr.bf16.mxu1 %v2600_v8  ;;  %2391 = vmatprep.subr.bf16.mxu0 %v2600_v8 }
 0x478   :  { %1741 = vperm.xlu1 %2465, %v1129_v49   ;;  %1957 = vperm.xlu0 %2466, %v1129_v49  }
 0x47a   :  { %2361 = vmatpush3.bf16.msra.mxu1 %v2618_v13  ;;  %2393 = vmatpush3.bf16.msra.mxu0 %v2618_v13 }
 0x47b   :  { %2363 = vmatprep.subr.bf16.mxu1 %v2622_v14  ;;  %2395 = vmatprep.subr.bf16.mxu0 %v2622_v14  ;;  %v1117_v14 = vlaneseq }
 0x47c   :  { %2467 = vset.pattern.permute.xlu1 %v2491_v61  ;;  %2468 = vset.pattern.permute.xlu0 %v2491_v61 }
 0x47e   :  { %2365 = vmatpush3.bf16.msra.mxu1 %v2638_v19  ;;  %2397 = vmatpush3.bf16.msra.mxu0 %v2638_v19  ;;  %v1118_v19 = vshrl.u32 %v1117_v14, 7 }
 0x47f   :  { %2367 = vmatprep.subr.bf16.mxu1 %v2642_v20  ;;  %2399 = vmatprep.subr.bf16.mxu0 %v2642_v20 }
 0x480   :  { %v1119_v20 = vsub.s32 0, %v1118_v19 }
 0x482   :  { %2369 = vmatpush3.bf16.msra.mxu1 %v2663_v27  ;;  %2401 = vmatpush3.bf16.msra.mxu0 %v2663_v27  ;;  %v1112_v27 = vpop.permute.xlu1 %1111 }
 0x483   :  { %2371 = vmatprep.subr.bf16.mxu1 %v2667_v28  ;;  %2403 = vmatprep.subr.bf16.mxu0 %v2667_v28 }
 0x486   :  { %2373 = vmatpush3.bf16.msra.mxu1 %v2686_v34  ;;  %2405 = vmatpush3.bf16.msra.mxu0 %v2686_v34 }
 0x487   :  { %2375 = vmatprep.subr.bf16.mxu1 %v2690_v35  ;;  %2407 = vmatprep.subr.bf16.mxu0 %v2690_v35  ;;  %v51_v35 = vld [vmem:[%s3142_s1] sm:$0x3] }
 0x488   :  { %v2959_v30 = vrot.slane %v51_v35, %v1119_v20 }
 0x48a   :  { %2377 = vmatpush3.bf16.msra.mxu1 %v2706_v40  ;;  %2409 = vmatpush3.bf16.msra.mxu0 %v2706_v40  ;;  %v1123_v40 = vsub.s32 1, %v1118_v19 }
 0x48b   :  { %2379 = vmatprep.subr.bf16.mxu1 %v2710_v41  ;;  %2411 = vmatprep.subr.bf16.mxu0 %v2710_v41 }
 0x48c   :  { %v2961_v23 = vrot.slane %v51_v35, %v1123_v40 }
 0x48e   :  { %2381 = vmatpush3.bf16.msra.mxu1 %v2726_v46  ;;  %2413 = vmatpush3.bf16.msra.mxu0 %v2726_v46 }
 0x48f   :  { %2383 = vmatprep.subr.bf16.mxu1 %v2730_v47  ;;  %2415 = vmatprep.subr.bf16.mxu0 %v2730_v47 }
 0x492   :  { %2385 = vmatpush3.bf16.msra.mxu1 %v2742_v51  ;;  %2417 = vmatpush3.bf16.msra.mxu0 %v2742_v51 }
 0x493   :  { %2270 = vmatprep.subr.mxu1 %v2489_v53  ;;  %2280 = vmatprep.subr.mxu0 %v2489_v53 }
 0x4d1   :  { %v986_v3 = vpop.f32.mrb[8].mxu0 }
 0x4d2   :  { %v988_v7 = vpop.f32.mrb[9].mxu0 }
 0x4d3   :  { %v990_v8 = vpop.f32.mrb[10].mxu0 }
 0x4d4   :  { %v991_v13 = vpop.f32.mrb[11].mxu0 }
 0x4ec   :  { %v1579_v63 = vpop.permute.xlu0 %1578  ;;  %v1585_v21 = vpop.permute.xlu1 %1584 }
 0x4f7   :  { %v1742_v19 = vpop.permute.xlu1 %1741 }
 0x548   :  { %v1036_v28 = vpop.f32.mrb[12].mxu1  ;;  %v1099_v34 = vpop.f32.mrb[12].mxu0 }
 0x549   :  { %v1037_v41 = vadd.f32 %v1036_v28, %v986_v3  ;;  %v1038_v46 = vpop.f32.mrb[13].mxu1  ;;  %v1101_v47 = vpop.f32.mrb[13].mxu0 }
 0x54a   :  { %v1039_v51 = vadd.f32 %v1038_v46, %v988_v7  ;;  %v1040_v44 = vpop.f32.mrb[14].mxu1  ;;  %v1103_v50 = vpop.f32.mrb[14].mxu0 }
 0x54b   :  { %v1106_v25 = vadd.f32 %v1099_v34, %v1037_v41  ;;  %v1041_v9 = vpop.f32.mrb[15].mxu1  ;;  %v1104_v16 = vpop.f32.mrb[15].mxu0 }
 0x54c   :  { %v1107_v58 = vadd.f32 %v1101_v47, %v1039_v51 }
 0x54d   :  { %v1114_v37 = vadd.f32 %v1112_v27, %v1106_v25 }
 0x54e   :  { %v1115_v38 = vadd.f32 %v1112_v27, %v1107_v58 }
 0x54f   :  { %v2964_v0 = vmul.f32 %v2959_v30, %v1114_v37 }
 0x550   :  { %v2967_v48 = vmul.f32 %v2961_v23, %v1115_v38 }
 0x551   :  { %v1202_v4 = vmul.f32 %v2964_v0, %v2964_v0 }
 0x552   :  { %1196 = vmatprep.mubr.f32.mxu1 %v2967_v48  ;;  %v1203_v29 = vmul.f32 %v2967_v48, %v2967_v48 }
 0x553   :  { %1197 = vmatmul.mubr.f32.vlgmr.msra.gmra.mrb[10].mxu1 %v2964_v0 }
 0x554   :  { %1268 = vmatprep.mubr.f32.mxu0 %v1203_v29  ;;  %2272 = vmatprep.mubr.msk.f32.mxu1 %vm2490_vm0, %v2489_v53 }
 0x555   :  { %1269 = vmatmul.mubr.f32.vlgmr.msra.gmra.mrb[6].mxu0 %v1202_v4 }
 0x556   :  { %2282 = vmatprep.mubr.msk.f32.mxu0 %vm2490_vm0, %v2489_v53 }
 0x626   :  { %v2204_v39 = vpop.f32.mrb[10].mxu1 }
 0x627   :  { %v2205_v42 = vpop.f32.mrb[11].mxu1 }
 0x628   :  { %v2206_v32 = vadd.f32 %v2205_v42, %v2204_v39  ;;  %v2239_v24 = vpop.f32.mrb[6].mxu0 }
 0x629   :  { %v2240_v43 = vpop.f32.mrb[7].mxu0 }
 0x62a   :  { %v2241_v45 = vadd.f32 %v2240_v43, %v2239_v24  ;;  %2271 = vmatpush3.msk.msra.mxu1 %vm546_vm2, %v2206_v32 }
 0x62b   :  { %2273 = vmatmul.mubr.msk.f32.vlgmr.msra.gmra.mrb[16].mxu1 %vm542_vm3, %v1130_v36  ;;  %2275 = vmatprep.subr.mxu1 %v2489_v53 }
 0x62c   :  { %2276 = vmatpush3.msk.msra.mxu1 %vm546_vm2, %v2241_v45  ;;  %2277 = vmatprep.mubr.msk.f32.mxu1 %vm2490_vm0, %v2489_v53 }
 0x62d   :  { %2285 = vmatprep.subr.mxu1 %v2489_v53 }
 0x62f   :  { %2278 = vmatmul.mubr.msk.f32.vlgmr.msra.gmra.mrb[18].mxu1 %vm542_vm3, %v1130_v36 }
 0x630   :  { %2287 = vmatprep.mubr.msk.f32.mxu1 %vm2490_vm0, %v2489_v53 }
 0x6fe   :  { %v1346_v59 = vpop.f32.mrb[16].mxu1 }
 0x6ff   :  { %v2274_v52 = vpop.f32.mrb[17].mxu1  ;;  %2281 = vmatpush3.msk.msra.mxu0 %vm546_vm2, %v1346_v59  ;;  %v1423_v15 = vmul.f32 %v1346_v59, %v1346_v59 }
 0x700   :  { %2283 = vmatmul.mubr.msk.f32.vlgmr.msra.gmra.mrb[16].mxu0 %vm542_vm3, %v1131_v26  ;;  %2077 = vmatprep.subr.msk.mxu0 %vm546_vm2, %v2788_v12 }
 0x701   :  { %2078 = vmatpush1.msk.msra.mxu0 %vm546_vm2, %v2784_v11  ;;  %1655 = vmatprep.mubr.f32.mxu0 %v2489_v53 }
 0x702   :  { %v1419_v60 = vpop.f32.mrb[18].mxu1 }
 0x703   :  { %v1424_v62 = vsub.f32 %v1419_v60, %v1423_v15  ;;  %v2279_v6 = vpop.f32.mrb[19].mxu1 }
 0x705   :  { %v1425_v17 = vmax.f32 %v1424_v62, 0.0  ;;  %v3155_v62 = vmov 2475754826  }
 0x707   :  { %2286 = vmatpush3.msk.msra.mxu1 %vm546_vm2, %v1425_v17 }
 0x708   :  { %2288 = vmatmul.mubr.msk.f32.vlgmr.msra.gmra.mrb[20].mxu1 %vm542_vm3, %v1131_v26  ;;  %2080 = vmatprep.subr.msk.mxu1 %vm546_vm2, %v2788_v12 }
 0x709   :  { %2081 = vmatpush1.msk.msra.mxu1 %vm546_vm2, %v2784_v11  ;;  %1729 = vmatprep.mubr.f32.mxu1 %v2489_v53  ;;  %v1967_v53 = vld [vmem:[%s3146_s13] sm:$0x3] }
 0x70a   :  { %1970 = vperm.xlu1 %2467, %v1967_v53  }
 0x7d3   :  { %v1498_v1 = vpop.f32.mrb[16].mxu0 }
 0x7d4   :  { %v2284_v22 = vpop.f32.mrb[17].mxu0 }
 0x7db   :  { %v1571_v55 = vpop.f32.mrb[20].mxu1 }
 0x7dc   :  { %v1572_v2 = vadd.f32 1e-05, %v1571_v55  ;;  %v2289_v5 = vpop.f32.mrb[21].mxu1  ;;  %v3156_v55 = vmov 2131351028  }
 0x7de   :  { %2479 = vrsqrt.f32 %v1572_v2 }
 0x7e8   :  { %v2480_v56 = vpop.eup %2479 }
 0x7e9   :  { %v1581_v10 = vmul.f32 %v2480_v56, %v1579_v63 }
 0x7eb   :  { %v1582_v3 = vmul.f32 %v1581_v10, %v1498_v1  ;;  %2079 = vmatmul.mubr.msk.f32.vlgmr.msra.gmra.mrb[18].mxu0 %vm542_vm3, %v1581_v10 }
 0x7ec   :  { %2015 = vmatprep.mubr.bf16.mxu0 %v2491_v61 }
 0x7ed   :  { %v1587_v12 = vsub.f32 %v1585_v21, %v1582_v3 }
 0x7ef   :  { %2082 = vmatmul.mubr.msk.f32.vlgmr.msra.gmra.mrb[22].mxu1 %vm542_vm3, %v1587_v12 }
 0x8be   :  { %v1657_v11 = vpop.f32.mrb[18].mxu0 }
 0x8bf   :  { %v1659_v7 = vpop.f32.mrb[19].mxu0  ;;  %v1736_v8 = vmul.f32 %v1657_v11, %v2964_v0 }
 0x8c0   :  { %v1737_v13 = vmul.f32 %v1659_v7, %v2967_v48 }
 0x8c2   :  { %v1731_v14 = vpop.f32.mrb[22].mxu1 }
 0x8c3   :  { %v3024_v20 = vadd.f32 %v1736_v8, %v1731_v14  ;;  %v1733_v27 = vpop.f32.mrb[23].mxu1 }
 0x8c4   :  { %v3026_v61 = vadd.f32 %v1737_v13, %v1733_v27 }
 0x8c5   :  { %v3029_v28 = vmul.f32 %v1742_v19, %v3024_v20 }
 0x8c6   :  { %v3032_v34 = vmul.f32 %v1742_v19, %v3026_v61 }
 0x8c7   :  { %v1749_v35 = vand.u32 2139095040, %v3029_v28  ;;  %v1746_v40 = vand.u32 2147483647, %v3029_v28  ;;  %vm1748_vm8 = vcmp.lt.s32.totalorder %v3029_v28, 0 }
 0x8c8   :  { %v1853_v41 = vand.u32 2139095040, %v3032_v34  ;;  %v1850_v50 = vand.u32 2147483647, %v3032_v34 }
 0x8c9   :  { %v1750_v46 = vshrl.u32 %v1749_v35, 23  ;;  %v1753_v44 = vand.u32 8388607, %v1746_v40 }
 0x8ca   :  { %v1854_v47 = vshrl.u32 %v1853_v41, 23  ;;  %v3042_v37 = vand.u32 8388607, %v1850_v50 }
 0x8cb   :  { %v2083_v51 = vadd.s32 4294967169, %v1750_v46  ;;  %v1754_v58 = vor.u32 8388608, %v1753_v44 }
 0x8cc   :  { %v2087_v25 = vadd.s32 4294967169, %v1854_v47  ;;  %v1858_v24 = vor.u32 8388608, %v3042_v37 }
 0x8cd   :  { %v1756_v9 = vadd.s32 1, %v2083_v51  ;;  %v3046_v32 = vshll.u32 %v1754_v58, 8 }
 0x8ce   :  { %v1860_v16 = vadd.s32 1, %v2087_v25 }
 0x8cf   :  { %vm1757_vm0 = vcmp.gt.s32.totalorder %v1756_v9, 0 }
 0x8d0   :  { %v1758_v38 = vsel %vm1757_vm0, %v1756_v9, 0  ;;  %vm1861_vm1 = vcmp.gt.s32.totalorder %v1860_v16, 0  ;;  %vm1747_vm0 = vcmp.le.f32.partialorder %v1746_v40, 0.7853982 }
 0x8d1   :  { %v1759_v0 = vshrl.u32 %v1758_v38, 5  ;;  %v1760_v48 = vand.u32 31, %v1758_v38  ;;  %v1862_v29 = vsel %vm1861_vm1, %v1860_v16, 0  ;;  %vm1852_vm1 = vcmp.lt.s32.totalorder %v3032_v34, 0 }
 0x8d2   :  { %v1864_v4 = vand.u32 31, %v1862_v29  ;;  %v3044_v42 = vshrl.u32 %v1862_v29, 5 }
 0x8d3   :  { %v1761_v39 = vsub.s32 32, %v1760_v48  ;;  %v1772_v36 = vshll.u32 %v2498_v31, %v1760_v48  ;;  %v1775_v43 = vshll.u32 %v2499_v33, %v1760_v48  ;;  %vm1781_vm2 = vcmp.lt.s32.totalorder %v1759_v0, 4 }
 0x8d4   :  { %v1865_v45 = vsub.s32 32, %v1864_v4  ;;  %v1876_v59 = vshll.u32 %v2498_v31, %v1864_v4  ;;  %v1879_v52 = vshll.u32 %v2499_v33, %v1864_v4  ;;  %v1763_v60 = vshll.u32 %v2495_v18, %v1760_v48 }
 0x8d5   :  { %v1773_v49 = vshrl.u32 %v2499_v33, %v1761_v39  ;;  %v1776_v57 = vshrl.u32 %v2500_v54, %v1761_v39  ;;  %v1764_v6 = vshrl.u32 %v3155_v62, %v1761_v39  ;;  %v1766_v22 = vshll.u32 %v3155_v62, %v1760_v48 }
 0x8d6   :  { %v1877_v26 = vshrl.u32 %v2499_v33, %v1865_v45  ;;  %v1880_v15 = vshrl.u32 %v2500_v54, %v1865_v45  ;;  %v1767_v2 = vshrl.u32 %v3156_v55, %v1761_v39  ;;  %vm1885_vm9 = vcmp.lt.s32.totalorder %v3044_v42, 4 }
 0x8d7   :  { %v1774_v17 = vor.u32 %v1773_v49, %v1772_v36  ;;  %v1777_v1 = vor.u32 %v1776_v57, %v1775_v43  ;;  %v1765_v5 = vor.u32 %v1764_v6, %v1763_v60  ;;  %v1769_v63 = vshll.u32 %v3156_v55, %v1760_v48 }
 0x8d8   :  { %v1770_v56 = vshrl.u32 %v2498_v31, %v1761_v39  ;;  %v1762_v10 = vshrl.u32 %v2495_v18, %v1761_v39  ;;  %v1768_v21 = vor.u32 %v1767_v2, %v1766_v22  ;;  %v1878_v3 = vor.u32 %v1877_v26, %v1876_v59 }
 0x8d9   :  { %v1787_v33 = vsel %vm1781_vm2, %v1774_v17, 920167782  ;;  %v1791_v54 = vsel %vm1781_vm2, %v1777_v1, 1326507024  ;;  %v1881_v12 = vor.u32 %v1880_v15, %v1879_v52  ;;  %vm1778_vm10 = vcmp.lt.s32.totalorder %v1759_v0, 1 }
 0x8da   :  { %v1771_v53 = vor.u32 %v1770_v56, %v1769_v63  ;;  %vm1779_vm11 = vcmp.lt.s32.totalorder %v1759_v0, 2  ;;  %vm1780_vm12 = vcmp.lt.s32.totalorder %v1759_v0, 3  ;;  %v1782_v11 = vsel %vm1778_vm10, %v1762_v10, %v1765_v5 }
 0x8db   :  { %v1786_v7 = vsel %vm1778_vm10, %v1765_v5, %v1768_v21  ;;  %v1792_v19 = vsel %vm1780_vm12, %v1774_v17, %v1791_v54  ;;  %v1867_v46 = vshll.u32 %v2495_v18, %v1864_v4  ;;  %v1868_v25 = vshrl.u32 %v3155_v62, %v1865_v45 }
 0x8dc   :  { %v1783_v8 = vsel %vm1781_vm2, %v1771_v53, 2102212464  ;;  %v1788_v13 = vsel %vm1780_vm12, %v1771_v53, %v1787_v33  ;;  %v1790_v14 = vsel %vm1778_vm10, %v1768_v21, %v1771_v53  ;;  %v1895_v9 = vsel %vm1885_vm9, %v1881_v12, 1326507024 }
 0x8dd   :  { %v1784_v27 = vsel %vm1780_vm12, %v1768_v21, %v1783_v8  ;;  %v1789_v35 = vsel %vm1779_vm11, %v1786_v7, %v1788_v13  ;;  %v1793_v41 = vsel %vm1779_vm11, %v1790_v14, %v1792_v19  ;;  %v1870_v37 = vshll.u32 %v3155_v62, %v1864_v4 }
 0x8de   :  { %v1785_v47 = vsel %vm1779_vm11, %v1782_v11, %v1784_v27  ;;  %v3070_v51 = vmul.u32.u64.low %v3046_v32, %v1793_v41  ;;  %v3071_v44 = vmul.u32.u64.high %v3046_v32, %v1793_v41, %v3070_v51  ;;  %v1869_v38 = vor.u32 %v1868_v25, %v1867_v46 }
 0x8df   :  { %v3077_v16 = vmul.u32.u64.low %v3046_v32, %v1789_v35  ;;  %v3078_v58 = vmul.u32.u64.high %v3046_v32, %v1789_v35, %v3077_v16  ;;  %v1871_v0 = vshrl.u32 %v3156_v55, %v1865_v45  ;;  %v1873_v48 = vshll.u32 %v3156_v55, %v1864_v4 }
 0x8e0   :  { %v1874_v29 = vshrl.u32 %v2498_v31, %v1865_v45  ;;  %v1891_v39 = vsel %vm1885_vm9, %v1878_v3, 920167782  ;;  %v1801_v36 = vmul.u32 %v3046_v32, %v1785_v47  ;;  %v1866_v43 = vshrl.u32 %v2495_v18, %v1865_v45 }
 0x8e1   :  { %v1898_v49 = vshll.u32 %v1858_v24, 8  ;;  %vm1803_vm13 = vc.u32 %v3071_v44, %v3077_v16  ;;  %v1872_v57 = vor.u32 %v1871_v0, %v1870_v37  ;;  %vm1884_vm14 = vcmp.lt.s32.totalorder %v3044_v42, 3 }
 0x8e2   :  { %v1875_v59 = vor.u32 %v1874_v29, %v1873_v48  ;;  %v1804_v52 = vadd.s32 1, %v3078_v58  ;;  %vm1882_vm15 = vcmp.lt.s32.totalorder %v3044_v42, 1  ;;  %vm1883_vm4 = vcmp.lt.s32.totalorder %v3044_v42, 2 }
 0x8e3   :  { %v1896_v31 = vsel %vm1884_vm14, %v1878_v3, %v1895_v9  ;;  %v1890_v32 = vsel %vm1882_vm15, %v1869_v38, %v1872_v57  ;;  %v1886_v45 = vsel %vm1882_vm15, %v1866_v43, %v1869_v38  ;;  %v1802_v35 = vadd.s32 %v3077_v16, %v3071_v44 }
 0x8e4   :  { %v1887_v4 = vsel %vm1885_vm9, %v1875_v59, 2102212464  ;;  %v1892_v26 = vsel %vm1884_vm14, %v1875_v59, %v1891_v39  ;;  %v1894_v18 = vsel %vm1882_vm15, %v1872_v57, %v1875_v59  ;;  %v1805_v24 = vsel %vm1803_vm13, %v1804_v52, %v3078_v58 }
 0x8e5   :  { %v1893_v15 = vsel %vm1883_vm4, %v1890_v32, %v1892_v26  ;;  %v1897_v60 = vsel %vm1883_vm4, %v1894_v18, %v1896_v31  ;;  %v1806_v62 = vadd.s32 %v1805_v24, %v1801_v36  ;;  %v1888_v6 = vsel %vm1884_vm14, %v1872_v57, %v1887_v4 }
 0x8e6   :  { %v3100_v17 = vmul.u32.u64.low %v1898_v49, %v1897_v60  ;;  %v3101_v1 = vmul.u32.u64.high %v1898_v49, %v1897_v60, %v3100_v17  ;;  %v3103_v22 = vmul.u32.u64.low %v1898_v49, %v1893_v15  ;;  %v3104_v55 = vmul.u32.u64.high %v1898_v49, %v1893_v15, %v3103_v22 }
 0x8e7   :  { %v1807_v2 = vadd.s32 536870912, %v1806_v62  ;;  %v1889_v5 = vsel %vm1883_vm4, %v1886_v45, %v1888_v6  ;;  %vm1851_vm2 = vcmp.le.f32.partialorder %v1850_v50, 0.7853982  ;;  %vm1838_vm12 = vweird.f32 %v3029_v28 }
 0x8e8   :  { %vm1907_vm5 = vc.u32 %v3101_v1, %v3103_v22  ;;  %v1908_v56 = vadd.s32 1, %v3104_v55  ;;  %v1905_v54 = vmul.u32 %v1898_v49, %v1889_v5  ;;  %v1906_v43 = vadd.s32 %v3103_v22, %v3101_v1 }
 0x8e9   :  { %v1808_v63 = vshrl.u32 %v1807_v2, 30  ;;  %vm1942_vm4 = vweird.f32 %v3032_v34 }
 0x8ea   :  { %v1909_v10 = vsel %vm1907_vm5, %v1908_v56, %v3104_v55  ;;  %vm1976_vm5 = vcmask 1040384  }
 0x8eb   :  { %v1809_v33 = vshll.u32 %v1808_v63, 30  ;;  %v1910_v3 = vadd.s32 %v1909_v10, %v1905_v54  ;;  %v1832_v16 = vsub.s32 4, %v1808_v63 }
 0x8ed   :  { %v1810_v21 = vsub.s32 %v1806_v62, %v1809_v33  ;;  %v1911_v53 = vadd.s32 536870912, %v1910_v3  ;;  %v1833_v24 = vsel %vm1748_vm8, %v1832_v16, %v1808_v63 }
 0x8ee   :  { %v1835_v60 = vsel %vm1747_vm0, 0, %v1833_v24 }
 0x8ef   :  { %v1812_v12 = vsub.s32 0, %v1810_v21  ;;  %v1912_v7 = vshrl.u32 %v1911_v53, 30  ;;  %v1839_v22 = vadd.s32 3, %v1835_v60 }
 0x8f1   :  { %v2084_v11 = vmin.u32 %v1812_v12, %v1810_v21  ;;  %v1913_v13 = vshll.u32 %v1912_v7, 30  ;;  %v1936_v1 = vsub.s32 4, %v1912_v7  ;;  %v1840_v5 = vand.u32 3, %v1839_v22 }
 0x8f3   :  { %v1814_v8 = vclz %v2084_v11  ;;  %v1914_v42 = vsub.s32 %v1910_v3, %v1913_v13  ;;  %v1937_v2 = vsel %vm1852_vm1, %v1936_v1, %v1912_v7  ;;  %vm1845_vm9 = vcmp.eq.s32.totalorder %v1840_v5, 2  ;;  %v1958_v7 = vpop.permute.xlu0 %1957 }
 0x8f4   :  { %v1939_v33 = vsel %vm1851_vm2, 0, %v1937_v2  ;;  %vm1842_vm10 = vcmp.eq.s32.totalorder %v1840_v5, 0  ;;  %vm1841_vm11 = vcmp.lt.s32.totalorder %v1840_v5, 2 }
 0x8f5   :  { %v2085_v14 = vadd.s32 4294967294, %v1814_v8  ;;  %v1916_v27 = vsub.s32 0, %v1914_v42  ;;  %v1943_v12 = vadd.s32 3, %v1939_v33 }
 0x8f7   :  { %vm2086_vm6 = vcmp.lt.s32.totalorder %v2085_v14, 0  ;;  %v2088_v47 = vmin.u32 %v1916_v27, %v1914_v42  ;;  %v1944_v8 = vand.u32 3, %v1943_v12 }
 0x8f8   :  { %v1817_v19 = vsel %vm2086_vm6, 0, %v2085_v14 }
 0x8f9   :  { %v1818_v41 = vsub.s32 32, %v1817_v19  ;;  %v1822_v46 = vsub.s32 4294967266, %v1817_v19  ;;  %v1819_v51 = vshll.u32 %v1810_v21, %v1817_v19  ;;  %v1918_v58 = vclz %v2088_v47 }
 0x8fa   :  { %vm1949_vm13 = vcmp.eq.s32.totalorder %v1944_v8, 2  ;;  %vm1946_vm14 = vcmp.eq.s32.totalorder %v1944_v8, 0  ;;  %vm1945_vm15 = vcmp.lt.s32.totalorder %v1944_v8, 2 }
 0x8fb   :  { %v1820_v25 = vshrl.u32 %v1802_v35, %v1818_v41  ;;  %v1823_v9 = vadd.s32 127, %v1822_v46  ;;  %v2089_v0 = vadd.s32 4294967294, %v1918_v58 }
 0x8fd   :  { %v1821_v37 = vor.u32 %v1820_v25, %v1819_v51  ;;  %v1824_v38 = vshll.u32 %v1823_v9, 23  ;;  %vm2090_vm7 = vcmp.lt.s32.totalorder %v2089_v0, 0 }
 0x8fe   :  { %v1921_v36 = vsel %vm2090_vm7, 0, %v2089_v0 }
 0x8ff   :  { %v1825_v48 = vor.u32 4788187, %v1824_v38  ;;  %v1828_v39 = vcvt.s32.f32 %v1821_v37  ;;  %v1922_v49 = vsub.s32 32, %v1921_v36  ;;  %v1926_v57 = vsub.s32 4294967266, %v1921_v36 }
 0x900   :  { %v1923_v59 = vshll.u32 %v1914_v42, %v1921_v36 }
 0x901   :  { %v1826_v29 = vand.u32 2147483647, %v1825_v48  ;;  %v1924_v52 = vshrl.u32 %v1906_v43, %v1922_v49  ;;  %v1927_v31 = vadd.s32 127, %v1926_v57  ;;  %v1964_v48 = vld [vmem:[%s3147_s12] sm:$0x1] }
 0x903   :  { %v1829_v44 = vmul.f32 %v1828_v39, %v1826_v29  ;;  %v1925_v32 = vor.u32 %v1924_v52, %v1923_v59  ;;  %v1928_v26 = vshll.u32 %v1927_v31, 23 }
 0x905   :  { %v1830_v4 = vxor.u32 2147483648, %v1829_v44  ;;  %v1929_v15 = vor.u32 4788187, %v1928_v26  ;;  %v1932_v6 = vcvt.s32.f32 %v1925_v32 }
 0x907   :  { %v1831_v18 = vsel %vm1748_vm8, %v1830_v4, %v1829_v44  ;;  %v1930_v62 = vand.u32 2147483647, %v1929_v15 }
 0x908   :  { %v1834_v45 = vsel %vm1747_vm0, %v3029_v28, %v1831_v18 }
 0x909   :  { %2481 = vcosq.f32 %v1834_v45  ;;  %v1933_v17 = vmul.f32 %v1932_v6, %v1930_v62 }
 0x90a   :  { %2483 = vsinq.f32 %v1834_v45 }
 0x90b   :  { %v1934_v55 = vxor.u32 2147483648, %v1933_v17 }
 0x90d   :  { %v1935_v40 = vsel %vm1852_vm1, %v1934_v55, %v1933_v17 }
 0x90e   :  { %v1938_v63 = vsel %vm1851_vm2, %v3032_v34, %v1935_v40  ;;  %v1971_v34 = vpop.permute.xlu1 %1970 }
 0x90f   :  { %2485 = vcosq.f32 %v1938_v63 }
 0x910   :  { %2487 = vsinq.f32 %v1938_v63 }
 0x913   :  { %v2482_v56 = vpop.eup %2481 }
 0x914   :  { %v2484_v54 = vpop.eup %2483  ;;  %v1846_v10 = vxor.u32 2147483648, %v2482_v56 }
 0x915   :  { %v1843_v21 = vxor.u32 2147483648, %v2484_v54 }
 0x916   :  { %v1847_v3 = vsel %vm1845_vm9, %v1846_v10, %v2484_v54 }
 0x917   :  { %v1844_v53 = vsel %vm1842_vm10, %v2482_v56, %v1843_v21 }
 0x918   :  { %v1848_v50 = vsel %vm1841_vm11, %v1844_v53, %v1847_v3 }
 0x919   :  { %v1849_v11 = vsel %vm1838_vm12, nan, %v1848_v50  ;;  %v2486_v14 = vpop.eup %2485 }
 0x91a   :  { %v1954_v13 = vmul.f32 %v1849_v11, %v1849_v11  ;;  %v2488_v42 = vpop.eup %2487  ;;  %v1950_v19 = vxor.u32 2147483648, %v2486_v14 }
 0x91b   :  { %v1947_v35 = vxor.u32 2147483648, %v2488_v42 }
 0x91c   :  { %v1960_v27 = vmul.f32 %v1958_v7, %v1954_v13  ;;  %v1951_v41 = vsel %vm1949_vm13, %v1950_v19, %v2488_v42 }
 0x91d   :  { %v1948_v46 = vsel %vm1946_vm14, %v2486_v14, %v1947_v35 }
 0x91e   :  { %v1952_v47 = vsel %vm1945_vm15, %v1948_v46, %v1951_v41  ;;  %v1962_v28 = vadd.f32 %v1960_v27, %v3024_v20 }
 0x91f   :  { %v1953_v51 = vsel %vm1942_vm4, nan, %v1952_v47 }
 0x920   :  { %v1955_v25 = vmul.f32 %v1953_v51, %v1953_v51  ;;  %v1965_v58 = vpack.c.bf16 %v1962_v28, %v1962_v28 }
 0x922   :  { %v1961_v9 = vmul.f32 %v1958_v7, %v1955_v25  ;;  %v1978_v0 = vsel %vm1976_vm5, %v1965_v58, 0 }
 0x924   :  { %v1963_v37 = vadd.f32 %v1961_v9, %v3026_v61 }
 0x926   :  { %v1966_v38 = vpack.c.bf16 %v1963_v37, %v1963_v37 }
 0x928   :  { %2091 = vmatprep.subr.msk.bf16.mxu0 %vm1976_vm5, %v1966_v38 }
 0x929   :  { %1984 = vmatpush1.bf16.msra.mxu0 %v1978_v0 }
 0x92c   :  { %2092 = vmatmul.mubr.msk.bf16.vlgmr.msra.gmra.mrb[20].mxu0 %vm542_vm3, %v1964_v48 }
 0x9ff   :  { %v2017_v29 = vpop.f32.mrb[20].mxu0 }
 0xa00   :  { %v2019_v20 = vpop.f32.mrb[21].mxu0  ;;  %v2018_v39 = vadd.f32 %v2017_v29, %v1971_v34 }
 0xa01   :  { %v2021_v36 = vpop.f32.mrb[22].mxu0  ;;  %v2020_v43 = vadd.f32 %v2019_v20, %v1971_v34 }
 0xa02   :  { %v2024_v49 = vmul.f32 %v2018_v39, %v2959_v30  ;;  %v2022_v57 = vpop.f32.mrb[23].mxu0 }
 0xa03   :  { %v2025_v61 = vmul.f32 %v2020_v43, %v2961_v23 }
 0xa05   :  { %v2028_v44 = vcombine.low %v2024_v49, %v2025_v61 }
 0xa07   :  { %2093 = vst.sshfl [vmem:[%s3148_s14] sm:$0x33 pattern:$0x76325410] %v2028_v44 }

</bundles_post_ra>
